<compile_context>
chip_gen: v7x
topology: tpu7x:2x2x1
jax: 0.10.0
libtpu: 0.0.40
codegen_flags: <defaults>
</compile_context>

<pallas_src>
import functools

import numpy as np
import jax
import jax.numpy as jnp
from jax.experimental import pallas as pl
from jax.experimental.pallas import tpu as pltpu

FACE = 128        # AttributeRecognitionCNN input resolution (Resize((128,128)))
C1, C2 = 8, 16    # conv channel widths of the attribute CNN


# ----------------------------------------------------------------------------
# Shared in-kernel fused conv3x3 ('same') + 2x2 max-pool (banded matmul form)
# ----------------------------------------------------------------------------
def _conv_pool_compute(x_ref, rhs_ref, *, nf, Hh, half):
    """x_ref  : (nf, 2, G, K) bf16 zero-padded input, padded-row parity split,
                lanes = (W+2)*Cin;  G = (H+2)//2, K = (W+2)*Cin.
       rhs_ref: (3, K, 2*half) bf16 banded conv weights, output columns of
                even / odd spatial positions mapped to low / high lane half.
       returns (nf, Hh, half) f32 pooled pre-activation, Hh = H//2,
                half = (W//2)*Cout.

       Parity mapping (output-row parity a, kernel-row tap di):
         plane p = (a+di) % 2, row offset g0 = (a+di) // 2
       -> tap 0 and tap 2 use the SAME row window for both parities, so both
          parities (and all faces) collapse into one big-M matmul via a
          leading-dim reshape; tap 1 needs one half-M matmul per parity."""
    k = x_ref.shape[3]
    nout = rhs_ref.shape[2]

    # tap di=0: both parities, rows 0:Hh       -> one (nf*2*Hh, K) dot
    lhs_t0 = x_ref[:, :, 0:Hh, :].reshape(nf * 2 * Hh, k)
    r0 = jnp.dot(lhs_t0, rhs_ref[0],
                 preferred_element_type=jnp.float32).reshape(nf, 2, Hh, nout)
    # tap di=2: both parities, rows 1:1+Hh     -> one (nf*2*Hh, K) dot
    lhs_t2 = x_ref[:, :, 1:1 + Hh, :].reshape(nf * 2 * Hh, k)
    r2 = jnp.dot(lhs_t2, rhs_ref[2],
                 preferred_element_type=jnp.float32).reshape(nf, 2, Hh, nout)
    # tap di=1: (plane 1, rows 0:Hh) -> out parity 0 ; (plane 0, rows 1:1+Hh) -> parity 1
    lhs_t1a = x_ref[:, 1, 0:Hh, :].reshape(nf * Hh, k)
    lhs_t1b = x_ref[:, 0, 1:1 + Hh, :].reshape(nf * Hh, k)
    r1a = jnp.dot(lhs_t1a, rhs_ref[1],
                  preferred_element_type=jnp.float32).reshape(nf, Hh, nout)
    r1b = jnp.dot(lhs_t1b, rhs_ref[1],
                  preferred_element_type=jnp.float32).reshape(nf, Hh, nout)

    acc0 = r0[:, 0] + r2[:, 0] + r1a          # output rows of even parity
    acc1 = r0[:, 1] + r2[:, 1] + r1b          # output rows of odd parity
    # max-pool along W: aligned lane halves; along H: the two row parities.
    w0 = jnp.maximum(acc0[..., :half], acc0[..., half:])
    w1 = jnp.maximum(acc1[..., :half], acc1[..., half:])
    return jnp.maximum(w0, w1)                # (nf, Hh, half) f32


# ----------------------------------------------------------------------------
# Kernel A: conv + bias + ReLU + maxpool   (all faces of one image / grid step)
# ----------------------------------------------------------------------------
def _conv_pool_kernel(x_ref, rhs_ref, b_ref, o_ref, *, nf, Hh, half):
    pooled = _conv_pool_compute(x_ref, rhs_ref, nf=nf, Hh=Hh, half=half)
    o_ref[...] = jnp.maximum(pooled + b_ref[...], 0.0).astype(o_ref.dtype)


def conv_pool_layer(xp, rhs, bias_t, *, n_img, nf, Hh, half):
    _, _, g, k = xp.shape
    nout = rhs.shape[2]
    return pl.pallas_call(
        functools.partial(_conv_pool_kernel, nf=nf, Hh=Hh, half=half),
        out_shape=jax.ShapeDtypeStruct((n_img * nf, Hh, half), jnp.bfloat16),
        grid_spec=pltpu.PrefetchScalarGridSpec(
            num_scalar_prefetch=0,
            grid=(n_img,),
            in_specs=[
                pl.BlockSpec((nf, 2, g, k), lambda i: (i, 0, 0, 0)),
                pl.BlockSpec((3, k, nout), lambda i: (0, 0, 0)),
                pl.BlockSpec((1, half), lambda i: (0, 0)),
            ],
            out_specs=pl.BlockSpec((nf, Hh, half), lambda i: (i, 0, 0)),
        ),
        compiler_params=pltpu.CompilerParams(
            dimension_semantics=("parallel",),
            vmem_limit_bytes=32 * 1024 * 1024,
        ),
    )(xp, rhs, bias_t)


# ----------------------------------------------------------------------------
# Kernel B: conv + bias + ReLU + maxpool + GAP + FC + per-image face mean
#           grid = (batch,) ; all F faces of the image handled in one step.
# ----------------------------------------------------------------------------
def _conv_pool_head_kernel(x_ref, rhs_ref, b_ref, wg_ref, bfc_ref, o_ref, *,
                           nf, Hh, half):
    pooled = _conv_pool_compute(x_ref, rhs_ref, nf=nf, Hh=Hh, half=half)
    act = jnp.maximum(pooled + b_ref[...], 0.0)                  # (nf, Hh, half) f32
    # GAP + FC + (1/F) face-mean folded into one matmul: wg already contains
    # tile(wfc) / (spatial * F) padded to 128 lanes, so summing all rows of the
    # projection over every face gives this image's attribute mean directly.
    proj = jnp.dot(act.reshape(nf * Hh, half), wg_ref[...],
                   preferred_element_type=jnp.float32)           # (nf*Hh, A_pad)
    o_ref[0] = jnp.sum(proj, axis=0, keepdims=True) + bfc_ref[...]


def conv_pool_head(xp, rhs, bias_t, wg, bfc_pad, *, batch, nf, Hh, half):
    _, _, g, k = xp.shape
    nout = rhs.shape[2]
    a_pad = wg.shape[1]
    out = pl.pallas_call(
        functools.partial(_conv_pool_head_kernel, nf=nf, Hh=Hh, half=half),
        out_shape=jax.ShapeDtypeStruct((batch, 1, a_pad), jnp.float32),
        grid_spec=pltpu.PrefetchScalarGridSpec(
            num_scalar_prefetch=0,
            grid=(batch,),
            in_specs=[
                pl.BlockSpec((nf, 2, g, k), lambda b: (b, 0, 0, 0)),
                pl.BlockSpec((3, k, nout), lambda b: (0, 0, 0)),
                pl.BlockSpec((1, half), lambda b: (0, 0)),
                pl.BlockSpec((half, a_pad), lambda b: (0, 0)),
                pl.BlockSpec((1, a_pad), lambda b: (0, 0)),
            ],
            out_specs=pl.BlockSpec((1, 1, a_pad), lambda b: (b, 0, 0)),
        ),
        compiler_params=pltpu.CompilerParams(
            dimension_semantics=("parallel",),
            vmem_limit_bytes=32 * 1024 * 1024,
        ),
    )(xp, rhs, bias_t, wg, bfc_pad)
    return out.reshape(batch, a_pad)


# ----------------------------------------------------------------------------
# Layout / weight preparation helpers
# ----------------------------------------------------------------------------
def to_parity_planes(x_nhwc, dtype=jnp.bfloat16):
    """(N,H,W,C) -> (N, 2, (H+2)//2, (W+2)*C) bf16: zero-pad by 1, split
    padded-row parity into a plane axis, merge (W, C) into the lane axis."""
    n, h, w, c = x_nhwc.shape
    xp = jnp.pad(x_nhwc.astype(dtype), ((0, 0), (1, 1), (1, 1), (0, 0)))
    xp = xp.reshape(n, (h + 2) // 2, 2, (w + 2) * c)
    return jnp.transpose(xp, (0, 2, 1, 3))


def build_banded_rhs(w, width, dtype=jnp.bfloat16):
    """Embed a 3x3 conv weight (3,3,Cin,Cout) into 3 banded matrices
    ((W+2)*Cin, W*Cout), one per kernel-row tap, with even/odd output columns
    routed to the low/high lane half (so max-pool along W is an aligned slice)."""
    w = np.asarray(w, np.float32)
    _, _, cin, cout = w.shape
    half = (width // 2) * cout
    rhs = np.zeros((3, (width + 2) * cin, width * cout), np.float32)
    for di in range(3):
        for dj in range(3):
            for j in range(width):
                src = j + dj                                # padded input column
                dst = (j % 2) * half + (j // 2) * cout      # parity-permuted output col
                rhs[di, src * cin:(src + 1) * cin, dst:dst + cout] = w[di, dj]
    return jnp.asarray(rhs, dtype)


# ----------------------------------------------------------------------------
# AttributeRecognitionCNN forward (two fused pallas_calls)
# ----------------------------------------------------------------------------
def attribute_cnn(faces, params, *, batch, faces_per_img):
    n = faces.shape[0]
    assert n == batch * faces_per_img

    # layer 1: 128x128x3 -> 64x64x8  (output lane-dense bf16: (N, 64, 512))
    x1 = to_parity_planes(faces)                                     # (N, 2, 65, 390)
    y1 = conv_pool_layer(x1, params["rhs1"], params["b1t"],
                         n_img=batch, nf=faces_per_img,
                         Hh=FACE // 2, half=(FACE // 2) * C1)        # (N, 64, 512)

    # layer 2 + GAP + FC + per-image face mean: -> (B, A_pad)
    a1 = y1.reshape(n, FACE // 2, FACE // 2, C1)
    x2 = to_parity_planes(a1)                                        # (N, 2, 33, 528)
    return conv_pool_head(x2, params["rhs2"], params["b2t"],
                          params["wgp"], params["bfcp"],
                          batch=batch, nf=faces_per_img,
                          Hh=FACE // 4, half=(FACE // 4) * C2)


# ----------------------------------------------------------------------------
# FacialAttributeDetection forward
# ----------------------------------------------------------------------------
def facial_attribute_detection(x_nchw, params, num_attributes):
    b = x_nchw.shape[0]
    x_nhwc = jnp.transpose(x_nchw, (0, 2, 3, 1)).astype(jnp.float32)
    h, w = x_nhwc.shape[1], x_nhwc.shape[2]

    # TODO(synk): MTCNN face detection is an external pretrained detector with
    # data-dependent, per-image variable numbers of boxes (and an empty-detection
    # branch); simulated here with two fixed boxes per image.
    boxes = [(0, 0, w // 2, h // 2), (w // 4, h // 4, w // 2, h // 2)]   # (x, y, w, h)
    f = len(boxes)

    # Batched crop + bilinear resize + Normalize(mean=0.5, std=0.5) for all B*F faces.
    crops = jnp.stack(
        [x_nhwc[:, y0:y0 + hh, x0:x0 + ww, :] for (x0, y0, ww, hh) in boxes], axis=1
    ).reshape(b * f, h // 2, w // 2, 3)
    faces = jax.image.resize(crops, (b * f, FACE, FACE, 3), method="bilinear")
    faces = (faces - 0.5) / 0.5

    attrs = attribute_cnn(faces, params, batch=b, faces_per_img=f)   # (B, A_pad)
    attrs = attrs[:, :num_attributes]                                # drop lane padding
    all_bounding_boxes = [
        [[x0, y0, x0 + ww, y0 + hh] for (x0, y0, ww, hh) in boxes] for _ in range(b)
    ]
    return attrs, all_bounding_boxes


# ----------------------------------------------------------------------------
# Deterministic parameter init (+ pre-baked kernel operands)
# ----------------------------------------------------------------------------
def init_params(key, num_attributes, faces_per_img=2):
    ks = jax.random.split(key, 5)
    w1 = jax.random.normal(ks[0], (3, 3, 3, C1), jnp.float32) * 0.1
    b1 = jax.random.normal(ks[1], (C1,), jnp.float32) * 0.01
    w2 = jax.random.normal(ks[2], (3, 3, C1, C2), jnp.float32) * 0.05
    b2 = jax.random.normal(ks[3], (C2,), jnp.float32) * 0.01
    wfc = jax.random.normal(ks[4], (C2, num_attributes), jnp.float32) * 0.1
    bfc = jnp.zeros((num_attributes,), jnp.float32)
    params = {"wfc": wfc, "bfc": bfc}

    # banded bf16 conv weights (parity-permuted output cols) + lane-tiled biases
    params["rhs1"] = build_banded_rhs(w1, FACE)             # (3, 390, 1024) bf16
    params["rhs2"] = build_banded_rhs(w2, FACE // 2)        # (3, 528, 1024) bf16
    params["b1t"] = jnp.tile(b1, FACE // 2).reshape(1, (FACE // 2) * C1)
    params["b2t"] = jnp.tile(b2, FACE // 4).reshape(1, (FACE // 4) * C2)

    # Head weights pre-baked at init: GAP + FC + (1/F) face-mean folded into a
    # single lane-dense (A padded to 128) matmul operand.
    # TODO(synk): with a real MTCNN the per-image face count varies, so the
    # 1/faces_per_img folding would need a per-image scale instead.
    a_pad = ((num_attributes + 127) // 128) * 128
    spatial = (FACE // 4) ** 2
    wg = jnp.tile(wfc, (FACE // 4, 1)) / float(spatial * faces_per_img)  # (512, A)
    params["wgp"] = jnp.pad(wg, ((0, 0), (0, a_pad - num_attributes)))   # (512, 128)
    params["bfcp"] = jnp.pad(bfc.reshape(1, -1),
                             ((0, 0), (0, a_pad - num_attributes)))      # (1, 128)
    return params


if __name__ == "__main__":
    num_attributes = 8
    key = jax.random.PRNGKey(0)
    k_params, k_x = jax.random.split(key)
    params = init_params(k_params, num_attributes, faces_per_img=2)

    # Batch of images, NCHW like the PyTorch module: (B=2, C=3, H=32, W=32)
    x = jax.random.uniform(k_x, (2, 3, 32, 32), jnp.float32)

    attrs, bboxes = facial_attribute_detection(x, params, num_attributes)
    attrs = jax.block_until_ready(attrs)

    assert attrs.shape == (2, num_attributes)
    assert len(bboxes) == 2 and len(bboxes[0]) == 2
    assert bool(jnp.all(jnp.isfinite(attrs)))
    print("KERNEL_OK")
</pallas_src>

<mosaic_0001>
module attributes {stable_mosaic.version = 11 : i64} {
  func.func @_conv_pool_kernel(%arg0: i32, %arg1: memref<2x2x65x390xbf16, #tpu.memory_space<vmem>>, %arg2: memref<3x390x1024xbf16, #tpu.memory_space<vmem>>, %arg3: memref<1x512xf32, #tpu.memory_space<vmem>>, %arg4: memref<2x64x512xbf16, #tpu.memory_space<vmem>>) attributes {dimension_semantics = [#tpu.dimension_semantics<parallel>], iteration_bounds = array<i64: 2>, scalar_prefetch = 0 : i64, scratch_operands = 0 : i64, tpu.core_type = #tpu.core_type<tc>, window_params = [{transform_indices = @transform_0, window_bounds = array<i64: 2, 2, 65, 390>}, {pipeline_mode = #tpu.pipeline_mode<synchronous>, transform_indices = @transform_1, window_bounds = array<i64: 3, 390, 1024>}, {pipeline_mode = #tpu.pipeline_mode<synchronous>, transform_indices = @transform_2, window_bounds = array<i64: 1, 512>}, {transform_indices = @transform_3, window_bounds = array<i64: 2, 64, 512>}]} {
    %c0 = arith.constant 0 : index
    %c0_0 = arith.constant 0 : index
    %c0_1 = arith.constant 0 : index
    %c0_2 = arith.constant 0 : index
    %0 = vector.load %arg1[%c0, %c0_0, %c0_1, %c0_2] : memref<2x2x65x390xbf16, #tpu.memory_space<vmem>>, vector<2x2x64x390xbf16>
    %1 = vector.shape_cast %0 : vector<2x2x64x390xbf16> to vector<256x390xbf16>
    %c0_3 = arith.constant 0 : index
    %c0_4 = arith.constant 0 : index
    %c0_5 = arith.constant 0 : index
    %2 = vector.load %arg2[%c0_3, %c0_4, %c0_5] : memref<3x390x1024xbf16, #tpu.memory_space<vmem>>, vector<1x390x1024xbf16>
    %3 = vector.shape_cast %2 : vector<1x390x1024xbf16> to vector<390x1024xbf16>
    %cst = arith.constant dense<0.000000e+00> : vector<256x1024xf32>
    %4 = tpu.matmul %1, %3, %cst {dimension_numbers = #tpu.dot_dimension_numbers<[1], [0], [0], [1], [0, 0, 1, 1], [], []>} : vector<256x390xbf16>, vector<390x1024xbf16>, vector<256x1024xf32> -> vector<256x1024xf32>
    %5 = vector.shape_cast %4 : vector<256x1024xf32> to vector<2x2x64x1024xf32>
    %c0_6 = arith.constant 0 : index
    %c0_7 = arith.constant 0 : index
    %c1 = arith.constant 1 : index
    %c0_8 = arith.constant 0 : index
    %6 = vector.load %arg1[%c0_6, %c0_7, %c1, %c0_8] : memref<2x2x65x390xbf16, #tpu.memory_space<vmem>>, vector<2x2x64x390xbf16>
    %7 = vector.shape_cast %6 : vector<2x2x64x390xbf16> to vector<256x390xbf16>
    %c2 = arith.constant 2 : index
    %c0_9 = arith.constant 0 : index
    %c0_10 = arith.constant 0 : index
    %8 = vector.load %arg2[%c2, %c0_9, %c0_10] : memref<3x390x1024xbf16, #tpu.memory_space<vmem>>, vector<1x390x1024xbf16>
    %9 = vector.shape_cast %8 : vector<1x390x1024xbf16> to vector<390x1024xbf16>
    %cst_11 = arith.constant dense<0.000000e+00> : vector<256x1024xf32>
    %10 = tpu.matmul %7, %9, %cst_11 {dimension_numbers = #tpu.dot_dimension_numbers<[1], [0], [0], [1], [0, 0, 1, 1], [], []>} : vector<256x390xbf16>, vector<390x1024xbf16>, vector<256x1024xf32> -> vector<256x1024xf32>
    %11 = vector.shape_cast %10 : vector<256x1024xf32> to vector<2x2x64x1024xf32>
    %c0_12 = arith.constant 0 : index
    %c1_13 = arith.constant 1 : index
    %c0_14 = arith.constant 0 : index
    %c0_15 = arith.constant 0 : index
    %12 = vector.load %arg1[%c0_12, %c1_13, %c0_14, %c0_15] : memref<2x2x65x390xbf16, #tpu.memory_space<vmem>>, vector<2x1x64x390xbf16>
    %13 = vector.shape_cast %12 : vector<2x1x64x390xbf16> to vector<2x64x390xbf16>
    %14 = vector.shape_cast %13 : vector<2x64x390xbf16> to vector<128x390xbf16>
    %c0_16 = arith.constant 0 : index
    %c0_17 = arith.constant 0 : index
    %c1_18 = arith.constant 1 : index
    %c0_19 = arith.constant 0 : index
    %15 = vector.load %arg1[%c0_16, %c0_17, %c1_18, %c0_19] : memref<2x2x65x390xbf16, #tpu.memory_space<vmem>>, vector<2x1x64x390xbf16>
    %16 = vector.shape_cast %15 : vector<2x1x64x390xbf16> to vector<2x64x390xbf16>
    %17 = vector.shape_cast %16 : vector<2x64x390xbf16> to vector<128x390xbf16>
    %c1_20 = arith.constant 1 : index
    %c0_21 = arith.constant 0 : index
    %c0_22 = arith.constant 0 : index
    %18 = vector.load %arg2[%c1_20, %c0_21, %c0_22] : memref<3x390x1024xbf16, #tpu.memory_space<vmem>>, vector<1x390x1024xbf16>
    %19 = vector.shape_cast %18 : vector<1x390x1024xbf16> to vector<390x1024xbf16>
    %cst_23 = arith.constant dense<0.000000e+00> : vector<128x1024xf32>
    %20 = tpu.matmul %14, %19, %cst_23 {dimension_numbers = #tpu.dot_dimension_numbers<[1], [0], [0], [1], [0, 0, 1, 1], [], []>} : vector<128x390xbf16>, vector<390x1024xbf16>, vector<128x1024xf32> -> vector<128x1024xf32>
    %21 = vector.shape_cast %20 : vector<128x1024xf32> to vector<2x64x1024xf32>
    %c1_24 = arith.constant 1 : index
    %c0_25 = arith.constant 0 : index
    %c0_26 = arith.constant 0 : index
    %22 = vector.load %arg2[%c1_24, %c0_25, %c0_26] : memref<3x390x1024xbf16, #tpu.memory_space<vmem>>, vector<1x390x1024xbf16>
    %23 = vector.shape_cast %22 : vector<1x390x1024xbf16> to vector<390x1024xbf16>
    %cst_27 = arith.constant dense<0.000000e+00> : vector<128x1024xf32>
    %24 = tpu.matmul %17, %23, %cst_27 {dimension_numbers = #tpu.dot_dimension_numbers<[1], [0], [0], [1], [0, 0, 1, 1], [], []>} : vector<128x390xbf16>, vector<390x1024xbf16>, vector<128x1024xf32> -> vector<128x1024xf32>
    %25 = vector.shape_cast %24 : vector<128x1024xf32> to vector<2x64x1024xf32>
    %26 = vector.extract_strided_slice %5 {offsets = [0, 0, 0, 0], sizes = [2, 1, 64, 1024], strides = [1, 1, 1, 1]} : vector<2x2x64x1024xf32> to vector<2x1x64x1024xf32>
    %27 = vector.shape_cast %26 : vector<2x1x64x1024xf32> to vector<2x64x1024xf32>
    %28 = vector.extract_strided_slice %11 {offsets = [0, 0, 0, 0], sizes = [2, 1, 64, 1024], strides = [1, 1, 1, 1]} : vector<2x2x64x1024xf32> to vector<2x1x64x1024xf32>
    %29 = vector.shape_cast %28 : vector<2x1x64x1024xf32> to vector<2x64x1024xf32>
    %30 = arith.addf %27, %29 : vector<2x64x1024xf32>
    %31 = arith.addf %30, %21 : vector<2x64x1024xf32>
    %32 = vector.extract_strided_slice %5 {offsets = [0, 1, 0, 0], sizes = [2, 1, 64, 1024], strides = [1, 1, 1, 1]} : vector<2x2x64x1024xf32> to vector<2x1x64x1024xf32>
    %33 = vector.shape_cast %32 : vector<2x1x64x1024xf32> to vector<2x64x1024xf32>
    %34 = vector.extract_strided_slice %11 {offsets = [0, 1, 0, 0], sizes = [2, 1, 64, 1024], strides = [1, 1, 1, 1]} : vector<2x2x64x1024xf32> to vector<2x1x64x1024xf32>
    %35 = vector.shape_cast %34 : vector<2x1x64x1024xf32> to vector<2x64x1024xf32>
    %36 = arith.addf %33, %35 : vector<2x64x1024xf32>
    %37 = arith.addf %36, %25 : vector<2x64x1024xf32>
    %38 = vector.extract_strided_slice %31 {offsets = [0, 0, 0], sizes = [2, 64, 512], strides = [1, 1, 1]} : vector<2x64x1024xf32> to vector<2x64x512xf32>
    %39 = vector.extract_strided_slice %31 {offsets = [0, 0, 512], sizes = [2, 64, 512], strides = [1, 1, 1]} : vector<2x64x1024xf32> to vector<2x64x512xf32>
    %40 = arith.maximumf %38, %39 : vector<2x64x512xf32>
    %41 = vector.extract_strided_slice %37 {offsets = [0, 0, 0], sizes = [2, 64, 512], strides = [1, 1, 1]} : vector<2x64x1024xf32> to vector<2x64x512xf32>
    %42 = vector.extract_strided_slice %37 {offsets = [0, 0, 512], sizes = [2, 64, 512], strides = [1, 1, 1]} : vector<2x64x1024xf32> to vector<2x64x512xf32>
    %43 = arith.maximumf %41, %42 : vector<2x64x512xf32>
    %44 = arith.maximumf %40, %43 : vector<2x64x512xf32>
    %c0_28 = arith.constant 0 : index
    %c0_29 = arith.constant 0 : index
    %45 = vector.load %arg3[%c0_28, %c0_29] : memref<1x512xf32, #tpu.memory_space<vmem>>, vector<1x512xf32>
    %46 = vector.shape_cast %45 : vector<1x512xf32> to vector<1x1x512xf32>
    %47 = vector.broadcast %46 : vector<1x1x512xf32> to vector<2x64x512xf32>
    %48 = arith.addf %44, %47 : vector<2x64x512xf32>
    %cst_30 = arith.constant 0.000000e+00 : f32
    %49 = vector.broadcast %cst_30 : f32 to vector<2x64x512xf32>
    %50 = arith.maximumf %48, %49 : vector<2x64x512xf32>
    %51 = arith.truncf %50 : vector<2x64x512xf32> to vector<2x64x512xbf16>
    %c0_31 = arith.constant 0 : index
    %c0_32 = arith.constant 0 : index
    %c0_33 = arith.constant 0 : index
    %52 = vector.load %arg4[%c0_31, %c0_32, %c0_33] : memref<2x64x512xbf16, #tpu.memory_space<vmem>>, vector<2x64x512xbf16>
    tpu.vector_store %arg4[%c0_31, %c0_32, %c0_33], %51 {strides = array<i32>} : memref<2x64x512xbf16, #tpu.memory_space<vmem>>, vector<2x64x512xbf16>,
    return
  }
  func.func @transform_0(%arg0: i32) -> (i32, i32, i32, i32) {
    %c0_i32 = arith.constant 0 : i32
    %c0_i32_0 = arith.constant 0 : i32
    %c0_i32_1 = arith.constant 0 : i32
    %c0_i32_2 = arith.constant 0 : i32
    return %arg0, %c0_i32, %c0_i32_0, %c0_i32_1 : i32, i32, i32, i32
  }
  func.func @transform_1(%arg0: i32) -> (i32, i32, i32) {
    %c0_i32 = arith.constant 0 : i32
    %c0_i32_0 = arith.constant 0 : i32
    %c0_i32_1 = arith.constant 0 : i32
    %c0_i32_2 = arith.constant 0 : i32
    return %c0_i32, %c0_i32_0, %c0_i32_1 : i32, i32, i32
  }
  func.func @transform_2(%arg0: i32) -> (i32, i32) {
    %c0_i32 = arith.constant 0 : i32
    %c0_i32_0 = arith.constant 0 : i32
    %c0_i32_1 = arith.constant 0 : i32
    return %c0_i32, %c0_i32_0 : i32, i32
  }
  func.func @transform_3(%arg0: i32) -> (i32, i32, i32) {
    %c0_i32 = arith.constant 0 : i32
    %c0_i32_0 = arith.constant 0 : i32
    %c0_i32_1 = arith.constant 0 : i32
    return %arg0, %c0_i32, %c0_i32_0 : i32, i32, i32
  }
}

</mosaic_0001>

<bundles_post_ra>
// kernel: tpu_custom_call.1
= control target key start
LH: loop header
LB: loop body
LE: loop exit
PB: predicated region body
PF: predicated region fallthrough
CT: control target
= control target key end

     0   :  { %8 = vsyncpa [#allocation3], 0  ;;  %s18706_s0 = inlined_call_operand.vmem [shape: bf16[4,2,65,390], index: 0, kind: input, shape index: {}]   ;;  %s18707_s1 = inlined_call_operand.hbm [shape: bf16[3,390,1024], index: 1, kind: input, shape index: {}]   ;;  %s18708_s2 = inlined_call_operand.hbm [shape: f32[1,512], index: 2, kind: input, shape index: {}]   ;;  %s18709_s3 = inlined_call_operand.hbm [shape: bf16[4,64,512], index: 3, kind: output, shape index: {}]  }
   0x1   :  { %9 = vsyncpa [#allocation6], 0 }
   0x2   :  { %10 = vsyncpa [#allocation4], 0 }
   0x3   :  { %12 = vsyncpa [#allocation4 + $0x1], 0  ;;  %s14846_s12 = smov 0   ;;  %s14848_s13 = smov 0  }
   0x4   :  { %s14850_s14 = smov 0   ;;  %s14852_s15 = smov 0  }
   0x5 LB: > { %s14867_s16 = sadd.s32 4294967295, %s14817_s15   ;;  %s12057_s17 = sadd.s32 4294967294, %s14817_s15   ;;  %s14817_s15 = sphi %s14852_s15, %s20010_s15   ;;  %s14813_s14 = sphi %s14850_s14, %s20009_s14   ;;  %s14809_s13 = sphi %s14848_s13, %s20008_s13   ;;  %s14805_s12 = sphi %s14846_s12, %s20007_s12  }
   0x6   : > { %s14871_s18 = sadd.s32 1, %s14817_s15   ;;  %s93_s19 = sadd.s32 1, %s14813_s14 }
   0x7   : > { %s90_s20 = ssub.s32 %s14817_s15, %s14871_s18  ;;  %p103_p0 = scmp.ne.s32.totalorder %s14813_s14, %s14809_s13 }
   0x8   : > { %p91_p1 = scmp.eq.s32.totalorder %s90_s20, 0  ;;  %p104_p2 = scmp.eq.s32.totalorder %s14867_s16, 1 }
   0x9   : > { %p109_p3 = scmp.ne.s32.totalorder %s14809_s13, %s14805_s12  ;;  %p110_p4 = scmp.eq.s32.totalorder %s12057_s17, 1 }
   0xa   : > { %s14882_s21 = scalar_select %p91_p1, %s14813_s14, %s93_s19  }
   0xb   : > { %p14884_p5 = por %p104_p2, %p103_p0  ;;  %p14888_p6 = por %p110_p4, %p109_p3 }
   0xc   : > { %p12058_p7 = scmp.ge.s32.totalorder %s14817_s15, 1  ;;  %p117_p8 = scmp.lt.s32.totalorder %s14817_s15, 3 }
   0xd   : > { %s19113_s22 = scalar_select %p14884_p5, 1, 0 }
   0xe   : > { %s19114_s23 = scalar_select %p14888_p6, 1, 0 }
   0xf   : > { %p18710_p9 = scmp.eq.s32.totalorder %s14867_s16, 0  ;;  %p14895_p10 = pnand %p12058_p7, %p117_p8 }
  0x10   : > { %s14819_s25 = smov [#allocation2]   ;;  %s14820_s28 = smov [#allocation5]  }
  0x11   : > { %s19115_s24 = scalar_select %p14895_p10, 1, 0 }
  0x12   : > { %s129_s26 = sshll.u32 %s14819_s25, 4  ;;  %p14463_p11 = pneg %p14895_p10  ;;  %s130_s26 = int_to_ptr.vmem [resolvable:$true] %s129_s26 }
  0x13   : > { %s143_s29 = sshll.u32 %s14820_s28, 4  ;;  %s14691_s5 = scalar_lea.hbm %s18707_s1, 75264  ;;  %s14907_s29 = int_to_ptr.vmem [resolvable:$true] %s143_s29 }
  0x14   : > { %p14903_p12 = pnand %p18710_p9, %p14463_p11  ;;  %p14692_p13 = scmp.ne.s32.totalorder %s18707_s1, %s14691_s5 }
  0x15   : > { %p14698_p3 = scmp.lt.u32.totalorder %s14691_s5, %s18707_s1 }
  0x16   : > { %p14693_p0 = pneg %p14903_p12 }
  0x18   : > { %p14694_p1 = pnand %p14693_p0, %p14692_p13 }
  0x1a   : > { %p14695_p2 = pneg %p14694_p1 }
  0x1c   : > { %p14700_p4 = pnand %p14698_p3, %p14695_p2 }
  0x1e   : > { %14703 = shalt.err (!%p14700_p4)
}
  0x1f   : > { %s14704_s10 = scalar_lea.vmem %s130_s26, 75264  ;;  %p14712_p9 = scmp.lt.s32.totalorder %s130_s26, %s130_s26 }
  0x20   : > { %p14705_p7 = scmp.ne.s32.totalorder %s130_s26, %s14704_s10  ;;  %p14713_p6 = scmp.lt.s32.totalorder %s14704_s10, %s14704_s10 }
  0x22   : > { %p14707_p8 = pnand %p14705_p7, %p14693_p0  ;;  %p14714_p5 = por %p14713_p6, %p14712_p9 }
  0x24   : > { %p14708_p11 = pneg %p14707_p8 }
  0x26   : > { %p14715_p10 = pnand %p14714_p5, %p14708_p11 }
  0x28   : > { %14718 = shalt.err (!%p14715_p10)
}
  0x29   : > { %s14821_s11 = smov 512   ;;  %s14822_s17 = smov 32  }
  0x2a   : > { %14466 = dma.hbm_to_vmem [thread:$0]  (!%p14903_p12), %s18707_s1, 75264, %s130_s26, [#allocation3], %s14821_s11, %s14821_s11, %s14822_s17  }
  0x2b   : > { %s14719_s30 = scalar_lea.hbm %s18708_s2, 64 }
  0x2c   : > { %p14720_p13 = scmp.ne.s32.totalorder %s18708_s2, %s14719_s30  ;;  %p14726_p9 = scmp.lt.u32.totalorder %s14719_s30, %s18708_s2 }
  0x2e   : > { %p14722_p5 = pnand %p14720_p13, %p14693_p0 }
  0x30   : > { %p14723_p6 = pneg %p14722_p5 }
  0x32   : > { %p14728_p10 = pnand %p14726_p9, %p14723_p6 }
  0x34   : > { %14731 = shalt.err (!%p14728_p10)
}
  0x35   : > { %s14732_s26 = scalar_lea.vmem %s14907_s29, 64  ;;  %p14740_p4 = scmp.lt.s32.totalorder %s14907_s29, %s14907_s29 }
  0x36   : > { %p14733_p1 = scmp.ne.s32.totalorder %s14907_s29, %s14732_s26  ;;  %p14741_p7 = scmp.lt.s32.totalorder %s14732_s26, %s14732_s26 }
  0x38   : > { %p14735_p2 = pnand %p14733_p1, %p14693_p0  ;;  %p14742_p8 = por %p14741_p7, %p14740_p4 }
  0x3a   : > { %p14736_p3 = pneg %p14735_p2 }
  0x3c   : > { %p14743_p11 = pnand %p14742_p8, %p14736_p3 }
  0x3e   : > { %14746 = shalt.err (!%p14743_p11)
}
  0x3f   : > { %14469 = dma.hbm_to_vmem [thread:$0]  (!%p14903_p12), %s18708_s2, 64, %s14907_s29, [#allocation6]  }
  0x40   : > { %p19117_p13 = scmp.ne.s32.totalorder %s19115_s24, 0 }
  0x42   : > { %166 = sbr.rel (%p19117_p13) target bundleno = 1940 (0x794), region = 32 }
  0x49   : > { %p19118_p5 = scmp.eq.s32.totalorder %s14867_s16, 0 }
  0x4b   : > { %14792 = dma.done.wait (%p19118_p5), [#allocation3], 75264   ;;  %p19119_p0 = pmov %p19118_p5 }
  0x4d   : > { %14794 = vsyncadd (%p19119_p0), [#allocation3], 4294892032  ;;  %p19120_p6 = pmov %p19119_p0 }
  0x4e   : > { %p19121_p9 = pmov %p19119_p0 }
  0x4f   : > { %14796 = dma.done.wait (%p19120_p6), [#allocation6], 64  }
  0x50   : > { %14798 = vsyncadd (%p19121_p9), [#allocation6], 4294967232  ;;  %v268_v0 = vld [vmem:[#allocation2] sm:$0xff]  ;;  %v269_v2 = vld [vmem:[#allocation2 + $0x8] sm:$0xff]  ;;  %s12066_s24 = sshll.u32 %s14867_s16, 1  ;;  %vm1797_vm0 = vcmask 1042432  }
  0x51   : > { %v272_v1 = vld [vmem:[#allocation2 + $0x20] sm:$0xff]  ;;  %v273_v4 = vld [vmem:[#allocation2 + $0x28] sm:$0xff]  ;;  %p196_p12 = scmp.lt.s32.totalorder %s12066_s24, 3  ;;  %vm1748_vm1 = vcmask 48128   ;;  %vm3438_vm2 = vsmask.f32 3328 }
  0x52   : > { %v12133_v3 = vcombine.high %v268_v0, %v272_v1  ;;  %v12132_v5 = vcombine.low %v268_v0, %v272_v1  ;;  %v276_v6 = vld [vmem:[#allocation2 + $0x40] sm:$0xff]  ;;  %v12135_v8 = vcombine.high %v269_v2, %v273_v4  ;;  %v12134_v9 = vcombine.low %v269_v2, %v273_v4  ;;  %v277_v11 = vld [vmem:[#allocation2 + $0x48] sm:$0xff]  ;;  %s192_s17 = sand.u32 1, %s14809_s13   ;;  %s13171_s25 = sshll.u32 %s14867_s16, 12 }
  0x53   : > { %v280_v7 = vld [vmem:[#allocation2 + $0x60] sm:$0xff]  ;;  %v281_v12 = vld [vmem:[#allocation2 + $0x68] sm:$0xff]  ;;  %s20012_s24 = smov (!%p196_p12, %s12066_s24), 3  ;;  %vm3439_vm3 = vsmask.f32 7440  ;;  %s18322_s19 = sshll.u32 %s192_s17, 8 }
  0x54   : > { %v12141_v10 = vcombine.high %v276_v6, %v280_v7  ;;  %v284_v13 = vld [vmem:[#allocation2 + $0x80] sm:$0xff]  ;;  %1822 = vmatprep.subr.bf16.mxu0 %v12133_v3  ;;  %v12143_v14 = vcombine.high %v277_v11, %v281_v12  ;;  %v285_v16 = vld [vmem:[#allocation2 + $0x88] sm:$0xff]  ;;  %2208 = vmatprep.subr.bf16.mxu1 %v12135_v8  ;;  %v12140_v18 = vcombine.low %v276_v6, %v280_v7  ;;  %s14452_s27 = smul.u32 288, %s20012_s24  ;;  %vm15541_vm4 = vmor %vm3438_vm2, %vm3439_vm3  ;;  %s18346_s20 = scalar_lea.vmem [#allocation7], %s18322_s19 }
  0x55   : > { %v288_v15 = vld [vmem:[#allocation2 + $0xa0] sm:$0xff]  ;;  %v289_v17 = vld [vmem:[#allocation2 + $0xa8] sm:$0xff]  ;;  %1823 = vmatpush1.bf16.msra.mxu0 %v12132_v5  ;;  %2209 = vmatpush1.bf16.msra.mxu1 %v12134_v9  ;;  %v12142_v19 = vcombine.low %v277_v11, %v281_v12  ;;  %s11973_s28 = sshll.u32 %s18346_s20, 4  ;;  %s18657_s5 = scalar_lea.hbm %s18709_s3, %s13171_s25  ;;  %s18659_s28 = int_to_ptr.vmem [resolvable:$true] %s11973_s28 }
  0x56   : > { %1824 = vmatprep.subr.bf16.mxu0 %v12141_v10  ;;  %v12149_v20 = vcombine.high %v284_v13, %v288_v15  ;;  %2210 = vmatprep.subr.bf16.mxu1 %v12143_v14  ;;  %v12151_v21 = vcombine.high %v285_v16, %v289_v17  ;;  %v292_v22 = vld [vmem:[#allocation2 + $0xc0] sm:$0xff]  ;;  %v293_v24 = vld [vmem:[#allocation2 + $0xc8] sm:$0xff]  ;;  %v12148_v26 = vcombine.low %v284_v13, %v288_v15  ;;  %s14970_s11 = scalar_lea.vmem %s18706_s0, %s14452_s27  ;;  %s18665_s16 = scalar_lea.sflag [#allocation4], %s192_s17 }
  0x57   : > { %v296_v23 = vld [vmem:[#allocation2 + $0xe0] sm:$0xff]  ;;  %v297_v25 = vld [vmem:[#allocation2 + $0xe8] sm:$0xff]  ;;  %v12150_v27 = vcombine.low %v285_v16, %v289_v17  ;;  %s14747_s6 = scalar_lea.vmem %s18659_s28, 4096  ;;  %p20005_p1 = scmp.ne.s32.totalorder %s19113_s22, 0 }
  0x58   : > { %v12157_v28 = vcombine.high %v292_v22, %v296_v23  ;;  %v12159_v29 = vcombine.high %v293_v24, %v297_v25  ;;  %v300_v30 = vld [vmem:[#allocation2 + $0x100] sm:$0xff]  ;;  %v301_v32 = vld [vmem:[#allocation2 + $0x108] sm:$0xff]  ;;  %v12156_v34 = vcombine.low %v292_v22, %v296_v23  ;;  %v12158_v35 = vcombine.low %v293_v24, %v297_v25  ;;  %p14748_p10 = scmp.ne.s32.totalorder %s18659_s28, %s14747_s6  ;;  %s14823_s7 = smov [#allocation7]  }
  0x59   : > { %1825 = vmatpush1.bf16.msra.mxu0 %v12140_v18  ;;  %2211 = vmatpush1.bf16.msra.mxu1 %v12142_v19  ;;  %v304_v31 = vld [vmem:[#allocation2 + $0x120] sm:$0xff]  ;;  %v305_v33 = vld [vmem:[#allocation2 + $0x128] sm:$0xff]  ;;  %s14751_s26 = sshll.u32 %s14823_s7, 4  ;;  %s14752_s26 = int_to_ptr.vmem [resolvable:$false] %s14751_s26 }
  0x5a   : > { %1826 = vmatprep.subr.bf16.mxu0 %v12149_v20  ;;  %2212 = vmatprep.subr.bf16.mxu1 %v12151_v21  ;;  %v12165_v36 = vcombine.high %v300_v30, %v304_v31  ;;  %v12167_v37 = vcombine.high %v301_v32, %v305_v33  ;;  %v308_v38 = vld [vmem:[#allocation2 + $0x140] sm:$0xff]  ;;  %v309_v40 = vld [vmem:[#allocation2 + $0x148] sm:$0xff]  ;;  %v12164_v42 = vcombine.low %v300_v30, %v304_v31  ;;  %p14749_p2 = pnand %p14748_p10, %p20005_p1  ;;  %s14753_s8 = scalar_lea.vmem %s14752_s26, 8192 }
  0x5b   : > { %v312_v39 = vld [vmem:[#allocation2 + $0x160] sm:$0xff]  ;;  %v313_v41 = vld [vmem:[#allocation2 + $0x168] sm:$0xff]  ;;  %v12166_v43 = vcombine.low %v301_v32, %v305_v33  ;;  %p14754_p4 = scmp.lt.s32.totalorder %s18659_s28, %s14752_s26  ;;  %p14755_p7 = scmp.lt.s32.totalorder %s14753_s8, %s14747_s6 }
  0x5c   : > { %v12173_v44 = vcombine.high %v308_v38, %v312_v39  ;;  %v12175_v45 = vcombine.high %v309_v40, %v313_v41  ;;  %v316_v46 = vld [vmem:[#allocation2 + $0x180] sm:$0xff]  ;;  %v317_v48 = vld [vmem:[#allocation2 + $0x188] sm:$0xff]  ;;  %v12172_v50 = vcombine.low %v308_v38, %v312_v39  ;;  %v12174_v51 = vcombine.low %v309_v40, %v313_v41  ;;  %p14750_p3 = pneg %p14749_p2 }
  0x5d   : > { %1827 = vmatpush1.bf16.msra.mxu0 %v12148_v26  ;;  %2213 = vmatpush1.bf16.msra.mxu1 %v12150_v27  ;;  %v320_v47 = vld [vmem:[#allocation2 + $0x1a0] sm:$0xff]  ;;  %v321_v49 = vld [vmem:[#allocation2 + $0x1a8] sm:$0xff]  ;;  %p14756_p8 = por %p14755_p7, %p14754_p4 }
  0x5e   : > { %1828 = vmatprep.subr.bf16.mxu0 %v12157_v28  ;;  %2214 = vmatprep.subr.bf16.mxu1 %v12159_v29  ;;  %v12181_v52 = vcombine.high %v316_v46, %v320_v47  ;;  %v12183_v53 = vcombine.high %v317_v48, %v321_v49  ;;  %v324_v54 = vld [vmem:[#allocation2 + $0x1c0] sm:$0xff]  ;;  %v325_v57 = vld [vmem:[#allocation2 + $0x1c8] sm:$0xff]  ;;  %v12180_v59 = vcombine.low %v316_v46, %v320_v47 }
  0x5f   : > { %v328_v55 = vld [vmem:[#allocation2 + $0x1e0] sm:$0xff]  ;;  %v329_v58 = vld [vmem:[#allocation2 + $0x1e8] sm:$0xff]  ;;  %v12182_v60 = vcombine.low %v317_v48, %v321_v49  ;;  %p14757_p11 = pnand %p14756_p8, %p14750_p3 }
  0x60   : > { %v14517_v56 = vld [vmem:[%s14970_s11 + $0x4] ss:$16 sps:$4 sm:$0xff]   ;;  %v12189_v61 = vcombine.high %v324_v54, %v328_v55  ;;  %v12191_v62 = vcombine.high %v325_v57, %v329_v58  ;;  %v333_v1 = vld [vmem:[#allocation2 + $0x208] sm:$0xff]  ;;  %v12188_v3 = vcombine.low %v324_v54, %v328_v55  ;;  %v12190_v4 = vcombine.low %v325_v57, %v329_v58 }
  0x61   : > { %1829 = vmatpush1.bf16.msra.mxu0 %v12156_v34  ;;  %2215 = vmatpush1.bf16.msra.mxu1 %v12158_v35  ;;  %v332_v63 = vld [vmem:[#allocation2 + $0x200] sm:$0xff]  ;;  %v337_v2 = vld [vmem:[#allocation2 + $0x228] sm:$0xff] }
  0x62   : > { %1830 = vmatprep.subr.bf16.mxu0 %v12165_v36  ;;  %2216 = vmatprep.subr.bf16.mxu1 %v12167_v37  ;;  %v336_v0 = vld [vmem:[#allocation2 + $0x220] sm:$0xff]  ;;  %v12199_v6 = vcombine.high %v333_v1, %v337_v2  ;;  %v341_v9 = vld [vmem:[#allocation2 + $0x248] sm:$0xff]  ;;  %v12198_v12 = vcombine.low %v333_v1, %v337_v2 }
  0x63   : > { %1854 = vmatprep.mubr.bf16.mxu0 %v14517_v56  ;;  %2240 = vmatprep.mubr.bf16.mxu1 %v14517_v56  ;;  %v12197_v5 = vcombine.high %v332_v63, %v336_v0  ;;  %v340_v7 = vld [vmem:[#allocation2 + $0x240] sm:$0xff]  ;;  %v345_v10 = vld [vmem:[#allocation2 + $0x268] sm:$0xff]  ;;  %v12196_v11 = vcombine.low %v332_v63, %v336_v0 }
  0x64   : > { %v344_v8 = vld [vmem:[#allocation2 + $0x260] sm:$0xff]  ;;  %v12207_v14 = vcombine.high %v341_v9, %v345_v10  ;;  %v349_v17 = vld [vmem:[#allocation2 + $0x288] sm:$0xff]  ;;  %v12206_v20 = vcombine.low %v341_v9, %v345_v10 }
  0x65   : > { %1831 = vmatpush1.bf16.msra.mxu0 %v12164_v42  ;;  %2217 = vmatpush1.bf16.msra.mxu1 %v12166_v43  ;;  %v12205_v13 = vcombine.high %v340_v7, %v344_v8  ;;  %v348_v15 = vld [vmem:[#allocation2 + $0x280] sm:$0xff]  ;;  %v353_v18 = vld [vmem:[#allocation2 + $0x2a8] sm:$0xff]  ;;  %v12204_v19 = vcombine.low %v340_v7, %v344_v8 }
  0x66   : > { %1832 = vmatprep.subr.bf16.mxu0 %v12173_v44  ;;  %2218 = vmatprep.subr.bf16.mxu1 %v12175_v45  ;;  %v352_v16 = vld [vmem:[#allocation2 + $0x2a0] sm:$0xff]  ;;  %v12215_v22 = vcombine.high %v349_v17, %v353_v18  ;;  %v357_v25 = vld [vmem:[#allocation2 + $0x2c8] sm:$0xff]  ;;  %v12214_v28 = vcombine.low %v349_v17, %v353_v18 }
  0x67   : > { %v12213_v21 = vcombine.high %v348_v15, %v352_v16  ;;  %v356_v23 = vld [vmem:[#allocation2 + $0x2c0] sm:$0xff]  ;;  %v361_v26 = vld [vmem:[#allocation2 + $0x2e8] sm:$0xff]  ;;  %v12212_v27 = vcombine.low %v348_v15, %v352_v16 }
  0x68   : > { %v360_v24 = vld [vmem:[#allocation2 + $0x2e0] sm:$0xff]  ;;  %v12223_v30 = vcombine.high %v357_v25, %v361_v26  ;;  %v365_v33 = vld [vmem:[#allocation2 + $0x308] sm:$0xff]  ;;  %v12222_v36 = vcombine.low %v357_v25, %v361_v26 }
  0x69   : > { %1833 = vmatpush1.bf16.msra.mxu0 %v12172_v50  ;;  %2219 = vmatpush1.bf16.msra.mxu1 %v12174_v51  ;;  %v12221_v29 = vcombine.high %v356_v23, %v360_v24  ;;  %v364_v31 = vld [vmem:[#allocation2 + $0x300] sm:$0xff]  ;;  %v369_v34 = vld [vmem:[#allocation2 + $0x328] sm:$0xff]  ;;  %v12220_v35 = vcombine.low %v356_v23, %v360_v24  ;;  %v14977_v23 = vld [vmem:[#allocation2 + $0x30] sm:$0xff] }
  0x6a   : > { %1834 = vmatprep.subr.bf16.mxu0 %v12181_v52  ;;  %2220 = vmatprep.subr.bf16.mxu1 %v12183_v53  ;;  %v368_v32 = vld [vmem:[#allocation2 + $0x320] sm:$0xff]  ;;  %v12231_v38 = vcombine.high %v365_v33, %v369_v34  ;;  %v373_v41 = vld [vmem:[#allocation2 + $0x348] sm:$0xff]  ;;  %v12230_v44 = vcombine.low %v365_v33, %v369_v34  ;;  %v14979_v24 = vld [vmem:[#allocation2 + $0x18] sm:$0xff] }
  0x6b   : > { %v12229_v37 = vcombine.high %v364_v31, %v368_v32  ;;  %v372_v39 = vld [vmem:[#allocation2 + $0x340] sm:$0xff]  ;;  %v377_v42 = vld [vmem:[#allocation2 + $0x368] sm:$0xff]  ;;  %v12228_v43 = vcombine.low %v364_v31, %v368_v32  ;;  %v14984_v31 = vld [vmem:[#allocation2 + $0x38] sm:$0xff] }
  0x6c   : > { %v376_v40 = vld [vmem:[#allocation2 + $0x360] sm:$0xff]  ;;  %v12239_v46 = vcombine.high %v373_v41, %v377_v42  ;;  %v381_v49 = vld [vmem:[#allocation2 + $0x388] sm:$0xff]  ;;  %v12238_v54 = vcombine.low %v373_v41, %v377_v42 }
  0x6d   : > { %1835 = vmatpush1.bf16.msra.mxu0 %v12180_v59  ;;  %2221 = vmatpush1.bf16.msra.mxu1 %v12182_v60  ;;  %v12237_v45 = vcombine.high %v372_v39, %v376_v40  ;;  %v380_v47 = vld [vmem:[#allocation2 + $0x380] sm:$0xff]  ;;  %v385_v50 = vld [vmem:[#allocation2 + $0x3a8] sm:$0xff]  ;;  %v12236_v51 = vcombine.low %v372_v39, %v376_v40 }
  0x6e   : > { %1836 = vmatprep.subr.bf16.mxu0 %v12189_v61  ;;  %2222 = vmatprep.subr.bf16.mxu1 %v12191_v62  ;;  %v384_v48 = vld [vmem:[#allocation2 + $0x3a0] sm:$0xff]  ;;  %v389_v56 = vld [vmem:[#allocation2 + $0x3c8] sm:$0xff]  ;;  %v12247_v58 = vcombine.high %v381_v49, %v385_v50  ;;  %v12246_v62 = vcombine.low %v381_v49, %v385_v50 }
  0x6f   : > { %v388_v52 = vld [vmem:[#allocation2 + $0x3c0] sm:$0xff]  ;;  %v12245_v55 = vcombine.high %v380_v47, %v384_v48  ;;  %v393_v57 = vld [vmem:[#allocation2 + $0x3e8] sm:$0xff]  ;;  %v12244_v59 = vcombine.low %v380_v47, %v384_v48 }
  0x70   : > { %v392_v53 = vld [vmem:[#allocation2 + $0x3e0] sm:$0xff]  ;;  %v397_v0 = vld [vmem:[#allocation2 + $0x408] sm:$0xff]  ;;  %v12255_v2 = vcombine.high %v389_v56, %v393_v57 }
  0x71   : > { %1837 = vmatpush1.bf16.msra.mxu0 %v12188_v3  ;;  %2223 = vmatpush1.bf16.msra.mxu1 %v12190_v4  ;;  %v396_v60 = vld [vmem:[#allocation2 + $0x400] sm:$0xff]  ;;  %v12253_v63 = vcombine.high %v388_v52, %v392_v53  ;;  %v401_v1 = vld [vmem:[#allocation2 + $0x428] sm:$0xff]  ;;  %v12252_v3 = vcombine.low %v388_v52, %v392_v53  ;;  %v12254_v4 = vcombine.low %v389_v56, %v393_v57 }
  0x72   : > { %1838 = vmatprep.subr.bf16.mxu0 %v12197_v5  ;;  %2224 = vmatprep.subr.bf16.mxu1 %v12199_v6  ;;  %v400_v61 = vld [vmem:[#allocation2 + $0x420] sm:$0xff]  ;;  %v12263_v9 = vcombine.high %v397_v0, %v401_v1  ;;  %v405_v10 = vld [vmem:[#allocation2 + $0x448] sm:$0xff]  ;;  %v12262_v16 = vcombine.low %v397_v0, %v401_v1 }
  0x73   : > { %v14519_v5 = vld [vmem:[%s14970_s11] ss:$16 sps:$4 sm:$0xff]   ;;  %v12261_v6 = vcombine.high %v396_v60, %v400_v61  ;;  %v413_v17 = vld [vmem:[#allocation2 + $0x488] sm:$0xff]  ;;  %v14523_v32 = vld [vmem:[%s14970_s11 + $0x44] ss:$16 sps:$4 sm:$0xff]  }
  0x74   : > { %v404_v7 = vld [vmem:[#allocation2 + $0x440] sm:$0xff]  ;;  %v417_v18 = vld [vmem:[#allocation2 + $0x4a8] sm:$0xff] }
  0x75   : > { %1839 = vmatpush1.bf16.msra.mxu0 %v12196_v11  ;;  %2225 = vmatpush1.bf16.msra.mxu1 %v12198_v12  ;;  %v408_v8 = vld [vmem:[#allocation2 + $0x460] sm:$0xff]  ;;  %v409_v11 = vld [vmem:[#allocation2 + $0x468] sm:$0xff]  ;;  %v12279_v33 = vcombine.high %v413_v17, %v417_v18  ;;  %v12278_v40 = vcombine.low %v413_v17, %v417_v18 }
  0x76   : > { %1840 = vmatprep.subr.bf16.mxu0 %v12205_v13  ;;  %2226 = vmatprep.subr.bf16.mxu1 %v12207_v14  ;;  %v14520_v12 = vld [vmem:[%s14970_s11 + $0x24] ss:$16 sps:$4 sm:$0xff]   ;;  %v12260_v13 = vcombine.low %v396_v60, %v400_v61  ;;  %v14522_v25 = vld [vmem:[%s14970_s11 + $0x20] ss:$16 sps:$4 sm:$0xff]   ;;  %v12270_v26 = vcombine.low %v405_v10, %v409_v11  ;;  %v421_v34 = vld [vmem:[#allocation2 + $0x4c8] sm:$0xff] }
  0x77   : > { %v412_v14 = vld [vmem:[#allocation2 + $0x480] sm:$0xff]  ;;  %v437_v53 = vld [vmem:[#allocation2 + $0x548] sm:$0xff] }
  0x78   : > { %v416_v15 = vld [vmem:[#allocation2 + $0x4a0] sm:$0xff]  ;;  %v445_v61 = vld [vmem:[#allocation2 + $0x588] sm:$0xff] }
  0x79   : > { %1841 = vmatpush1.bf16.msra.mxu0 %v12204_v19  ;;  %2227 = vmatpush1.bf16.msra.mxu1 %v12206_v20  ;;  %v12269_v19 = vcombine.high %v404_v7, %v408_v8  ;;  %v12271_v20 = vcombine.high %v405_v10, %v409_v11  ;;  %v432_v39 = vld [vmem:[#allocation2 + $0x520] sm:$0xff] }
  0x7a   : > { %1842 = vmatprep.subr.bf16.mxu0 %v12213_v21  ;;  %2228 = vmatprep.subr.bf16.mxu1 %v12215_v22  ;;  %v12268_v21 = vcombine.low %v404_v7, %v408_v8  ;;  %v14975_v22 = vld [vmem:[#allocation2 + $0x10] sm:$0xff]  ;;  %v436_v47 = vld [vmem:[#allocation2 + $0x540] sm:$0xff]  ;;  %v453_v7 = vld [vmem:[#allocation2 + $0x5c8] sm:$0xff] }
  0x7b   : > { %v440_v48 = vld [vmem:[#allocation2 + $0x560] sm:$0xff]  ;;  %v457_v8 = vld [vmem:[#allocation2 + $0x5e8] sm:$0xff] }
  0x7c   : > { %v14991_v52 = vld [vmem:[%s14970_s11 + $0x64] ss:$16 sps:$4 sm:$0xff]   ;;  %v12301_v57 = vcombine.high %v436_v47, %v440_v48 }
  0x7d   : > { %1843 = vmatpush1.bf16.msra.mxu0 %v12212_v27  ;;  %2229 = vmatpush1.bf16.msra.mxu1 %v12214_v28  ;;  %v12277_v27 = vcombine.high %v412_v14, %v416_v15  ;;  %v420_v28 = vld [vmem:[#allocation2 + $0x4c0] sm:$0xff] }
  0x7e   : > { %1844 = vmatprep.subr.bf16.mxu0 %v12221_v29  ;;  %2230 = vmatprep.subr.bf16.mxu1 %v12223_v30  ;;  %v424_v29 = vld [vmem:[#allocation2 + $0x4e0] sm:$0xff]  ;;  %v12136_v30 = vcombine.low %v14975_v22, %v14977_v23 }
  0x7f   : > { %v12285_v41 = vcombine.high %v420_v28, %v424_v29  ;;  %v448_v60 = vld [vmem:[#allocation2 + $0x5a0] sm:$0xff] }
  0x81   : > { %1845 = vmatpush1.bf16.msra.mxu0 %v12220_v35  ;;  %2231 = vmatpush1.bf16.msra.mxu1 %v12222_v36  ;;  %v425_v35 = vld [vmem:[#allocation2 + $0x4e8] sm:$0xff]  ;;  %v12138_v36 = vcombine.low %v14979_v24, %v14984_v31 }
  0x82   : > { %1846 = vmatprep.subr.bf16.mxu0 %v12229_v37  ;;  %2232 = vmatprep.subr.bf16.mxu1 %v12231_v38  ;;  %v12276_v37 = vcombine.low %v412_v14, %v416_v15  ;;  %v428_v38 = vld [vmem:[#allocation2 + $0x500] sm:$0xff]  ;;  %v12287_v42 = vcombine.high %v421_v34, %v425_v35  ;;  %v12286_v49 = vcombine.low %v421_v34, %v425_v35  ;;  %v461_v14 = vld [vmem:[#allocation2 + $0x608] sm:$0x77] }
  0x83   : > { %v12293_v50 = vcombine.high %v428_v38, %v432_v39  ;;  %v15034_v34 = vld [vmem:[%s14970_s11 + $0xd0] ss:$16 sps:$4 sm:$0xff]   ;;  %v15037_v35 = vld [vmem:[%s14970_s11 + $0xf4] ss:$16 sps:$4 sm:$0xff]  }
  0x85   : > { %1847 = vmatpush1.bf16.msra.mxu0 %v12228_v43  ;;  %2233 = vmatpush1.bf16.msra.mxu1 %v12230_v44  ;;  %v429_v43 = vld [vmem:[#allocation2 + $0x508] sm:$0xff] }
  0x86   : > { %1848 = vmatprep.subr.bf16.mxu0 %v12237_v45  ;;  %2234 = vmatprep.subr.bf16.mxu1 %v12239_v46  ;;  %v433_v44 = vld [vmem:[#allocation2 + $0x528] sm:$0xff]  ;;  %v14525_v45 = vld [vmem:[%s14970_s11 + $0x40] ss:$16 sps:$4 sm:$0xff]   ;;  %v12284_v46 = vcombine.low %v420_v28, %v424_v29  ;;  %v12139_v29 = vcombine.high %v14979_v24, %v14984_v31  ;;  %v295_v31 = vld [vmem:[#allocation2 + $0xd8] sm:$0xff] }
  0x87   : > { %v12294_v56 = vcombine.low %v429_v43, %v433_v44  ;;  %v15169_v24 = vld [vmem:[%s14970_s11 + $0x4c] ss:$16 sps:$4 sm:$0xff]  }
  0x89   : > { %1849 = vmatpush1.bf16.msra.mxu0 %v12236_v51  ;;  %2235 = vmatpush1.bf16.msra.mxu1 %v12238_v54  ;;  %v12295_v51 = vcombine.high %v429_v43, %v433_v44  ;;  %v441_v54 = vld [vmem:[#allocation2 + $0x568] sm:$0xff]  ;;  %v15074_v43 = vld [vmem:[%s14970_s11 + $0x160] ss:$16 sps:$4 sm:$0xff]   ;;  %v15077_v44 = vld [vmem:[%s14970_s11 + $0x184] ss:$16 sps:$4 sm:$0xff]  }
  0x8a   : > { %1850 = vmatprep.subr.bf16.mxu0 %v12245_v55  ;;  %2236 = vmatprep.subr.bf16.mxu1 %v12247_v58  ;;  %v12292_v55 = vcombine.low %v428_v38, %v432_v39  ;;  %v12303_v58 = vcombine.high %v437_v53, %v441_v54  ;;  %v12302_v0 = vcombine.low %v437_v53, %v441_v54  ;;  %v15047_v38 = vld [vmem:[%s14970_s11 + $0x124] ss:$16 sps:$4 sm:$0xff]   ;;  %v15054_v39 = vld [vmem:[%s14970_s11 + $0x120] ss:$16 sps:$4 sm:$0xff]  }
  0x8b   : > { %v15117_v53 = vld [vmem:[%s14970_s11 + $0x214] ss:$16 sps:$4 sm:$0xff]   ;;  %v15124_v54 = vld [vmem:[%s14970_s11 + $0x210] ss:$16 sps:$4 sm:$0xff]  }
  0x8d   : > { %1851 = vmatpush1.bf16.msra.mxu0 %v12244_v59  ;;  %2237 = vmatpush1.bf16.msra.mxu1 %v12246_v62  ;;  %v444_v59 = vld [vmem:[#allocation2 + $0x580] sm:$0xff]  ;;  %v449_v62 = vld [vmem:[#allocation2 + $0x5a8] sm:$0xff] }
  0x8e   : > { %1852 = vmatprep.subr.bf16.mxu0 %v12253_v63  ;;  %2238 = vmatprep.subr.bf16.mxu1 %v12255_v2  ;;  %v12300_v63 = vcombine.low %v436_v47, %v440_v48  ;;  %v12309_v1 = vcombine.high %v444_v59, %v448_v60  ;;  %v14996_v2 = vld [vmem:[%s14970_s11 + $0x60] ss:$16 sps:$4 sm:$0xff]   ;;  %v12310_v10 = vcombine.low %v445_v61, %v449_v62  ;;  %v15097_v48 = vld [vmem:[%s14970_s11 + $0x1d4] ss:$16 sps:$4 sm:$0xff]  }
  0x8f   : > { %v15094_v47 = vld [vmem:[%s14970_s11 + $0x1b0] ss:$16 sps:$4 sm:$0xff]  }
  0x91   : > { %1853 = vmatpush1.bf16.msra.mxu0 %v12252_v3  ;;  %2239 = vmatpush1.bf16.msra.mxu1 %v12254_v4  ;;  %v12311_v3 = vcombine.high %v445_v61, %v449_v62  ;;  %v452_v4 = vld [vmem:[#allocation2 + $0x5c0] sm:$0xff]  ;;  %v15139_v61 = vld [vmem:[%s14970_s11 + $0x2c] ss:$16 sps:$4 sm:$0xff]  }
  0x92   : > { %2015 = vmatprep.subr.bf16.mxu0 %v12261_v6  ;;  %2401 = vmatprep.subr.bf16.mxu1 %v12263_v9  ;;  %v14999_v6 = vld [vmem:[%s14970_s11 + $0x94] ss:$16 sps:$4 sm:$0xff]   ;;  %v12308_v9 = vcombine.low %v444_v59, %v448_v60  ;;  %v279_v59 = vld [vmem:[#allocation2 + $0x58] sm:$0xff] }
  0x93   : > { %v283_v60 = vld [vmem:[#allocation2 + $0x78] sm:$0xff] }
  0x94   : > { %1855 = vmatmul.mubr.bf16.vlgmr.msra.gmra.mrb[0].mxu0 %v14519_v5  ;;  %2241 = vmatmul.mubr.bf16.vlgmr.msra.gmra.mrb[0].mxu1 %v14519_v5  ;;  %v456_v5 = vld [vmem:[#allocation2 + $0x5e0] sm:$0xff] }
  0x95   : > { %2016 = vmatpush1.bf16.msra.mxu0 %v12260_v13  ;;  %2402 = vmatpush1.bf16.msra.mxu1 %v12262_v16  ;;  %v12317_v11 = vcombine.high %v452_v4, %v456_v5  ;;  %v460_v13 = vld [vmem:[#allocation2 + $0x600] sm:$0x77]  ;;  %v12316_v15 = vcombine.low %v452_v4, %v456_v5  ;;  %v12318_v16 = vcombine.low %v453_v7, %v457_v8  ;;  %v291_v4 = vld [vmem:[#allocation2 + $0xb8] sm:$0xff]  ;;  %v15142_v5 = vld [vmem:[#allocation2 + $0x410] sm:$0xff] }
  0x96   : > { %1864 = vmatprep.mubr.bf16.mxu0 %v14520_v12  ;;  %2250 = vmatprep.mubr.bf16.mxu1 %v14520_v12  ;;  %v12319_v12 = vcombine.high %v453_v7, %v457_v8  ;;  %v12325_v17 = vcombine.high %v460_v13, %v460_v13  ;;  %v12324_v18 = vcombine.low %v460_v13, %v460_v13  ;;  %v15144_v7 = vld [vmem:[#allocation2 + $0x430] sm:$0xff] }
  0x97   : > { %2017 = vmatprep.subr.bf16.mxu0 %v12269_v19  ;;  %2403 = vmatprep.subr.bf16.mxu1 %v12271_v20  ;;  %v15006_v19 = vld [vmem:[%s14970_s11 + $0x90] ss:$16 sps:$4 sm:$0xff]   ;;  %v12327_v20 = vcombine.high %v461_v14, %v461_v14 }
  0x99   : > { %2018 = vmatpush1.bf16.msra.mxu0 %v12268_v21  ;;  %2404 = vmatpush1.bf16.msra.mxu1 %v12270_v26  ;;  %v12326_v21 = vcombine.low %v461_v14, %v461_v14  ;;  %v1799_v26 = vsel %vm1797_vm0, %v12324_v18, 0  ;;  %v294_v14 = vld [vmem:[#allocation2 + $0xd0] sm:$0xff] }
  0x9a   : > { %2019 = vmatprep.subr.bf16.mxu0 %v12277_v27  ;;  %2405 = vmatprep.subr.bf16.mxu1 %v12279_v33  ;;  %v12137_v27 = vcombine.high %v14975_v22, %v14977_v23  ;;  %v15027_v33 = vld [vmem:[%s14970_s11 + $0xd4] ss:$16 sps:$4 sm:$0xff]   ;;  %v363_v22 = vld [vmem:[#allocation2 + $0x2f8] sm:$0xff] }
  0x9b   : > { %v1805_v28 = vsel %vm1797_vm0, %v12326_v21, 0  ;;  %v302_v21 = vld [vmem:[#allocation2 + $0x110] sm:$0xff] }
  0x9c   : > { %1865 = vmatmul.mubr.bf16.gmra.mrb[4].mxu0 %v14522_v25  ;;  %2251 = vmatmul.mubr.bf16.gmra.mrb[4].mxu1 %v14522_v25  ;;  %v15009_v25 = vld [vmem:[%s14970_s11 + $0xb4] ss:$16 sps:$4 sm:$0xff]  }
  0x9d   : > { %1874 = vmatprep.mubr.bf16.mxu0 %v14523_v32  ;;  %2260 = vmatprep.mubr.bf16.mxu1 %v14523_v32  ;;  %v15024_v32 = vld [vmem:[%s14970_s11 + $0xb0] ss:$16 sps:$4 sm:$0xff]  }
  0x9e   : > { %2020 = vmatpush1.bf16.msra.mxu0 %v12276_v37  ;;  %2406 = vmatpush1.bf16.msra.mxu1 %v12278_v40  ;;  %v15044_v37 = vld [vmem:[%s14970_s11 + $0xf0] ss:$16 sps:$4 sm:$0xff]   ;;  %v15057_v40 = vld [vmem:[%s14970_s11 + $0x144] ss:$16 sps:$4 sm:$0xff]  }
  0x9f   : > { %2021 = vmatprep.subr.bf16.mxu0 %v12285_v41  ;;  %2407 = vmatprep.subr.bf16.mxu1 %v12287_v42  ;;  %v15064_v41 = vld [vmem:[%s14970_s11 + $0x140] ss:$16 sps:$4 sm:$0xff]   ;;  %v15067_v42 = vld [vmem:[%s14970_s11 + $0x164] ss:$16 sps:$4 sm:$0xff]  }
  0xa2   : > { %2022 = vmatpush1.bf16.msra.mxu0 %v12284_v46  ;;  %2408 = vmatpush1.bf16.msra.mxu1 %v12286_v49  ;;  %v15087_v46 = vld [vmem:[%s14970_s11 + $0x1b4] ss:$16 sps:$4 sm:$0xff]   ;;  %v15104_v49 = vld [vmem:[%s14970_s11 + $0x1d0] ss:$16 sps:$4 sm:$0xff]  }
  0xa3   : > { %2023 = vmatprep.subr.bf16.mxu0 %v12293_v50  ;;  %2409 = vmatprep.subr.bf16.mxu1 %v12295_v51  ;;  %v15107_v50 = vld [vmem:[%s14970_s11 + $0x1f4] ss:$16 sps:$4 sm:$0xff]   ;;  %v15114_v51 = vld [vmem:[%s14970_s11 + $0x1f0] ss:$16 sps:$4 sm:$0xff]  }
  0xa4   : > { %1875 = vmatmul.mubr.bf16.gmra.mrb[8].mxu0 %v14525_v45  ;;  %2261 = vmatmul.mubr.bf16.gmra.mrb[8].mxu1 %v14525_v45  ;;  %v15084_v45 = vld [vmem:[%s14970_s11 + $0x180] ss:$16 sps:$4 sm:$0xff]  }
  0xa5   : > { %1884 = vmatprep.mubr.bf16.mxu0 %v14991_v52  ;;  %2270 = vmatprep.mubr.bf16.mxu1 %v14991_v52 }
  0xa6   : > { %2024 = vmatpush1.bf16.msra.mxu0 %v12292_v55  ;;  %2410 = vmatpush1.bf16.msra.mxu1 %v12294_v56  ;;  %v15127_v55 = vld [vmem:[%s14970_s11 + $0xc] ss:$16 sps:$4 sm:$0xff]   ;;  %v15136_v56 = vld [vmem:[%s14970_s11 + $0x8] ss:$16 sps:$4 sm:$0xff]  }
  0xa7   : > { %2025 = vmatprep.subr.bf16.mxu0 %v12301_v57  ;;  %2411 = vmatprep.subr.bf16.mxu1 %v12303_v58  ;;  %v278_v57 = vld [vmem:[#allocation2 + $0x50] sm:$0xff] }
  0xa8   : > { %v282_v58 = vld [vmem:[#allocation2 + $0x70] sm:$0xff] }
  0xa9   : > { %v12145_v62 = vcombine.high %v278_v57, %v282_v58  ;;  %v12144_v8 = vcombine.low %v278_v57, %v282_v58 }
  0xaa   : > { %2026 = vmatpush1.bf16.msra.mxu0 %v12300_v63  ;;  %2412 = vmatpush1.bf16.msra.mxu1 %v12302_v0  ;;  %v286_v63 = vld [vmem:[#allocation2 + $0x90] sm:$0xff] }
  0xab   : > { %2027 = vmatprep.subr.bf16.mxu0 %v12309_v1  ;;  %2413 = vmatprep.subr.bf16.mxu1 %v12311_v3  ;;  %v290_v0 = vld [vmem:[#allocation2 + $0xb0] sm:$0xff]  ;;  %v287_v1 = vld [vmem:[#allocation2 + $0x98] sm:$0xff]  ;;  %v12147_v3 = vcombine.high %v279_v59, %v283_v60 }
  0xac   : > { %1885 = vmatmul.mubr.bf16.gmra.mrb[12].mxu0 %v14996_v2  ;;  %2271 = vmatmul.mubr.bf16.gmra.mrb[12].mxu1 %v14996_v2  ;;  %v12153_v13 = vcombine.high %v286_v63, %v290_v0  ;;  %v12155_v23 = vcombine.high %v287_v1, %v291_v4 }
  0xad   : > { %1894 = vmatprep.mubr.bf16.mxu0 %v14999_v6  ;;  %2280 = vmatprep.mubr.bf16.mxu1 %v14999_v6 }
  0xae   : > { %2028 = vmatpush1.bf16.msra.mxu0 %v12308_v9  ;;  %2414 = vmatpush1.bf16.msra.mxu1 %v12310_v10  ;;  %v15152_v10 = vld [vmem:[#allocation2 + $0x418] sm:$0xff] }
  0xaf   : > { %2029 = vmatprep.subr.bf16.mxu0 %v12317_v11  ;;  %2415 = vmatprep.subr.bf16.mxu1 %v12319_v12  ;;  %v15154_v11 = vld [vmem:[#allocation2 + $0x438] sm:$0xff]  ;;  %v12146_v12 = vcombine.low %v279_v59, %v283_v60 }
  0xb0   : > { %v15178_v59 = vld [vmem:[%s14970_s11 + $0x48] ss:$16 sps:$4 sm:$0xff]  }
  0xb2   : > { %2030 = vmatpush1.bf16.msra.mxu0 %v12316_v15  ;;  %2416 = vmatpush1.bf16.msra.mxu1 %v12318_v16  ;;  %v298_v15 = vld [vmem:[#allocation2 + $0xf0] sm:$0xff]  ;;  %v12152_v16 = vcombine.low %v286_v63, %v290_v0  ;;  %v15181_v0 = vld [vmem:[%s14970_s11 + $0x6c] ss:$16 sps:$4 sm:$0xff]  }
  0xb3   : > { %12332 = vmatprep.subr.msk.bf16.mxu0 %vm1797_vm0, %v12325_v17  ;;  %12349 = vmatprep.subr.msk.bf16.mxu1 %vm1797_vm0, %v12327_v20  ;;  %v12154_v17 = vcombine.low %v287_v1, %v291_v4  ;;  %v12161_v18 = vcombine.high %v294_v14, %v298_v15  ;;  %v314_v63 = vld [vmem:[#allocation2 + $0x170] sm:$0xff]  ;;  %v311_v1 = vld [vmem:[#allocation2 + $0x158] sm:$0xff] }
  0xb4   : > { %1895 = vmatmul.mubr.bf16.gmra.mrb[16].mxu0 %v15006_v19  ;;  %2281 = vmatmul.mubr.bf16.gmra.mrb[16].mxu1 %v15006_v19 }
  0xb5   : > { %1904 = vmatprep.mubr.bf16.mxu0 %v15009_v25  ;;  %2290 = vmatprep.mubr.bf16.mxu1 %v15009_v25 }
  0xb6   : > { %2032 = vmatpush1.bf16.msra.mxu0 %v1799_v26  ;;  %2418 = vmatpush1.bf16.msra.mxu1 %v1805_v28  ;;  %v306_v26 = vld [vmem:[#allocation2 + $0x130] sm:$0xff]  ;;  %v307_v28 = vld [vmem:[#allocation2 + $0x138] sm:$0xff] }
  0xb7   : > { %2594 = vmatprep.subr.bf16.mxu0 %v12137_v27  ;;  %2980 = vmatprep.subr.bf16.mxu1 %v12139_v29  ;;  %v303_v27 = vld [vmem:[#allocation2 + $0x118] sm:$0xff]  ;;  %v12160_v29 = vcombine.low %v294_v14, %v298_v15  ;;  %v12169_v58 = vcombine.high %v302_v21, %v306_v26  ;;  %v12168_v4 = vcombine.low %v302_v21, %v306_v26  ;;  %v322_v14 = vld [vmem:[#allocation2 + $0x1b0] sm:$0xff] }
  0xb8   : > { %v12171_v60 = vcombine.high %v303_v27, %v307_v28  ;;  %v319_v15 = vld [vmem:[#allocation2 + $0x198] sm:$0xff]  ;;  %v326_v21 = vld [vmem:[#allocation2 + $0x1d0] sm:$0xff] }
  0xb9   : > { %v330_v26 = vld [vmem:[#allocation2 + $0x1f0] sm:$0xff] }
  0xbc   : > { %1905 = vmatmul.mubr.bf16.gmra.mrb[20].mxu0 %v15024_v32  ;;  %2291 = vmatmul.mubr.bf16.gmra.mrb[20].mxu1 %v15024_v32 }
  0xbd   : > { %1914 = vmatprep.mubr.bf16.mxu0 %v15027_v33  ;;  %2300 = vmatprep.mubr.bf16.mxu1 %v15027_v33 }
  0xc4   : > { %1915 = vmatmul.mubr.bf16.gmra.mrb[24].mxu0 %v15034_v34  ;;  %2301 = vmatmul.mubr.bf16.gmra.mrb[24].mxu1 %v15034_v34 }
  0xc5   : > { %1924 = vmatprep.mubr.bf16.mxu0 %v15037_v35  ;;  %2310 = vmatprep.mubr.bf16.mxu1 %v15037_v35 }
  0xcc   : > { %1925 = vmatmul.mubr.bf16.gmra.mrb[28].mxu0 %v15044_v37  ;;  %2311 = vmatmul.mubr.bf16.gmra.mrb[28].mxu1 %v15044_v37 }
  0xcd   : > { %1934 = vmatprep.mubr.bf16.mxu0 %v15047_v38  ;;  %2320 = vmatprep.mubr.bf16.mxu1 %v15047_v38 }
  0xd4   : > { %1935 = vmatmul.mubr.bf16.gmra.mrb[32].mxu0 %v15054_v39  ;;  %2321 = vmatmul.mubr.bf16.gmra.mrb[32].mxu1 %v15054_v39 }
  0xd5   : > { %1944 = vmatprep.mubr.bf16.mxu0 %v15057_v40  ;;  %2330 = vmatprep.mubr.bf16.mxu1 %v15057_v40 }
  0xdc   : > { %1945 = vmatmul.mubr.bf16.gmra.mrb[36].mxu0 %v15064_v41  ;;  %2331 = vmatmul.mubr.bf16.gmra.mrb[36].mxu1 %v15064_v41 }
  0xdd   : > { %1954 = vmatprep.mubr.bf16.mxu0 %v15067_v42  ;;  %2340 = vmatprep.mubr.bf16.mxu1 %v15067_v42 }
  0xe4   : > { %1955 = vmatmul.mubr.bf16.gmra.mrb[40].mxu0 %v15074_v43  ;;  %2341 = vmatmul.mubr.bf16.gmra.mrb[40].mxu1 %v15074_v43 }
  0xe5   : > { %1964 = vmatprep.mubr.bf16.mxu0 %v15077_v44  ;;  %2350 = vmatprep.mubr.bf16.mxu1 %v15077_v44 }
  0xec   : > { %1965 = vmatmul.mubr.bf16.gmra.mrb[44].mxu0 %v15084_v45  ;;  %2351 = vmatmul.mubr.bf16.gmra.mrb[44].mxu1 %v15084_v45 }
  0xed   : > { %1974 = vmatprep.mubr.bf16.mxu0 %v15087_v46  ;;  %2360 = vmatprep.mubr.bf16.mxu1 %v15087_v46 }
  0xf4   : > { %1975 = vmatmul.mubr.bf16.gmra.mrb[48].mxu0 %v15094_v47  ;;  %2361 = vmatmul.mubr.bf16.gmra.mrb[48].mxu1 %v15094_v47 }
  0xf5   : > { %1984 = vmatprep.mubr.bf16.mxu0 %v15097_v48  ;;  %2370 = vmatprep.mubr.bf16.mxu1 %v15097_v48 }
  0xfc   : > { %1985 = vmatmul.mubr.bf16.gmra.mrb[52].mxu0 %v15104_v49  ;;  %2371 = vmatmul.mubr.bf16.gmra.mrb[52].mxu1 %v15104_v49 }
  0xfd   : > { %1994 = vmatprep.mubr.bf16.mxu0 %v15107_v50  ;;  %2380 = vmatprep.mubr.bf16.mxu1 %v15107_v50 }
 0x104   : > { %1995 = vmatmul.mubr.bf16.gmra.mrb[56].mxu0 %v15114_v51  ;;  %2381 = vmatmul.mubr.bf16.gmra.mrb[56].mxu1 %v15114_v51 }
 0x105   : > { %2004 = vmatprep.mubr.bf16.mxu0 %v15117_v53  ;;  %2390 = vmatprep.mubr.bf16.mxu1 %v15117_v53 }
 0x10c   : > { %2005 = vmatmul.mubr.bf16.gmra.mrb[60].mxu0 %v15124_v54  ;;  %2391 = vmatmul.mubr.bf16.gmra.mrb[60].mxu1 %v15124_v54 }
 0x10d   : > { %12333 = vmatprep.mubr.msk.bf16.mxu0 %vm1748_vm1, %v15127_v55  ;;  %12350 = vmatprep.mubr.msk.bf16.mxu1 %vm1748_vm1, %v15127_v55 }
 0x114   : > { %2048 = vmatmul.mubr.bf16.vlgmr.msra.gmra.mrb[0].mxu0 %v15136_v56  ;;  %2434 = vmatmul.mubr.bf16.vlgmr.msra.gmra.mrb[0].mxu1 %v15136_v56 }
 0x115   : > { %2595 = vmatpush1.bf16.msra.mxu0 %v12136_v30  ;;  %2981 = vmatpush1.bf16.msra.mxu1 %v12138_v36  ;;  %v15166_v30 = vld [vmem:[%s14970_s11 + $0x28] ss:$16 sps:$4 sm:$0xff]  }
 0x116   : > { %12334 = vmatprep.mubr.msk.bf16.mxu0 %vm1748_vm1, %v15139_v61  ;;  %12351 = vmatprep.mubr.msk.bf16.mxu1 %vm1748_vm1, %v15139_v61  ;;  %v299_v36 = vld [vmem:[#allocation2 + $0xf8] sm:$0xff] }
 0x117   : > { %2596 = vmatprep.subr.bf16.mxu0 %v12145_v62  ;;  %2982 = vmatprep.subr.bf16.mxu1 %v12147_v3  ;;  %v12163_v20 = vcombine.high %v295_v31, %v299_v36  ;;  %v12162_v57 = vcombine.low %v295_v31, %v299_v36  ;;  %v310_v62 = vld [vmem:[#allocation2 + $0x150] sm:$0xff]  ;;  %v315_v3 = vld [vmem:[#allocation2 + $0x178] sm:$0xff] }
 0x118   : > { %v323_v31 = vld [vmem:[#allocation2 + $0x1b8] sm:$0xff]  ;;  %v12176_v36 = vcombine.low %v310_v62, %v314_v63 }
 0x119   : > { %2597 = vmatpush1.bf16.msra.mxu0 %v12144_v8  ;;  %2983 = vmatpush1.bf16.msra.mxu1 %v12146_v12  ;;  %v12170_v8 = vcombine.low %v303_v27, %v307_v28  ;;  %v12177_v12 = vcombine.high %v310_v62, %v314_v63  ;;  %v15193_v27 = vld [vmem:[%s14970_s11 + $0x9c] ss:$16 sps:$4 sm:$0xff]   ;;  %v334_v63 = vld [vmem:[#allocation2 + $0x210] sm:$0xff] }
 0x11a   : > { %2598 = vmatprep.subr.bf16.mxu0 %v12153_v13  ;;  %2984 = vmatprep.subr.bf16.mxu1 %v12155_v23  ;;  %v12179_v13 = vcombine.high %v311_v1, %v315_v3  ;;  %v318_v23 = vld [vmem:[#allocation2 + $0x190] sm:$0xff]  ;;  %v327_v28 = vld [vmem:[#allocation2 + $0x1d8] sm:$0xff] }
 0x11c   : > { %2058 = vmatmul.mubr.bf16.gmra.mrb[4].mxu0 %v15166_v30  ;;  %2444 = vmatmul.mubr.bf16.gmra.mrb[4].mxu1 %v15166_v30 }
 0x11d   : > { %12335 = vmatprep.mubr.msk.bf16.mxu0 %vm1748_vm1, %v15169_v24  ;;  %12352 = vmatprep.mubr.msk.bf16.mxu1 %vm1748_vm1, %v15169_v24 }
 0x11e   : > { %2599 = vmatpush1.bf16.msra.mxu0 %v12152_v16  ;;  %2985 = vmatpush1.bf16.msra.mxu1 %v12154_v17  ;;  %v12178_v16 = vcombine.low %v311_v1, %v315_v3  ;;  %v12185_v17 = vcombine.high %v318_v23, %v322_v14  ;;  %v338_v1 = vld [vmem:[#allocation2 + $0x230] sm:$0xff]  ;;  %v335_v3 = vld [vmem:[#allocation2 + $0x218] sm:$0xff] }
 0x11f   : > { %2600 = vmatprep.subr.bf16.mxu0 %v12161_v18  ;;  %2986 = vmatprep.subr.bf16.mxu1 %v12163_v20  ;;  %v15190_v18 = vld [vmem:[%s14970_s11 + $0x68] ss:$16 sps:$4 sm:$0xff]   ;;  %v12187_v20 = vcombine.high %v319_v15, %v323_v31 }
 0x122   : > { %2601 = vmatpush1.bf16.msra.mxu0 %v12160_v29  ;;  %2987 = vmatpush1.bf16.msra.mxu1 %v12162_v57  ;;  %v331_v29 = vld [vmem:[#allocation2 + $0x1f8] sm:$0xff]  ;;  %v12184_v57 = vcombine.low %v318_v23, %v322_v14 }
 0x123   : > { %2602 = vmatprep.subr.bf16.mxu0 %v12169_v58  ;;  %2988 = vmatprep.subr.bf16.mxu1 %v12171_v60  ;;  %v12186_v58 = vcombine.low %v319_v15, %v323_v31  ;;  %v12193_v60 = vcombine.high %v326_v21, %v330_v26  ;;  %v12195_v62 = vcombine.high %v327_v28, %v331_v29  ;;  %v15202_v23 = vld [vmem:[%s14970_s11 + $0x98] ss:$16 sps:$4 sm:$0xff]   ;;  %v342_v15 = vld [vmem:[#allocation2 + $0x250] sm:$0xff] }
 0x124   : > { %2068 = vmatmul.mubr.bf16.gmra.mrb[8].mxu0 %v15178_v59  ;;  %2454 = vmatmul.mubr.bf16.gmra.mrb[8].mxu1 %v15178_v59  ;;  %v346_v31 = vld [vmem:[#allocation2 + $0x270] sm:$0xff] }
 0x125   : > { %12336 = vmatprep.mubr.msk.bf16.mxu0 %vm1748_vm1, %v15181_v0  ;;  %12353 = vmatprep.mubr.msk.bf16.mxu1 %vm1748_vm1, %v15181_v0 }
 0x126   : > { %2603 = vmatpush1.bf16.msra.mxu0 %v12168_v4  ;;  %2989 = vmatpush1.bf16.msra.mxu1 %v12170_v8  ;;  %v339_v4 = vld [vmem:[#allocation2 + $0x238] sm:$0xff]  ;;  %v12192_v8 = vcombine.low %v326_v21, %v330_v26  ;;  %v12209_v21 = vcombine.high %v342_v15, %v346_v31 }
 0x127   : > { %2604 = vmatprep.subr.bf16.mxu0 %v12177_v12  ;;  %2990 = vmatprep.subr.bf16.mxu1 %v12179_v13  ;;  %v12194_v12 = vcombine.low %v327_v28, %v331_v29  ;;  %v12201_v13 = vcombine.high %v334_v63, %v338_v1  ;;  %v12203_v14 = vcombine.high %v335_v3, %v339_v4  ;;  %v350_v28 = vld [vmem:[#allocation2 + $0x290] sm:$0xff] }
 0x128   : > { %v354_v29 = vld [vmem:[#allocation2 + $0x2b0] sm:$0xff] }
 0x129   : > { %v12216_v9 = vcombine.low %v350_v28, %v354_v29 }
 0x12a   : > { %2605 = vmatpush1.bf16.msra.mxu0 %v12176_v36  ;;  %2991 = vmatpush1.bf16.msra.mxu1 %v12178_v16  ;;  %v15205_v36 = vld [vmem:[%s14970_s11 + $0xbc] ss:$16 sps:$4 sm:$0xff]  }
 0x12b   : > { %2606 = vmatprep.subr.bf16.mxu0 %v12185_v17  ;;  %2992 = vmatprep.subr.bf16.mxu1 %v12187_v20  ;;  %19122 = vst [vmem:[#allocation11_spill] sm:$0xff] %v15205_v36  ;;  %v343_v16 = vld [vmem:[#allocation2 + $0x258] sm:$0xff]  ;;  %v12200_v20 = vcombine.low %v334_v63, %v338_v1  ;;  %v12217_v1 = vcombine.high %v350_v28, %v354_v29 }
 0x12c   : > { %2078 = vmatmul.mubr.bf16.gmra.mrb[12].mxu0 %v15190_v18  ;;  %2464 = vmatmul.mubr.bf16.gmra.mrb[12].mxu1 %v15190_v18  ;;  %v347_v17 = vld [vmem:[#allocation2 + $0x278] sm:$0xff] }
 0x12d   : > { %12337 = vmatprep.mubr.msk.bf16.mxu0 %vm1748_vm1, %v15193_v27  ;;  %12354 = vmatprep.mubr.msk.bf16.mxu1 %vm1748_vm1, %v15193_v27  ;;  %v12211_v26 = vcombine.high %v343_v16, %v347_v17  ;;  %v12210_v63 = vcombine.low %v343_v16, %v347_v17  ;;  %v366_v16 = vld [vmem:[#allocation2 + $0x310] sm:$0xff] }
 0x12e   : > { %2607 = vmatpush1.bf16.msra.mxu0 %v12184_v57  ;;  %2993 = vmatpush1.bf16.msra.mxu1 %v12186_v58  ;;  %v12202_v57 = vcombine.low %v335_v3, %v339_v4  ;;  %v351_v58 = vld [vmem:[#allocation2 + $0x298] sm:$0xff]  ;;  %v370_v17 = vld [vmem:[#allocation2 + $0x330] sm:$0xff] }
 0x12f   : > { %2608 = vmatprep.subr.bf16.mxu0 %v12193_v60  ;;  %2994 = vmatprep.subr.bf16.mxu1 %v12195_v62  ;;  %v355_v60 = vld [vmem:[#allocation2 + $0x2b8] sm:$0xff]  ;;  %v12208_v62 = vcombine.low %v342_v15, %v346_v31  ;;  %v12233_v29 = vcombine.high %v366_v16, %v370_v17 }
 0x130   : > { %v15214_v3 = vld [vmem:[%s14970_s11 + $0xb8] ss:$16 sps:$4 sm:$0xff]   ;;  %v12219_v4 = vcombine.high %v351_v58, %v355_v60 }
 0x131   : > { %19123 = vst [vmem:[#allocation12_spill] sm:$0xff] %v15214_v3 }
 0x132   : > { %2609 = vmatpush1.bf16.msra.mxu0 %v12192_v8  ;;  %2995 = vmatpush1.bf16.msra.mxu1 %v12194_v12  ;;  %v358_v8 = vld [vmem:[#allocation2 + $0x2d0] sm:$0xff] }
 0x133   : > { %2610 = vmatprep.subr.bf16.mxu0 %v12201_v13  ;;  %2996 = vmatprep.subr.bf16.mxu1 %v12203_v14  ;;  %v362_v12 = vld [vmem:[#allocation2 + $0x2f0] sm:$0xff]  ;;  %v15217_v13 = vld [vmem:[%s14970_s11 + $0xdc] ss:$16 sps:$4 sm:$0xff]  }
 0x134   : > { %2088 = vmatmul.mubr.bf16.gmra.mrb[16].mxu0 %v15202_v23  ;;  %2474 = vmatmul.mubr.bf16.gmra.mrb[16].mxu1 %v15202_v23  ;;  %19124 = vst [vmem:[#allocation13_spill] sm:$0xff] %v15217_v13  ;;  %v359_v14 = vld [vmem:[#allocation2 + $0x2d8] sm:$0xff]  ;;  %v12225_v15 = vcombine.high %v358_v8, %v362_v12 }
 0x135   : > { %12338 = vmatprep.mubr.msk.bf16.mxu0 %vm1748_vm1, %v15205_v36  ;;  %12355 = vmatprep.mubr.msk.bf16.mxu1 %vm1748_vm1, %v15205_v36  ;;  %v12227_v31 = vcombine.high %v359_v14, %v363_v22  ;;  %v12226_v28 = vcombine.low %v359_v14, %v363_v22  ;;  %v12232_v36 = vcombine.low %v366_v16, %v370_v17  ;;  %v386_v14 = vld [vmem:[#allocation2 + $0x3b0] sm:$0xff] }
 0x136   : > { %2611 = vmatpush1.bf16.msra.mxu0 %v12200_v20  ;;  %2997 = vmatpush1.bf16.msra.mxu1 %v12202_v57  ;;  %v12218_v20 = vcombine.low %v351_v58, %v355_v60  ;;  %v367_v57 = vld [vmem:[#allocation2 + $0x318] sm:$0xff] }
 0x137   : > { %2612 = vmatprep.subr.bf16.mxu0 %v12209_v21  ;;  %2998 = vmatprep.subr.bf16.mxu1 %v12211_v26  ;;  %v371_v21 = vld [vmem:[#allocation2 + $0x338] sm:$0xff]  ;;  %v12224_v26 = vcombine.low %v358_v8, %v362_v12  ;;  %v382_v12 = vld [vmem:[#allocation2 + $0x390] sm:$0xff] }
 0x138   : > { %v15226_v58 = vld [vmem:[%s14970_s11 + $0xd8] ss:$16 sps:$4 sm:$0xff]   ;;  %v12235_v60 = vcombine.high %v367_v57, %v371_v21  ;;  %v12249_v17 = vcombine.high %v382_v12, %v386_v14 }
 0x139   : > { %19125 = vst [vmem:[#allocation14_spill] sm:$0xff] %v15226_v58 }
 0x13a   : > { %2613 = vmatpush1.bf16.msra.mxu0 %v12208_v62  ;;  %2999 = vmatpush1.bf16.msra.mxu1 %v12210_v63  ;;  %v374_v62 = vld [vmem:[#allocation2 + $0x350] sm:$0xff] }
 0x13b   : > { %2614 = vmatprep.subr.bf16.mxu0 %v12217_v1  ;;  %3000 = vmatprep.subr.bf16.mxu1 %v12219_v4  ;;  %v378_v63 = vld [vmem:[#allocation2 + $0x370] sm:$0xff]  ;;  %v15229_v1 = vld [vmem:[%s14970_s11 + $0xfc] ss:$16 sps:$4 sm:$0xff]  }
 0x13c   : > { %2098 = vmatmul.mubr.bf16.gmra.mrb[20].mxu0 %v15214_v3  ;;  %2484 = vmatmul.mubr.bf16.gmra.mrb[20].mxu1 %v15214_v3  ;;  %19126 = vst [vmem:[#allocation15_spill] sm:$0xff] %v15229_v1  ;;  %v375_v4 = vld [vmem:[#allocation2 + $0x358] sm:$0xff]  ;;  %v12241_v8 = vcombine.high %v374_v62, %v378_v63 }
 0x13d   : > { %12339 = vmatprep.mubr.msk.bf16.mxu0 %vm1748_vm1, %v15217_v13  ;;  %12356 = vmatprep.mubr.msk.bf16.mxu1 %vm1748_vm1, %v15217_v13  ;;  %v379_v3 = vld [vmem:[#allocation2 + $0x378] sm:$0xff]  ;;  %v12248_v13 = vcombine.low %v382_v12, %v386_v14 }
 0x13e   : > { %2615 = vmatpush1.bf16.msra.mxu0 %v12216_v9  ;;  %3001 = vmatpush1.bf16.msra.mxu1 %v12218_v20  ;;  %v12234_v9 = vcombine.low %v367_v57, %v371_v21  ;;  %v12243_v22 = vcombine.high %v375_v4, %v379_v3  ;;  %v383_v20 = vld [vmem:[#allocation2 + $0x398] sm:$0xff]  ;;  %v12242_v16 = vcombine.low %v375_v4, %v379_v3 }
 0x13f   : > { %2616 = vmatprep.subr.bf16.mxu0 %v12225_v15  ;;  %3002 = vmatprep.subr.bf16.mxu1 %v12227_v31  ;;  %v387_v15 = vld [vmem:[#allocation2 + $0x3b8] sm:$0xff]  ;;  %v12240_v31 = vcombine.low %v374_v62, %v378_v63 }
 0x140   : > { %v15238_v57 = vld [vmem:[%s14970_s11 + $0xf8] ss:$16 sps:$4 sm:$0xff]   ;;  %v12251_v21 = vcombine.high %v383_v20, %v387_v15  ;;  %v15257_v12 = vld [vmem:[%s14970_s11 + $0x14c] ss:$16 sps:$4 sm:$0xff]  }
 0x141   : > { %19127 = vst [vmem:[#allocation16_spill] sm:$0xff] %v15238_v57  ;;  %19130 = vst [vmem:[#allocation19_spill] sm:$0xff] %v15257_v12  ;;  %v15278_v14 = vld [vmem:[%s14970_s11 + $0x168] ss:$16 sps:$4 sm:$0xff]  }
 0x142   : > { %2617 = vmatpush1.bf16.msra.mxu0 %v12224_v26  ;;  %3003 = vmatpush1.bf16.msra.mxu1 %v12226_v28  ;;  %v390_v26 = vld [vmem:[#allocation2 + $0x3d0] sm:$0xff]  ;;  %19133 = vst [vmem:[#allocation22_spill] sm:$0xff] %v15278_v14 }
 0x143   : > { %2618 = vmatprep.subr.bf16.mxu0 %v12233_v29  ;;  %3004 = vmatprep.subr.bf16.mxu1 %v12235_v60  ;;  %v394_v28 = vld [vmem:[#allocation2 + $0x3f0] sm:$0xff]  ;;  %v15241_v29 = vld [vmem:[%s14970_s11 + $0x12c] ss:$16 sps:$4 sm:$0xff]  }
 0x144   : > { %2108 = vmatmul.mubr.bf16.gmra.mrb[24].mxu0 %v15226_v58  ;;  %2494 = vmatmul.mubr.bf16.gmra.mrb[24].mxu1 %v15226_v58  ;;  %19128 = vst [vmem:[#allocation17_spill] sm:$0xff] %v15241_v29  ;;  %v391_v60 = vld [vmem:[#allocation2 + $0x3d8] sm:$0xff]  ;;  %v12257_v62 = vcombine.high %v390_v26, %v394_v28  ;;  %v12256_v63 = vcombine.low %v390_v26, %v394_v28 }
 0x145   : > { %12340 = vmatprep.mubr.msk.bf16.mxu0 %vm1748_vm1, %v15229_v1  ;;  %12357 = vmatprep.mubr.msk.bf16.mxu1 %vm1748_vm1, %v15229_v1  ;;  %v395_v58 = vld [vmem:[#allocation2 + $0x3f8] sm:$0xff] }
 0x146   : > { %2619 = vmatpush1.bf16.msra.mxu0 %v12232_v36  ;;  %3005 = vmatpush1.bf16.msra.mxu1 %v12234_v9  ;;  %v12250_v36 = vcombine.low %v383_v20, %v387_v15  ;;  %v12259_v3 = vcombine.high %v391_v60, %v395_v58  ;;  %v12258_v4 = vcombine.low %v391_v60, %v395_v58  ;;  %v15269_v58 = vld [vmem:[%s14970_s11 + $0x16c] ss:$16 sps:$4 sm:$0xff]   ;;  %v15290_v15 = vld [vmem:[%s14970_s11 + $0x188] ss:$16 sps:$4 sm:$0xff]  }
 0x147   : > { %2620 = vmatprep.subr.bf16.mxu0 %v12241_v8  ;;  %3006 = vmatprep.subr.bf16.mxu1 %v12243_v22  ;;  %v12265_v9 = vcombine.high %v15142_v5, %v15144_v7  ;;  %v15252_v8 = vld [vmem:[%s14970_s11 + $0x128] ss:$16 sps:$4 sm:$0xff]   ;;  %v12267_v22 = vcombine.high %v15152_v10, %v15154_v11  ;;  %19132 = vst [vmem:[#allocation21_spill] sm:$0xff] %v15269_v58  ;;  %v15281_v20 = vld [vmem:[%s14970_s11 + $0x18c] ss:$16 sps:$4 sm:$0xff]   ;;  %19135 = vst [vmem:[#allocation24_spill] sm:$0xff] %v15290_v15 }
 0x148   : > { %19129 = vst [vmem:[#allocation18_spill] sm:$0xff] %v15252_v8  ;;  %19134 = vst [vmem:[#allocation23_spill] sm:$0xff] %v15281_v20  ;;  %v15317_v26 = vld [vmem:[%s14970_s11 + $0x1fc] ss:$16 sps:$4 sm:$0xff]   ;;  %v15326_v28 = vld [vmem:[%s14970_s11 + $0x1f8] ss:$16 sps:$4 sm:$0xff]  }
 0x149   : > { %19140 = vst [vmem:[#allocation29_spill] sm:$0xff] %v15317_v26  ;;  %19141 = vst [vmem:[#allocation30_spill] sm:$0xff] %v15326_v28  ;;  %v15329_v60 = vld [vmem:[%s14970_s11 + $0x21c] ss:$16 sps:$4 sm:$0xff]  }
 0x14a   : > { %2621 = vmatpush1.bf16.msra.mxu0 %v12240_v31  ;;  %3007 = vmatpush1.bf16.msra.mxu1 %v12242_v16  ;;  %v15293_v31 = vld [vmem:[%s14970_s11 + $0x1bc] ss:$16 sps:$4 sm:$0xff]   ;;  %v15302_v16 = vld [vmem:[%s14970_s11 + $0x1b8] ss:$16 sps:$4 sm:$0xff]   ;;  %19142 = vst [vmem:[#allocation31_spill] sm:$0xff] %v15329_v60 }
 0x14b   : > { %2622 = vmatprep.subr.bf16.mxu0 %v12249_v17  ;;  %3008 = vmatprep.subr.bf16.mxu1 %v12251_v21  ;;  %19136 = vst [vmem:[#allocation25_spill] sm:$0xff] %v15293_v31  ;;  %19137 = vst [vmem:[#allocation26_spill] sm:$0xff] %v15302_v16  ;;  %v15305_v17 = vld [vmem:[%s14970_s11 + $0x1dc] ss:$16 sps:$4 sm:$0xff]   ;;  %v15314_v21 = vld [vmem:[%s14970_s11 + $0x1d8] ss:$16 sps:$4 sm:$0xff]  }
 0x14c   : > { %2118 = vmatmul.mubr.bf16.gmra.mrb[28].mxu0 %v15238_v57  ;;  %2504 = vmatmul.mubr.bf16.gmra.mrb[28].mxu1 %v15238_v57  ;;  %19138 = vst [vmem:[#allocation27_spill] sm:$0xff] %v15305_v17  ;;  %19139 = vst [vmem:[#allocation28_spill] sm:$0xff] %v15314_v21 }
 0x14d   : > { %12341 = vmatprep.mubr.msk.bf16.mxu0 %vm1748_vm1, %v15241_v29  ;;  %12358 = vmatprep.mubr.msk.bf16.mxu1 %vm1748_vm1, %v15241_v29  ;;  %v435_v29 = vld [vmem:[#allocation2 + $0x538] sm:$0xff] }
 0x14e   : > { %2623 = vmatpush1.bf16.msra.mxu0 %v12248_v13  ;;  %3009 = vmatpush1.bf16.msra.mxu1 %v12250_v36  ;;  %v15266_v13 = vld [vmem:[%s14970_s11 + $0x148] ss:$16 sps:$4 sm:$0xff]  }
 0x14f   : > { %2624 = vmatprep.subr.bf16.mxu0 %v12257_v62  ;;  %3010 = vmatprep.subr.bf16.mxu1 %v12259_v3  ;;  %19131 = vst [vmem:[#allocation20_spill] sm:$0xff] %v15266_v13  ;;  %v15338_v36 = vld [vmem:[%s14970_s11 + $0x218] ss:$16 sps:$4 sm:$0xff]   ;;  %v14685_v62 = vld [vmem:[%s14970_s11 + $0x4] ss:$16 sps:$4 sm:$0xff]  }
 0x150   : > { %19143 = vst [vmem:[#allocation32_spill] sm:$0xff] %v15338_v36  ;;  %v406_v3 = vld [vmem:[#allocation2 + $0x450] sm:$0xff] }
 0x152   : > { %2625 = vmatpush1.bf16.msra.mxu0 %v12256_v63  ;;  %3011 = vmatpush1.bf16.msra.mxu1 %v12258_v4  ;;  %v410_v63 = vld [vmem:[#allocation2 + $0x470] sm:$0xff]  ;;  %v407_v4 = vld [vmem:[#allocation2 + $0x458] sm:$0xff] }
 0x153   : > { %2787 = vmatprep.subr.bf16.mxu0 %v12265_v9  ;;  %3173 = vmatprep.subr.bf16.mxu1 %v12267_v22  ;;  %v411_v9 = vld [vmem:[#allocation2 + $0x478] sm:$0xff]  ;;  %v12273_v22 = vcombine.high %v406_v3, %v410_v63 }
 0x154   : > { %2128 = vmatmul.mubr.bf16.gmra.mrb[32].mxu0 %v15252_v8  ;;  %2514 = vmatmul.mubr.bf16.gmra.mrb[32].mxu1 %v15252_v8  ;;  %v434_v8 = vld [vmem:[#allocation2 + $0x530] sm:$0xff] }
 0x155   : > { %12342 = vmatprep.mubr.msk.bf16.mxu0 %vm1748_vm1, %v15257_v12  ;;  %12359 = vmatprep.mubr.msk.bf16.mxu1 %vm1748_vm1, %v15257_v12 }
 0x15c   : > { %2138 = vmatmul.mubr.bf16.gmra.mrb[36].mxu0 %v15266_v13  ;;  %2524 = vmatmul.mubr.bf16.gmra.mrb[36].mxu1 %v15266_v13  ;;  %v12274_v13 = vcombine.low %v407_v4, %v411_v9 }
 0x15d   : > { %12343 = vmatprep.mubr.msk.bf16.mxu0 %vm1748_vm1, %v15269_v58  ;;  %12360 = vmatprep.mubr.msk.bf16.mxu1 %vm1748_vm1, %v15269_v58  ;;  %v14687_v58 = vld [vmem:[%s14970_s11 + $0x24] ss:$16 sps:$4 sm:$0xff]  }
 0x164   : > { %2148 = vmatmul.mubr.bf16.gmra.mrb[40].mxu0 %v15278_v14  ;;  %2534 = vmatmul.mubr.bf16.gmra.mrb[40].mxu1 %v15278_v14  ;;  %v19145_v14 = vcombine.low %v15152_v10, %v15154_v11  ;;  %v426_v10 = vld [vmem:[#allocation2 + $0x4f0] sm:$0xff]  ;;  %v423_v11 = vld [vmem:[#allocation2 + $0x4d8] sm:$0xff] }
 0x165   : > { %12344 = vmatprep.mubr.msk.bf16.mxu0 %vm1748_vm1, %v15281_v20  ;;  %12361 = vmatprep.mubr.msk.bf16.mxu1 %vm1748_vm1, %v15281_v20  ;;  %v15351_v20 = vld [vmem:[#allocation2 + $0xc48] sm:$0xff] }
 0x16c   : > { %2158 = vmatmul.mubr.bf16.gmra.mrb[44].mxu0 %v15290_v15  ;;  %2544 = vmatmul.mubr.bf16.gmra.mrb[44].mxu1 %v15290_v15  ;;  %v15349_v15 = vld [vmem:[#allocation2 + $0xc60] sm:$0xff] }
 0x16d   : > { %12345 = vmatprep.mubr.msk.bf16.mxu0 %vm1748_vm1, %v15293_v31  ;;  %12362 = vmatprep.mubr.msk.bf16.mxu1 %vm1748_vm1, %v15293_v31  ;;  %v12272_v31 = vcombine.low %v406_v3, %v410_v63  ;;  %v422_v3 = vld [vmem:[#allocation2 + $0x4d0] sm:$0xff] }
 0x174   : > { %2168 = vmatmul.mubr.bf16.gmra.mrb[48].mxu0 %v15302_v16  ;;  %2554 = vmatmul.mubr.bf16.gmra.mrb[48].mxu1 %v15302_v16  ;;  %v419_v16 = vld [vmem:[#allocation2 + $0x4b8] sm:$0xff] }
 0x175   : > { %12346 = vmatprep.mubr.msk.bf16.mxu0 %vm1748_vm1, %v15305_v17  ;;  %12363 = vmatprep.mubr.msk.bf16.mxu1 %vm1748_vm1, %v15305_v17  ;;  %v415_v17 = vld [vmem:[#allocation2 + $0x498] sm:$0xff] }
 0x17c   : > { %2178 = vmatmul.mubr.bf16.gmra.mrb[52].mxu0 %v15314_v21  ;;  %2564 = vmatmul.mubr.bf16.gmra.mrb[52].mxu1 %v15314_v21  ;;  %v14686_v21 = vld [vmem:[%s14970_s11] ss:$16 sps:$4 sm:$0xff]  }
 0x17d   : > { %12347 = vmatprep.mubr.msk.bf16.mxu0 %vm1748_vm1, %v15317_v26  ;;  %12364 = vmatprep.mubr.msk.bf16.mxu1 %vm1748_vm1, %v15317_v26  ;;  %v418_v26 = vld [vmem:[#allocation2 + $0x4b0] sm:$0xff] }
 0x184   : > { %2188 = vmatmul.mubr.bf16.gmra.mrb[56].mxu0 %v15326_v28  ;;  %2574 = vmatmul.mubr.bf16.gmra.mrb[56].mxu1 %v15326_v28  ;;  %v414_v28 = vld [vmem:[#allocation2 + $0x490] sm:$0xff] }
 0x185   : > { %12348 = vmatprep.mubr.msk.bf16.mxu0 %vm1748_vm1, %v15329_v60  ;;  %12365 = vmatprep.mubr.msk.bf16.mxu1 %vm1748_vm1, %v15329_v60  ;;  %v12275_v60 = vcombine.high %v407_v4, %v411_v9  ;;  %v12281_v12 = vcombine.high %v414_v28, %v418_v26  ;;  %v12280_v63 = vcombine.low %v414_v28, %v418_v26  ;;  %v442_v26 = vld [vmem:[#allocation2 + $0x570] sm:$0xff]  ;;  %v439_v28 = vld [vmem:[#allocation2 + $0x558] sm:$0xff] }
 0x186   : > { %v12282_v4 = vcombine.low %v415_v17, %v419_v16  ;;  %v12289_v9 = vcombine.high %v422_v3, %v426_v10 }
 0x18c   : > { %2198 = vmatmul.mubr.bf16.gmra.mrb[60].mxu0 %v15338_v36  ;;  %2584 = vmatmul.mubr.bf16.gmra.mrb[60].mxu1 %v15338_v36  ;;  %v19144_v36 = vcombine.low %v15142_v5, %v15144_v7  ;;  %v15359_v5 = vld [vmem:[#allocation2 + $0xc68] sm:$0xff]  ;;  %v12283_v7 = vcombine.high %v415_v17, %v419_v16  ;;  %v438_v17 = vld [vmem:[#allocation2 + $0x550] sm:$0xff] }
 0x18d   : > { %2626 = vmatprep.mubr.bf16.mxu0 %v14685_v62  ;;  %3012 = vmatprep.mubr.bf16.mxu1 %v14685_v62  ;;  %v15347_v62 = vld [vmem:[#allocation2 + $0xc40] sm:$0xff]  ;;  %v12305_v1 = vcombine.high %v438_v17, %v442_v26 }
 0x194   : > { %2627 = vmatmul.mubr.bf16.vlgmr.msra.gmra.mrb[64].mxu0 %v14686_v21  ;;  %3013 = vmatmul.mubr.bf16.vlgmr.msra.gmra.mrb[64].mxu1 %v14686_v21  ;;  %v430_v21 = vld [vmem:[#allocation2 + $0x510] sm:$0xff] }
 0x195   : > { %2788 = vmatpush1.bf16.msra.mxu0 %v19144_v36  ;;  %3174 = vmatpush1.bf16.msra.mxu1 %v19145_v14  ;;  %v427_v14 = vld [vmem:[#allocation2 + $0x4f8] sm:$0xff]  ;;  %v14689_v36 = vld [vmem:[%s14970_s11 + $0x44] ss:$16 sps:$4 sm:$0xff]  }
 0x196   : > { %2636 = vmatprep.mubr.bf16.mxu0 %v14687_v58  ;;  %3022 = vmatprep.mubr.bf16.mxu1 %v14687_v58  ;;  %v14688_v58 = vld [vmem:[%s14970_s11 + $0x20] ss:$16 sps:$4 sm:$0xff]  }
 0x197   : > { %2789 = vmatprep.subr.bf16.mxu0 %v12273_v22  ;;  %3175 = vmatprep.subr.bf16.mxu1 %v12275_v60  ;;  %v12291_v22 = vcombine.high %v423_v11, %v427_v14  ;;  %v431_v60 = vld [vmem:[#allocation2 + $0x518] sm:$0xff] }
 0x198   : > { %v12299_v16 = vcombine.high %v431_v60, %v435_v29  ;;  %v12298_v57 = vcombine.low %v431_v60, %v435_v29  ;;  %v455_v60 = vld [vmem:[#allocation2 + $0x5d8] sm:$0xff] }
 0x199   : > { %2790 = vmatpush1.bf16.msra.mxu0 %v12272_v31  ;;  %3176 = vmatpush1.bf16.msra.mxu1 %v12274_v13  ;;  %v12288_v31 = vcombine.low %v422_v3, %v426_v10  ;;  %v12297_v13 = vcombine.high %v430_v21, %v434_v8  ;;  %v446_v10 = vld [vmem:[#allocation2 + $0x590] sm:$0xff] }
 0x19a   : > { %2791 = vmatprep.subr.bf16.mxu0 %v12281_v12  ;;  %3177 = vmatprep.subr.bf16.mxu1 %v12283_v7  ;;  %v12290_v12 = vcombine.low %v423_v11, %v427_v14  ;;  %v443_v7 = vld [vmem:[#allocation2 + $0x578] sm:$0xff] }
 0x19b   : > { %v12307_v3 = vcombine.high %v439_v28, %v443_v7  ;;  %v447_v11 = vld [vmem:[#allocation2 + $0x598] sm:$0xff] }
 0x19c   : > { %2637 = vmatmul.mubr.bf16.gmra.mrb[68].mxu0 %v14688_v58  ;;  %3023 = vmatmul.mubr.bf16.gmra.mrb[68].mxu1 %v14688_v58  ;;  %v12296_v58 = vcombine.low %v430_v21, %v434_v8  ;;  %v451_v14 = vld [vmem:[#allocation2 + $0x5b8] sm:$0xff]  ;;  %v12306_v8 = vcombine.low %v439_v28, %v443_v7 }
 0x19d   : > { %2646 = vmatprep.mubr.bf16.mxu0 %v14689_v36  ;;  %3032 = vmatprep.mubr.bf16.mxu1 %v14689_v36  ;;  %v14690_v36 = vld [vmem:[%s14970_s11 + $0x40] ss:$16 sps:$4 sm:$0xff]   ;;  %v12315_v21 = vcombine.high %v447_v11, %v451_v14 }
 0x19e   : > { %2792 = vmatpush1.bf16.msra.mxu0 %v12280_v63  ;;  %3178 = vmatpush1.bf16.msra.mxu1 %v12282_v4  ;;  %v450_v63 = vld [vmem:[#allocation2 + $0x5b0] sm:$0xff]  ;;  %v12304_v4 = vcombine.low %v438_v17, %v442_v26 }
 0x19f   : > { %2793 = vmatprep.subr.bf16.mxu0 %v12289_v9  ;;  %3179 = vmatprep.subr.bf16.mxu1 %v12291_v22  ;;  %v12313_v29 = vcombine.high %v446_v10, %v450_v63  ;;  %v454_v9 = vld [vmem:[#allocation2 + $0x5d0] sm:$0xff] }
 0x1a0   : > { %v458_v22 = vld [vmem:[#allocation2 + $0x5f0] sm:$0xff] }
 0x1a1   : > { %v12320_v17 = vcombine.low %v454_v9, %v458_v22 }
 0x1a2   : > { %2794 = vmatpush1.bf16.msra.mxu0 %v12288_v31  ;;  %3180 = vmatpush1.bf16.msra.mxu1 %v12290_v12  ;;  %v459_v31 = vld [vmem:[#allocation2 + $0x5f8] sm:$0xff]  ;;  %v12312_v12 = vcombine.low %v446_v10, %v450_v63  ;;  %v12467_v10 = vcombine.high %v15351_v20, %v15359_v5 }
 0x1a3   : > { %2795 = vmatprep.subr.bf16.mxu0 %v12297_v13  ;;  %3181 = vmatprep.subr.bf16.mxu1 %v12299_v16  ;;  %v12314_v13 = vcombine.low %v447_v11, %v451_v14  ;;  %v12321_v16 = vcombine.high %v454_v9, %v458_v22  ;;  %v12322_v26 = vcombine.low %v455_v60, %v459_v31  ;;  %v4146_v11 = vld [vmem:[#allocation2 + $0xd40] sm:$0xff] }
 0x1a4   : > { %2647 = vmatmul.mubr.bf16.gmra.mrb[72].mxu0 %v14690_v36  ;;  %3033 = vmatmul.mubr.bf16.gmra.mrb[72].mxu1 %v14690_v36  ;;  %v4150_v14 = vld [vmem:[#allocation2 + $0xd60] sm:$0xff] }
 0x1a5   : > { %2656 = vmatprep.mubr.bf16.mxu0 %v14991_v52  ;;  %3042 = vmatprep.mubr.bf16.mxu1 %v14991_v52  ;;  %v12323_v52 = vcombine.high %v455_v60, %v459_v31  ;;  %v4154_v22 = vld [vmem:[#allocation2 + $0xd80] sm:$0xff]  ;;  %v4155_v31 = vld [vmem:[#allocation2 + $0xd88] sm:$0xff] }
 0x1a6   : > { %2796 = vmatpush1.bf16.msra.mxu0 %v12296_v58  ;;  %3182 = vmatpush1.bf16.msra.mxu1 %v12298_v57  ;;  %v462_v57 = vld [vmem:[#allocation2 + $0x610] sm:$0x77]  ;;  %v4158_v60 = vld [vmem:[#allocation2 + $0xda0] sm:$0xff] }
 0x1a7   : > { %2797 = vmatprep.subr.bf16.mxu0 %v12305_v1  ;;  %3183 = vmatprep.subr.bf16.mxu1 %v12307_v3  ;;  %v463_v1 = vld [vmem:[#allocation2 + $0x618] sm:$0x77]  ;;  %v12329_v28 = vcombine.high %v462_v57, %v462_v57  ;;  %v12328_v7 = vcombine.low %v462_v57, %v462_v57  ;;  %v12465_v3 = vcombine.high %v15347_v62, %v15349_v15  ;;  %v4166_v57 = vld [vmem:[#allocation2 + $0xde0] sm:$0xff] }
 0x1a8   : > { %v12331_v58 = vcombine.high %v463_v1, %v463_v1  ;;  %v12330_v36 = vcombine.low %v463_v1, %v463_v1  ;;  %v4163_v1 = vld [vmem:[#allocation2 + $0xdc8] sm:$0xff] }
 0x1aa   : > { %2798 = vmatpush1.bf16.msra.mxu0 %v12304_v4  ;;  %3184 = vmatpush1.bf16.msra.mxu1 %v12306_v8  ;;  %v4151_v4 = vld [vmem:[#allocation2 + $0xd68] sm:$0xff] }
 0x1ab   : > { %2799 = vmatprep.subr.bf16.mxu0 %v12313_v29  ;;  %3185 = vmatprep.subr.bf16.mxu1 %v12315_v21  ;;  %v12497_v21 = vcombine.high %v4146_v11, %v4150_v14 }
 0x1ac   : > { %2657 = vmatmul.mubr.bf16.gmra.mrb[76].mxu0 %v14996_v2  ;;  %3043 = vmatmul.mubr.bf16.gmra.mrb[76].mxu1 %v14996_v2  ;;  %v1811_v2 = vsel %vm1797_vm0, %v12328_v7, 0 }
 0x1ad   : > { %2666 = vmatprep.mubr.bf16.mxu0 %v14999_v6  ;;  %3052 = vmatprep.mubr.bf16.mxu1 %v14999_v6  ;;  %v1817_v6 = vsel %vm1797_vm0, %v12330_v36, 0  ;;  %v4170_v36 = vld [vmem:[#allocation2 + $0xe00] sm:$0xff] }
 0x1ae   : > { %2800 = vmatpush1.bf16.msra.mxu0 %v12312_v12  ;;  %3186 = vmatpush1.bf16.msra.mxu1 %v12314_v13  ;;  %v12496_v12 = vcombine.low %v4146_v11, %v4150_v14  ;;  %v4202_v11 = vld [vmem:[#allocation2 + $0xf00] sm:$0xff] }
 0x1af   : > { %2801 = vmatprep.subr.bf16.mxu0 %v12321_v16  ;;  %3187 = vmatprep.subr.bf16.mxu1 %v12323_v52  ;;  %v12505_v16 = vcombine.high %v4154_v22, %v4158_v60  ;;  %v4162_v52 = vld [vmem:[#allocation2 + $0xdc0] sm:$0xff] }
 0x1b0   : > { %v12513_v7 = vcombine.high %v4162_v52, %v4166_v57  ;;  %v4206_v14 = vld [vmem:[#allocation2 + $0xf20] sm:$0xff] }
 0x1b2   : > { %2802 = vmatpush1.bf16.msra.mxu0 %v12320_v17  ;;  %3188 = vmatpush1.bf16.msra.mxu1 %v12322_v26  ;;  %v4167_v17 = vld [vmem:[#allocation2 + $0xde8] sm:$0xff]  ;;  %v12504_v26 = vcombine.low %v4154_v22, %v4158_v60  ;;  %v4210_v22 = vld [vmem:[#allocation2 + $0xf40] sm:$0xff] }
 0x1b3   : > { %12366 = vmatprep.subr.msk.bf16.mxu0 %vm1797_vm0, %v12329_v28  ;;  %12383 = vmatprep.subr.msk.bf16.mxu1 %vm1797_vm0, %v12331_v58  ;;  %v12515_v58 = vcombine.high %v4163_v1, %v4167_v17  ;;  %v4214_v60 = vld [vmem:[#allocation2 + $0xf60] sm:$0xff] }
 0x1b4   : > { %2667 = vmatmul.mubr.bf16.gmra.mrb[80].mxu0 %v15006_v19  ;;  %3053 = vmatmul.mubr.bf16.gmra.mrb[80].mxu1 %v15006_v19  ;;  %v4122_v19 = vld [vmem:[#allocation2 + $0xc80] sm:$0xff] }
 0x1b5   : > { %2676 = vmatprep.mubr.bf16.mxu0 %v15009_v25  ;;  %3062 = vmatprep.mubr.bf16.mxu1 %v15009_v25  ;;  %v4126_v25 = vld [vmem:[#allocation2 + $0xca0] sm:$0xff] }
 0x1b6   : > { %2804 = vmatpush1.bf16.msra.mxu0 %v1811_v2  ;;  %3190 = vmatpush1.bf16.msra.mxu1 %v1817_v6  ;;  %v4174_v2 = vld [vmem:[#allocation2 + $0xe20] sm:$0xff]  ;;  %v12512_v6 = vcombine.low %v4162_v52, %v4166_v57 }
 0x1b7   : > { %5602 = vmatprep.subr.bf16.mxu0 %v12465_v3  ;;  %5988 = vmatprep.subr.bf16.mxu1 %v12467_v10  ;;  %v4171_v3 = vld [vmem:[#allocation2 + $0xe08] sm:$0xff]  ;;  %v12514_v10 = vcombine.low %v4163_v1, %v4167_v17  ;;  %v4218_v57 = vld [vmem:[#allocation2 + $0xf80] sm:$0xff] }
 0x1b8   : > { %v4222_v1 = vld [vmem:[#allocation2 + $0xfa0] sm:$0xff]  ;;  %v4219_v17 = vld [vmem:[#allocation2 + $0xf88] sm:$0xff] }
 0x1bc   : > { %2677 = vmatmul.mubr.bf16.gmra.mrb[84].mxu0 %v15024_v32  ;;  %3063 = vmatmul.mubr.bf16.gmra.mrb[84].mxu1 %v15024_v32  ;;  %v4123_v32 = vld [vmem:[#allocation2 + $0xc88] sm:$0xff] }
 0x1bd   : > { %2686 = vmatprep.mubr.bf16.mxu0 %v15027_v33  ;;  %3072 = vmatprep.mubr.bf16.mxu1 %v15027_v33  ;;  %v4127_v33 = vld [vmem:[#allocation2 + $0xca8] sm:$0xff] }
 0x1c4   : > { %2687 = vmatmul.mubr.bf16.gmra.mrb[88].mxu0 %v15034_v34  ;;  %3073 = vmatmul.mubr.bf16.gmra.mrb[88].mxu1 %v15034_v34  ;;  %v12473_v34 = vcombine.high %v4122_v19, %v4126_v25 }
 0x1c5   : > { %2696 = vmatprep.mubr.bf16.mxu0 %v15037_v35  ;;  %3082 = vmatprep.mubr.bf16.mxu1 %v15037_v35  ;;  %v4130_v35 = vld [vmem:[#allocation2 + $0xcc0] sm:$0xff] }
 0x1cc   : > { %2697 = vmatmul.mubr.bf16.gmra.mrb[92].mxu0 %v15044_v37  ;;  %3083 = vmatmul.mubr.bf16.gmra.mrb[92].mxu1 %v15044_v37  ;;  %v4134_v37 = vld [vmem:[#allocation2 + $0xce0] sm:$0xff] }
 0x1cd   : > { %2706 = vmatprep.mubr.bf16.mxu0 %v15047_v38  ;;  %3092 = vmatprep.mubr.bf16.mxu1 %v15047_v38  ;;  %v4131_v38 = vld [vmem:[#allocation2 + $0xcc8] sm:$0xff] }
 0x1d4   : > { %2707 = vmatmul.mubr.bf16.gmra.mrb[96].mxu0 %v15054_v39  ;;  %3093 = vmatmul.mubr.bf16.gmra.mrb[96].mxu1 %v15054_v39  ;;  %v12475_v39 = vcombine.high %v4123_v32, %v4127_v33 }
 0x1d5   : > { %2716 = vmatprep.mubr.bf16.mxu0 %v15057_v40  ;;  %3102 = vmatprep.mubr.bf16.mxu1 %v15057_v40  ;;  %v4135_v40 = vld [vmem:[#allocation2 + $0xce8] sm:$0xff] }
 0x1dc   : > { %2717 = vmatmul.mubr.bf16.gmra.mrb[100].mxu0 %v15064_v41  ;;  %3103 = vmatmul.mubr.bf16.gmra.mrb[100].mxu1 %v15064_v41  ;;  %v15431_v41 = vld [vmem:[#allocation2 + $0x1040] sm:$0xff] }
 0x1dd   : > { %2726 = vmatprep.mubr.bf16.mxu0 %v15067_v42  ;;  %3112 = vmatprep.mubr.bf16.mxu1 %v15067_v42  ;;  %v15433_v42 = vld [vmem:[#allocation2 + $0x1060] sm:$0xff] }
 0x1e4   : > { %2727 = vmatmul.mubr.bf16.gmra.mrb[104].mxu0 %v15074_v43  ;;  %3113 = vmatmul.mubr.bf16.gmra.mrb[104].mxu1 %v15074_v43  ;;  %v19146_v43 = vcombine.low %v15347_v62, %v15349_v15  ;;  %v12480_v15 = vcombine.low %v4130_v35, %v4134_v37  ;;  %v12482_v62 = vcombine.low %v4131_v38, %v4135_v40 }
 0x1e5   : > { %2736 = vmatprep.mubr.bf16.mxu0 %v15077_v44  ;;  %3122 = vmatprep.mubr.bf16.mxu1 %v15077_v44  ;;  %v12472_v44 = vcombine.low %v4122_v19, %v4126_v25  ;;  %v12521_v19 = vcombine.high %v4170_v36, %v4174_v2  ;;  %v4178_v25 = vld [vmem:[#allocation2 + $0xe40] sm:$0xff] }
 0x1ec   : > { %2737 = vmatmul.mubr.bf16.gmra.mrb[108].mxu0 %v15084_v45  ;;  %3123 = vmatmul.mubr.bf16.gmra.mrb[108].mxu1 %v15084_v45  ;;  %v12592_v45 = vcombine.low %v15431_v41, %v15433_v42 }
 0x1ed   : > { %2746 = vmatprep.mubr.bf16.mxu0 %v15087_v46  ;;  %3132 = vmatprep.mubr.bf16.mxu1 %v15087_v46  ;;  %v15441_v46 = vld [vmem:[#allocation2 + $0x1048] sm:$0xff] }
 0x1f4   : > { %2747 = vmatmul.mubr.bf16.gmra.mrb[112].mxu0 %v15094_v47  ;;  %3133 = vmatmul.mubr.bf16.gmra.mrb[112].mxu1 %v15094_v47  ;;  %v15443_v47 = vld [vmem:[#allocation2 + $0x1068] sm:$0xff] }
 0x1f5   : > { %2756 = vmatprep.mubr.bf16.mxu0 %v15097_v48  ;;  %3142 = vmatprep.mubr.bf16.mxu1 %v15097_v48  ;;  %v19147_v48 = vcombine.low %v15351_v20, %v15359_v5  ;;  %v4143_v20 = vld [vmem:[#allocation2 + $0xd28] sm:$0xff] }
 0x1fc   : > { %2757 = vmatmul.mubr.bf16.gmra.mrb[116].mxu0 %v15104_v49  ;;  %3143 = vmatmul.mubr.bf16.gmra.mrb[116].mxu1 %v15104_v49  ;;  %v12474_v49 = vcombine.low %v4123_v32, %v4127_v33  ;;  %v4182_v32 = vld [vmem:[#allocation2 + $0xe60] sm:$0xff]  ;;  %v4179_v33 = vld [vmem:[#allocation2 + $0xe48] sm:$0xff] }
 0x1fd   : > { %2766 = vmatprep.mubr.bf16.mxu0 %v15107_v50  ;;  %3152 = vmatprep.mubr.bf16.mxu1 %v15107_v50  ;;  %v12481_v50 = vcombine.high %v4130_v35, %v4134_v37  ;;  %v12520_v35 = vcombine.low %v4170_v36, %v4174_v2  ;;  %v19151_v36 = vld [vmem:[#allocation14_spill] sm:$0xff] }
 0x204   : > { %2767 = vmatmul.mubr.bf16.gmra.mrb[120].mxu0 %v15114_v51  ;;  %3153 = vmatmul.mubr.bf16.gmra.mrb[120].mxu1 %v15114_v51  ;;  %v12594_v51 = vcombine.low %v15441_v46, %v15443_v47 }
 0x205   : > { %2776 = vmatprep.mubr.bf16.mxu0 %v15117_v53  ;;  %3162 = vmatprep.mubr.bf16.mxu1 %v15117_v53  ;;  %v12483_v53 = vcombine.high %v4131_v38, %v4135_v40  ;;  %v12529_v38 = vcombine.high %v4178_v25, %v4182_v32  ;;  %v4186_v40 = vld [vmem:[#allocation2 + $0xe80] sm:$0xff] }
 0x20c   : > { %2777 = vmatmul.mubr.bf16.gmra.mrb[124].mxu0 %v15124_v54  ;;  %3163 = vmatmul.mubr.bf16.gmra.mrb[124].mxu1 %v15124_v54  ;;  %v4138_v54 = vld [vmem:[#allocation2 + $0xd00] sm:$0xff] }
 0x20d   : > { %12367 = vmatprep.mubr.msk.bf16.mxu0 %vm1748_vm1, %v15127_v55  ;;  %12384 = vmatprep.mubr.msk.bf16.mxu1 %vm1748_vm1, %v15127_v55  ;;  %v4142_v55 = vld [vmem:[#allocation2 + $0xd20] sm:$0xff] }
 0x20e   : > { %v12489_v5 = vcombine.high %v4138_v54, %v4142_v55  ;;  %v12488_v8 = vcombine.low %v4138_v54, %v4142_v55  ;;  %v4198_v54 = vld [vmem:[#allocation2 + $0xee0] sm:$0xff] }
 0x20f   : > { %v19148_v55 = vld [vmem:[#allocation11_spill] sm:$0xff] }
 0x214   : > { %2820 = vmatmul.mubr.bf16.vlgmr.msra.gmra.mrb[64].mxu0 %v15136_v56  ;;  %3206 = vmatmul.mubr.bf16.vlgmr.msra.gmra.mrb[64].mxu1 %v15136_v56  ;;  %v4139_v56 = vld [vmem:[#allocation2 + $0xd08] sm:$0xff] }
 0x215   : > { %5603 = vmatpush1.bf16.msra.mxu0 %v19146_v43  ;;  %5989 = vmatpush1.bf16.msra.mxu1 %v19147_v48  ;;  %v12491_v63 = vcombine.high %v4139_v56, %v4143_v20  ;;  %v12490_v29 = vcombine.low %v4139_v56, %v4143_v20  ;;  %v4190_v43 = vld [vmem:[#allocation2 + $0xea0] sm:$0xff]  ;;  %v12528_v48 = vcombine.low %v4178_v25, %v4182_v32  ;;  %v4195_v56 = vld [vmem:[#allocation2 + $0xec8] sm:$0xff] }
 0x216   : > { %12368 = vmatprep.mubr.msk.bf16.mxu0 %vm1748_vm1, %v15139_v61  ;;  %12385 = vmatprep.mubr.msk.bf16.mxu1 %vm1748_vm1, %v15139_v61  ;;  %v4147_v61 = vld [vmem:[#allocation2 + $0xd48] sm:$0xff] }
 0x217   : > { %5604 = vmatprep.subr.bf16.mxu0 %v12473_v34  ;;  %5990 = vmatprep.subr.bf16.mxu1 %v12475_v39  ;;  %v12499_v9 = vcombine.high %v4147_v61, %v4151_v4  ;;  %v12498_v13 = vcombine.low %v4147_v61, %v4151_v4  ;;  %v4183_v34 = vld [vmem:[#allocation2 + $0xe68] sm:$0xff] }
 0x218   : > { %v12531_v39 = vcombine.high %v4179_v33, %v4183_v34  ;;  %v4199_v20 = vld [vmem:[#allocation2 + $0xee8] sm:$0xff] }
 0x219   : > { %5605 = vmatpush1.bf16.msra.mxu0 %v12472_v44  ;;  %5991 = vmatpush1.bf16.msra.mxu1 %v12474_v49  ;;  %v4187_v44 = vld [vmem:[#allocation2 + $0xe88] sm:$0xff]  ;;  %v12530_v49 = vcombine.low %v4179_v33, %v4183_v34  ;;  %v4234_v34 = vld [vmem:[#allocation2 + $0x1000] sm:$0xff] }
 0x21a   : > { %5606 = vmatprep.subr.bf16.mxu0 %v12481_v50  ;;  %5992 = vmatprep.subr.bf16.mxu1 %v12483_v53  ;;  %v12537_v50 = vcombine.high %v4186_v40, %v4190_v43  ;;  %v4194_v53 = vld [vmem:[#allocation2 + $0xec0] sm:$0xff]  ;;  %v4203_v61 = vld [vmem:[#allocation2 + $0xf08] sm:$0xff] }
 0x21b   : > { %v12544_v4 = vcombine.low %v4194_v53, %v4198_v54 }
 0x21c   : > { %2830 = vmatmul.mubr.bf16.gmra.mrb[68].mxu0 %v15166_v30  ;;  %3216 = vmatmul.mubr.bf16.gmra.mrb[68].mxu1 %v15166_v30  ;;  %v4159_v30 = vld [vmem:[#allocation2 + $0xda8] sm:$0xff] }
 0x21d   : > { %12369 = vmatprep.mubr.msk.bf16.mxu0 %vm1748_vm1, %v15169_v24  ;;  %12386 = vmatprep.mubr.msk.bf16.mxu1 %vm1748_vm1, %v15169_v24  ;;  %v12507_v24 = vcombine.high %v4155_v31, %v4159_v30  ;;  %v12506_v28 = vcombine.low %v4155_v31, %v4159_v30  ;;  %v19150_v31 = vld [vmem:[#allocation13_spill] sm:$0xff]  ;;  %v4211_v30 = vld [vmem:[#allocation2 + $0xf48] sm:$0xff] }
 0x21e   : > { %5607 = vmatpush1.bf16.msra.mxu0 %v12480_v15  ;;  %5993 = vmatpush1.bf16.msra.mxu1 %v12482_v62  ;;  %v12536_v15 = vcombine.low %v4186_v40, %v4190_v43 }
 0x21f   : > { %5608 = vmatprep.subr.bf16.mxu0 %v12489_v5  ;;  %5994 = vmatprep.subr.bf16.mxu1 %v12491_v63  ;;  %v12545_v5 = vcombine.high %v4194_v53, %v4198_v54  ;;  %v12547_v63 = vcombine.high %v4195_v56, %v4199_v20  ;;  %v12595_v53 = vcombine.high %v15441_v46, %v15443_v47  ;;  %v19155_v54 = vld [vmem:[#allocation18_spill] sm:$0xff] }
 0x222   : > { %5609 = vmatpush1.bf16.msra.mxu0 %v12488_v8  ;;  %5995 = vmatpush1.bf16.msra.mxu1 %v12490_v29  ;;  %v12546_v8 = vcombine.low %v4195_v56, %v4199_v20  ;;  %v12553_v29 = vcombine.high %v4202_v11, %v4206_v14  ;;  %v19157_v56 = vld [vmem:[#allocation20_spill] sm:$0xff]  ;;  %v19158_v20 = vld [vmem:[#allocation21_spill] sm:$0xff] }
 0x223   : > { %5610 = vmatprep.subr.bf16.mxu0 %v12497_v21  ;;  %5996 = vmatprep.subr.bf16.mxu1 %v12499_v9  ;;  %v19149_v21 = vld [vmem:[#allocation12_spill] sm:$0xff] }
 0x224   : > { %2840 = vmatmul.mubr.bf16.gmra.mrb[72].mxu0 %v15178_v59  ;;  %3226 = vmatmul.mubr.bf16.gmra.mrb[72].mxu1 %v15178_v59  ;;  %v4175_v59 = vld [vmem:[#allocation2 + $0xe28] sm:$0xff] }
 0x225   : > { %12370 = vmatprep.mubr.msk.bf16.mxu0 %vm1748_vm1, %v15181_v0  ;;  %12387 = vmatprep.mubr.msk.bf16.mxu1 %vm1748_vm1, %v15181_v0  ;;  %v12523_v0 = vcombine.high %v4171_v3, %v4175_v59  ;;  %v12522_v37 = vcombine.low %v4171_v3, %v4175_v59  ;;  %v4226_v3 = vld [vmem:[#allocation2 + $0xfc0] sm:$0xff] }
 0x226   : > { %5611 = vmatpush1.bf16.msra.mxu0 %v12496_v12  ;;  %5997 = vmatpush1.bf16.msra.mxu1 %v12498_v13  ;;  %v4215_v12 = vld [vmem:[#allocation2 + $0xf68] sm:$0xff]  ;;  %v12552_v13 = vcombine.low %v4202_v11, %v4206_v14  ;;  %v4230_v59 = vld [vmem:[#allocation2 + $0xfe0] sm:$0xff]  ;;  %v3368_v14 = vld [vmem:[%s14970_s11 + $0x10] sm:$0xff] }
 0x227   : > { %5612 = vmatprep.subr.bf16.mxu0 %v12505_v16  ;;  %5998 = vmatprep.subr.bf16.mxu1 %v12507_v24  ;;  %v12561_v24 = vcombine.high %v4210_v22, %v4214_v60  ;;  %v12563_v52 = vcombine.high %v4211_v30, %v4215_v12  ;;  %v12577_v32 = vcombine.high %v4226_v3, %v4230_v59  ;;  %v3366_v11 = vld [vmem:[%s14970_s11] sm:$0xff] }
 0x22a   : > { %5613 = vmatpush1.bf16.msra.mxu0 %v12504_v26  ;;  %5999 = vmatpush1.bf16.msra.mxu1 %v12506_v28  ;;  %v4223_v26 = vld [vmem:[#allocation2 + $0xfa8] sm:$0xff]  ;;  %v12560_v28 = vcombine.low %v4210_v22, %v4214_v60 }
 0x22b   : > { %5614 = vmatprep.subr.bf16.mxu0 %v12513_v7  ;;  %6000 = vmatprep.subr.bf16.mxu1 %v12515_v58  ;;  %v12562_v7 = vcombine.low %v4211_v30, %v4215_v12  ;;  %v12569_v58 = vcombine.high %v4218_v57, %v4222_v1  ;;  %v12571_v2 = vcombine.high %v4219_v17, %v4223_v26  ;;  %v3370_v30 = vld [vmem:[%s14970_s11 + $0x20] sm:$0xff]  ;;  %v19165_v12 = vld [vmem:[#allocation28_spill] sm:$0xff] }
 0x22c   : > { %2850 = vmatmul.mubr.bf16.gmra.mrb[76].mxu0 %v15190_v18  ;;  %3236 = vmatmul.mubr.bf16.gmra.mrb[76].mxu1 %v15190_v18  ;;  %v4191_v18 = vld [vmem:[#allocation2 + $0xea8] sm:$0xff]  ;;  %v12570_v25 = vcombine.low %v4219_v17, %v4223_v26 }
 0x22d   : > { %12371 = vmatprep.mubr.msk.bf16.mxu0 %vm1748_vm1, %v15193_v27  ;;  %12388 = vmatprep.mubr.msk.bf16.mxu1 %vm1748_vm1, %v15193_v27  ;;  %v12539_v27 = vcombine.high %v4187_v44, %v4191_v18  ;;  %v12538_v62 = vcombine.low %v4187_v44, %v4191_v18  ;;  %v19153_v44 = vld [vmem:[#allocation16_spill] sm:$0xff] }
 0x22e   : > { %5615 = vmatpush1.bf16.msra.mxu0 %v12512_v6  ;;  %6001 = vmatpush1.bf16.msra.mxu1 %v12514_v10  ;;  %v19152_v6 = vld [vmem:[#allocation15_spill] sm:$0xff] }
 0x22f   : > { %5616 = vmatprep.subr.bf16.mxu0 %v12521_v19  ;;  %6002 = vmatprep.subr.bf16.mxu1 %v12523_v0  ;;  %v4227_v10 = vld [vmem:[#allocation2 + $0xfc8] sm:$0xff]  ;;  %v12568_v0 = vcombine.low %v4218_v57, %v4222_v1  ;;  %v3475_v57 = vshll.u32 %v3370_v30, 16  ;;  %v3489_v1 = vshrl.u32 %v3370_v30, 16 }
 0x230   : > { %v4231_v19 = vld [vmem:[#allocation2 + $0xfe8] sm:$0xff] }
 0x231   : > { %v12579_v33 = vcombine.high %v4227_v10, %v4231_v19  ;;  %v12578_v40 = vcombine.low %v4227_v10, %v4231_v19  ;;  %v19170_v19 = vld [vmem:[#allocation30_spill] sm:$0xff] }
 0x232   : > { %5617 = vmatpush1.bf16.msra.mxu0 %v12520_v35  ;;  %6003 = vmatpush1.bf16.msra.mxu1 %v12522_v37  ;;  %v4238_v35 = vld [vmem:[#allocation2 + $0x1020] sm:$0xff]  ;;  %v4235_v37 = vld [vmem:[#allocation2 + $0x1008] sm:$0xff] }
 0x233   : > { %5618 = vmatprep.subr.bf16.mxu0 %v12529_v38  ;;  %6004 = vmatprep.subr.bf16.mxu1 %v12531_v39  ;;  %v4239_v38 = vld [vmem:[#allocation2 + $0x1028] sm:$0xff]  ;;  %v12576_v39 = vcombine.low %v4226_v3, %v4230_v59  ;;  %v12585_v43 = vcombine.high %v4234_v34, %v4238_v35  ;;  %v3374_v3 = vld [vmem:[%s14970_s11 + $0x40] sm:$0xff]  ;;  %v3491_v59 = vrot.slane %v3489_v1, 4 }
 0x234   : > { %2860 = vmatmul.mubr.bf16.gmra.mrb[80].mxu0 %v15202_v23  ;;  %3246 = vmatmul.mubr.bf16.gmra.mrb[80].mxu1 %v15202_v23  ;;  %v4207_v23 = vld [vmem:[#allocation2 + $0xf28] sm:$0xff]  ;;  %v12587_v18 = vcombine.high %v4235_v37, %v4239_v38  ;;  %v15578_v1 = vld [vmem:[#allocation2 + $0x10e0] sm:$0xff] }
 0x235   : > { %12372 = vmatprep.mubr.msk.bf16.mxu0 %vm1748_vm1, %v19148_v55  ;;  %12389 = vmatprep.mubr.msk.bf16.mxu1 %vm1748_vm1, %v19148_v55  ;;  %v12555_v9 = vcombine.high %v4203_v61, %v4207_v23  ;;  %v12554_v16 = vcombine.low %v4203_v61, %v4207_v23  ;;  %v19156_v55 = vld [vmem:[#allocation19_spill] sm:$0xff]  ;;  %v19163_v61 = vld [vmem:[#allocation26_spill] sm:$0xff] }
 0x236   : > { %5619 = vmatpush1.bf16.msra.mxu0 %v12528_v48  ;;  %6005 = vmatpush1.bf16.msra.mxu1 %v12530_v49  ;;  %v19154_v48 = vld [vmem:[#allocation17_spill] sm:$0xff]  ;;  %v12584_v49 = vcombine.low %v4234_v34, %v4238_v35  ;;  %v19164_v23 = vld [vmem:[#allocation27_spill] sm:$0xff] }
 0x237   : > { %5620 = vmatprep.subr.bf16.mxu0 %v12537_v50  ;;  %6006 = vmatprep.subr.bf16.mxu1 %v12539_v27  ;;  %v12586_v50 = vcombine.low %v4235_v37, %v4239_v38  ;;  %v12593_v27 = vcombine.high %v15431_v41, %v15433_v42  ;;  %v3515_v37 = vshll.u32 %v3374_v3, 16 }
 0x23a   : > { %5621 = vmatpush1.bf16.msra.mxu0 %v12536_v15  ;;  %6007 = vmatpush1.bf16.msra.mxu1 %v12538_v62  ;;  %v19159_v15 = vld [vmem:[#allocation22_spill] sm:$0xff]  ;;  %v19160_v62 = vld [vmem:[#allocation23_spill] sm:$0xff] }
 0x23b   : > { %5622 = vmatprep.subr.bf16.mxu0 %v12545_v5  ;;  %6008 = vmatprep.subr.bf16.mxu1 %v12547_v63  ;;  %v19161_v5 = vld [vmem:[#allocation24_spill] sm:$0xff]  ;;  %v19162_v63 = vld [vmem:[#allocation25_spill] sm:$0xff] }
 0x23c   : > { %2870 = vmatmul.mubr.bf16.gmra.mrb[84].mxu0 %v19149_v21  ;;  %3256 = vmatmul.mubr.bf16.gmra.mrb[84].mxu1 %v19149_v21  ;;  %v3469_v21 = vshrl.u32 %v3368_v14, 16 }
 0x23d   : > { %12373 = vmatprep.mubr.msk.bf16.mxu0 %vm1748_vm1, %v19150_v31  ;;  %12390 = vmatprep.mubr.msk.bf16.mxu1 %vm1748_vm1, %v19150_v31 }
 0x23e   : > { %5623 = vmatpush1.bf16.msra.mxu0 %v12544_v4  ;;  %6009 = vmatpush1.bf16.msra.mxu1 %v12546_v8  ;;  %v3442_v4 = vshrl.u32 %v3366_v11, 16  ;;  %v3445_v8 = vshll.u32 %v3366_v11, 16  ;;  %v3471_v31 = vrot.slane %v3469_v21, 4 }
 0x23f   : > { %5624 = vmatprep.subr.bf16.mxu0 %v12553_v29  ;;  %6010 = vmatprep.subr.bf16.mxu1 %v12555_v9  ;;  %v3451_v29 = vshll.u32 %v3368_v14, 16  ;;  %v4250_v14 = vld [vmem:[#allocation2 + $0x1080] sm:$0xff] }
 0x240   : > { %v3444_v9 = vrot.slane %v3442_v4, 4  ;;  %v3447_v22 = vrot.slane %v3445_v8, 5  ;;  %v4254_v4 = vld [vmem:[#allocation2 + $0x10a0] sm:$0xff]  ;;  %v4251_v8 = vld [vmem:[#allocation2 + $0x1088] sm:$0xff] }
 0x241   : > { %v3453_v60 = vrot.slane %v3451_v29, 5  ;;  %v4255_v29 = vld [vmem:[#allocation2 + $0x10a8] sm:$0xff] }
 0x242   : > { %5625 = vmatpush1.bf16.msra.mxu0 %v12552_v13  ;;  %6011 = vmatpush1.bf16.msra.mxu1 %v12554_v16  ;;  %v3372_v13 = vld [vmem:[%s14970_s11 + $0x30] sm:$0xff] }
 0x243   : > { %5626 = vmatprep.subr.bf16.mxu0 %v12561_v24  ;;  %6012 = vmatprep.subr.bf16.mxu1 %v12563_v52  ;;  %v19166_v16 = vld [vmem:[#allocation29_spill] sm:$0xff]  ;;  %v3448_v24 = vor.u32 %v3447_v22, %v3444_v9  ;;  %v3472_v52 = vor.u32 %v3471_v31, %v3453_v60  ;;  %v3495_v17 = vshll.u32 %v3372_v13, 16  ;;  %v3509_v26 = vshrl.u32 %v3372_v13, 16 }
 0x244   : > { %2880 = vmatmul.mubr.bf16.gmra.mrb[88].mxu0 %v19151_v36  ;;  %3266 = vmatmul.mubr.bf16.gmra.mrb[88].mxu1 %v19151_v36  ;;  %v3376_v36 = vld [vmem:[%s14970_s11 + $0x50] sm:$0xff] }
 0x245   : > { %12374 = vmatprep.mubr.msk.bf16.mxu0 %vm1748_vm1, %v19152_v6  ;;  %12391 = vmatprep.mubr.msk.bf16.mxu1 %vm1748_vm1, %v19152_v6  ;;  %v3497_v6 = vrot.slane %v3495_v17, 5  ;;  %v3511_v10 = vrot.slane %v3509_v26, 4  ;;  %v3384_v13 = vld [vmem:[%s14970_s11 + $0x90] sm:$0xff]  ;;  %v3386_v17 = vld [vmem:[%s14970_s11 + $0xa0] sm:$0xff] }
 0x246   : > { %5627 = vmatpush1.bf16.msra.mxu0 %v12560_v28  ;;  %6013 = vmatpush1.bf16.msra.mxu1 %v12562_v7  ;;  %v3449_v28 = vrot.slane %v3448_v24, 4  ;;  %v3473_v7 = vrot.slane %v3472_v52, 4  ;;  %v12601_v24 = vcombine.high %v4250_v14, %v4254_v4  ;;  %v12602_v52 = vcombine.low %v4251_v8, %v4255_v29 }
 0x247   : > { %5628 = vmatprep.subr.bf16.mxu0 %v12569_v58  ;;  %6014 = vmatprep.subr.bf16.mxu1 %v12571_v2  ;;  %v3477_v58 = vrot.slane %v3475_v57, 5  ;;  %v19167_v2 = vmov 0  ;;  %v15576_v57 = vld [vmem:[#allocation2 + $0x10c0] sm:$0xff]  ;;  %v3619_v42 = vshll.u32 %v3386_v17, 16 }
 0x248   : > { %v19168_v2 = vsel %vm15541_vm4, 4294967295, %v19167_v2  ;;  %v3454_v34 = vsel %vm15541_vm4, %v3449_v28, %v3453_v60  ;;  %v3382_v60 = vld [vmem:[%s14970_s11 + $0x80] sm:$0x11]  ;;  %v12603_v28 = vcombine.high %v4251_v8, %v4255_v29  ;;  %v12609_v41 = vcombine.high %v15576_v57, %v15578_v1 }
 0x249   : > { %19169 = vst [vmem:[#allocation11_spill] sm:$0xff] %v19168_v2  ;;  %v3478_v35 = vsel %vm15541_vm4, %v3473_v7, %v3477_v58  ;;  %v3492_v38 = vor.u32 %v3491_v59, %v3477_v58  ;;  %v3595_v58 = vshll.u32 %v3382_v60, 16  ;;  %v4281_v2 = vld [vmem:[#allocation2 + $0x1178] sm:$0xff] }
 0x24a   : > { %5629 = vmatpush1.bf16.msra.mxu0 %v12568_v0  ;;  %6015 = vmatpush1.bf16.msra.mxu1 %v12570_v25  ;;  %v3529_v0 = vshrl.u32 %v3374_v3, 16  ;;  %v19171_v25 = vld [vmem:[#allocation31_spill] sm:$0xff] }
 0x24b   : > { %5630 = vmatprep.subr.bf16.mxu0 %v12577_v32  ;;  %6016 = vmatprep.subr.bf16.mxu1 %v12579_v33  ;;  %v3535_v32 = vshll.u32 %v3376_v36, 16  ;;  %v3549_v33 = vshrl.u32 %v3376_v36, 16  ;;  %v15586_v36 = vld [vmem:[#allocation2 + $0x10c8] sm:$0xff] }
 0x24c   : > { %2890 = vmatmul.mubr.bf16.gmra.mrb[92].mxu0 %v19153_v44  ;;  %3276 = vmatmul.mubr.bf16.gmra.mrb[92].mxu1 %v19153_v44  ;;  %v15588_v3 = vld [vmem:[#allocation2 + $0x10e8] sm:$0xff] }
 0x24d   : > { %12375 = vmatprep.mubr.msk.bf16.mxu0 %vm1748_vm1, %v19154_v48  ;;  %12392 = vmatprep.mubr.msk.bf16.mxu1 %vm1748_vm1, %v19154_v48  ;;  %v3537_v44 = vrot.slane %v3535_v32, 5  ;;  %v3517_v48 = vrot.slane %v3515_v37, 5  ;;  %v15603_v32 = vld [vmem:[#allocation2 + $0xc58] sm:$0xff]  ;;  %v12611_v46 = vcombine.high %v15586_v36, %v15588_v3  ;;  %v3597_v37 = vrot.slane %v3595_v58, 5  ;;  %v4286_v58 = vld [vmem:[#allocation2 + $0x11a0] sm:$0xff] }
 0x24e   : > { %5631 = vmatpush1.bf16.msra.mxu0 %v12576_v39  ;;  %6017 = vmatpush1.bf16.msra.mxu1 %v12578_v40  ;;  %v3512_v39 = vor.u32 %v3511_v10, %v3497_v6  ;;  %v3531_v40 = vrot.slane %v3529_v0, 4  ;;  %v3610_v10 = vshrl.u32 %v3384_v13, 16  ;;  %v15599_v0 = vld [vmem:[#allocation2 + $0xc50] sm:$0xff] }
 0x24f   : > { %5632 = vmatprep.subr.bf16.mxu0 %v12585_v43  ;;  %6018 = vmatprep.subr.bf16.mxu1 %v12587_v18  ;;  %v15556_v43 = vcombine.high %v3454_v34, %v3478_v35  ;;  %v3551_v18 = vrot.slane %v3549_v33, 4 }
 0x252   : > { %5633 = vmatpush1.bf16.msra.mxu0 %v12584_v49  ;;  %6019 = vmatpush1.bf16.msra.mxu1 %v12586_v50  ;;  %v3378_v49 = vld [vmem:[%s14970_s11 + $0x60] sm:$0xff]  ;;  %v3380_v50 = vld [vmem:[%s14970_s11 + $0x70] sm:$0xff] }
 0x253   : > { %5795 = vmatprep.subr.bf16.mxu0 %v12593_v27  ;;  %6181 = vmatprep.subr.bf16.mxu1 %v12595_v53  ;;  %v3493_v27 = vrot.slane %v3492_v38, 4  ;;  %v3513_v53 = vrot.slane %v3512_v39, 4  ;;  %v3390_v38 = vld [vmem:[%s14970_s11 + $0xc0] sm:$0xff] }
 0x254   : > { %2900 = vmatmul.mubr.bf16.gmra.mrb[96].mxu0 %v19155_v54  ;;  %3286 = vmatmul.mubr.bf16.gmra.mrb[96].mxu1 %v19155_v54  ;;  %v19172_v54 = vld [vmem:[#allocation32_spill] sm:$0xff]  ;;  %v4266_v39 = vld [vmem:[#allocation2 + $0x1100] sm:$0xff] }
 0x255   : > { %12376 = vmatprep.mubr.msk.bf16.mxu0 %vm1748_vm1, %v19156_v55  ;;  %12393 = vmatprep.mubr.msk.bf16.mxu1 %vm1748_vm1, %v19156_v55  ;;  %v3532_v55 = vor.u32 %v3531_v40, %v3517_v48  ;;  %v3518_v11 = vsel %vm15541_vm4, %v3513_v53, %v3517_v48  ;;  %v4270_v40 = vld [vmem:[#allocation2 + $0x1120] sm:$0xff]  ;;  %v3388_v48 = vld [vmem:[%s14970_s11 + $0xb0] sm:$0xff]  ;;  %v4271_v53 = vld [vmem:[#allocation2 + $0x1128] sm:$0xff] }
 0x25c   : > { %2910 = vmatmul.mubr.bf16.gmra.mrb[100].mxu0 %v19157_v56  ;;  %3296 = vmatmul.mubr.bf16.gmra.mrb[100].mxu1 %v19157_v56  ;;  %v3569_v56 = vshrl.u32 %v3378_v49, 16 }
 0x25d   : > { %12377 = vmatprep.mubr.msk.bf16.mxu0 %vm1748_vm1, %v19158_v20  ;;  %12394 = vmatprep.mubr.msk.bf16.mxu1 %vm1748_vm1, %v19158_v20  ;;  %v3552_v20 = vor.u32 %v3551_v18, %v3537_v44 }
 0x25e   : > { %v3571_v21 = vrot.slane %v3569_v56, 4 }
 0x25f   : > { %v3553_v9 = vrot.slane %v3552_v20, 4  ;;  %v3657_v20 = vshrl.u32 %v3388_v48, 16 }
 0x264   : > { %2920 = vmatmul.mubr.bf16.gmra.mrb[104].mxu0 %v19159_v15  ;;  %3306 = vmatmul.mubr.bf16.gmra.mrb[104].mxu1 %v19159_v15  ;;  %v3555_v15 = vshll.u32 %v3378_v49, 16  ;;  %v3612_v49 = vrot.slane %v3610_v10, 4 }
 0x265   : > { %12378 = vmatprep.mubr.msk.bf16.mxu0 %vm1748_vm1, %v19160_v62  ;;  %12395 = vmatprep.mubr.msk.bf16.mxu1 %vm1748_vm1, %v19160_v62  ;;  %v3575_v62 = vshll.u32 %v3380_v50, 16 }
 0x266   : > { %v3557_v22 = vrot.slane %v3555_v15, 5  ;;  %v12610_v15 = vcombine.low %v15586_v36, %v15588_v3  ;;  %v4283_v3 = vld [vmem:[#allocation2 + $0x1188] sm:$0xff] }
 0x267   : > { %v15571_v31 = vrot.slane %v3575_v62, 5  ;;  %v3663_v62 = vshll.u32 %v3390_v38, 16 }
 0x268   : > { %v3572_v7 = vor.u32 %v3571_v21, %v3557_v22  ;;  %v15596_v59 = vsel %vm15541_vm4, %v3553_v9, %v3557_v22  ;;  %v4275_v21 = vld [vmem:[#allocation2 + $0x1148] sm:$0xff] }
 0x269   : > { %v4279_v9 = vld [vmem:[#allocation2 + $0x1168] sm:$0xff] }
 0x26c   : > { %2930 = vmatmul.mubr.bf16.gmra.mrb[108].mxu0 %v19161_v5  ;;  %3316 = vmatmul.mubr.bf16.gmra.mrb[108].mxu1 %v19161_v5  ;;  %v3589_v5 = vshrl.u32 %v3380_v50, 16 }
 0x26d   : > { %12379 = vmatprep.mubr.msk.bf16.mxu0 %vm1748_vm1, %v19162_v63  ;;  %12396 = vmatprep.mubr.msk.bf16.mxu1 %vm1748_vm1, %v19162_v63  ;;  %v3498_v63 = vsel %vm15541_vm4, %v3493_v27, %v3497_v6  ;;  %v4267_v27 = vld [vmem:[#allocation2 + $0x1108] sm:$0xff] }
 0x26e   : > { %v3591_v30 = vrot.slane %v3589_v5, 4  ;;  %v3677_v5 = vshrl.u32 %v3390_v38, 16 }
 0x270   : > { %v3592_v6 = vor.u32 %v3591_v30, %v15571_v31  ;;  %v3659_v30 = vrot.slane %v3657_v20, 4 }
 0x272   : > { %v3593_v18 = vrot.slane %v3592_v6, 4  ;;  %v4287_v6 = vld [vmem:[#allocation2 + $0x11a8] sm:$0xff] }
 0x273   : > { %v12635_v38 = vcombine.high %v4283_v3, %v4287_v6 }
 0x274   : > { %2940 = vmatmul.mubr.bf16.gmra.mrb[112].mxu0 %v19163_v61  ;;  %3326 = vmatmul.mubr.bf16.gmra.mrb[112].mxu1 %v19163_v61  ;;  %v15568_v61 = vcombine.low %v3454_v34, %v3478_v35  ;;  %v15613_v34 = vld [vmem:[#allocation2 + $0xc78] sm:$0xff]  ;;  %v3573_v35 = vrot.slane %v3572_v7, 4  ;;  %v3598_v29 = vsel %vm15541_vm4, %v3593_v18, %v3597_v37  ;;  %v4282_v7 = vld [vmem:[#allocation2 + $0x1180] sm:$0xff] }
 0x275   : > { %12380 = vmatprep.mubr.msk.bf16.mxu0 %vm1748_vm1, %v19164_v23  ;;  %12397 = vmatprep.mubr.msk.bf16.mxu1 %vm1748_vm1, %v19164_v23  ;;  %v3533_v23 = vrot.slane %v3532_v55, 4  ;;  %v15630_v55 = vrot.slane %v3619_v42, 5  ;;  %v3394_v42 = vld [vmem:[%s14970_s11 + $0xe0] sm:$0xff] }
 0x276   : > { %v3578_v8 = vsel %vm15541_vm4, %v3573_v35, %v15571_v31  ;;  %v12618_v31 = vcombine.low %v4267_v27, %v4271_v53  ;;  %v12633_v35 = vcombine.high %v4282_v7, %v4286_v58  ;;  %v3703_v18 = vshll.u32 %v3394_v42, 16 }
 0x277   : > { %v15584_v26 = vsel %vm15541_vm4, %v3533_v23, %v3537_v44  ;;  %v4274_v23 = vld [vmem:[#allocation2 + $0x1140] sm:$0xff]  ;;  %v15651_v36 = vcombine.high %v3578_v8, %v3598_v29 }
 0x278   : > { %v15625_v44 = vcombine.high %v15584_v26, %v15596_v59 }
 0x27c   : > { %2950 = vmatmul.mubr.bf16.gmra.mrb[116].mxu0 %v19165_v12  ;;  %3336 = vmatmul.mubr.bf16.gmra.mrb[116].mxu1 %v19165_v12  ;;  %v15573_v12 = vcombine.high %v3498_v63, %v3518_v11 }
 0x27d   : > { %12381 = vmatprep.mubr.msk.bf16.mxu0 %vm1748_vm1, %v19166_v16  ;;  %12398 = vmatprep.mubr.msk.bf16.mxu1 %vm1748_vm1, %v19166_v16  ;;  %v12600_v16 = vcombine.low %v4250_v14, %v4254_v4  ;;  %v12619_v14 = vcombine.high %v4267_v27, %v4271_v53  ;;  %v4278_v4 = vld [vmem:[#allocation2 + $0x1160] sm:$0xff] }
 0x284   : > { %2960 = vmatmul.mubr.bf16.gmra.mrb[120].mxu0 %v19170_v19  ;;  %3346 = vmatmul.mubr.bf16.gmra.mrb[120].mxu1 %v19170_v19  ;;  %v3613_v19 = vshll.u32 %v3384_v13, 16  ;;  %v12616_v13 = vcombine.low %v4266_v39, %v4270_v40 }
 0x285   : > { %12382 = vmatprep.mubr.msk.bf16.mxu0 %vm1748_vm1, %v19171_v25  ;;  %12399 = vmatprep.mubr.msk.bf16.mxu1 %vm1748_vm1, %v19171_v25  ;;  %v15601_v25 = vld [vmem:[#allocation2 + $0xc70] sm:$0xff] }
 0x286   : > { %v3615_v50 = vrot.slane %v3613_v19, 5 }
 0x288   : > { %v3616_v22 = vor.u32 %v3615_v50, %v3612_v49  ;;  %v4291_v49 = vld [vmem:[#allocation2 + $0x11c8] sm:$0xff] }
 0x289   : > { %v4295_v50 = vld [vmem:[#allocation2 + $0x11e8] sm:$0xff] }
 0x28a   : > { %v3617_v10 = vrot.slane %v3616_v22, 4 }
 0x28c   : > { %2970 = vmatmul.mubr.bf16.gmra.mrb[124].mxu0 %v19172_v54  ;;  %3356 = vmatmul.mubr.bf16.gmra.mrb[124].mxu1 %v19172_v54  ;;  %v12608_v54 = vcombine.low %v15576_v57, %v15578_v1  ;;  %v15648_v57 = vcombine.low %v15584_v26, %v15596_v59  ;;  %v12626_v59 = vcombine.low %v4275_v21, %v4279_v9 }
 0x28d   : > { %5634 = vmatprep.mubr.bf16.mxu0 %v15556_v43  ;;  %6020 = vmatprep.mubr.bf16.mxu1 %v15556_v43  ;;  %v3622_v27 = vsel %vm15541_vm4, %v3617_v10, %v15630_v55  ;;  %v4307_v10 = vld [vmem:[#allocation2 + $0x1248] sm:$0x77] }
 0x294   : > { %5635 = vmatmul.mubr.bf16.vlgmr.msra.gmra.mrb[0].mxu0 %v15568_v61  ;;  %6021 = vmatmul.mubr.bf16.vlgmr.msra.gmra.mrb[0].mxu1 %v15568_v61 }
 0x295   : > { %5796 = vmatpush1.bf16.msra.mxu0 %v12592_v45  ;;  %6182 = vmatpush1.bf16.msra.mxu1 %v12594_v51  ;;  %v3637_v45 = vshrl.u32 %v3386_v17, 16  ;;  %v15620_v51 = vcombine.low %v3498_v63, %v3518_v11  ;;  %v12617_v63 = vcombine.high %v4266_v39, %v4270_v40  ;;  %v3643_v11 = vshll.u32 %v3388_v48, 16  ;;  %v3392_v17 = vld [vmem:[%s14970_s11 + $0xd0] sm:$0xff]  ;;  %v4290_v39 = vld [vmem:[#allocation2 + $0x11c0] sm:$0xff] }
 0x296   : > { %5644 = vmatprep.mubr.bf16.mxu0 %v15573_v12  ;;  %6030 = vmatprep.mubr.bf16.mxu1 %v15573_v12  ;;  %v3683_v26 = vshll.u32 %v3392_v17, 16  ;;  %v3697_v37 = vshrl.u32 %v3392_v17, 16  ;;  %v4294_v40 = vld [vmem:[#allocation2 + $0x11e0] sm:$0xff]  ;;  %v3717_v48 = vshrl.u32 %v3394_v42, 16 }
 0x297   : > { %5797 = vmatprep.subr.bf16.mxu0 %v12601_v24  ;;  %6183 = vmatprep.subr.bf16.mxu1 %v12603_v28  ;;  %v3639_v56 = vrot.slane %v3637_v45, 4  ;;  %v3679_v24 = vrot.slane %v3677_v5, 4  ;;  %v3645_v1 = vrot.slane %v3643_v11, 5  ;;  %v12627_v28 = vcombine.high %v4275_v21, %v4279_v9  ;;  %v3396_v21 = vld [vmem:[%s14970_s11 + $0xf0] sm:$0xff] }
 0x298   : > { %v12624_v45 = vcombine.low %v4274_v23, %v4278_v4  ;;  %v12641_v5 = vcombine.high %v4290_v39, %v4294_v40  ;;  %v3699_v11 = vrot.slane %v3697_v37, 4  ;;  %v3705_v9 = vrot.slane %v3703_v18, 5 }
 0x299   : > { %5798 = vmatpush1.bf16.msra.mxu0 %v12600_v16  ;;  %6184 = vmatpush1.bf16.msra.mxu1 %v12602_v52  ;;  %v3640_v60 = vor.u32 %v3639_v56, %v15630_v55  ;;  %v15644_v16 = vrot.slane %v3663_v62, 5  ;;  %v12625_v52 = vcombine.high %v4274_v23, %v4278_v4  ;;  %v12632_v56 = vcombine.low %v4282_v7, %v4286_v58  ;;  %v4298_v55 = vld [vmem:[#allocation2 + $0x1200] sm:$0xff] }
 0x29a   : > { %5799 = vmatprep.subr.bf16.mxu0 %v12609_v41  ;;  %6185 = vmatprep.subr.bf16.mxu1 %v12611_v46  ;;  %v3660_v41 = vor.u32 %v3659_v30, %v3645_v1  ;;  %v12634_v62 = vcombine.low %v4283_v3, %v4287_v6  ;;  %v4302_v23 = vld [vmem:[#allocation2 + $0x1220] sm:$0xff]  ;;  %v3719_v22 = vrot.slane %v3717_v48, 4  ;;  %v4303_v30 = vld [vmem:[#allocation2 + $0x1228] sm:$0xff]  ;;  %v3723_v17 = vshll.u32 %v3396_v21, 16 }
 0x29b   : > { %v3641_v19 = vrot.slane %v3640_v60, 4  ;;  %v3680_v46 = vor.u32 %v3679_v24, %v15644_v16  ;;  %v4299_v60 = vld [vmem:[#allocation2 + $0x1208] sm:$0xff]  ;;  %v3398_v24 = vld [vmem:[%s14970_s11 + $0x100] sm:$0xff]  ;;  %v3737_v58 = vshrl.u32 %v3396_v21, 16  ;;  %v12648_v42 = vcombine.low %v4298_v55, %v4302_v23 }
 0x29c   : > { %5645 = vmatmul.mubr.bf16.gmra.mrb[4].mxu0 %v15620_v51  ;;  %6031 = vmatmul.mubr.bf16.gmra.mrb[4].mxu1 %v15620_v51  ;;  %v4306_v7 = vld [vmem:[#allocation2 + $0x1240] sm:$0x77]  ;;  %v3743_v3 = vshll.u32 %v3398_v24, 16  ;;  %v3757_v6 = vshrl.u32 %v3398_v24, 16  ;;  %v12659_v37 = vcombine.high %v4307_v10, %v4307_v10 }
 0x29d   : > { %5654 = vmatprep.mubr.bf16.mxu0 %v15625_v44  ;;  %6040 = vmatprep.mubr.bf16.mxu1 %v15625_v44  ;;  %v3646_v53 = vsel %vm15541_vm4, %v3641_v19, %v3645_v1  ;;  %v3681_v20 = vrot.slane %v3680_v46, 4  ;;  %v12657_v46 = vcombine.high %v4306_v7, %v4306_v7 }
 0x29e   : > { %5800 = vmatpush1.bf16.msra.mxu0 %v12608_v54  ;;  %6186 = vmatpush1.bf16.msra.mxu1 %v12610_v15  ;;  %v3661_v54 = vrot.slane %v3660_v41, 4  ;;  %v3685_v15 = vrot.slane %v3683_v26, 5  ;;  %v15666_v4 = vcombine.high %v3622_v27, %v3646_v53  ;;  %v15683_v19 = vcombine.low %v3622_v27, %v3646_v53  ;;  %v3404_v27 = vld [vmem:[%s14970_s11 + $0x130] sm:$0xff] }
 0x29f   : > { %5801 = vmatprep.subr.bf16.mxu0 %v12617_v63  ;;  %6187 = vmatprep.subr.bf16.mxu1 %v12619_v14  ;;  %v15664_v63 = vcombine.low %v3578_v8, %v3598_v29  ;;  %v12643_v14 = vcombine.high %v4291_v49, %v4295_v50  ;;  %v12640_v8 = vcombine.low %v4290_v39, %v4294_v40  ;;  %v3739_v40 = vrot.slane %v3737_v58, 4 }
 0x2a0   : > { %v15677_v29 = vsel %vm15541_vm4, %v3681_v20, %v3685_v15  ;;  %v3700_v1 = vor.u32 %v3699_v11, %v3685_v15  ;;  %v12656_v26 = vcombine.low %v4306_v7, %v4306_v7  ;;  %v3745_v18 = vrot.slane %v3743_v3, 5  ;;  %v3406_v7 = vld [vmem:[%s14970_s11 + $0x140] sm:$0xff] }
 0x2a1   : > { %v3759_v48 = vrot.slane %v3757_v6, 4  ;;  %v12471_v15 = vcombine.high %v15603_v32, %v15613_v34  ;;  %v3787_v21 = vshll.u32 %v3404_v27, 16 }
 0x2a2   : > { %5802 = vmatpush1.bf16.msra.mxu0 %v12616_v13  ;;  %6188 = vmatpush1.bf16.msra.mxu1 %v12618_v31  ;;  %v15672_v13 = vsel %vm15541_vm4, %v3661_v54, %v15644_v16  ;;  %v12642_v31 = vcombine.low %v4291_v49, %v4295_v50  ;;  %v3720_v16 = vor.u32 %v3719_v22, %v3705_v9  ;;  %v3400_v49 = vld [vmem:[%s14970_s11 + $0x110] sm:$0x11]  ;;  %v3402_v50 = vld [vmem:[%s14970_s11 + $0x120] sm:$0xff]  ;;  %v5579_v53 = vsel %vm1797_vm0, %v12656_v26, 0 }
 0x2a3   : > { %5803 = vmatprep.subr.bf16.mxu0 %v12625_v52  ;;  %6189 = vmatprep.subr.bf16.mxu1 %v12627_v28  ;;  %v12649_v52 = vcombine.high %v4298_v55, %v4302_v23  ;;  %v12651_v28 = vcombine.high %v4299_v60, %v4303_v30  ;;  %v15687_v41 = vcombine.high %v15672_v13, %v15677_v29  ;;  %v3778_v55 = vshrl.u32 %v3402_v50, 16 }
 0x2a4   : > { %5655 = vmatmul.mubr.bf16.gmra.mrb[8].mxu0 %v15648_v57  ;;  %6041 = vmatmul.mubr.bf16.gmra.mrb[8].mxu1 %v15648_v57  ;;  %v3721_v39 = vrot.slane %v3720_v16, 4  ;;  %v12469_v54 = vcombine.high %v15599_v0, %v15601_v25  ;;  %v3760_v11 = vor.u32 %v3759_v48, %v3745_v18  ;;  %v3781_v23 = vshll.u32 %v3402_v50, 16 }
 0x2a5   : > { %5664 = vmatprep.mubr.bf16.mxu0 %v15651_v36  ;;  %6050 = vmatprep.mubr.bf16.mxu1 %v15651_v36  ;;  %v15710_v22 = vcombine.low %v15672_v13, %v15677_v29  ;;  %v3825_v16 = vshrl.u32 %v3406_v7, 16 }
 0x2a6   : > { %5804 = vmatpush1.bf16.msra.mxu0 %v12624_v45  ;;  %6190 = vmatpush1.bf16.msra.mxu1 %v12626_v59  ;;  %v12650_v45 = vcombine.low %v4299_v60, %v4303_v30  ;;  %v3701_v59 = vrot.slane %v3700_v1, 4  ;;  %v3761_v24 = vrot.slane %v3760_v11, 4  ;;  %v3783_v1 = vrot.slane %v3781_v23, 5  ;;  %v3414_v23 = vld [vmem:[%s14970_s11 + $0x180] sm:$0xff] }
 0x2a7   : > { %5805 = vmatprep.subr.bf16.mxu0 %v12633_v35  ;;  %6191 = vmatprep.subr.bf16.mxu1 %v12635_v38  ;;  %v3725_v35 = vrot.slane %v3723_v17, 5  ;;  %v12658_v38 = vcombine.low %v4307_v10, %v4307_v10  ;;  %v3789_v17 = vrot.slane %v3787_v21, 5 }
 0x2a9   : > { %v5585_v20 = vsel %vm1797_vm0, %v12658_v38, 0 }
 0x2aa   : > { %5806 = vmatpush1.bf16.msra.mxu0 %v12632_v56  ;;  %6192 = vmatpush1.bf16.msra.mxu1 %v12634_v62  ;;  %v3706_v56 = vsel %vm15541_vm4, %v3701_v59, %v3705_v9  ;;  %v3726_v62 = vsel %vm15541_vm4, %v3721_v39, %v3725_v35  ;;  %v3805_v9 = vshrl.u32 %v3404_v27, 16 }
 0x2ab   : > { %5807 = vmatprep.subr.bf16.mxu0 %v12641_v5  ;;  %6193 = vmatprep.subr.bf16.mxu1 %v12643_v14  ;;  %v3740_v5 = vor.u32 %v3739_v40, %v3725_v35  ;;  %v3763_v14 = vshll.u32 %v3400_v49, 16  ;;  %v15712_v60 = vcombine.high %v3706_v56, %v3726_v62 }
 0x2ac   : > { %5665 = vmatmul.mubr.bf16.gmra.mrb[12].mxu0 %v15664_v63  ;;  %6051 = vmatmul.mubr.bf16.gmra.mrb[12].mxu1 %v15664_v63 }
 0x2ad   : > { %5674 = vmatprep.mubr.bf16.mxu0 %v15666_v4  ;;  %6060 = vmatprep.mubr.bf16.mxu1 %v15666_v4  ;;  %v3741_v30 = vrot.slane %v3740_v5, 4 }
 0x2ae   : > { %5808 = vmatpush1.bf16.msra.mxu0 %v12640_v8  ;;  %6194 = vmatpush1.bf16.msra.mxu1 %v12642_v31  ;;  %v3765_v8 = vrot.slane %v3763_v14, 5  ;;  %v3408_v31 = vld [vmem:[%s14970_s11 + $0x150] sm:$0xff] }
 0x2af   : > { %5809 = vmatprep.subr.bf16.mxu0 %v12649_v52  ;;  %6195 = vmatprep.subr.bf16.mxu1 %v12651_v28  ;;  %v3780_v52 = vrot.slane %v3778_v55, 4  ;;  %v3807_v28 = vrot.slane %v3805_v9, 4  ;;  %v3831_v58 = vshll.u32 %v3408_v31, 16  ;;  %v3845_v3 = vshrl.u32 %v3408_v31, 16 }
 0x2b0   : > { %v3746_v13 = vsel %vm15541_vm4, %v3741_v30, %v3745_v18  ;;  %v3766_v29 = vsel %vm15541_vm4, %v3761_v24, %v3765_v8  ;;  %v3412_v18 = vld [vmem:[%s14970_s11 + $0x170] sm:$0xff] }
 0x2b1   : > { %v3784_v6 = vor.u32 %v3783_v1, %v3780_v52  ;;  %v3808_v10 = vor.u32 %v3807_v28, %v3789_v17  ;;  %v3833_v26 = vrot.slane %v3831_v58, 5  ;;  %v3847_v59 = vrot.slane %v3845_v3, 4  ;;  %v3416_v30 = vld [vmem:[%s14970_s11 + $0x190] sm:$0xff] }
 0x2b2   : > { %5810 = vmatpush1.bf16.msra.mxu0 %v12648_v42  ;;  %6196 = vmatpush1.bf16.msra.mxu1 %v12650_v45  ;;  %v3811_v42 = vshll.u32 %v3406_v7, 16  ;;  %v15724_v45 = vcombine.low %v3706_v56, %v3726_v62  ;;  %v15726_v35 = vcombine.high %v3746_v13, %v3766_v29  ;;  %v3891_v52 = vshll.u32 %v3414_v23, 16 }
 0x2b3   : > { %12664 = vmatprep.subr.msk.bf16.mxu0 %vm1797_vm0, %v12657_v46  ;;  %12681 = vmatprep.subr.msk.bf16.mxu1 %vm1797_vm0, %v12659_v37  ;;  %v3827_v46 = vrot.slane %v3825_v16, 4  ;;  %v3410_v37 = vld [vmem:[%s14970_s11 + $0x160] sm:$0xff]  ;;  %v3785_v38 = vrot.slane %v3784_v6, 4  ;;  %v3809_v39 = vrot.slane %v3808_v10, 4  ;;  %v3848_v49 = vor.u32 %v3847_v59, %v3833_v26 }
 0x2b4   : > { %5675 = vmatmul.mubr.bf16.gmra.mrb[16].mxu0 %v15683_v19  ;;  %6061 = vmatmul.mubr.bf16.gmra.mrb[16].mxu1 %v15683_v19  ;;  %v3813_v40 = vrot.slane %v3811_v42, 5  ;;  %v3851_v50 = vshll.u32 %v3410_v37, 16  ;;  %v3865_v27 = vshrl.u32 %v3410_v37, 16  ;;  %v3911_v28 = vshll.u32 %v3416_v30, 16  ;;  %v3422_v59 = vld [vmem:[%s14970_s11 + $0x1c0] sm:$0xff] }
 0x2b5   : > { %5684 = vmatprep.mubr.bf16.mxu0 %v15687_v41  ;;  %6070 = vmatprep.mubr.bf16.mxu1 %v15687_v41  ;;  %v3790_v56 = vsel %vm15541_vm4, %v3785_v38, %v3789_v17  ;;  %v3849_v5 = vrot.slane %v3848_v49, 4  ;;  %v3905_v17 = vshrl.u32 %v3414_v23, 16  ;;  %v3925_v7 = vshrl.u32 %v3416_v30, 16 }
 0x2b6   : > { %5812 = vmatpush1.bf16.msra.mxu0 %v5579_v53  ;;  %6198 = vmatpush1.bf16.msra.mxu1 %v5585_v20  ;;  %v3828_v48 = vor.u32 %v3827_v46, %v3813_v40  ;;  %v3871_v53 = vshll.u32 %v3412_v18, 16  ;;  %v3814_v20 = vsel %vm15541_vm4, %v3809_v39, %v3813_v40  ;;  %v3853_v11 = vrot.slane %v3851_v50, 5  ;;  %v3418_v46 = vld [vmem:[%s14970_s11 + $0x1a0] sm:$0x11] }
 0x2b7   : > { %6374 = vmatprep.subr.bf16.mxu0 %v12469_v54  ;;  %6760 = vmatprep.subr.bf16.mxu1 %v12471_v15  ;;  %v3885_v54 = vshrl.u32 %v3412_v18, 16  ;;  %v15738_v15 = vcombine.low %v3746_v13, %v3766_v29  ;;  %v3867_v14 = vrot.slane %v3865_v27, 4  ;;  %v15740_v55 = vcombine.high %v3790_v56, %v3814_v20 }
 0x2b8   : > { %v3829_v62 = vrot.slane %v3828_v48, 4  ;;  %v3873_v21 = vrot.slane %v3871_v53, 5  ;;  %v3854_v8 = vsel %vm15541_vm4, %v3849_v5, %v3853_v11  ;;  %v15752_v16 = vcombine.low %v3790_v56, %v3814_v20  ;;  %v3426_v5 = vld [vmem:[%s14970_s11 + $0x1e0] sm:$0xff] }
 0x2b9   : > { %v3887_v9 = vrot.slane %v3885_v54, 4  ;;  %v3868_v31 = vor.u32 %v3867_v14, %v3853_v11  ;;  %v3893_v13 = vrot.slane %v3891_v52, 5  ;;  %v3907_v6 = vrot.slane %v3905_v17, 4 }
 0x2ba   : > { %v3834_v24 = vsel %vm15541_vm4, %v3829_v62, %v3833_v26  ;;  %v3913_v10 = vrot.slane %v3911_v28, 5  ;;  %v3927_v42 = vrot.slane %v3925_v7, 4  ;;  %v3420_v26 = vld [vmem:[%s14970_s11 + $0x1b0] sm:$0xff]  ;;  %v3931_v18 = vshll.u32 %v3418_v46, 16 }
 0x2bb   : > { %v3888_v1 = vor.u32 %v3887_v9, %v3873_v21  ;;  %v15754_v58 = vcombine.high %v3834_v24, %v3854_v8  ;;  %v3869_v3 = vrot.slane %v3868_v31, 4  ;;  %v3908_v39 = vor.u32 %v3907_v6, %v3893_v13  ;;  %v3424_v9 = vld [vmem:[%s14970_s11 + $0x1d0] sm:$0xff] }
 0x2bc   : > { %5685 = vmatmul.mubr.bf16.gmra.mrb[20].mxu0 %v15710_v22  ;;  %6071 = vmatmul.mubr.bf16.gmra.mrb[20].mxu1 %v15710_v22  ;;  %v3928_v40 = vor.u32 %v3927_v42, %v3913_v10  ;;  %v3946_v48 = vshrl.u32 %v3420_v26, 16  ;;  %v3949_v49 = vshll.u32 %v3420_v26, 16  ;;  %v3955_v50 = vshll.u32 %v3422_v59, 16  ;;  %v3428_v42 = vld [vmem:[%s14970_s11 + $0x1f0] sm:$0xff] }
 0x2bd   : > { %5694 = vmatprep.mubr.bf16.mxu0 %v15712_v60  ;;  %6080 = vmatprep.mubr.bf16.mxu1 %v15712_v60  ;;  %v3889_v29 = vrot.slane %v3888_v1, 4  ;;  %v3874_v37 = vsel %vm15541_vm4, %v3869_v3, %v3873_v21  ;;  %v3973_v27 = vshrl.u32 %v3422_v59, 16  ;;  %v15767_v53 = vcombine.low %v3834_v24, %v3854_v8 }
 0x2be   : > { %v3909_v56 = vrot.slane %v3908_v39, 4  ;;  %v3929_v20 = vrot.slane %v3928_v40, 4  ;;  %v3933_v62 = vrot.slane %v3931_v18, 5  ;;  %v3948_v11 = vrot.slane %v3946_v48, 4 }
 0x2bf   : > { %v3894_v38 = vsel %vm15541_vm4, %v3889_v29, %v3893_v13  ;;  %v3951_v14 = vrot.slane %v3949_v49, 5  ;;  %v3957_v23 = vrot.slane %v3955_v50, 5  ;;  %v3975_v21 = vrot.slane %v3973_v27, 4 }
 0x2c0   : > { %v15769_v54 = vcombine.high %v3874_v37, %v3894_v38  ;;  %v3993_v30 = vshrl.u32 %v3424_v9, 16  ;;  %v3999_v31 = vshll.u32 %v3426_v5, 16  ;;  %v4013_v52 = vshrl.u32 %v3426_v5, 16 }
 0x2c1   : > { %v3914_v24 = vsel %vm15541_vm4, %v3909_v56, %v3913_v10  ;;  %v3934_v8 = vsel %vm15541_vm4, %v3929_v20, %v3933_v62  ;;  %v3952_v1 = vor.u32 %v3951_v14, %v3948_v11  ;;  %v3976_v17 = vor.u32 %v3975_v21, %v3957_v23  ;;  %v3430_v10 = vld [vmem:[%s14970_s11 + $0x200] sm:$0xff]  ;;  %v3432_v14 = vld [vmem:[%s14970_s11 + $0x210] sm:$0xff] }
 0x2c2   : > { %v3979_v28 = vshll.u32 %v3424_v9, 16  ;;  %v15781_v7 = vcombine.low %v3874_v37, %v3894_v38  ;;  %v3995_v3 = vrot.slane %v3993_v30, 4  ;;  %v4001_v13 = vrot.slane %v3999_v31, 5  ;;  %v3434_v30 = vld [vmem:[%s14970_s11 + $0x220] sm:$0xff] }
 0x2c3   : > { %v4015_v29 = vrot.slane %v4013_v52, 4  ;;  %v15783_v6 = vcombine.high %v3914_v24, %v3934_v8  ;;  %v3953_v46 = vrot.slane %v3952_v1, 4  ;;  %v3977_v26 = vrot.slane %v3976_v17, 4 }
 0x2c4   : > { %5695 = vmatmul.mubr.bf16.gmra.mrb[24].mxu0 %v15724_v45  ;;  %6081 = vmatmul.mubr.bf16.gmra.mrb[24].mxu1 %v15724_v45  ;;  %v3981_v59 = vrot.slane %v3979_v28, 5  ;;  %v4019_v18 = vshll.u32 %v3428_v42, 16  ;;  %v4033_v48 = vshrl.u32 %v3428_v42, 16  ;;  %v4039_v37 = vshll.u32 %v3430_v10, 16 }
 0x2c5   : > { %5704 = vmatprep.mubr.bf16.mxu0 %v15726_v35  ;;  %6090 = vmatprep.mubr.bf16.mxu1 %v15726_v35  ;;  %19173 = vst [vmem:[#allocation12_spill] sm:$0xff] %v15783_v6  ;;  %v4016_v40 = vor.u32 %v4015_v29, %v4001_v13  ;;  %v4053_v38 = vshrl.u32 %v3430_v10, 16  ;;  %v3958_v49 = vsel %vm15541_vm4, %v3953_v46, %v3957_v23  ;;  %v4073_v1 = vshrl.u32 %v3432_v14, 16 }
 0x2c6   : > { %v3996_v39 = vor.u32 %v3995_v3, %v3981_v59  ;;  %v3982_v50 = vsel %vm15541_vm4, %v3977_v26, %v3981_v59  ;;  %v15795_v27 = vcombine.low %v3914_v24, %v3934_v8  ;;  %v4021_v62 = vrot.slane %v4019_v18, 5  ;;  %v3369_v18 = vld [vmem:[%s14970_s11 + $0x18] sm:$0xff] }
 0x2c7   : > { %v4017_v20 = vrot.slane %v4016_v40, 4  ;;  %v4035_v5 = vrot.slane %v4033_v48, 4  ;;  %v15797_v11 = vcombine.high %v3958_v49, %v3982_v50  ;;  %v4041_v21 = vrot.slane %v4039_v37, 5  ;;  %v3367_v40 = vld [vmem:[%s14970_s11 + $0x8] sm:$0xff] }
 0x2c8   : > { %19174 = vst [vmem:[#allocation13_spill] sm:$0xff] %v15795_v27  ;;  %v3997_v56 = vrot.slane %v3996_v39, 4  ;;  %v4055_v9 = vrot.slane %v4053_v38, 4  ;;  %v4059_v24 = vshll.u32 %v3432_v14, 16  ;;  %v4079_v17 = vshll.u32 %v3434_v30, 16 }
 0x2c9   : > { %19175 = vst [vmem:[#allocation14_spill] sm:$0xff] %v15797_v11  ;;  %v4022_v31 = vsel %vm15541_vm4, %v4017_v20, %v4021_v62  ;;  %v4036_v52 = vor.u32 %v4035_v5, %v4021_v62  ;;  %v4093_v28 = vshrl.u32 %v3434_v30, 16  ;;  %v15809_v3 = vcombine.low %v3958_v49, %v3982_v50  ;;  %v3436_v39 = vld [vmem:[%s14970_s11 + $0x230] sm:$0x11] }
 0x2ca   : > { %v4002_v23 = vsel %vm15541_vm4, %v3997_v56, %v4001_v13  ;;  %v4056_v8 = vor.u32 %v4055_v9, %v4041_v21  ;;  %v4061_v42 = vrot.slane %v4059_v24, 5  ;;  %v4075_v26 = vrot.slane %v4073_v1, 4 }
 0x2cb   : > { %19176 = vst [vmem:[#allocation15_spill] sm:$0xff] %v15809_v3  ;;  %v15811_v13 = vcombine.high %v4002_v23, %v4022_v31  ;;  %v4037_v29 = vrot.slane %v4036_v52, 4  ;;  %v4081_v59 = vrot.slane %v4079_v17, 5  ;;  %v4095_v10 = vrot.slane %v4093_v28, 4  ;;  %v3371_v28 = vld [vmem:[%s14970_s11 + $0x28] sm:$0xff] }
 0x2cc   : > { %5705 = vmatmul.mubr.bf16.gmra.mrb[28].mxu0 %v15738_v15  ;;  %6091 = vmatmul.mubr.bf16.gmra.mrb[28].mxu1 %v15738_v15  ;;  %v4057_v46 = vrot.slane %v4056_v8, 4  ;;  %v4076_v38 = vor.u32 %v4075_v26, %v4061_v42  ;;  %v4099_v50 = vshll.u32 %v3436_v39, 16  ;;  %v3456_v56 = vshrl.u32 %v3367_v40, 16 }
 0x2cd   : > { %5714 = vmatprep.mubr.bf16.mxu0 %v15740_v55  ;;  %6100 = vmatprep.mubr.bf16.mxu1 %v15740_v55  ;;  %19177 = vst [vmem:[#allocation16_spill] sm:$0xff] %v15811_v13  ;;  %v4042_v48 = vsel %vm15541_vm4, %v4037_v29, %v4041_v21  ;;  %v4096_v49 = vor.u32 %v4095_v10, %v4081_v59  ;;  %v3459_v20 = vshll.u32 %v3367_v40, 16  ;;  %v3465_v62 = vshll.u32 %v3369_v18, 16  ;;  %v3373_v29 = vld [vmem:[%s14970_s11 + $0x38] sm:$0xff] }
 0x2ce   : > { %v4062_v37 = vsel %vm15541_vm4, %v4057_v46, %v4061_v42  ;;  %v3479_v5 = vshrl.u32 %v3369_v18, 16  ;;  %v15824_v14 = vcombine.low %v4002_v23, %v4022_v31  ;;  %v4077_v9 = vrot.slane %v4076_v38, 4 }
 0x2cf   : > { %v15826_v21 = vcombine.high %v4042_v48, %v4062_v37  ;;  %v4097_v30 = vrot.slane %v4096_v49, 4  ;;  %v4101_v52 = vrot.slane %v4099_v50, 5  ;;  %v3458_v24 = vrot.slane %v3456_v56, 4  ;;  %v3377_v49 = vld [vmem:[%s14970_s11 + $0x58] sm:$0xff] }
 0x2d0   : > { %19178 = vst [vmem:[#allocation17_spill] sm:$0xff] %v15824_v14  ;;  %v3461_v8 = vrot.slane %v3459_v20, 5  ;;  %v3467_v1 = vrot.slane %v3465_v62, 5  ;;  %v3481_v17 = vrot.slane %v3479_v5, 4  ;;  %v4082_v23 = vsel %vm15541_vm4, %v4077_v9, %v4081_v59  ;;  %v3375_v59 = vld [vmem:[%s14970_s11 + $0x48] sm:$0xff] }
 0x2d1   : > { %19179 = vst [vmem:[#allocation18_spill] sm:$0xff] %v15826_v21  ;;  %v4102_v31 = vsel %vm15541_vm4, %v4097_v30, %v4101_v52  ;;  %v3485_v26 = vshll.u32 %v3371_v28, 16  ;;  %v3499_v10 = vshrl.u32 %v3371_v28, 16  ;;  %v3505_v39 = vshll.u32 %v3373_v29, 16 }
 0x2d2   : > { %v3462_v42 = vor.u32 %v3461_v8, %v3458_v24  ;;  %v3482_v46 = vor.u32 %v3481_v17, %v3467_v1  ;;  %v3519_v40 = vshrl.u32 %v3373_v29, 16  ;;  %v15838_v18 = vcombine.low %v4042_v48, %v4062_v37 }
 0x2d3   : > { %v15840_v38 = vcombine.high %v4082_v23, %v4102_v31  ;;  %v3487_v20 = vrot.slane %v3485_v26, 5  ;;  %v3501_v62 = vrot.slane %v3499_v10, 4  ;;  %v3507_v5 = vrot.slane %v3505_v39, 5  ;;  %v3379_v39 = vld [vmem:[%s14970_s11 + $0x68] sm:$0xff] }
 0x2d4   : > { %5715 = vmatmul.mubr.bf16.gmra.mrb[32].mxu0 %v15752_v16  ;;  %6101 = vmatmul.mubr.bf16.gmra.mrb[32].mxu1 %v15752_v16  ;;  %19180 = vst [vmem:[#allocation19_spill] sm:$0xff] %v15838_v18  ;;  %v3463_v50 = vrot.slane %v3462_v42, 4  ;;  %v3483_v56 = vrot.slane %v3482_v46, 4  ;;  %v3521_v9 = vrot.slane %v3519_v40, 4  ;;  %v3539_v30 = vshrl.u32 %v3375_v59, 16 }
 0x2d5   : > { %5724 = vmatprep.mubr.bf16.mxu0 %v15754_v58  ;;  %6110 = vmatprep.mubr.bf16.mxu1 %v15754_v58  ;;  %19181 = vst [vmem:[#allocation20_spill] sm:$0xff] %v15840_v38  ;;  %v3545_v52 = vshll.u32 %v3377_v49, 16  ;;  %v3559_v24 = vshrl.u32 %v3377_v49, 16  ;;  %v3525_v8 = vshll.u32 %v3375_v59, 16  ;;  %v3502_v17 = vor.u32 %v3501_v62, %v3487_v20  ;;  %v3381_v49 = vld [vmem:[%s14970_s11 + $0x78] sm:$0xff] }
 0x2d6   : > { %v3468_v48 = vsel %vm15541_vm4, %v3463_v50, %v3467_v1  ;;  %v3488_v37 = vsel %vm15541_vm4, %v3483_v56, %v3487_v20  ;;  %v3522_v28 = vor.u32 %v3521_v9, %v3507_v5  ;;  %v15852_v29 = vcombine.low %v4082_v23, %v4102_v31 }
 0x2d7   : > { %v3541_v42 = vrot.slane %v3539_v30, 4  ;;  %v3547_v46 = vrot.slane %v3545_v52, 5  ;;  %v3561_v26 = vrot.slane %v3559_v24, 4  ;;  %v15854_v10 = vcombine.high %v3468_v48, %v3488_v37  ;;  %v4124_v30 = vld [vmem:[#allocation2 + $0xc90] sm:$0xff]  ;;  %v4125_v24 = vld [vmem:[#allocation2 + $0xc98] sm:$0xff] }
 0x2d8   : > { %19182 = vst [vmem:[#allocation21_spill] sm:$0xff] %v15852_v29  ;;  %v3527_v40 = vrot.slane %v3525_v8, 5  ;;  %v3503_v47 = vrot.slane %v3502_v17, 4  ;;  %v3523_v33 = vrot.slane %v3522_v28, 4  ;;  %v3565_v56 = vshll.u32 %v3379_v39, 16  ;;  %v4128_v52 = vld [vmem:[#allocation2 + $0xcb0] sm:$0xff] }
 0x2d9   : > { %19183 = vst [vmem:[#allocation22_spill] sm:$0xff] %v15854_v10  ;;  %v3562_v50 = vor.u32 %v3561_v26, %v3547_v46  ;;  %v3579_v59 = vshrl.u32 %v3379_v39, 16  ;;  %v3585_v23 = vshll.u32 %v3381_v49, 16  ;;  %v3599_v31 = vshrl.u32 %v3381_v49, 16  ;;  %v4129_v8 = vld [vmem:[#allocation2 + $0xcb8] sm:$0xff] }
 0x2da   : > { %v3542_v1 = vor.u32 %v3541_v42, %v3527_v40  ;;  %v15864_v20 = vcombine.low %v3468_v48, %v3488_v37  ;;  %v3508_v62 = vsel %vm15541_vm4, %v3503_v47, %v3507_v5  ;;  %v3528_v9 = vsel %vm15541_vm4, %v3523_v33, %v3527_v40  ;;  %v3383_v39 = vld [vmem:[%s14970_s11 + $0x88] sm:$0x11]  ;;  %v3385_v47 = vld [vmem:[%s14970_s11 + $0x98] sm:$0xff] }
 0x2db   : > { %v3563_v28 = vrot.slane %v3562_v50, 4  ;;  %v3567_v42 = vrot.slane %v3565_v56, 5  ;;  %v3581_v26 = vrot.slane %v3579_v59, 4  ;;  %v3587_v49 = vrot.slane %v3585_v23, 5  ;;  %v15890_v59 = vld [vmem:[#allocation2 + $0xcf8] sm:$0xff] }
 0x2dc   : > { %5725 = vmatmul.mubr.bf16.gmra.mrb[36].mxu0 %v15767_v53  ;;  %6111 = vmatmul.mubr.bf16.gmra.mrb[36].mxu1 %v15767_v53  ;;  %19184 = vst [vmem:[#allocation23_spill] sm:$0xff] %v15864_v20  ;;  %v3543_v17 = vrot.slane %v3542_v1, 4  ;;  %v3601_v48 = vrot.slane %v3599_v31, 4  ;;  %v15871_v37 = vcombine.high %v3508_v62, %v3528_v9  ;;  %v12476_v5 = vcombine.low %v4124_v30, %v4128_v52  ;;  %v3387_v1 = vld [vmem:[%s14970_s11 + $0xa8] sm:$0xff] }
 0x2dd   : > { %5734 = vmatprep.mubr.bf16.mxu0 %v15769_v54  ;;  %6120 = vmatprep.mubr.bf16.mxu1 %v15769_v54  ;;  %v12478_v33 = vcombine.low %v4125_v24, %v4129_v8  ;;  %v12479_v40 = vcombine.high %v4125_v24, %v4129_v8  ;;  %v15888_v56 = vsel %vm15541_vm4, %v3563_v28, %v3567_v42  ;;  %v3605_v31 = vshll.u32 %v3383_v39, 16 }
 0x2de   : > { %19185 = vst [vmem:[#allocation24_spill] sm:$0xff] %v15871_v37  ;;  %v15884_v50 = vsel %vm15541_vm4, %v3543_v17, %v3547_v46  ;;  %v3582_v23 = vor.u32 %v3581_v26, %v3567_v42  ;;  %v19186_v24 = vcombine.low %v15599_v0, %v15601_v25  ;;  %v3602_v46 = vor.u32 %v3601_v48, %v3587_v49  ;;  %v15904_v42 = vld [vmem:[#allocation2 + $0x1078] sm:$0xff] }
 0x2df   : > { %v3624_v8 = vshrl.u32 %v3385_v47, 16  ;;  %v3627_v17 = vshll.u32 %v3385_v47, 16  ;;  %v19187_v26 = vcombine.low %v15603_v32, %v15613_v34  ;;  %v3633_v25 = vshll.u32 %v3387_v1, 16 }
 0x2e0   : > { %v3647_v39 = vshrl.u32 %v3387_v1, 16  ;;  %v15919_v32 = vcombine.low %v3508_v62, %v3528_v9  ;;  %v15923_v34 = vcombine.high %v15884_v50, %v15888_v56  ;;  %v4140_v1 = vld [vmem:[#allocation2 + $0xd10] sm:$0xff]  ;;  %v3603_v48 = vrot.slane %v3602_v46, 4  ;;  %v3389_v9 = vld [vmem:[%s14970_s11 + $0xb8] sm:$0xff] }
 0x2e1   : > { %v3607_v28 = vrot.slane %v3605_v31, 5  ;;  %v4148_v46 = vld [vmem:[#allocation2 + $0xd50] sm:$0xff] }
 0x2e2   : > { %19188 = vst [vmem:[#allocation25_spill] sm:$0xff] %v15919_v32  ;;  %19189 = vst [vmem:[#allocation26_spill] sm:$0xff] %v15923_v34 }
 0x2e4   : > { %5735 = vmatmul.mubr.bf16.gmra.mrb[40].mxu0 %v15781_v7  ;;  %6121 = vmatmul.mubr.bf16.gmra.mrb[40].mxu1 %v15781_v7 }
 0x2e5   : > { %5744 = vmatprep.mubr.bf16.mxu0 %v15783_v6  ;;  %6130 = vmatprep.mubr.bf16.mxu1 %v15783_v6  ;;  %v4168_v6 = vld [vmem:[#allocation2 + $0xdf0] sm:$0xff] }
 0x2ec   : > { %5745 = vmatmul.mubr.bf16.gmra.mrb[44].mxu0 %v15795_v27  ;;  %6131 = vmatmul.mubr.bf16.gmra.mrb[44].mxu1 %v15795_v27  ;;  %v4164_v27 = vld [vmem:[#allocation2 + $0xdd0] sm:$0xff] }
 0x2ed   : > { %5754 = vmatprep.mubr.bf16.mxu0 %v15797_v11  ;;  %6140 = vmatprep.mubr.bf16.mxu1 %v15797_v11 }
 0x2f4   : > { %5755 = vmatmul.mubr.bf16.gmra.mrb[48].mxu0 %v15809_v3  ;;  %6141 = vmatmul.mubr.bf16.gmra.mrb[48].mxu1 %v15809_v3  ;;  %v3391_v3 = vld [vmem:[%s14970_s11 + $0xc8] sm:$0xff] }
 0x2f5   : > { %5764 = vmatprep.mubr.bf16.mxu0 %v15811_v13  ;;  %6150 = vmatprep.mubr.bf16.mxu1 %v15811_v13  ;;  %v3649_v13 = vrot.slane %v3647_v39, 4  ;;  %v3673_v39 = vshll.u32 %v3391_v3, 16 }
 0x2fc   : > { %5765 = vmatmul.mubr.bf16.gmra.mrb[52].mxu0 %v15824_v14  ;;  %6151 = vmatmul.mubr.bf16.gmra.mrb[52].mxu1 %v15824_v14  ;;  %v3629_v14 = vrot.slane %v3627_v17, 5  ;;  %v4149_v17 = vld [vmem:[#allocation2 + $0xd58] sm:$0xff] }
 0x2fd   : > { %5774 = vmatprep.mubr.bf16.mxu0 %v15826_v21  ;;  %6160 = vmatprep.mubr.bf16.mxu1 %v15826_v21  ;;  %v15902_v21 = vld [vmem:[#allocation2 + $0x1058] sm:$0xff] }
 0x304   : > { %5775 = vmatmul.mubr.bf16.gmra.mrb[56].mxu0 %v15838_v18  ;;  %6161 = vmatmul.mubr.bf16.gmra.mrb[56].mxu1 %v15838_v18  ;;  %v15878_v18 = vld [vmem:[#allocation2 + $0xcd8] sm:$0xff] }
 0x305   : > { %5784 = vmatprep.mubr.bf16.mxu0 %v15840_v38  ;;  %6170 = vmatprep.mubr.bf16.mxu1 %v15840_v38  ;;  %v15876_v38 = vld [vmem:[#allocation2 + $0xcf0] sm:$0xff]  ;;  %v12487_v47 = vcombine.high %v15878_v18, %v15890_v59 }
 0x30c   : > { %5785 = vmatmul.mubr.bf16.gmra.mrb[60].mxu0 %v15852_v29  ;;  %6171 = vmatmul.mubr.bf16.gmra.mrb[60].mxu1 %v15852_v29  ;;  %v12477_v29 = vcombine.high %v4124_v30, %v4128_v52  ;;  %v15892_v30 = vld [vmem:[#allocation2 + $0x1050] sm:$0xff] }
 0x30d   : > { %12665 = vmatprep.mubr.msk.bf16.mxu0 %vm1748_vm1, %v15854_v10  ;;  %12682 = vmatprep.mubr.msk.bf16.mxu1 %vm1748_vm1, %v15854_v10  ;;  %v15873_v10 = vld [vmem:[#allocation2 + $0xcd0] sm:$0xff] }
 0x30e   : > { %v15894_v52 = vld [vmem:[#allocation2 + $0x1070] sm:$0xff]  ;;  %v12485_v0 = vcombine.high %v15873_v10, %v15876_v38  ;;  %v12484_v62 = vcombine.low %v15873_v10, %v15876_v38  ;;  %v3653_v10 = vshll.u32 %v3389_v9, 16 }
 0x314   : > { %5828 = vmatmul.mubr.bf16.vlgmr.msra.gmra.mrb[0].mxu0 %v15864_v20  ;;  %6214 = vmatmul.mubr.bf16.vlgmr.msra.gmra.mrb[0].mxu1 %v15864_v20  ;;  %v3626_v20 = vrot.slane %v3624_v8, 4  ;;  %v4152_v8 = vld [vmem:[#allocation2 + $0xd70] sm:$0xff] }
 0x315   : > { %6375 = vmatpush1.bf16.msra.mxu0 %v19186_v24  ;;  %6761 = vmatpush1.bf16.msra.mxu1 %v19187_v26  ;;  %v3583_v24 = vrot.slane %v3582_v23, 4  ;;  %v4144_v26 = vld [vmem:[#allocation2 + $0xd30] sm:$0xff]  ;;  %v12486_v23 = vcombine.low %v15878_v18, %v15890_v59  ;;  %v3608_v18 = vsel %vm15541_vm4, %v3603_v48, %v3607_v28  ;;  %v3667_v59 = vshrl.u32 %v3389_v9, 16  ;;  %v4161_v9 = vld [vmem:[#allocation2 + $0xdb8] sm:$0xff] }
 0x316   : > { %12666 = vmatprep.mubr.msk.bf16.mxu0 %vm1748_vm1, %v15871_v37  ;;  %12683 = vmatprep.mubr.msk.bf16.mxu1 %vm1748_vm1, %v15871_v37  ;;  %v4141_v37 = vld [vmem:[#allocation2 + $0xd18] sm:$0xff]  ;;  %v3630_v38 = vor.u32 %v3629_v14, %v3626_v20  ;;  %v15945_v14 = vcombine.low %v15884_v50, %v15888_v56  ;;  %v4156_v28 = vld [vmem:[#allocation2 + $0xd90] sm:$0xff] }
 0x317   : > { %6376 = vmatprep.subr.bf16.mxu0 %v12477_v29  ;;  %6762 = vmatprep.subr.bf16.mxu1 %v12479_v40  ;;  %v4145_v29 = vld [vmem:[#allocation2 + $0xd38] sm:$0xff]  ;;  %v3635_v40 = vrot.slane %v3633_v25, 5  ;;  %v15934_v31 = vsel %vm15541_vm4, %v3583_v24, %v3587_v49  ;;  %v12492_v49 = vcombine.low %v4140_v1, %v4144_v26  ;;  %v4160_v48 = vld [vmem:[#allocation2 + $0xdb0] sm:$0xff] }
 0x318   : > { %v12494_v24 = vcombine.low %v4141_v37, %v4145_v29 }
 0x319   : > { %6377 = vmatpush1.bf16.msra.mxu0 %v12476_v5  ;;  %6763 = vmatpush1.bf16.msra.mxu1 %v12478_v33  ;;  %v12493_v5 = vcombine.high %v4140_v1, %v4144_v26  ;;  %v12495_v33 = vcombine.high %v4141_v37, %v4145_v29  ;;  %v3650_v25 = vor.u32 %v3649_v13, %v3635_v40  ;;  %v3631_v13 = vrot.slane %v3630_v38, 4  ;;  %v4157_v26 = vld [vmem:[#allocation2 + $0xd98] sm:$0xff] }
 0x31a   : > { %6378 = vmatprep.subr.bf16.mxu0 %v12485_v0  ;;  %6764 = vmatprep.subr.bf16.mxu1 %v12487_v47  ;;  %v4153_v0 = vld [vmem:[#allocation2 + $0xd78] sm:$0xff]  ;;  %v3687_v47 = vshrl.u32 %v3391_v3, 16  ;;  %v3655_v1 = vrot.slane %v3653_v10, 5  ;;  %v3669_v3 = vrot.slane %v3667_v59, 4  ;;  %v12500_v29 = vcombine.low %v4148_v46, %v4152_v8 }
 0x31b   : > { %v12503_v20 = vcombine.high %v4149_v17, %v4153_v0  ;;  %v3651_v37 = vrot.slane %v3650_v25, 4  ;;  %v12502_v56 = vcombine.low %v4149_v17, %v4153_v0  ;;  %v12511_v10 = vcombine.high %v4157_v26, %v4161_v9  ;;  %v4169_v17 = vld [vmem:[#allocation2 + $0xdf8] sm:$0xff] }
 0x31c   : > { %5838 = vmatmul.mubr.bf16.gmra.mrb[4].mxu0 %v15919_v32  ;;  %6224 = vmatmul.mubr.bf16.gmra.mrb[4].mxu1 %v15919_v32  ;;  %v12501_v32 = vcombine.high %v4148_v46, %v4152_v8  ;;  %v3689_v50 = vrot.slane %v3687_v47, 4  ;;  %v3670_v46 = vor.u32 %v3669_v3, %v3655_v1  ;;  %v4165_v8 = vld [vmem:[#allocation2 + $0xdd8] sm:$0xff]  ;;  %v15966_v47 = vcombine.low %v15934_v31, %v3608_v18 }
 0x31d   : > { %12667 = vmatprep.mubr.msk.bf16.mxu0 %vm1748_vm1, %v15923_v34  ;;  %12684 = vmatprep.mubr.msk.bf16.mxu1 %vm1748_vm1, %v15923_v34  ;;  %v12509_v34 = vcombine.high %v4156_v28, %v4160_v48  ;;  %v3656_v0 = vsel %vm15541_vm4, %v3651_v37, %v3655_v1  ;;  %v12519_v1 = vcombine.high %v4165_v8, %v4169_v17  ;;  %v4176_v37 = vld [vmem:[#allocation2 + $0xe30] sm:$0xff] }
 0x31e   : > { %6379 = vmatpush1.bf16.msra.mxu0 %v12484_v62  ;;  %6765 = vmatpush1.bf16.msra.mxu1 %v12486_v23  ;;  %v15948_v62 = vcombine.high %v15934_v31, %v3608_v18  ;;  %v3395_v23 = vld [vmem:[%s14970_s11 + $0xe8] sm:$0xff]  ;;  %19191 = vst [vmem:[#allocation28_spill] sm:$0xff] %v15966_v47  ;;  %v4177_v31 = vld [vmem:[#allocation2 + $0xe38] sm:$0xff] }
 0x31f   : > { %6380 = vmatprep.subr.bf16.mxu0 %v12493_v5  ;;  %6766 = vmatprep.subr.bf16.mxu1 %v12495_v33  ;;  %v15951_v5 = vrot.slane %v3673_v39, 5  ;;  %v3393_v33 = vld [vmem:[%s14970_s11 + $0xd8] sm:$0xff]  ;;  %v3713_v59 = vshll.u32 %v3395_v23, 16  ;;  %v3727_v11 = vshrl.u32 %v3395_v23, 16  ;;  %v12508_v39 = vcombine.low %v4156_v28, %v4160_v48  ;;  %v4172_v23 = vld [vmem:[#allocation2 + $0xe10] sm:$0xff] }
 0x320   : > { %19190 = vst [vmem:[#allocation27_spill] sm:$0xff] %v15948_v62  ;;  %v3707_v38 = vshrl.u32 %v3393_v33, 16  ;;  %v3693_v25 = vshll.u32 %v3393_v33, 16  ;;  %v3397_v28 = vld [vmem:[%s14970_s11 + $0xf8] sm:$0xff]  ;;  %v12525_v33 = vcombine.high %v4172_v23, %v4176_v37 }
 0x321   : > { %v3729_v3 = vrot.slane %v3727_v11, 4  ;;  %v4173_v48 = vld [vmem:[#allocation2 + $0xe18] sm:$0xff] }
 0x322   : > { %6381 = vmatpush1.bf16.msra.mxu0 %v12492_v49  ;;  %6767 = vmatpush1.bf16.msra.mxu1 %v12494_v24  ;;  %v3690_v49 = vor.u32 %v3689_v50, %v15951_v5  ;;  %v12517_v24 = vcombine.high %v4164_v27, %v4168_v6  ;;  %v3671_v50 = vrot.slane %v3670_v46, 4  ;;  %v4180_v46 = vld [vmem:[#allocation2 + $0xe50] sm:$0xff] }
 0x323   : > { %6382 = vmatprep.subr.bf16.mxu0 %v12501_v32  ;;  %6768 = vmatprep.subr.bf16.mxu1 %v12503_v20  ;;  %v3636_v32 = vsel %vm15541_vm4, %v3631_v13, %v3635_v40  ;;  %v12510_v40 = vcombine.low %v4157_v26, %v4161_v9  ;;  %v3709_v20 = vrot.slane %v3707_v38, 4  ;;  %v15968_v13 = vrot.slane %v3713_v59, 5  ;;  %v3399_v9 = vld [vmem:[%s14970_s11 + $0x108] sm:$0xff] }
 0x324   : > { %5848 = vmatmul.mubr.bf16.gmra.mrb[8].mxu0 %v15945_v14  ;;  %6234 = vmatmul.mubr.bf16.gmra.mrb[8].mxu1 %v15945_v14  ;;  %v3691_v18 = vrot.slane %v3690_v49, 4  ;;  %v12518_v26 = vcombine.low %v4165_v8, %v4169_v17  ;;  %v12527_v59 = vcombine.high %v4173_v48, %v4177_v31  ;;  %v4181_v8 = vld [vmem:[#allocation2 + $0xe58] sm:$0xff] }
 0x325   : > { %12668 = vmatprep.mubr.msk.bf16.mxu0 %vm1748_vm1, %v15948_v62  ;;  %12685 = vmatprep.mubr.msk.bf16.mxu1 %vm1748_vm1, %v15948_v62  ;;  %v3730_v38 = vor.u32 %v3729_v3, %v15968_v13  ;;  %v4184_v62 = vld [vmem:[#allocation2 + $0xe70] sm:$0xff]  ;;  %v4185_v17 = vld [vmem:[#allocation2 + $0xe78] sm:$0xff] }
 0x326   : > { %6383 = vmatpush1.bf16.msra.mxu0 %v12500_v29  ;;  %6769 = vmatpush1.bf16.msra.mxu1 %v12502_v56  ;;  %v15970_v29 = vcombine.high %v3636_v32, %v3656_v0  ;;  %v3695_v56 = vrot.slane %v3693_v25, 5  ;;  %v3753_v25 = vshll.u32 %v3399_v9, 16 }
 0x327   : > { %6384 = vmatprep.subr.bf16.mxu0 %v12509_v34  ;;  %6770 = vmatprep.subr.bf16.mxu1 %v12511_v10  ;;  %v12516_v34 = vcombine.low %v4164_v27, %v4168_v6  ;;  %v3733_v10 = vshll.u32 %v3397_v28, 16  ;;  %v3676_v6 = vsel %vm15541_vm4, %v3671_v50, %v15951_v5  ;;  %v3747_v27 = vshrl.u32 %v3397_v28, 16 }
 0x328   : > { %19192 = vst [vmem:[#allocation29_spill] sm:$0xff] %v15970_v29  ;;  %v3710_v11 = vor.u32 %v3709_v20, %v3695_v56  ;;  %v3696_v49 = vsel %vm15541_vm4, %v3691_v18, %v3695_v56  ;;  %v12526_v20 = vcombine.low %v4173_v48, %v4177_v31  ;;  %v12533_v5 = vcombine.high %v4180_v46, %v4184_v62  ;;  %v4192_v18 = vld [vmem:[#allocation2 + $0xeb0] sm:$0xff]  ;;  %v3403_v48 = vld [vmem:[%s14970_s11 + $0x128] sm:$0xff] }
 0x329   : > { %v3735_v50 = vrot.slane %v3733_v10, 5  ;;  %v12535_v28 = vcombine.high %v4181_v8, %v4185_v17  ;;  %v15988_v56 = vcombine.high %v3676_v6, %v3696_v49  ;;  %v12532_v31 = vcombine.low %v4180_v46, %v4184_v62  ;;  %v4200_v62 = vld [vmem:[#allocation2 + $0xef0] sm:$0xff] }
 0x32a   : > { %6385 = vmatpush1.bf16.msra.mxu0 %v12508_v39  ;;  %6771 = vmatpush1.bf16.msra.mxu1 %v12510_v40  ;;  %v3767_v39 = vshrl.u32 %v3399_v9, 16  ;;  %v12524_v40 = vcombine.low %v4172_v23, %v4176_v37  ;;  %v3711_v3 = vrot.slane %v3710_v11, 4  ;;  %v4189_v23 = vld [vmem:[#allocation2 + $0xe98] sm:$0xff]  ;;  %v15991_v37 = vrot.slane %v3753_v25, 5 }
 0x32b   : > { %6386 = vmatprep.subr.bf16.mxu0 %v12517_v24  ;;  %6772 = vmatprep.subr.bf16.mxu1 %v12519_v1  ;;  %v15986_v24 = vcombine.low %v3636_v32, %v3656_v0  ;;  %v3731_v1 = vrot.slane %v3730_v38, 4  ;;  %19194 = vst [vmem:[#allocation31_spill] sm:$0xff] %v15988_v56  ;;  %v4193_v32 = vld [vmem:[#allocation2 + $0xeb8] sm:$0xff]  ;;  %v3795_v25 = vshll.u32 %v3403_v48, 16 }
 0x32c   : > { %5858 = vmatmul.mubr.bf16.gmra.mrb[12].mxu0 %v15966_v47  ;;  %6244 = vmatmul.mubr.bf16.gmra.mrb[12].mxu1 %v15966_v47  ;;  %v3401_v0 = vld [vmem:[%s14970_s11 + $0x118] sm:$0x11]  ;;  %v15999_v38 = vsel %vm15541_vm4, %v3711_v3, %v15968_v13 }
 0x32d   : > { %12669 = vmatprep.mubr.msk.bf16.mxu0 %vm1748_vm1, %v15970_v29  ;;  %12686 = vmatprep.mubr.msk.bf16.mxu1 %vm1748_vm1, %v15970_v29  ;;  %19193 = vst [vmem:[#allocation30_spill] sm:$0xff] %v15986_v24  ;;  %v4188_v29 = vld [vmem:[#allocation2 + $0xe90] sm:$0xff]  ;;  %v3405_v9 = vld [vmem:[%s14970_s11 + $0x138] sm:$0xff]  ;;  %v16003_v10 = vsel %vm15541_vm4, %v3731_v1, %v3735_v50  ;;  %v12542_v1 = vcombine.low %v4189_v23, %v4193_v32 }
 0x32e   : > { %6387 = vmatpush1.bf16.msra.mxu0 %v12516_v34  ;;  %6773 = vmatpush1.bf16.msra.mxu1 %v12518_v26  ;;  %v3749_v34 = vrot.slane %v3747_v27, 4  ;;  %v3769_v26 = vrot.slane %v3767_v39, 4  ;;  %v12541_v11 = vcombine.high %v4188_v29, %v4192_v18  ;;  %v4196_v27 = vld [vmem:[#allocation2 + $0xed0] sm:$0xff]  ;;  %v4197_v39 = vld [vmem:[#allocation2 + $0xed8] sm:$0xff]  ;;  %v12540_v3 = vcombine.low %v4188_v29, %v4192_v18 }
 0x32f   : > { %6388 = vmatprep.subr.bf16.mxu0 %v12525_v33  ;;  %6774 = vmatprep.subr.bf16.mxu1 %v12527_v59  ;;  %v12534_v33 = vcombine.low %v4181_v8, %v4185_v17  ;;  %v12543_v59 = vcombine.high %v4189_v23, %v4193_v32  ;;  %v3773_v8 = vshll.u32 %v3401_v0, 16  ;;  %v3792_v17 = vshrl.u32 %v3403_v48, 16  ;;  %v4201_v13 = vld [vmem:[#allocation2 + $0xef8] sm:$0xff]  ;;  %v4204_v48 = vld [vmem:[#allocation2 + $0xf10] sm:$0xff] }
 0x330   : > { %v3750_v46 = vor.u32 %v3749_v34, %v3735_v50  ;;  %v16011_v50 = vcombine.low %v3676_v6, %v3696_v49  ;;  %v16015_v34 = vcombine.high %v15999_v38, %v16003_v10  ;;  %v12551_v0 = vcombine.high %v4197_v39, %v4201_v13  ;;  %v4205_v18 = vld [vmem:[#allocation2 + $0xf18] sm:$0xff] }
 0x331   : > { %v3797_v29 = vrot.slane %v3795_v25, 5  ;;  %v3409_v49 = vld [vmem:[%s14970_s11 + $0x158] sm:$0xff]  ;;  %v4216_v25 = vld [vmem:[#allocation2 + $0xf70] sm:$0xff] }
 0x332   : > { %6389 = vmatpush1.bf16.msra.mxu0 %v12524_v40  ;;  %6775 = vmatpush1.bf16.msra.mxu1 %v12526_v20  ;;  %v3770_v40 = vor.u32 %v3769_v26, %v15991_v37  ;;  %v3801_v20 = vshll.u32 %v3405_v9, 16  ;;  %19195 = vst [vmem:[#allocation32_spill] sm:$0xff] %v16015_v34  ;;  %v4208_v26 = vld [vmem:[#allocation2 + $0xf30] sm:$0xff] }
 0x333   : > { %6390 = vmatprep.subr.bf16.mxu0 %v12533_v5  ;;  %6776 = vmatprep.subr.bf16.mxu1 %v12535_v28  ;;  %v3815_v5 = vshrl.u32 %v3405_v9, 16  ;;  %v12549_v28 = vcombine.high %v4196_v27, %v4200_v62  ;;  %v3775_v9 = vrot.slane %v3773_v8, 5  ;;  %v12557_v47 = vcombine.high %v4204_v48, %v4208_v26 }
 0x334   : > { %5868 = vmatmul.mubr.bf16.gmra.mrb[16].mxu0 %v15986_v24  ;;  %6254 = vmatmul.mubr.bf16.gmra.mrb[16].mxu1 %v15986_v24  ;;  %v3771_v23 = vrot.slane %v3770_v40, 4  ;;  %v16017_v32 = vrot.slane %v3801_v20, 5  ;;  %v3407_v24 = vld [vmem:[%s14970_s11 + $0x148] sm:$0xff]  ;;  %v3841_v40 = vshll.u32 %v3409_v49, 16  ;;  %v4217_v20 = vld [vmem:[#allocation2 + $0xf78] sm:$0xff] }
 0x335   : > { %12670 = vmatprep.mubr.msk.bf16.mxu0 %vm1748_vm1, %v15988_v56  ;;  %12687 = vmatprep.mubr.msk.bf16.mxu1 %vm1748_vm1, %v15988_v56  ;;  %v3751_v56 = vrot.slane %v3750_v46, 4  ;;  %v3817_v6 = vrot.slane %v3815_v5, 4  ;;  %v3835_v46 = vshrl.u32 %v3407_v24, 16 }
 0x336   : > { %6391 = vmatpush1.bf16.msra.mxu0 %v12532_v31  ;;  %6777 = vmatpush1.bf16.msra.mxu1 %v12534_v33  ;;  %v3794_v31 = vrot.slane %v3792_v17, 4  ;;  %v4209_v33 = vld [vmem:[#allocation2 + $0xf38] sm:$0xff]  ;;  %v4212_v17 = vld [vmem:[#allocation2 + $0xf50] sm:$0xff]  ;;  %v3776_v5 = vsel %vm15541_vm4, %v3771_v23, %v3775_v9 }
 0x337   : > { %6392 = vmatprep.subr.bf16.mxu0 %v12541_v11  ;;  %6778 = vmatprep.subr.bf16.mxu1 %v12543_v59  ;;  %v12548_v11 = vcombine.low %v4196_v27, %v4200_v62  ;;  %v12550_v59 = vcombine.low %v4197_v39, %v4201_v13  ;;  %v12559_v8 = vcombine.high %v4205_v18, %v4209_v33  ;;  %v3855_v39 = vshrl.u32 %v3409_v49, 16  ;;  %v4213_v13 = vld [vmem:[#allocation2 + $0xf58] sm:$0xff]  ;;  %v4220_v49 = vld [vmem:[#allocation2 + $0xf90] sm:$0xff] }
 0x338   : > { %v3756_v27 = vsel %vm15541_vm4, %v3751_v56, %v15991_v37  ;;  %v3798_v62 = vor.u32 %v3797_v29, %v3794_v31  ;;  %v12565_v56 = vcombine.high %v4212_v17, %v4216_v25  ;;  %v16035_v37 = vcombine.low %v15999_v38, %v16003_v10  ;;  %v4224_v9 = vld [vmem:[#allocation2 + $0xfb0] sm:$0xff]  ;;  %v3413_v38 = vld [vmem:[%s14970_s11 + $0x178] sm:$0xff] }
 0x339   : > { %v3837_v31 = vrot.slane %v3835_v46, 4  ;;  %v12567_v29 = vcombine.high %v4213_v13, %v4217_v20  ;;  %v16037_v23 = vcombine.high %v3756_v27, %v3776_v5  ;;  %v12566_v10 = vcombine.low %v4213_v13, %v4217_v20  ;;  %v4229_v20 = vld [vmem:[#allocation2 + $0xfd8] sm:$0xff] }
 0x33a   : > { %6393 = vmatpush1.bf16.msra.mxu0 %v12540_v3  ;;  %6779 = vmatpush1.bf16.msra.mxu1 %v12542_v1  ;;  %v3818_v3 = vor.u32 %v3817_v6, %v16017_v32  ;;  %v3821_v1 = vshll.u32 %v3407_v24, 16  ;;  %19196 = vst [vmem:[#allocation33_spill] sm:$0xff] %v16035_v37  ;;  %v3799_v24 = vrot.slane %v3798_v62, 4  ;;  %v3843_v6 = vrot.slane %v3841_v40, 5  ;;  %v4228_v62 = vld [vmem:[#allocation2 + $0xfd0] sm:$0xff] }
 0x33b   : > { %6394 = vmatprep.subr.bf16.mxu0 %v12549_v28  ;;  %6780 = vmatprep.subr.bf16.mxu1 %v12551_v0  ;;  %v12556_v28 = vcombine.low %v4204_v48, %v4208_v26  ;;  %v12558_v0 = vcombine.low %v4205_v18, %v4209_v33  ;;  %19197 = vst [vmem:[#allocation34_spill] sm:$0xff] %v16037_v23  ;;  %v3857_v48 = vrot.slane %v3855_v39, 4  ;;  %v4221_v26 = vld [vmem:[#allocation2 + $0xf98] sm:$0xff]  ;;  %v4232_v40 = vld [vmem:[#allocation2 + $0xff0] sm:$0xff] }
 0x33c   : > { %5878 = vmatmul.mubr.bf16.gmra.mrb[20].mxu0 %v16011_v50  ;;  %6264 = vmatmul.mubr.bf16.gmra.mrb[20].mxu1 %v16011_v50  ;;  %v3819_v18 = vrot.slane %v3818_v3, 4  ;;  %v3823_v33 = vrot.slane %v3821_v1, 5  ;;  %v12573_v46 = vcombine.high %v4220_v49, %v4224_v9  ;;  %v4233_v3 = vld [vmem:[#allocation2 + $0xff8] sm:$0xff] }
 0x33d   : > { %12671 = vmatprep.mubr.msk.bf16.mxu0 %vm1748_vm1, %v16015_v34  ;;  %12688 = vmatprep.mubr.msk.bf16.mxu1 %vm1748_vm1, %v16015_v34 }
 0x33e   : > { %6395 = vmatpush1.bf16.msra.mxu0 %v12548_v11  ;;  %6781 = vmatpush1.bf16.msra.mxu1 %v12550_v59  ;;  %v3411_v11 = vld [vmem:[%s14970_s11 + $0x168] sm:$0xff]  ;;  %v12564_v59 = vcombine.low %v4212_v17, %v4216_v25  ;;  %v3804_v17 = vsel %vm15541_vm4, %v3799_v24, %v16017_v32  ;;  %v3858_v25 = vor.u32 %v3857_v48, %v3843_v6 }
 0x33f   : > { %6396 = vmatprep.subr.bf16.mxu0 %v12557_v47  ;;  %6782 = vmatprep.subr.bf16.mxu1 %v12559_v8  ;;  %v4225_v47 = vld [vmem:[#allocation2 + $0xfb8] sm:$0xff]  ;;  %v3838_v8 = vor.u32 %v3837_v31, %v3823_v33  ;;  %v3861_v39 = vshll.u32 %v3411_v11, 16  ;;  %v3875_v13 = vshrl.u32 %v3411_v11, 16  ;;  %v3824_v1 = vsel %vm15541_vm4, %v3819_v18, %v3823_v33  ;;  %v4236_v11 = vld [vmem:[#allocation2 + $0x1010] sm:$0xff] }
 0x340   : > { %v12575_v34 = vcombine.high %v4221_v26, %v4225_v47  ;;  %v12574_v31 = vcombine.low %v4221_v26, %v4225_v47  ;;  %v12581_v32 = vcombine.high %v4228_v62, %v4232_v40  ;;  %v12583_v48 = vcombine.high %v4229_v20, %v4233_v3 }
 0x341   : > { %v3839_v24 = vrot.slane %v3838_v8, 4  ;;  %v3859_v18 = vrot.slane %v3858_v25, 4  ;;  %v3863_v33 = vrot.slane %v3861_v39, 5  ;;  %v12580_v26 = vcombine.low %v4228_v62, %v4232_v40 }
 0x342   : > { %6397 = vmatpush1.bf16.msra.mxu0 %v12556_v28  ;;  %6783 = vmatpush1.bf16.msra.mxu1 %v12558_v0  ;;  %v3881_v28 = vshll.u32 %v3413_v38, 16  ;;  %v3895_v0 = vshrl.u32 %v3413_v38, 16  ;;  %v3877_v38 = vrot.slane %v3875_v13, 4 }
 0x343   : > { %6398 = vmatprep.subr.bf16.mxu0 %v12565_v56  ;;  %6784 = vmatprep.subr.bf16.mxu1 %v12567_v29  ;;  %v12572_v56 = vcombine.low %v4220_v49, %v4224_v9  ;;  %v16052_v29 = vcombine.low %v3756_v27, %v3776_v5  ;;  %v4241_v49 = vld [vmem:[#allocation2 + $0x1038] sm:$0xff]  ;;  %v3415_v9 = vld [vmem:[%s14970_s11 + $0x188] sm:$0xff]  ;;  %v12582_v5 = vcombine.low %v4229_v20, %v4233_v3 }
 0x344   : > { %5888 = vmatmul.mubr.bf16.gmra.mrb[24].mxu0 %v16035_v37  ;;  %6274 = vmatmul.mubr.bf16.gmra.mrb[24].mxu1 %v16035_v37  ;;  %v16054_v37 = vcombine.high %v3804_v17, %v3824_v1  ;;  %v3417_v27 = vld [vmem:[%s14970_s11 + $0x198] sm:$0xff]  ;;  %v3844_v47 = vsel %vm15541_vm4, %v3839_v24, %v3843_v6  ;;  %v3864_v62 = vsel %vm15541_vm4, %v3859_v18, %v3863_v33  ;;  %v3901_v25 = vshll.u32 %v3415_v9, 16 }
 0x345   : > { %12672 = vmatprep.mubr.msk.bf16.mxu0 %vm1748_vm1, %v16037_v23  ;;  %12689 = vmatprep.mubr.msk.bf16.mxu1 %vm1748_vm1, %v16037_v23  ;;  %v4240_v23 = vld [vmem:[#allocation2 + $0x1030] sm:$0xff]  ;;  %v3878_v40 = vor.u32 %v3877_v38, %v3863_v33  ;;  %v3915_v39 = vshrl.u32 %v3415_v9, 16  ;;  %v3921_v6 = vshll.u32 %v3417_v27, 16  ;;  %v3935_v20 = vshrl.u32 %v3417_v27, 16  ;;  %v3421_v18 = vld [vmem:[%s14970_s11 + $0x1b8] sm:$0xff]  ;;  %v3423_v33 = vld [vmem:[%s14970_s11 + $0x1c8] sm:$0xff] }
 0x346   : > { %6399 = vmatpush1.bf16.msra.mxu0 %v12564_v59  ;;  %6785 = vmatpush1.bf16.msra.mxu1 %v12566_v10  ;;  %v4237_v59 = vld [vmem:[#allocation2 + $0x1018] sm:$0xff]  ;;  %v3883_v10 = vrot.slane %v3881_v28, 5  ;;  %v12588_v3 = vcombine.low %v4236_v11, %v4240_v23 }
 0x347   : > { %6400 = vmatprep.subr.bf16.mxu0 %v12573_v46  ;;  %6786 = vmatprep.subr.bf16.mxu1 %v12575_v34  ;;  %v3897_v46 = vrot.slane %v3895_v0, 4  ;;  %v12589_v34 = vcombine.high %v4236_v11, %v4240_v23  ;;  %v12591_v8 = vcombine.high %v4237_v59, %v4241_v49  ;;  %v12590_v28 = vcombine.low %v4237_v59, %v4241_v49  ;;  %v3419_v59 = vld [vmem:[%s14970_s11 + $0x1a8] sm:$0x11] }
 0x348   : > { %v12597_v0 = vcombine.high %v15892_v30, %v15894_v52  ;;  %v3879_v24 = vrot.slane %v3878_v40, 4  ;;  %v3917_v11 = vrot.slane %v3915_v39, 4  ;;  %v3923_v38 = vrot.slane %v3921_v6, 5 }
 0x349   : > { %v3898_v13 = vor.u32 %v3897_v46, %v3883_v10  ;;  %v3937_v9 = vrot.slane %v3935_v20, 4  ;;  %v3969_v49 = vshll.u32 %v3423_v33, 16  ;;  %v3983_v46 = vshrl.u32 %v3423_v33, 16 }
 0x34a   : > { %6401 = vmatpush1.bf16.msra.mxu0 %v12572_v56  ;;  %6787 = vmatpush1.bf16.msra.mxu1 %v12574_v31  ;;  %v16070_v56 = vcombine.low %v3804_v17, %v3824_v1  ;;  %v12599_v31 = vcombine.high %v15902_v21, %v15904_v42  ;;  %v3960_v17 = vshrl.u32 %v3421_v18, 16  ;;  %v3963_v1 = vshll.u32 %v3421_v18, 16 }
 0x34b   : > { %6402 = vmatprep.subr.bf16.mxu0 %v12581_v32  ;;  %6788 = vmatprep.subr.bf16.mxu1 %v12583_v48  ;;  %v16074_v32 = vcombine.high %v3844_v47, %v3864_v62  ;;  %v3903_v48 = vrot.slane %v3901_v25, 5  ;;  %v3899_v23 = vrot.slane %v3898_v13, 4  ;;  %v16089_v40 = vcombine.low %v3844_v47, %v3864_v62 }
 0x34c   : > { %5898 = vmatmul.mubr.bf16.gmra.mrb[28].mxu0 %v16052_v29  ;;  %6284 = vmatmul.mubr.bf16.gmra.mrb[28].mxu1 %v16052_v29  ;;  %v3962_v25 = vrot.slane %v3960_v17, 4  ;;  %v3965_v39 = vrot.slane %v3963_v1, 5  ;;  %v3971_v13 = vrot.slane %v3969_v49, 5  ;;  %v3985_v6 = vrot.slane %v3983_v46, 4 }
 0x34d   : > { %12673 = vmatprep.mubr.msk.bf16.mxu0 %vm1748_vm1, %v16054_v37  ;;  %12690 = vmatprep.mubr.msk.bf16.mxu1 %vm1748_vm1, %v16054_v37  ;;  %v3904_v27 = vsel %vm15541_vm4, %v3899_v23, %v3903_v48 }
 0x34e   : > { %6403 = vmatpush1.bf16.msra.mxu0 %v12580_v26  ;;  %6789 = vmatpush1.bf16.msra.mxu1 %v12582_v5  ;;  %v3884_v26 = vsel %vm15541_vm4, %v3879_v24, %v3883_v10  ;;  %v3918_v5 = vor.u32 %v3917_v11, %v3903_v48  ;;  %v3966_v24 = vor.u32 %v3965_v39, %v3962_v25  ;;  %v3431_v25 = vld [vmem:[%s14970_s11 + $0x208] sm:$0xff] }
 0x34f   : > { %6404 = vmatprep.subr.bf16.mxu0 %v12589_v34  ;;  %6790 = vmatprep.subr.bf16.mxu1 %v12591_v8  ;;  %v3938_v34 = vor.u32 %v3937_v9, %v3923_v38  ;;  %v3941_v8 = vshll.u32 %v3419_v59, 16  ;;  %v16091_v20 = vcombine.high %v3884_v26, %v3904_v27  ;;  %v3986_v18 = vor.u32 %v3985_v6, %v3971_v13 }
 0x350   : > { %v3919_v10 = vrot.slane %v3918_v5, 4  ;;  %v16105_v9 = vcombine.low %v3884_v26, %v3904_v27  ;;  %v3967_v59 = vrot.slane %v3966_v24, 4 }
 0x351   : > { %v3987_v17 = vrot.slane %v3986_v18, 4 }
 0x352   : > { %6405 = vmatpush1.bf16.msra.mxu0 %v12588_v3  ;;  %6791 = vmatpush1.bf16.msra.mxu1 %v12590_v28  ;;  %v3425_v3 = vld [vmem:[%s14970_s11 + $0x1d8] sm:$0xff]  ;;  %v3939_v28 = vrot.slane %v3938_v34, 4  ;;  %v3924_v23 = vsel %vm15541_vm4, %v3919_v10, %v3923_v38  ;;  %v3972_v38 = vsel %vm15541_vm4, %v3967_v59, %v3971_v13  ;;  %v4049_v10 = vshll.u32 %v3431_v25, 16  ;;  %v3435_v59 = vld [vmem:[%s14970_s11 + $0x228] sm:$0xff] }
 0x353   : > { %6567 = vmatprep.subr.bf16.mxu0 %v12597_v0  ;;  %6953 = vmatprep.subr.bf16.mxu1 %v12599_v31  ;;  %v3943_v0 = vrot.slane %v3941_v8, 5  ;;  %v3427_v31 = vld [vmem:[%s14970_s11 + $0x1e8] sm:$0xff]  ;;  %v3989_v48 = vshll.u32 %v3425_v3, 16  ;;  %v4003_v47 = vshrl.u32 %v3425_v3, 16  ;;  %v3429_v8 = vld [vmem:[%s14970_s11 + $0x1f8] sm:$0xff] }
 0x354   : > { %5908 = vmatmul.mubr.bf16.gmra.mrb[32].mxu0 %v16070_v56  ;;  %6294 = vmatmul.mubr.bf16.gmra.mrb[32].mxu1 %v16070_v56  ;;  %v4009_v62 = vshll.u32 %v3427_v31, 16  ;;  %v4023_v33 = vshrl.u32 %v3427_v31, 16  ;;  %v4029_v6 = vshll.u32 %v3429_v8, 16  ;;  %v4043_v3 = vshrl.u32 %v3429_v8, 16 }
 0x355   : > { %12674 = vmatprep.mubr.msk.bf16.mxu0 %vm1748_vm1, %v16074_v32  ;;  %12691 = vmatprep.mubr.msk.bf16.mxu1 %vm1748_vm1, %v16074_v32  ;;  %v3944_v11 = vsel %vm15541_vm4, %v3939_v28, %v3943_v0  ;;  %v3991_v1 = vrot.slane %v3989_v48, 5  ;;  %v4005_v46 = vrot.slane %v4003_v47, 4  ;;  %v4063_v28 = vshrl.u32 %v3431_v25, 16  ;;  %v3433_v47 = vld [vmem:[%s14970_s11 + $0x218] sm:$0xff] }
 0x356   : > { %v16107_v49 = vcombine.high %v3924_v23, %v3944_v11  ;;  %v4011_v5 = vrot.slane %v4009_v62, 5  ;;  %v4025_v34 = vrot.slane %v4023_v33, 4  ;;  %v16121_v13 = vcombine.low %v3924_v23, %v3944_v11 }
 0x357   : > { %v3992_v39 = vsel %vm15541_vm4, %v3987_v17, %v3991_v1  ;;  %v4006_v26 = vor.u32 %v4005_v46, %v3991_v1  ;;  %v4031_v18 = vrot.slane %v4029_v6, 5  ;;  %v4045_v48 = vrot.slane %v4043_v3, 4 }
 0x358   : > { %v4026_v27 = vor.u32 %v4025_v34, %v4011_v5  ;;  %v16123_v0 = vcombine.high %v3972_v38, %v3992_v39  ;;  %v4051_v62 = vrot.slane %v4049_v10, 5  ;;  %v4065_v33 = vrot.slane %v4063_v28, 4 }
 0x359   : > { %v4007_v31 = vrot.slane %v4006_v26, 4  ;;  %v4046_v17 = vor.u32 %v4045_v48, %v4031_v18  ;;  %v4069_v1 = vshll.u32 %v3433_v47, 16  ;;  %v4083_v34 = vshrl.u32 %v3433_v47, 16 }
 0x35a   : > { %v4027_v24 = vrot.slane %v4026_v27, 4  ;;  %v4066_v46 = vor.u32 %v4065_v33, %v4051_v62  ;;  %v4089_v8 = vshll.u32 %v3435_v59, 16  ;;  %v4103_v25 = vshrl.u32 %v3435_v59, 16 }
 0x35b   : > { %v4012_v23 = vsel %vm15541_vm4, %v4007_v31, %v4011_v5  ;;  %v16137_v26 = vcombine.low %v3972_v38, %v3992_v39  ;;  %v4047_v6 = vrot.slane %v4046_v17, 4  ;;  %v4071_v3 = vrot.slane %v4069_v1, 5 }
 0x35c   : > { %5918 = vmatmul.mubr.bf16.gmra.mrb[36].mxu0 %v16089_v40  ;;  %6304 = vmatmul.mubr.bf16.gmra.mrb[36].mxu1 %v16089_v40  ;;  %v4032_v11 = vsel %vm15541_vm4, %v4027_v24, %v4031_v18  ;;  %v4067_v5 = vrot.slane %v4066_v46, 4  ;;  %v4085_v10 = vrot.slane %v4083_v34, 4  ;;  %v4091_v28 = vrot.slane %v4089_v8, 5  ;;  %v3437_v24 = vld [vmem:[%s14970_s11 + $0x238] sm:$0x11] }
 0x35d   : > { %12675 = vmatprep.mubr.msk.bf16.mxu0 %vm1748_vm1, %v16091_v20  ;;  %12692 = vmatprep.mubr.msk.bf16.mxu1 %vm1748_vm1, %v16091_v20  ;;  %v16139_v27 = vcombine.high %v4012_v23, %v4032_v11  ;;  %v4105_v31 = vrot.slane %v4103_v25, 4  ;;  %v4052_v38 = vsel %vm15541_vm4, %v4047_v6, %v4051_v62  ;;  %v4109_v47 = vshll.u32 %v3437_v24, 16  ;;  %v4252_v25 = vld [vmem:[#allocation2 + $0x1090] sm:$0xff] }
 0x35e   : > { %v4072_v39 = vsel %vm15541_vm4, %v4067_v5, %v4071_v3  ;;  %v4086_v18 = vor.u32 %v4085_v10, %v4071_v3  ;;  %v16152_v33 = vcombine.low %v4012_v23, %v4032_v11  ;;  %v4256_v6 = vld [vmem:[#allocation2 + $0x10b0] sm:$0xff]  ;;  %v4253_v3 = vld [vmem:[#allocation2 + $0x1098] sm:$0xff] }
 0x35f   : > { %v4106_v48 = vor.u32 %v4105_v31, %v4091_v28  ;;  %v16154_v59 = vcombine.high %v4052_v38, %v4072_v39  ;;  %v4111_v46 = vrot.slane %v4109_v47, 5  ;;  %v16166_v11 = vcombine.low %v4052_v38, %v4072_v39  ;;  %v4257_v5 = vld [vmem:[#allocation2 + $0x10b8] sm:$0xff]  ;;  %v4264_v31 = vld [vmem:[#allocation2 + $0x10f0] sm:$0xff]  ;;  %v16189_v47 = vld [vmem:[#allocation2 + $0x640] sm:$0xff] }
 0x360   : > { %v4087_v17 = vrot.slane %v4086_v18, 4  ;;  %v12605_v10 = vcombine.high %v4252_v25, %v4256_v6  ;;  %v12607_v24 = vcombine.high %v4253_v3, %v4257_v5  ;;  %v4261_v38 = vld [vmem:[#allocation2 + $0x10d8] sm:$0xff]  ;;  %v19200_v18 = vcombine.low %v15892_v30, %v15894_v52  ;;  %v16201_v30 = vld [vmem:[#allocation2 + $0x648] sm:$0xff] }
 0x361   : > { %v4107_v1 = vrot.slane %v4106_v48, 4  ;;  %v4265_v39 = vld [vmem:[#allocation2 + $0x10f8] sm:$0xff]  ;;  %v12604_v48 = vcombine.low %v4252_v25, %v4256_v6 }
 0x362   : > { %v4092_v62 = vsel %vm15541_vm4, %v4087_v17, %v4091_v28  ;;  %v4260_v28 = vld [vmem:[#allocation2 + $0x10d0] sm:$0xff]  ;;  %v16191_v17 = vld [vmem:[#allocation2 + $0x628] sm:$0xff]  ;;  %v12615_v52 = vcombine.high %v4261_v38, %v4265_v39  ;;  %v4269_v25 = vld [vmem:[#allocation2 + $0x1118] sm:$0xff] }
 0x363   : > { %v4112_v23 = vsel %vm15541_vm4, %v4107_v1, %v4111_v46  ;;  %v19201_v1 = vcombine.low %v15902_v21, %v15904_v42  ;;  %v12606_v46 = vcombine.low %v4253_v3, %v4257_v5  ;;  %v4268_v21 = vld [vmem:[#allocation2 + $0x1110] sm:$0xff]  ;;  %v4273_v6 = vld [vmem:[#allocation2 + $0x1138] sm:$0xff]  ;;  %v12612_v3 = vcombine.low %v4260_v28, %v4264_v31 }
 0x364   : > { %5928 = vmatmul.mubr.bf16.gmra.mrb[40].mxu0 %v16105_v9  ;;  %6314 = vmatmul.mubr.bf16.gmra.mrb[40].mxu1 %v16105_v9  ;;  %v16168_v34 = vcombine.high %v4092_v62, %v4112_v23  ;;  %v16176_v8 = vcombine.low %v4092_v62, %v4112_v23  ;;  %v12613_v62 = vcombine.high %v4260_v28, %v4264_v31  ;;  %v4272_v42 = vld [vmem:[#allocation2 + $0x1130] sm:$0xff] }
 0x365   : > { %12676 = vmatprep.mubr.msk.bf16.mxu0 %vm1748_vm1, %v16107_v49  ;;  %12693 = vmatprep.mubr.msk.bf16.mxu1 %vm1748_vm1, %v16107_v49  ;;  %v16206_v23 = vcombine.low %v16191_v17, %v16201_v30  ;;  %v12614_v5 = vcombine.low %v4261_v38, %v4265_v39  ;;  %v12622_v28 = vcombine.low %v4269_v25, %v4273_v6  ;;  %v4284_v39 = vld [vmem:[#allocation2 + $0x1190] sm:$0xff] }
 0x366   : > { %19198 = vst [vmem:[#allocation35_spill] sm:$0xff] %v16168_v34  ;;  %19199 = vst [vmem:[#allocation36_spill] sm:$0xff] %v16176_v8 }
 0x36c   : > { %5938 = vmatmul.mubr.bf16.gmra.mrb[44].mxu0 %v16121_v13  ;;  %6324 = vmatmul.mubr.bf16.gmra.mrb[44].mxu1 %v16121_v13 }
 0x36d   : > { %12677 = vmatprep.mubr.msk.bf16.mxu0 %vm1748_vm1, %v16123_v0  ;;  %12694 = vmatprep.mubr.msk.bf16.mxu1 %vm1748_vm1, %v16123_v0 }
 0x374   : > { %5948 = vmatmul.mubr.bf16.gmra.mrb[48].mxu0 %v16137_v26  ;;  %6334 = vmatmul.mubr.bf16.gmra.mrb[48].mxu1 %v16137_v26 }
 0x375   : > { %12678 = vmatprep.mubr.msk.bf16.mxu0 %vm1748_vm1, %v16139_v27  ;;  %12695 = vmatprep.mubr.msk.bf16.mxu1 %vm1748_vm1, %v16139_v27 }
 0x37c   : > { %5958 = vmatmul.mubr.bf16.gmra.mrb[52].mxu0 %v16152_v33  ;;  %6344 = vmatmul.mubr.bf16.gmra.mrb[52].mxu1 %v16152_v33 }
 0x37d   : > { %12679 = vmatprep.mubr.msk.bf16.mxu0 %vm1748_vm1, %v16154_v59  ;;  %12696 = vmatprep.mubr.msk.bf16.mxu1 %vm1748_vm1, %v16154_v59 }
 0x384   : > { %5968 = vmatmul.mubr.bf16.gmra.mrb[56].mxu0 %v16166_v11  ;;  %6354 = vmatmul.mubr.bf16.gmra.mrb[56].mxu1 %v16166_v11 }
 0x385   : > { %12680 = vmatprep.mubr.msk.bf16.mxu0 %vm1748_vm1, %v16168_v34  ;;  %12697 = vmatprep.mubr.msk.bf16.mxu1 %vm1748_vm1, %v16168_v34 }
 0x38c   : > { %5978 = vmatmul.mubr.bf16.gmra.mrb[60].mxu0 %v16176_v8  ;;  %6364 = vmatmul.mubr.bf16.gmra.mrb[60].mxu1 %v16176_v8 }
 0x38d   : > { %6406 = vmatprep.mubr.bf16.mxu0 %v15556_v43  ;;  %6792 = vmatprep.mubr.bf16.mxu1 %v15556_v43  ;;  %v16187_v43 = vld [vmem:[#allocation2 + $0x620] sm:$0xff] }
 0x394   : > { %6407 = vmatmul.mubr.bf16.vlgmr.msra.gmra.mrb[64].mxu0 %v15568_v61  ;;  %6793 = vmatmul.mubr.bf16.vlgmr.msra.gmra.mrb[64].mxu1 %v15568_v61  ;;  %v16199_v61 = vcombine.low %v16187_v43, %v16189_v47 }
 0x395   : > { %6568 = vmatpush1.bf16.msra.mxu0 %v19200_v18  ;;  %6954 = vmatpush1.bf16.msra.mxu1 %v19201_v1  ;;  %v12621_v18 = vcombine.high %v4268_v21, %v4272_v42  ;;  %v4280_v1 = vld [vmem:[#allocation2 + $0x1170] sm:$0xff] }
 0x396   : > { %6416 = vmatprep.mubr.bf16.mxu0 %v15573_v12  ;;  %6802 = vmatprep.mubr.bf16.mxu1 %v15573_v12  ;;  %v12623_v12 = vcombine.high %v4269_v25, %v4273_v6  ;;  %v4293_v25 = vld [vmem:[#allocation2 + $0x11d8] sm:$0xff] }
 0x397   : > { %6569 = vmatprep.subr.bf16.mxu0 %v12605_v10  ;;  %6955 = vmatprep.subr.bf16.mxu1 %v12607_v24  ;;  %v4276_v10 = vld [vmem:[#allocation2 + $0x1150] sm:$0xff]  ;;  %v4277_v24 = vld [vmem:[#allocation2 + $0x1158] sm:$0xff] }
 0x398   : > { %v12629_v31 = vcombine.high %v4276_v10, %v4280_v1  ;;  %v12631_v38 = vcombine.high %v4277_v24, %v4281_v2  ;;  %v12630_v8 = vcombine.low %v4277_v24, %v4281_v2  ;;  %v4297_v6 = vld [vmem:[#allocation2 + $0x11f8] sm:$0xff] }
 0x399   : > { %6570 = vmatpush1.bf16.msra.mxu0 %v12604_v48  ;;  %6956 = vmatpush1.bf16.msra.mxu1 %v12606_v46  ;;  %v12620_v48 = vcombine.low %v4268_v21, %v4272_v42  ;;  %v4288_v46 = vld [vmem:[#allocation2 + $0x11b0] sm:$0xff]  ;;  %v4305_v24 = vld [vmem:[#allocation2 + $0x1238] sm:$0xff] }
 0x39a   : > { %6571 = vmatprep.subr.bf16.mxu0 %v12613_v62  ;;  %6957 = vmatprep.subr.bf16.mxu1 %v12615_v52  ;;  %v4285_v62 = vld [vmem:[#allocation2 + $0x1198] sm:$0xff]  ;;  %v12637_v34 = vcombine.high %v4284_v39, %v4288_v46  ;;  %v4292_v21 = vld [vmem:[#allocation2 + $0x11d0] sm:$0xff] }
 0x39b   : > { %v4289_v52 = vld [vmem:[#allocation2 + $0x11b8] sm:$0xff]  ;;  %v4296_v42 = vld [vmem:[#allocation2 + $0x11f0] sm:$0xff] }
 0x39c   : > { %6417 = vmatmul.mubr.bf16.gmra.mrb[68].mxu0 %v15620_v51  ;;  %6803 = vmatmul.mubr.bf16.gmra.mrb[68].mxu1 %v15620_v51  ;;  %v12628_v51 = vcombine.low %v4276_v10, %v4280_v1  ;;  %v12638_v2 = vcombine.low %v4285_v62, %v4289_v52  ;;  %v4304_v10 = vld [vmem:[#allocation2 + $0x1230] sm:$0xff]  ;;  %v4301_v1 = vld [vmem:[#allocation2 + $0x1218] sm:$0xff] }
 0x39d   : > { %6426 = vmatprep.mubr.bf16.mxu0 %v15625_v44  ;;  %6812 = vmatprep.mubr.bf16.mxu1 %v15625_v44  ;;  %v12639_v44 = vcombine.high %v4285_v62, %v4289_v52 }
 0x39e   : > { %6572 = vmatpush1.bf16.msra.mxu0 %v12612_v3  ;;  %6958 = vmatpush1.bf16.msra.mxu1 %v12614_v5  ;;  %v12636_v3 = vcombine.low %v4284_v39, %v4288_v46  ;;  %v12645_v5 = vcombine.high %v4292_v21, %v4296_v42 }
 0x39f   : > { %6573 = vmatprep.subr.bf16.mxu0 %v12621_v18  ;;  %6959 = vmatprep.subr.bf16.mxu1 %v12623_v12  ;;  %v12647_v18 = vcombine.high %v4293_v25, %v4297_v6  ;;  %v4300_v12 = vld [vmem:[#allocation2 + $0x1210] sm:$0xff] }
 0x3a2   : > { %6574 = vmatpush1.bf16.msra.mxu0 %v12620_v48  ;;  %6960 = vmatpush1.bf16.msra.mxu1 %v12622_v28  ;;  %v12646_v48 = vcombine.low %v4293_v25, %v4297_v6  ;;  %v12653_v28 = vcombine.high %v4300_v12, %v4304_v10  ;;  %v19213_v25 = vld [vmem:[#allocation23_spill] sm:$0xff] }
 0x3a3   : > { %6575 = vmatprep.subr.bf16.mxu0 %v12629_v31  ;;  %6961 = vmatprep.subr.bf16.mxu1 %v12631_v38  ;;  %v12652_v31 = vcombine.low %v4300_v12, %v4304_v10  ;;  %v12654_v38 = vcombine.low %v4301_v1, %v4305_v24  ;;  %v16301_v10 = vld [vmem:[#allocation2 + $0xa28] sm:$0xff] }
 0x3a4   : > { %6427 = vmatmul.mubr.bf16.gmra.mrb[72].mxu0 %v15648_v57  ;;  %6813 = vmatmul.mubr.bf16.gmra.mrb[72].mxu1 %v15648_v57  ;;  %v12644_v57 = vcombine.low %v4292_v21, %v4296_v42  ;;  %v7572_v21 = vld [vmem:[#allocation2 + $0x6c0] sm:$0xff]  ;;  %v7569_v42 = vld [vmem:[#allocation2 + $0x6a8] sm:$0xff] }
 0x3a5   : > { %6436 = vmatprep.mubr.bf16.mxu0 %v15651_v36  ;;  %6822 = vmatprep.mubr.bf16.mxu1 %v15651_v36  ;;  %v12655_v36 = vcombine.high %v4301_v1, %v4305_v24  ;;  %v16303_v1 = vld [vmem:[#allocation2 + $0xa48] sm:$0xff] }
 0x3a6   : > { %6576 = vmatpush1.bf16.msra.mxu0 %v12628_v51  ;;  %6962 = vmatpush1.bf16.msra.mxu1 %v12630_v8  ;;  %v4308_v8 = vld [vmem:[#allocation2 + $0x1250] sm:$0x77]  ;;  %v16224_v51 = vcombine.high %v16187_v43, %v16189_v47  ;;  %v7561_v43 = vld [vmem:[#allocation2 + $0x668] sm:$0xff] }
 0x3a7   : > { %6577 = vmatprep.subr.bf16.mxu0 %v12637_v34  ;;  %6963 = vmatprep.subr.bf16.mxu1 %v12639_v44  ;;  %v4309_v34 = vld [vmem:[#allocation2 + $0x1258] sm:$0x77]  ;;  %v12661_v39 = vcombine.high %v4308_v8, %v4308_v8  ;;  %v12660_v46 = vcombine.low %v4308_v8, %v4308_v8  ;;  %v16231_v44 = vcombine.high %v16191_v17, %v16201_v30  ;;  %v7565_v47 = vld [vmem:[#allocation2 + $0x688] sm:$0xff]  ;;  %v7568_v30 = vld [vmem:[#allocation2 + $0x6a0] sm:$0xff] }
 0x3a8   : > { %v12663_v62 = vcombine.high %v4309_v34, %v4309_v34  ;;  %v12662_v52 = vcombine.low %v4309_v34, %v4309_v34  ;;  %v16287_v6 = vcombine.high %v7561_v43, %v7565_v47  ;;  %v19215_v24 = vld [vmem:[#allocation24_spill] sm:$0xff]  ;;  %v7576_v8 = vld [vmem:[#allocation2 + $0x6e0] sm:$0xff] }
 0x3a9   : > { %v7580_v34 = vld [vmem:[#allocation2 + $0x700] sm:$0xff] }
 0x3aa   : > { %6578 = vmatpush1.bf16.msra.mxu0 %v12636_v3  ;;  %6964 = vmatpush1.bf16.msra.mxu1 %v12638_v2  ;;  %v7573_v3 = vld [vmem:[#allocation2 + $0x6c8] sm:$0xff]  ;;  %v16289_v2 = vld [vmem:[#allocation2 + $0xa20] sm:$0xff] }
 0x3ab   : > { %6579 = vmatprep.subr.bf16.mxu0 %v12645_v5  ;;  %6965 = vmatprep.subr.bf16.mxu1 %v12647_v18  ;;  %v16291_v5 = vld [vmem:[#allocation2 + $0xa40] sm:$0xff] }
 0x3ac   : > { %6437 = vmatmul.mubr.bf16.gmra.mrb[76].mxu0 %v15664_v63  ;;  %6823 = vmatmul.mubr.bf16.gmra.mrb[76].mxu1 %v15664_v63  ;;  %v5591_v63 = vsel %vm1797_vm0, %v12660_v46, 0  ;;  %v16299_v12 = vcombine.low %v16289_v2, %v16291_v5  ;;  %v16327_v46 = vcombine.low %v7569_v42, %v7573_v3 }
 0x3ad   : > { %6446 = vmatprep.mubr.bf16.mxu0 %v15666_v4  ;;  %6832 = vmatprep.mubr.bf16.mxu1 %v15666_v4  ;;  %v5597_v4 = vsel %vm1797_vm0, %v12662_v52, 0  ;;  %v19217_v52 = vld [vmem:[#allocation25_spill] sm:$0xff] }
 0x3ae   : > { %6580 = vmatpush1.bf16.msra.mxu0 %v12644_v57  ;;  %6966 = vmatpush1.bf16.msra.mxu1 %v12646_v48  ;;  %v16308_v57 = vcombine.low %v7561_v43, %v7565_v47  ;;  %v16310_v48 = vcombine.high %v7568_v30, %v7572_v21 }
 0x3af   : > { %6581 = vmatprep.subr.bf16.mxu0 %v12653_v28  ;;  %6967 = vmatprep.subr.bf16.mxu1 %v12655_v36  ;;  %v16314_v28 = vcombine.low %v16301_v10, %v16303_v1  ;;  %v16319_v36 = vcombine.high %v7569_v42, %v7573_v3  ;;  %v7604_v42 = vld [vmem:[#allocation2 + $0x7c0] sm:$0xff]  ;;  %v7601_v3 = vld [vmem:[#allocation2 + $0x7a8] sm:$0xff] }
 0x3b2   : > { %6582 = vmatpush1.bf16.msra.mxu0 %v12652_v31  ;;  %6968 = vmatpush1.bf16.msra.mxu1 %v12654_v38  ;;  %v7577_v31 = vld [vmem:[#allocation2 + $0x6e8] sm:$0xff] }
 0x3b3   : > { %12698 = vmatprep.subr.msk.bf16.mxu0 %vm1797_vm0, %v12661_v39  ;;  %12715 = vmatprep.subr.msk.bf16.mxu1 %vm1797_vm0, %v12663_v62  ;;  %v7581_v38 = vld [vmem:[#allocation2 + $0x708] sm:$0xff]  ;;  %v16324_v39 = vcombine.low %v7568_v30, %v7572_v21  ;;  %v16330_v62 = vcombine.high %v7576_v8, %v7580_v34  ;;  %v7600_v21 = vld [vmem:[#allocation2 + $0x7a0] sm:$0xff] }
 0x3b4   : > { %6447 = vmatmul.mubr.bf16.gmra.mrb[80].mxu0 %v15683_v19  ;;  %6833 = vmatmul.mubr.bf16.gmra.mrb[80].mxu1 %v15683_v19  ;;  %v19202_v19 = vld [vmem:[#allocation12_spill] sm:$0xff] }
 0x3b5   : > { %6456 = vmatprep.mubr.bf16.mxu0 %v15687_v41  ;;  %6842 = vmatprep.mubr.bf16.mxu1 %v15687_v41  ;;  %v19203_v41 = vld [vmem:[#allocation13_spill] sm:$0xff]  ;;  %19214 = vst [vmem:[#allocation12_spill] sm:$0xff] %v16299_v12 }
 0x3b6   : > { %6584 = vmatpush1.bf16.msra.mxu0 %v5591_v63  ;;  %6970 = vmatpush1.bf16.msra.mxu1 %v5597_v4  ;;  %19216 = vst [vmem:[#allocation13_spill] sm:$0xff] %v16314_v28  ;;  %v16333_v63 = vcombine.high %v7577_v31, %v7581_v38  ;;  %v7584_v4 = vld [vmem:[#allocation2 + $0x720] sm:$0xff] }
 0x3b7   : > { %8928 = vmatprep.subr.bf16.mxu0 %v16224_v51  ;;  %9154 = vmatprep.subr.bf16.mxu1 %v16231_v44 }
 0x3bc   : > { %6457 = vmatmul.mubr.bf16.gmra.mrb[84].mxu0 %v15710_v22  ;;  %6843 = vmatmul.mubr.bf16.gmra.mrb[84].mxu1 %v15710_v22  ;;  %v19204_v22 = vld [vmem:[#allocation14_spill] sm:$0xff] }
 0x3bd   : > { %6466 = vmatprep.mubr.bf16.mxu0 %v15712_v60  ;;  %6852 = vmatprep.mubr.bf16.mxu1 %v15712_v60  ;;  %v19205_v60 = vld [vmem:[#allocation15_spill] sm:$0xff] }
 0x3c4   : > { %6467 = vmatmul.mubr.bf16.gmra.mrb[88].mxu0 %v15724_v45  ;;  %6853 = vmatmul.mubr.bf16.gmra.mrb[88].mxu1 %v15724_v45  ;;  %v19206_v45 = vld [vmem:[#allocation16_spill] sm:$0xff] }
 0x3c5   : > { %6476 = vmatprep.mubr.bf16.mxu0 %v15726_v35  ;;  %6862 = vmatprep.mubr.bf16.mxu1 %v15726_v35  ;;  %v19207_v35 = vld [vmem:[#allocation17_spill] sm:$0xff] }
 0x3cc   : > { %6477 = vmatmul.mubr.bf16.gmra.mrb[92].mxu0 %v15738_v15  ;;  %6863 = vmatmul.mubr.bf16.gmra.mrb[92].mxu1 %v15738_v15  ;;  %v19208_v15 = vld [vmem:[#allocation18_spill] sm:$0xff] }
 0x3cd   : > { %6486 = vmatprep.mubr.bf16.mxu0 %v15740_v55  ;;  %6872 = vmatprep.mubr.bf16.mxu1 %v15740_v55  ;;  %v19209_v55 = vld [vmem:[#allocation19_spill] sm:$0xff] }
 0x3d4   : > { %6487 = vmatmul.mubr.bf16.gmra.mrb[96].mxu0 %v15752_v16  ;;  %6873 = vmatmul.mubr.bf16.gmra.mrb[96].mxu1 %v15752_v16  ;;  %v19210_v16 = vld [vmem:[#allocation20_spill] sm:$0xff] }
 0x3d5   : > { %6496 = vmatprep.mubr.bf16.mxu0 %v15754_v58  ;;  %6882 = vmatprep.mubr.bf16.mxu1 %v15754_v58  ;;  %v19211_v58 = vld [vmem:[#allocation21_spill] sm:$0xff] }
 0x3dc   : > { %6497 = vmatmul.mubr.bf16.gmra.mrb[100].mxu0 %v15767_v53  ;;  %6883 = vmatmul.mubr.bf16.gmra.mrb[100].mxu1 %v15767_v53  ;;  %v19212_v53 = vld [vmem:[#allocation22_spill] sm:$0xff] }
 0x3dd   : > { %6506 = vmatprep.mubr.bf16.mxu0 %v15769_v54  ;;  %6892 = vmatprep.mubr.bf16.mxu1 %v15769_v54  ;;  %v7560_v54 = vld [vmem:[#allocation2 + $0x660] sm:$0xff] }
 0x3e4   : > { %6507 = vmatmul.mubr.bf16.gmra.mrb[104].mxu0 %v15781_v7  ;;  %6893 = vmatmul.mubr.bf16.gmra.mrb[104].mxu1 %v15781_v7  ;;  %v7564_v7 = vld [vmem:[#allocation2 + $0x680] sm:$0xff] }
 0x3e5   : > { %6516 = vmatprep.mubr.bf16.mxu0 %v19202_v19  ;;  %6902 = vmatprep.mubr.bf16.mxu1 %v19202_v19  ;;  %v16284_v17 = vcombine.high %v7560_v54, %v7564_v7  ;;  %v16295_v18 = vcombine.low %v7560_v54, %v7564_v7  ;;  %v7588_v19 = vld [vmem:[#allocation2 + $0x740] sm:$0xff]  ;;  %v7597_v54 = vld [vmem:[#allocation2 + $0x788] sm:$0xff] }
 0x3e6   : > { %v16353_v7 = vcombine.low %v7584_v4, %v7588_v19 }
 0x3ec   : > { %6517 = vmatmul.mubr.bf16.gmra.mrb[108].mxu0 %v19203_v41  ;;  %6903 = vmatmul.mubr.bf16.gmra.mrb[108].mxu1 %v19203_v41  ;;  %v19218_v41 = vld [vmem:[#allocation26_spill] sm:$0xff] }
 0x3ed   : > { %6526 = vmatprep.mubr.bf16.mxu0 %v19204_v22  ;;  %6912 = vmatprep.mubr.bf16.mxu1 %v19204_v22  ;;  %v7585_v22 = vld [vmem:[#allocation2 + $0x728] sm:$0xff] }
 0x3f4   : > { %6527 = vmatmul.mubr.bf16.gmra.mrb[112].mxu0 %v19205_v60  ;;  %6913 = vmatmul.mubr.bf16.gmra.mrb[112].mxu1 %v19205_v60  ;;  %v7589_v60 = vld [vmem:[#allocation2 + $0x748] sm:$0xff] }
 0x3f5   : > { %6536 = vmatprep.mubr.bf16.mxu0 %v19206_v45  ;;  %6922 = vmatprep.mubr.bf16.mxu1 %v19206_v45  ;;  %v16341_v45 = vcombine.low %v7576_v8, %v7580_v34  ;;  %v16357_v43 = vcombine.low %v7585_v22, %v7589_v60 }
 0x3fc   : > { %6537 = vmatmul.mubr.bf16.gmra.mrb[116].mxu0 %v19207_v35  ;;  %6923 = vmatmul.mubr.bf16.gmra.mrb[116].mxu1 %v19207_v35  ;;  %v16345_v35 = vcombine.low %v7577_v31, %v7581_v38  ;;  %v16377_v31 = vcombine.high %v7600_v21, %v7604_v42  ;;  %v7608_v38 = vld [vmem:[#allocation2 + $0x7e0] sm:$0xff] }
 0x3fd   : > { %6546 = vmatprep.mubr.bf16.mxu0 %v19208_v15  ;;  %6932 = vmatprep.mubr.bf16.mxu1 %v19208_v15  ;;  %v16347_v15 = vcombine.high %v7584_v4, %v7588_v19  ;;  %v7609_v4 = vld [vmem:[#allocation2 + $0x7e8] sm:$0xff] }
 0x3fe   : > { %19222 = vst [vmem:[#allocation16_spill] sm:$0xff] %v16377_v31  ;;  %v7613_v19 = vld [vmem:[#allocation2 + $0x808] sm:$0xff] }
 0x404   : > { %6547 = vmatmul.mubr.bf16.gmra.mrb[120].mxu0 %v19209_v55  ;;  %6933 = vmatmul.mubr.bf16.gmra.mrb[120].mxu1 %v19209_v55  ;;  %v16350_v55 = vcombine.high %v7585_v22, %v7589_v60 }
 0x405   : > { %6556 = vmatprep.mubr.bf16.mxu0 %v19210_v16  ;;  %6942 = vmatprep.mubr.bf16.mxu1 %v19210_v16  ;;  %v7592_v16 = vld [vmem:[#allocation2 + $0x760] sm:$0xff] }
 0x40c   : > { %6557 = vmatmul.mubr.bf16.gmra.mrb[124].mxu0 %v19211_v58  ;;  %6943 = vmatmul.mubr.bf16.gmra.mrb[124].mxu1 %v19211_v58  ;;  %v7596_v58 = vld [vmem:[#allocation2 + $0x780] sm:$0xff] }
 0x40d   : > { %12699 = vmatprep.mubr.msk.bf16.mxu0 %vm1748_vm1, %v19212_v53  ;;  %12716 = vmatprep.mubr.msk.bf16.mxu1 %vm1748_vm1, %v19212_v53  ;;  %v7593_v53 = vld [vmem:[#allocation2 + $0x768] sm:$0xff]  ;;  %v16359_v47 = vcombine.high %v7592_v16, %v7596_v58  ;;  %v16371_v8 = vcombine.low %v7592_v16, %v7596_v58  ;;  %v16393_v58 = vcombine.high %v7609_v4, %v7613_v19 }
 0x40e   : > { %v16363_v30 = vcombine.high %v7593_v53, %v7597_v54  ;;  %v16375_v34 = vcombine.low %v7593_v53, %v7597_v54  ;;  %v19227_v16 = vld [vmem:[#allocation28_spill] sm:$0xff]  ;;  %v7616_v53 = vld [vmem:[#allocation2 + $0x820] sm:$0xff] }
 0x40f   : > { %19220 = vst [vmem:[#allocation14_spill] sm:$0xff] %v16371_v8  ;;  %19228 = vst [vmem:[#allocation21_spill] sm:$0xff] %v16393_v58  ;;  %v7620_v54 = vld [vmem:[#allocation2 + $0x840] sm:$0xff] }
 0x410   : > { %19221 = vst [vmem:[#allocation15_spill] sm:$0xff] %v16375_v34 }
 0x414   : > { %6600 = vmatmul.mubr.bf16.vlgmr.msra.gmra.mrb[64].mxu0 %v19213_v25  ;;  %6986 = vmatmul.mubr.bf16.vlgmr.msra.gmra.mrb[64].mxu1 %v19213_v25  ;;  %v19219_v25 = vld [vmem:[#allocation27_spill] sm:$0xff] }
 0x415   : > { %8929 = vmatpush1.bf16.msra.mxu0 %v16199_v61  ;;  %9155 = vmatpush1.bf16.msra.mxu1 %v16206_v23 }
 0x416   : > { %12700 = vmatprep.mubr.msk.bf16.mxu0 %vm1748_vm1, %v19215_v24  ;;  %12717 = vmatprep.mubr.msk.bf16.mxu1 %vm1748_vm1, %v19215_v24  ;;  %v7605_v24 = vld [vmem:[#allocation2 + $0x7c8] sm:$0xff] }
 0x417   : > { %8930 = vmatprep.subr.bf16.mxu0 %v16284_v17  ;;  %9156 = vmatprep.subr.bf16.mxu1 %v16287_v6  ;;  %v16387_v22 = vcombine.low %v7601_v3, %v7605_v24 }
 0x419   : > { %8931 = vmatpush1.bf16.msra.mxu0 %v16295_v18  ;;  %9157 = vmatpush1.bf16.msra.mxu1 %v16308_v57  ;;  %19225 = vst [vmem:[#allocation19_spill] sm:$0xff] %v16387_v22 }
 0x41a   : > { %8932 = vmatprep.subr.bf16.mxu0 %v16310_v48  ;;  %9158 = vmatprep.subr.bf16.mxu1 %v16319_v36 }
 0x41c   : > { %6610 = vmatmul.mubr.bf16.gmra.mrb[68].mxu0 %v19217_v52  ;;  %6996 = vmatmul.mubr.bf16.gmra.mrb[68].mxu1 %v19217_v52  ;;  %v7612_v52 = vld [vmem:[#allocation2 + $0x800] sm:$0xff] }
 0x41d   : > { %12701 = vmatprep.mubr.msk.bf16.mxu0 %vm1748_vm1, %v19218_v41  ;;  %12718 = vmatprep.mubr.msk.bf16.mxu1 %vm1748_vm1, %v19218_v41  ;;  %v16383_v41 = vcombine.low %v7600_v21, %v7604_v42  ;;  %v16389_v60 = vcombine.high %v7608_v38, %v7612_v52  ;;  %v19229_v21 = vld [vmem:[#allocation29_spill] sm:$0xff]  ;;  %v7617_v42 = vld [vmem:[#allocation2 + $0x828] sm:$0xff] }
 0x41e   : > { %8933 = vmatpush1.bf16.msra.mxu0 %v16324_v39  ;;  %9159 = vmatpush1.bf16.msra.mxu1 %v16327_v46 }
 0x41f   : > { %8934 = vmatprep.subr.bf16.mxu0 %v16330_v62  ;;  %9160 = vmatprep.subr.bf16.mxu1 %v16333_v63  ;;  %19224 = vst [vmem:[#allocation18_spill] sm:$0xff] %v16383_v41  ;;  %19226 = vst [vmem:[#allocation20_spill] sm:$0xff] %v16389_v60 }
 0x422   : > { %8935 = vmatpush1.bf16.msra.mxu0 %v16341_v45  ;;  %9161 = vmatpush1.bf16.msra.mxu1 %v16345_v35 }
 0x423   : > { %8936 = vmatprep.subr.bf16.mxu0 %v16347_v15  ;;  %9162 = vmatprep.subr.bf16.mxu1 %v16350_v55 }
 0x424   : > { %6620 = vmatmul.mubr.bf16.gmra.mrb[72].mxu0 %v15945_v14  ;;  %7006 = vmatmul.mubr.bf16.gmra.mrb[72].mxu1 %v15945_v14  ;;  %v16380_v14 = vcombine.high %v7601_v3, %v7605_v24  ;;  %v16401_v3 = vcombine.low %v7608_v38, %v7612_v52  ;;  %v16405_v24 = vcombine.low %v7609_v4, %v7613_v19  ;;  %v19237_v19 = vld [vmem:[#allocation30_spill] sm:$0xff] }
 0x425   : > { %12702 = vmatprep.mubr.msk.bf16.mxu0 %vm1748_vm1, %v19219_v25  ;;  %12719 = vmatprep.mubr.msk.bf16.mxu1 %vm1748_vm1, %v19219_v25  ;;  %v7621_v25 = vld [vmem:[#allocation2 + $0x848] sm:$0xff]  ;;  %v16413_v38 = vcombine.low %v7616_v53, %v7620_v54 }
 0x426   : > { %8937 = vmatpush1.bf16.msra.mxu0 %v16353_v7  ;;  %9163 = vmatpush1.bf16.msra.mxu1 %v16357_v43  ;;  %19223 = vst [vmem:[#allocation17_spill] sm:$0xff] %v16380_v14  ;;  %19230 = vst [vmem:[#allocation22_spill] sm:$0xff] %v16401_v3  ;;  %v16417_v52 = vcombine.low %v7617_v42, %v7621_v25 }
 0x427   : > { %8938 = vmatprep.subr.bf16.mxu0 %v16359_v47  ;;  %9164 = vmatprep.subr.bf16.mxu1 %v16363_v30  ;;  %19231 = vst [vmem:[#allocation23_spill] sm:$0xff] %v16405_v24  ;;  %19234 = vst [vmem:[#allocation26_spill] sm:$0xff] %v16413_v38 }
 0x428   : > { %19235 = vst [vmem:[#allocation27_spill] sm:$0xff] %v16417_v52 }
 0x42a   : > { %8939 = vmatpush1.bf16.msra.mxu0 %v16371_v8  ;;  %9165 = vmatpush1.bf16.msra.mxu1 %v16375_v34  ;;  %v7628_v34 = vld [vmem:[#allocation2 + $0x880] sm:$0xff]  ;;  %v7625_v8 = vld [vmem:[#allocation2 + $0x868] sm:$0xff] }
 0x42b   : > { %8940 = vmatprep.subr.bf16.mxu0 %v16377_v31  ;;  %9166 = vmatprep.subr.bf16.mxu1 %v16380_v14  ;;  %v16407_v14 = vcombine.high %v7616_v53, %v7620_v54  ;;  %v7624_v31 = vld [vmem:[#allocation2 + $0x860] sm:$0xff]  ;;  %v7633_v54 = vld [vmem:[#allocation2 + $0x8a8] sm:$0xff] }
 0x42c   : > { %6630 = vmatmul.mubr.bf16.gmra.mrb[76].mxu0 %v19227_v16  ;;  %7016 = vmatmul.mubr.bf16.gmra.mrb[76].mxu1 %v19227_v16  ;;  %v16410_v16 = vcombine.high %v7617_v42, %v7621_v25  ;;  %v16419_v4 = vcombine.high %v7624_v31, %v7628_v34  ;;  %v19239_v53 = vld [vmem:[#allocation31_spill] sm:$0xff]  ;;  %v16431_v42 = vcombine.low %v7624_v31, %v7628_v34 }
 0x42d   : > { %12703 = vmatprep.mubr.msk.bf16.mxu0 %vm1748_vm1, %v19229_v21  ;;  %12720 = vmatprep.mubr.msk.bf16.mxu1 %vm1748_vm1, %v19229_v21  ;;  %19232 = vst [vmem:[#allocation24_spill] sm:$0xff] %v16407_v14  ;;  %v7629_v21 = vld [vmem:[#allocation2 + $0x888] sm:$0xff] }
 0x42e   : > { %8941 = vmatpush1.bf16.msra.mxu0 %v16383_v41  ;;  %9167 = vmatpush1.bf16.msra.mxu1 %v16387_v22  ;;  %19233 = vst [vmem:[#allocation25_spill] sm:$0xff] %v16410_v16  ;;  %19236 = vst [vmem:[#allocation28_spill] sm:$0xff] %v16419_v4  ;;  %v7636_v22 = vld [vmem:[#allocation2 + $0x8c0] sm:$0xff]  ;;  %v16435_v25 = vcombine.low %v7625_v8, %v7629_v21  ;;  %v7641_v41 = vld [vmem:[#allocation2 + $0x8e8] sm:$0xff] }
 0x42f   : > { %8942 = vmatprep.subr.bf16.mxu0 %v16389_v60  ;;  %9168 = vmatprep.subr.bf16.mxu1 %v16393_v58  ;;  %v16423_v58 = vcombine.high %v7625_v8, %v7629_v21  ;;  %v7632_v60 = vld [vmem:[#allocation2 + $0x8a0] sm:$0xff]  ;;  %19240 = vst [vmem:[#allocation30_spill] sm:$0xff] %v16431_v42 }
 0x430   : > { %19241 = vst [vmem:[#allocation31_spill] sm:$0xff] %v16435_v25  ;;  %v16443_v34 = vcombine.low %v7632_v60, %v7636_v22 }
 0x431   : > { %19238 = vst [vmem:[#allocation29_spill] sm:$0xff] %v16423_v58 }
 0x432   : > { %8943 = vmatpush1.bf16.msra.mxu0 %v16401_v3  ;;  %9169 = vmatpush1.bf16.msra.mxu1 %v16405_v24  ;;  %v7637_v24 = vld [vmem:[#allocation2 + $0x8c8] sm:$0xff]  ;;  %v7644_v3 = vld [vmem:[#allocation2 + $0x900] sm:$0xff]  ;;  %19244 = vst [vmem:[#allocation39_spill] sm:$0xff] %v16443_v34 }
 0x433   : > { %8944 = vmatprep.subr.bf16.mxu0 %v16407_v14  ;;  %9170 = vmatprep.subr.bf16.mxu1 %v16410_v16  ;;  %v16437_v16 = vcombine.high %v7632_v60, %v7636_v22  ;;  %v7640_v14 = vld [vmem:[#allocation2 + $0x8e0] sm:$0xff]  ;;  %v16447_v8 = vcombine.low %v7633_v54, %v7637_v24  ;;  %v19248_v22 = vld [vmem:[#allocation32_spill] sm:$0xff] }
 0x434   : > { %6640 = vmatmul.mubr.bf16.gmra.mrb[80].mxu0 %v19237_v19  ;;  %7026 = vmatmul.mubr.bf16.gmra.mrb[80].mxu1 %v19237_v19  ;;  %v16440_v19 = vcombine.high %v7633_v54, %v7637_v24  ;;  %v16449_v31 = vcombine.high %v7640_v14, %v7644_v3  ;;  %v7649_v60 = vld [vmem:[#allocation2 + $0x928] sm:$0xff]  ;;  %v16461_v24 = vcombine.low %v7640_v14, %v7644_v3 }
 0x435   : > { %12704 = vmatprep.mubr.msk.bf16.mxu0 %vm1748_vm1, %v19239_v53  ;;  %12721 = vmatprep.mubr.msk.bf16.mxu1 %vm1748_vm1, %v19239_v53  ;;  %19242 = vst [vmem:[#allocation37_spill] sm:$0xff] %v16437_v16  ;;  %v7645_v53 = vld [vmem:[#allocation2 + $0x908] sm:$0xff]  ;;  %19245 = vst [vmem:[#allocation40_spill] sm:$0xff] %v16447_v8 }
 0x436   : > { %8945 = vmatpush1.bf16.msra.mxu0 %v16413_v38  ;;  %9171 = vmatpush1.bf16.msra.mxu1 %v16417_v52  ;;  %19243 = vst [vmem:[#allocation38_spill] sm:$0xff] %v16440_v19  ;;  %19246 = vst [vmem:[#allocation41_spill] sm:$0xff] %v16449_v31  ;;  %v16453_v21 = vcombine.high %v7641_v41, %v7645_v53  ;;  %v16465_v54 = vcombine.low %v7641_v41, %v7645_v53  ;;  %v7657_v52 = vld [vmem:[#allocation2 + $0x968] sm:$0xff]  ;;  %v19256_v53 = vld [vmem:[#allocation33_spill] sm:$0xff] }
 0x437   : > { %8946 = vmatprep.subr.bf16.mxu0 %v16419_v4  ;;  %9172 = vmatprep.subr.bf16.mxu1 %v16423_v58  ;;  %v7648_v58 = vld [vmem:[#allocation2 + $0x920] sm:$0xff]  ;;  %19249 = vst [vmem:[#allocation32_spill] sm:$0xff] %v16461_v24  ;;  %v7618_v38 = vld [vmem:[#allocation2 + $0x830] sm:$0xff] }
 0x438   : > { %19247 = vst [vmem:[#allocation42_spill] sm:$0xff] %v16453_v21  ;;  %v7652_v4 = vld [vmem:[#allocation2 + $0x940] sm:$0xff]  ;;  %19250 = vst [vmem:[#allocation43_spill] sm:$0xff] %v16465_v54 }
 0x439   : > { %v16473_v14 = vcombine.low %v7648_v58, %v7652_v4 }
 0x43a   : > { %8947 = vmatpush1.bf16.msra.mxu0 %v16431_v42  ;;  %9173 = vmatpush1.bf16.msra.mxu1 %v16435_v25  ;;  %v7653_v25 = vld [vmem:[#allocation2 + $0x948] sm:$0xff]  ;;  %v7660_v42 = vld [vmem:[#allocation2 + $0x980] sm:$0xff] }
 0x43b   : > { %8948 = vmatprep.subr.bf16.mxu0 %v16437_v16  ;;  %9174 = vmatprep.subr.bf16.mxu1 %v16440_v19  ;;  %v16467_v19 = vcombine.high %v7648_v58, %v7652_v4  ;;  %v7656_v16 = vld [vmem:[#allocation2 + $0x960] sm:$0xff]  ;;  %19253 = vst [vmem:[#allocation46_spill] sm:$0xff] %v16473_v14  ;;  %v16477_v41 = vcombine.low %v7649_v60, %v7653_v25  ;;  %v7665_v4 = vld [vmem:[#allocation2 + $0x9a8] sm:$0xff] }
 0x43c   : > { %6650 = vmatmul.mubr.bf16.gmra.mrb[84].mxu0 %v16011_v50  ;;  %7036 = vmatmul.mubr.bf16.gmra.mrb[84].mxu1 %v16011_v50  ;;  %v16470_v50 = vcombine.high %v7649_v60, %v7653_v25  ;;  %v16479_v3 = vcombine.high %v7656_v16, %v7660_v42  ;;  %v19258_v58 = vld [vmem:[#allocation34_spill] sm:$0xff]  ;;  %v16491_v25 = vcombine.low %v7656_v16, %v7660_v42 }
 0x43d   : > { %12705 = vmatprep.mubr.msk.bf16.mxu0 %vm1748_vm1, %v19248_v22  ;;  %12722 = vmatprep.mubr.msk.bf16.mxu1 %vm1748_vm1, %v19248_v22  ;;  %19251 = vst [vmem:[#allocation44_spill] sm:$0xff] %v16467_v19  ;;  %v7661_v22 = vld [vmem:[#allocation2 + $0x988] sm:$0xff]  ;;  %19254 = vst [vmem:[#allocation47_spill] sm:$0xff] %v16477_v41 }
 0x43e   : > { %8949 = vmatpush1.bf16.msra.mxu0 %v16443_v34  ;;  %9175 = vmatpush1.bf16.msra.mxu1 %v16447_v8  ;;  %19252 = vst [vmem:[#allocation45_spill] sm:$0xff] %v16470_v50  ;;  %19255 = vst [vmem:[#allocation48_spill] sm:$0xff] %v16479_v3  ;;  %v7668_v8 = vld [vmem:[#allocation2 + $0x9c0] sm:$0xff]  ;;  %v16495_v60 = vcombine.low %v7657_v52, %v7661_v22  ;;  %v7673_v34 = vld [vmem:[#allocation2 + $0x9e8] sm:$0xff] }
 0x43f   : > { %8950 = vmatprep.subr.bf16.mxu0 %v16449_v31  ;;  %9176 = vmatprep.subr.bf16.mxu1 %v16453_v21  ;;  %v16483_v21 = vcombine.high %v7657_v52, %v7661_v22  ;;  %v7664_v31 = vld [vmem:[#allocation2 + $0x9a0] sm:$0xff]  ;;  %19259 = vst [vmem:[#allocation34_spill] sm:$0xff] %v16491_v25 }
 0x440   : > { %19260 = vst [vmem:[#allocation49_spill] sm:$0xff] %v16495_v60  ;;  %v16503_v16 = vcombine.low %v7664_v31, %v7668_v8 }
 0x441   : > { %19257 = vst [vmem:[#allocation33_spill] sm:$0xff] %v16483_v21 }
 0x442   : > { %8951 = vmatpush1.bf16.msra.mxu0 %v16461_v24  ;;  %9177 = vmatpush1.bf16.msra.mxu1 %v16465_v54  ;;  %v7669_v54 = vld [vmem:[#allocation2 + $0x9c8] sm:$0xff]  ;;  %v7676_v24 = vld [vmem:[#allocation2 + $0xa00] sm:$0xff]  ;;  %19263 = vst [vmem:[#allocation52_spill] sm:$0xff] %v16503_v16 }
 0x443   : > { %8952 = vmatprep.subr.bf16.mxu0 %v16467_v19  ;;  %9178 = vmatprep.subr.bf16.mxu1 %v16470_v50  ;;  %v16497_v50 = vcombine.high %v7664_v31, %v7668_v8  ;;  %v7672_v19 = vld [vmem:[#allocation2 + $0x9e0] sm:$0xff]  ;;  %v16507_v52 = vcombine.low %v7665_v4, %v7669_v54 }
 0x444   : > { %6660 = vmatmul.mubr.bf16.gmra.mrb[88].mxu0 %v19256_v53  ;;  %7046 = vmatmul.mubr.bf16.gmra.mrb[88].mxu1 %v19256_v53  ;;  %v16500_v53 = vcombine.high %v7665_v4, %v7669_v54  ;;  %v16509_v42 = vcombine.high %v7672_v19, %v7676_v24  ;;  %v16521_v8 = vcombine.low %v7672_v19, %v7676_v24  ;;  %v7704_v24 = vld [vmem:[#allocation2 + $0xae0] sm:$0xff] }
 0x445   : > { %12706 = vmatprep.mubr.msk.bf16.mxu0 %vm1748_vm1, %v19258_v58  ;;  %12723 = vmatprep.mubr.msk.bf16.mxu1 %vm1748_vm1, %v19258_v58  ;;  %19261 = vst [vmem:[#allocation50_spill] sm:$0xff] %v16497_v50  ;;  %v7677_v58 = vld [vmem:[#allocation2 + $0xa08] sm:$0xff]  ;;  %19264 = vst [vmem:[#allocation53_spill] sm:$0xff] %v16507_v52  ;;  %v16529_v54 = vcombine.high %v16289_v2, %v16291_v5  ;;  %v7708_v4 = vld [vmem:[#allocation2 + $0xb00] sm:$0xff] }
 0x446   : > { %8953 = vmatpush1.bf16.msra.mxu0 %v16473_v14  ;;  %9179 = vmatpush1.bf16.msra.mxu1 %v16477_v41  ;;  %19262 = vst [vmem:[#allocation51_spill] sm:$0xff] %v16500_v53  ;;  %19265 = vst [vmem:[#allocation54_spill] sm:$0xff] %v16509_v42  ;;  %v16513_v22 = vcombine.high %v7673_v34, %v7677_v58  ;;  %v16525_v31 = vcombine.low %v7673_v34, %v7677_v58  ;;  %v7701_v2 = vld [vmem:[#allocation2 + $0xac8] sm:$0xff]  ;;  %v16615_v34 = vld [vmem:[%s14970_s11 + $0xb0] ss:$16 sps:$4 sm:$0xff]  }
 0x447   : > { %8954 = vmatprep.subr.bf16.mxu0 %v16479_v3  ;;  %9180 = vmatprep.subr.bf16.mxu1 %v16483_v21  ;;  %19267 = vst [vmem:[#allocation56_spill] sm:$0xff] %v16521_v8  ;;  %19269 = vst [vmem:[#allocation58_spill] sm:$0xff] %v16529_v54  ;;  %v16620_v58 = vld [vmem:[%s14970_s11 + $0xd4] ss:$16 sps:$4 sm:$0xff]  }
 0x448   : > { %19266 = vst [vmem:[#allocation55_spill] sm:$0xff] %v16513_v22  ;;  %19268 = vst [vmem:[#allocation57_spill] sm:$0xff] %v16525_v31  ;;  %v7586_v21 = vld [vmem:[#allocation2 + $0x730] sm:$0xff] }
 0x449   : > { %v7590_v3 = vld [vmem:[#allocation2 + $0x750] sm:$0xff] }
 0x44a   : > { %8955 = vmatpush1.bf16.msra.mxu0 %v16491_v25  ;;  %9181 = vmatpush1.bf16.msra.mxu1 %v16495_v60  ;;  %v7578_v60 = vld [vmem:[#allocation2 + $0x6f0] sm:$0xff]  ;;  %v16827_v25 = vld [vmem:[%s14970_s11 + $0xdc] ss:$16 sps:$4 sm:$0xff]  }
 0x44b   : > { %8956 = vmatprep.subr.bf16.mxu0 %v16497_v50  ;;  %9182 = vmatprep.subr.bf16.mxu1 %v16500_v53  ;;  %v7571_v53 = vld [vmem:[#allocation2 + $0x6b8] sm:$0xff]  ;;  %v7602_v41 = vld [vmem:[#allocation2 + $0x7b0] sm:$0xff] }
 0x44c   : > { %6670 = vmatmul.mubr.bf16.gmra.mrb[92].mxu0 %v16052_v29  ;;  %7056 = vmatmul.mubr.bf16.gmra.mrb[92].mxu1 %v16052_v29  ;;  %v16534_v29 = vcombine.high %v16301_v10, %v16303_v1  ;;  %v7575_v50 = vld [vmem:[#allocation2 + $0x6d8] sm:$0xff]  ;;  %v7606_v14 = vld [vmem:[#allocation2 + $0x7d0] sm:$0xff] }
 0x44d   : > { %12707 = vmatprep.mubr.msk.bf16.mxu0 %vm1748_vm1, %v16054_v37  ;;  %12724 = vmatprep.mubr.msk.bf16.mxu1 %vm1748_vm1, %v16054_v37  ;;  %v19271_v37 = vld [vmem:[#allocation35_spill] sm:$0xff] }
 0x44e   : > { %8957 = vmatpush1.bf16.msra.mxu0 %v16503_v16  ;;  %9183 = vmatpush1.bf16.msra.mxu1 %v16507_v52  ;;  %19270 = vst [vmem:[#allocation59_spill] sm:$0xff] %v16534_v29  ;;  %v7570_v52 = vld [vmem:[#allocation2 + $0x6b0] sm:$0xff] }
 0x44f   : > { %8958 = vmatprep.subr.bf16.mxu0 %v16509_v42  ;;  %9184 = vmatprep.subr.bf16.mxu1 %v16513_v22  ;;  %v16791_v42 = vld [vmem:[%s14970_s11 + $0xbc] ss:$16 sps:$4 sm:$0xff]   ;;  %v7574_v16 = vld [vmem:[#allocation2 + $0x6d0] sm:$0xff] }
 0x452   : > { %8959 = vmatpush1.bf16.msra.mxu0 %v16521_v8  ;;  %9185 = vmatpush1.bf16.msra.mxu1 %v16525_v31 }
 0x453   : > { %9041 = vmatprep.subr.bf16.mxu0 %v16529_v54  ;;  %9267 = vmatprep.subr.bf16.mxu1 %v16534_v29  ;;  %v7740_v29 = vld [vmem:[#allocation2 + $0xc00] sm:$0xff] }
 0x454   : > { %6680 = vmatmul.mubr.bf16.gmra.mrb[96].mxu0 %v16070_v56  ;;  %7066 = vmatmul.mubr.bf16.gmra.mrb[96].mxu1 %v16070_v56  ;;  %v16583_v56 = vld [vmem:[%s14970_s11 + $0x94] ss:$16 sps:$4 sm:$0xff]  }
 0x455   : > { %12708 = vmatprep.mubr.msk.bf16.mxu0 %vm1748_vm1, %v16074_v32  ;;  %12725 = vmatprep.mubr.msk.bf16.mxu1 %vm1748_vm1, %v16074_v32  ;;  %v19272_v32 = vld [vmem:[#allocation36_spill] sm:$0xff]  ;;  %v16687_v54 = vld [vmem:[%s14970_s11 + $0x1b4] ss:$16 sps:$4 sm:$0xff]  }
 0x45c   : > { %6690 = vmatmul.mubr.bf16.gmra.mrb[100].mxu0 %v16089_v40  ;;  %7076 = vmatmul.mubr.bf16.gmra.mrb[100].mxu1 %v16089_v40  ;;  %v16590_v40 = vld [vmem:[%s14970_s11 + $0x90] ss:$16 sps:$4 sm:$0xff]  }
 0x45d   : > { %12709 = vmatprep.mubr.msk.bf16.mxu0 %vm1748_vm1, %v16091_v20  ;;  %12726 = vmatprep.mubr.msk.bf16.mxu1 %vm1748_vm1, %v16091_v20  ;;  %v7688_v20 = vld [vmem:[#allocation2 + $0xa60] sm:$0xff] }
 0x464   : > { %6700 = vmatmul.mubr.bf16.gmra.mrb[104].mxu0 %v16105_v9  ;;  %7086 = vmatmul.mubr.bf16.gmra.mrb[104].mxu1 %v16105_v9  ;;  %v7692_v9 = vld [vmem:[#allocation2 + $0xa80] sm:$0xff] }
 0x465   : > { %12710 = vmatprep.mubr.msk.bf16.mxu0 %vm1748_vm1, %v16107_v49  ;;  %12727 = vmatprep.mubr.msk.bf16.mxu1 %vm1748_vm1, %v16107_v49  ;;  %v7689_v49 = vld [vmem:[#allocation2 + $0xa68] sm:$0xff]  ;;  %v16602_v5 = vcombine.low %v7688_v20, %v7692_v9 }
 0x467   : > { %19275 = vst [vmem:[#allocation60_spill] sm:$0xff] %v16602_v5 }
 0x46c   : > { %6710 = vmatmul.mubr.bf16.gmra.mrb[108].mxu0 %v16121_v13  ;;  %7096 = vmatmul.mubr.bf16.gmra.mrb[108].mxu1 %v16121_v13  ;;  %v7693_v13 = vld [vmem:[#allocation2 + $0xa88] sm:$0xff] }
 0x46d   : > { %12711 = vmatprep.mubr.msk.bf16.mxu0 %vm1748_vm1, %v16123_v0  ;;  %12728 = vmatprep.mubr.msk.bf16.mxu1 %vm1748_vm1, %v16123_v0  ;;  %v16593_v0 = vld [vmem:[%s14970_s11 + $0xb4] ss:$16 sps:$4 sm:$0xff]   ;;  %v16606_v10 = vcombine.low %v7689_v49, %v7693_v13 }
 0x46f   : > { %19276 = vst [vmem:[#allocation61_spill] sm:$0xff] %v16606_v10 }
 0x474   : > { %6720 = vmatmul.mubr.bf16.gmra.mrb[112].mxu0 %v16137_v26  ;;  %7106 = vmatmul.mubr.bf16.gmra.mrb[112].mxu1 %v16137_v26  ;;  %v16595_v26 = vcombine.high %v7688_v20, %v7692_v9 }
 0x475   : > { %12712 = vmatprep.mubr.msk.bf16.mxu0 %vm1748_vm1, %v16139_v27  ;;  %12729 = vmatprep.mubr.msk.bf16.mxu1 %vm1748_vm1, %v16139_v27  ;;  %v7696_v27 = vld [vmem:[#allocation2 + $0xaa0] sm:$0xff] }
 0x476   : > { %19273 = vst [vmem:[#allocation35_spill] sm:$0xff] %v16595_v26 }
 0x47c   : > { %6730 = vmatmul.mubr.bf16.gmra.mrb[116].mxu0 %v16152_v33  ;;  %7116 = vmatmul.mubr.bf16.gmra.mrb[116].mxu1 %v16152_v33  ;;  %v7700_v33 = vld [vmem:[#allocation2 + $0xac0] sm:$0xff] }
 0x47d   : > { %12713 = vmatprep.mubr.msk.bf16.mxu0 %vm1748_vm1, %v16154_v59  ;;  %12730 = vmatprep.mubr.msk.bf16.mxu1 %vm1748_vm1, %v16154_v59  ;;  %v16598_v59 = vcombine.high %v7689_v49, %v7693_v13  ;;  %v16608_v1 = vcombine.high %v7696_v27, %v7700_v33  ;;  %v16623_v20 = vcombine.low %v7696_v27, %v7700_v33  ;;  %v7713_v27 = vld [vmem:[#allocation2 + $0xb28] sm:$0xff] }
 0x47e   : > { %v16629_v49 = vcombine.high %v7704_v24, %v7708_v4  ;;  %v7717_v33 = vld [vmem:[#allocation2 + $0xb48] sm:$0xff] }
 0x47f   : > { %19274 = vst [vmem:[#allocation36_spill] sm:$0xff] %v16598_v59  ;;  %19277 = vst [vmem:[#allocation62_spill] sm:$0xff] %v16608_v1 }
 0x480   : > { %19279 = vst [vmem:[#allocation64_spill] sm:$0xff] %v16623_v20  ;;  %19281 = vst [vmem:[#allocation66_spill] sm:$0xff] %v16629_v49 }
 0x484   : > { %6740 = vmatmul.mubr.bf16.gmra.mrb[120].mxu0 %v16166_v11  ;;  %7126 = vmatmul.mubr.bf16.gmra.mrb[120].mxu1 %v16166_v11  ;;  %v7697_v11 = vld [vmem:[#allocation2 + $0xaa8] sm:$0xff] }
 0x485   : > { %12714 = vmatprep.mubr.msk.bf16.mxu0 %vm1748_vm1, %v19271_v37  ;;  %12731 = vmatprep.mubr.msk.bf16.mxu1 %vm1748_vm1, %v19271_v37  ;;  %v16612_v19 = vcombine.high %v7697_v11, %v7701_v2  ;;  %v7705_v37 = vld [vmem:[#allocation2 + $0xae8] sm:$0xff]  ;;  %v16626_v9 = vcombine.low %v7697_v11, %v7701_v2  ;;  %v16638_v11 = vcombine.low %v7704_v24, %v7708_v4 }
 0x486   : > { %v7721_v24 = vld [vmem:[#allocation2 + $0xb68] sm:$0xff] }
 0x487   : > { %19278 = vst [vmem:[#allocation63_spill] sm:$0xff] %v16612_v19  ;;  %19280 = vst [vmem:[#allocation65_spill] sm:$0xff] %v16626_v9  ;;  %v7725_v4 = vld [vmem:[#allocation2 + $0xb88] sm:$0xff] }
 0x488   : > { %19283 = vst [vmem:[#allocation68_spill] sm:$0xff] %v16638_v11 }
 0x48c   : > { %6750 = vmatmul.mubr.bf16.gmra.mrb[124].mxu0 %v19272_v32  ;;  %7136 = vmatmul.mubr.bf16.gmra.mrb[124].mxu1 %v19272_v32  ;;  %v7709_v32 = vld [vmem:[#allocation2 + $0xb08] sm:$0xff] }
 0x48d   : > { %8960 = vmatprep.mubr.bf16.mxu0 %v16583_v56  ;;  %9186 = vmatprep.mubr.bf16.mxu1 %v16583_v56  ;;  %v16632_v13 = vcombine.high %v7705_v37, %v7709_v32  ;;  %v16642_v2 = vcombine.low %v7705_v37, %v7709_v32  ;;  %v16660_v37 = vcombine.low %v7713_v27, %v7717_v33 }
 0x48f   : > { %19282 = vst [vmem:[#allocation67_spill] sm:$0xff] %v16632_v13  ;;  %19284 = vst [vmem:[#allocation69_spill] sm:$0xff] %v16642_v2 }
 0x490   : > { %19288 = vst [vmem:[#allocation73_spill] sm:$0xff] %v16660_v37 }
 0x494   : > { %8961 = vmatmul.mubr.bf16.vlgmr.msra.gmra.mrb[0].mxu0 %v16590_v40  ;;  %9187 = vmatmul.mubr.bf16.vlgmr.msra.gmra.mrb[0].mxu1 %v16590_v40 }
 0x495   : > { %9042 = vmatpush1.bf16.msra.mxu0 %v16299_v12  ;;  %9268 = vmatpush1.bf16.msra.mxu1 %v16314_v28  ;;  %v7724_v28 = vld [vmem:[#allocation2 + $0xb80] sm:$0xff] }
 0x496   : > { %8970 = vmatprep.mubr.bf16.mxu0 %v16593_v0  ;;  %9196 = vmatprep.mubr.bf16.mxu1 %v16593_v0  ;;  %v16653_v12 = vld [vmem:[%s14970_s11 + $0xf4] ss:$16 sps:$4 sm:$0xff]  }
 0x497   : > { %9043 = vmatprep.subr.bf16.mxu0 %v16595_v26  ;;  %9269 = vmatprep.subr.bf16.mxu1 %v16598_v59  ;;  %v7716_v59 = vld [vmem:[#allocation2 + $0xb40] sm:$0xff] }
 0x498   : > { %v7720_v26 = vld [vmem:[#allocation2 + $0xb60] sm:$0xff] }
 0x499   : > { %9044 = vmatpush1.bf16.msra.mxu0 %v16602_v5  ;;  %9270 = vmatpush1.bf16.msra.mxu1 %v16606_v10  ;;  %v7712_v5 = vld [vmem:[#allocation2 + $0xb20] sm:$0xff]  ;;  %v16650_v10 = vcombine.high %v7713_v27, %v7717_v33  ;;  %v16662_v32 = vcombine.high %v7720_v26, %v7724_v28  ;;  %v16672_v27 = vcombine.low %v7720_v26, %v7724_v28  ;;  %v7737_v28 = vld [vmem:[#allocation2 + $0xbe8] sm:$0xff] }
 0x49a   : > { %9045 = vmatprep.subr.bf16.mxu0 %v16608_v1  ;;  %9271 = vmatprep.subr.bf16.mxu1 %v16612_v19  ;;  %v16644_v19 = vcombine.high %v7712_v5, %v7716_v59  ;;  %v16647_v1 = vld [vmem:[%s14970_s11 + $0xd0] ss:$16 sps:$4 sm:$0xff]   ;;  %v16676_v33 = vcombine.low %v7721_v24, %v7725_v4  ;;  %v7741_v26 = vld [vmem:[#allocation2 + $0xc08] sm:$0xff] }
 0x49b   : > { %19286 = vst [vmem:[#allocation71_spill] sm:$0xff] %v16650_v10  ;;  %19289 = vst [vmem:[#allocation74_spill] sm:$0xff] %v16662_v32 }
 0x49c   : > { %8971 = vmatmul.mubr.bf16.gmra.mrb[4].mxu0 %v16615_v34  ;;  %9197 = vmatmul.mubr.bf16.gmra.mrb[4].mxu1 %v16615_v34  ;;  %19285 = vst [vmem:[#allocation70_spill] sm:$0xff] %v16644_v19  ;;  %19291 = vst [vmem:[#allocation76_spill] sm:$0xff] %v16672_v27 }
 0x49d   : > { %8980 = vmatprep.mubr.bf16.mxu0 %v16620_v58  ;;  %9206 = vmatprep.mubr.bf16.mxu1 %v16620_v58  ;;  %19292 = vst [vmem:[#allocation77_spill] sm:$0xff] %v16676_v33 }
 0x49e   : > { %9046 = vmatpush1.bf16.msra.mxu0 %v16623_v20  ;;  %9272 = vmatpush1.bf16.msra.mxu1 %v16626_v9  ;;  %v16656_v9 = vcombine.low %v7712_v5, %v7716_v59  ;;  %v7732_v20 = vld [vmem:[#allocation2 + $0xbc0] sm:$0xff]  ;;  %v7729_v59 = vld [vmem:[#allocation2 + $0xba8] sm:$0xff] }
 0x49f   : > { %9047 = vmatprep.subr.bf16.mxu0 %v16629_v49  ;;  %9273 = vmatprep.subr.bf16.mxu1 %v16632_v13  ;;  %v16666_v13 = vcombine.high %v7721_v24, %v7725_v4  ;;  %v7728_v49 = vld [vmem:[#allocation2 + $0xba0] sm:$0xff]  ;;  %v7733_v5 = vld [vmem:[#allocation2 + $0xbc8] sm:$0xff] }
 0x4a0   : > { %19287 = vst [vmem:[#allocation72_spill] sm:$0xff] %v16656_v9  ;;  %v16694_v24 = vcombine.low %v7729_v59, %v7733_v5 }
 0x4a1   : > { %19290 = vst [vmem:[#allocation75_spill] sm:$0xff] %v16666_v13 }
 0x4a2   : > { %9048 = vmatpush1.bf16.msra.mxu0 %v16638_v11  ;;  %9274 = vmatpush1.bf16.msra.mxu1 %v16642_v2  ;;  %v16684_v2 = vcombine.high %v7729_v59, %v7733_v5  ;;  %v7736_v11 = vld [vmem:[#allocation2 + $0xbe0] sm:$0xff]  ;;  %19296 = vst [vmem:[#allocation81_spill] sm:$0xff] %v16694_v24  ;;  %v16710_v59 = vcombine.low %v7737_v28, %v7741_v26 }
 0x4a3   : > { %9049 = vmatprep.subr.bf16.mxu0 %v16644_v19  ;;  %9275 = vmatprep.subr.bf16.mxu1 %v16650_v10  ;;  %v16678_v10 = vcombine.high %v7728_v49, %v7732_v20  ;;  %v16681_v19 = vld [vmem:[%s14970_s11 + $0xf0] ss:$16 sps:$4 sm:$0xff]   ;;  %v16696_v4 = vcombine.high %v7736_v11, %v7740_v29 }
 0x4a4   : > { %8981 = vmatmul.mubr.bf16.gmra.mrb[8].mxu0 %v16647_v1  ;;  %9207 = vmatmul.mubr.bf16.gmra.mrb[8].mxu1 %v16647_v1  ;;  %19294 = vst [vmem:[#allocation79_spill] sm:$0xff] %v16684_v2  ;;  %19300 = vst [vmem:[#allocation85_spill] sm:$0xff] %v16710_v59 }
 0x4a5   : > { %8990 = vmatprep.mubr.bf16.mxu0 %v16653_v12  ;;  %9216 = vmatprep.mubr.bf16.mxu1 %v16653_v12  ;;  %19293 = vst [vmem:[#allocation78_spill] sm:$0xff] %v16678_v10  ;;  %19297 = vst [vmem:[#allocation82_spill] sm:$0xff] %v16696_v4 }
 0x4a6   : > { %9050 = vmatpush1.bf16.msra.mxu0 %v16656_v9  ;;  %9276 = vmatpush1.bf16.msra.mxu1 %v16660_v37  ;;  %v16690_v37 = vcombine.low %v7728_v49, %v7732_v20  ;;  %v7745_v20 = vld [vmem:[#allocation2 + $0xc28] sm:$0x77]  ;;  %v16706_v49 = vcombine.low %v7736_v11, %v7740_v29  ;;  %v7554_v9 = vld [vmem:[#allocation2 + $0x630] sm:$0xff]  ;;  %v7555_v11 = vld [vmem:[#allocation2 + $0x638] sm:$0xff] }
 0x4a7   : > { %9051 = vmatprep.subr.bf16.mxu0 %v16662_v32  ;;  %9277 = vmatprep.subr.bf16.mxu1 %v16666_v13  ;;  %v16700_v13 = vcombine.high %v7737_v28, %v7741_v26  ;;  %v7744_v32 = vld [vmem:[#allocation2 + $0xc20] sm:$0x77] }
 0x4a8   : > { %19295 = vst [vmem:[#allocation80_spill] sm:$0xff] %v16690_v37  ;;  %19299 = vst [vmem:[#allocation84_spill] sm:$0xff] %v16706_v49  ;;  %v16712_v5 = vcombine.high %v7744_v32, %v7744_v32  ;;  %v16721_v29 = vld [vmem:[%s14970_s11 + $0x1d4] ss:$16 sps:$4 sm:$0xff]  }
 0x4a9   : > { %19298 = vst [vmem:[#allocation83_spill] sm:$0xff] %v16700_v13 }
 0x4aa   : > { %9052 = vmatpush1.bf16.msra.mxu0 %v16672_v27  ;;  %9278 = vmatpush1.bf16.msra.mxu1 %v16676_v33  ;;  %19301 = vst [vmem:[#allocation86_spill] sm:$0xff] %v16712_v5  ;;  %v16718_v33 = vcombine.high %v7745_v20, %v7745_v20  ;;  %v12990_v27 = vcombine.low %v7745_v20, %v7745_v20 }
 0x4ab   : > { %9053 = vmatprep.subr.bf16.mxu0 %v16678_v10  ;;  %9279 = vmatprep.subr.bf16.mxu1 %v16684_v2  ;;  %v12988_v2 = vcombine.low %v7744_v32, %v7744_v32  ;;  %v16715_v10 = vld [vmem:[%s14970_s11 + $0x1b0] ss:$16 sps:$4 sm:$0xff]  }
 0x4ac   : > { %8991 = vmatmul.mubr.bf16.gmra.mrb[12].mxu0 %v16681_v19  ;;  %9217 = vmatmul.mubr.bf16.gmra.mrb[12].mxu1 %v16681_v19  ;;  %19302 = vst [vmem:[#allocation87_spill] sm:$0xff] %v16718_v33  ;;  %v16736_v26 = vsel %vm1797_vm0, %v12990_v27, 0  ;;  %v16751_v27 = vld [vmem:[%s14970_s11 + $0x1f4] ss:$16 sps:$4 sm:$0xff]  }
 0x4ad   : > { %9000 = vmatprep.mubr.bf16.mxu0 %v16687_v54  ;;  %9226 = vmatprep.mubr.bf16.mxu1 %v16687_v54  ;;  %v16728_v32 = vsel %vm1797_vm0, %v12988_v2, 0  ;;  %19305 = vst [vmem:[#allocation90_spill] sm:$0xff] %v16736_v26  ;;  %v16747_v2 = vld [vmem:[%s14970_s11 + $0x1d0] ss:$16 sps:$4 sm:$0xff]  }
 0x4ae   : > { %9054 = vmatpush1.bf16.msra.mxu0 %v16690_v37  ;;  %9280 = vmatpush1.bf16.msra.mxu1 %v16694_v24  ;;  %v7558_v37 = vld [vmem:[#allocation2 + $0x650] sm:$0xff]  ;;  %v7559_v24 = vld [vmem:[#allocation2 + $0x658] sm:$0xff]  ;;  %19303 = vst [vmem:[#allocation88_spill] sm:$0xff] %v16728_v32 }
 0x4af   : > { %9055 = vmatprep.subr.bf16.mxu0 %v16696_v4  ;;  %9281 = vmatprep.subr.bf16.mxu1 %v16700_v13  ;;  %v16730_v28 = vcombine.high %v7554_v9, %v7558_v37  ;;  %v16738_v20 = vcombine.high %v7555_v11, %v7559_v24  ;;  %v7567_v13 = vld [vmem:[#allocation2 + $0x698] sm:$0xff]  ;;  %v16782_v4 = vcombine.low %v7554_v9, %v7558_v37 }
 0x4b0   : > { %v16784_v31 = vcombine.low %v7555_v11, %v7559_v24  ;;  %v16802_v24 = vcombine.high %v7570_v52, %v7574_v16  ;;  %v16807_v11 = vcombine.high %v7571_v53, %v7575_v50 }
 0x4b1   : > { %19304 = vst [vmem:[#allocation89_spill] sm:$0xff] %v16730_v28  ;;  %19306 = vst [vmem:[#allocation91_spill] sm:$0xff] %v16738_v20 }
 0x4b2   : > { %9056 = vmatpush1.bf16.msra.mxu0 %v16706_v49  ;;  %9282 = vmatpush1.bf16.msra.mxu1 %v16710_v59  ;;  %v16780_v59 = vld [vmem:[%s14970_s11 + $0x98] ss:$16 sps:$4 sm:$0xff]   ;;  %19307 = vst [vmem:[#allocation92_spill] sm:$0xff] %v16782_v4  ;;  %19308 = vst [vmem:[#allocation93_spill] sm:$0xff] %v16784_v31 }
 0x4b3   : > { %12996 = vmatprep.subr.msk.bf16.mxu0 %vm1797_vm0, %v16712_v5  ;;  %13005 = vmatprep.subr.msk.bf16.mxu1 %vm1797_vm0, %v16718_v33  ;;  %v7562_v33 = vld [vmem:[#allocation2 + $0x670] sm:$0xff]  ;;  %v7563_v49 = vld [vmem:[#allocation2 + $0x678] sm:$0xff]  ;;  %19313 = vst [vmem:[#allocation98_spill] sm:$0xff] %v16802_v24  ;;  %19314 = vst [vmem:[#allocation99_spill] sm:$0xff] %v16807_v11 }
 0x4b4   : > { %9001 = vmatmul.mubr.bf16.gmra.mrb[32].mxu0 %v16715_v10  ;;  %9227 = vmatmul.mubr.bf16.gmra.mrb[32].mxu1 %v16715_v10  ;;  %v7566_v5 = vld [vmem:[#allocation2 + $0x690] sm:$0xff]  ;;  %v16788_v22 = vcombine.high %v7563_v49, %v7567_v13  ;;  %v16800_v37 = vcombine.low %v7563_v49, %v7567_v13  ;;  %v7583_v13 = vld [vmem:[#allocation2 + $0x718] sm:$0xff]  ;;  %v16815_v49 = vcombine.low %v7570_v52, %v7574_v16 }
 0x4b5   : > { %9010 = vmatprep.mubr.bf16.mxu0 %v16721_v29  ;;  %9236 = vmatprep.mubr.bf16.mxu1 %v16721_v29  ;;  %v16786_v8 = vcombine.high %v7562_v33, %v7566_v5  ;;  %v16796_v9 = vcombine.low %v7562_v33, %v7566_v5  ;;  %v16812_v33 = vld [vmem:[%s14970_s11 + $0xb8] ss:$16 sps:$4 sm:$0xff]  }
 0x4b6   : > { %9058 = vmatpush1.bf16.msra.mxu0 %v16728_v32  ;;  %9284 = vmatpush1.bf16.msra.mxu1 %v16736_v26  ;;  %v16758_v32 = vld [vmem:[%s14970_s11 + $0x1f0] ss:$16 sps:$4 sm:$0xff]   ;;  %v16761_v26 = vld [vmem:[%s14970_s11 + $0x214] ss:$16 sps:$4 sm:$0xff]   ;;  %19310 = vst [vmem:[#allocation95_spill] sm:$0xff] %v16788_v22  ;;  %19312 = vst [vmem:[#allocation97_spill] sm:$0xff] %v16800_v37 }
 0x4b7   : > { %9380 = vmatprep.subr.bf16.mxu0 %v16730_v28  ;;  %9606 = vmatprep.subr.bf16.mxu1 %v16738_v20  ;;  %v16768_v20 = vld [vmem:[%s14970_s11 + $0x210] ss:$16 sps:$4 sm:$0xff]   ;;  %v16771_v28 = vld [vmem:[%s14970_s11 + $0x9c] ss:$16 sps:$4 sm:$0xff]   ;;  %19309 = vst [vmem:[#allocation94_spill] sm:$0xff] %v16786_v8  ;;  %19311 = vst [vmem:[#allocation96_spill] sm:$0xff] %v16796_v9 }
 0x4b8   : > { %v7579_v5 = vld [vmem:[#allocation2 + $0x6f8] sm:$0xff]  ;;  %19315 = vst [vmem:[#allocation100_spill] sm:$0xff] %v16815_v49 }
 0x4b9   : > { %v7587_v16 = vld [vmem:[#allocation2 + $0x738] sm:$0xff] }
 0x4ba   : > { %v7591_v52 = vld [vmem:[#allocation2 + $0x758] sm:$0xff] }
 0x4bc   : > { %9011 = vmatmul.mubr.bf16.gmra.mrb[36].mxu0 %v16747_v2  ;;  %9237 = vmatmul.mubr.bf16.gmra.mrb[36].mxu1 %v16747_v2 }
 0x4bd   : > { %9020 = vmatprep.mubr.bf16.mxu0 %v16751_v27  ;;  %9246 = vmatprep.mubr.bf16.mxu1 %v16751_v27 }
 0x4c4   : > { %9021 = vmatmul.mubr.bf16.gmra.mrb[40].mxu0 %v16758_v32  ;;  %9247 = vmatmul.mubr.bf16.gmra.mrb[40].mxu1 %v16758_v32 }
 0x4c5   : > { %9030 = vmatprep.mubr.bf16.mxu0 %v16761_v26  ;;  %9256 = vmatprep.mubr.bf16.mxu1 %v16761_v26 }
 0x4cc   : > { %9031 = vmatmul.mubr.bf16.gmra.mrb[44].mxu0 %v16768_v20  ;;  %9257 = vmatmul.mubr.bf16.gmra.mrb[44].mxu1 %v16768_v20 }
 0x4cd   : > { %12997 = vmatprep.mubr.msk.bf16.mxu0 %vm1748_vm1, %v16771_v28  ;;  %13006 = vmatprep.mubr.msk.bf16.mxu1 %vm1748_vm1, %v16771_v28 }
 0x4d4   : > { %9074 = vmatmul.mubr.bf16.vlgmr.msra.gmra.mrb[0].mxu0 %v16780_v59  ;;  %9300 = vmatmul.mubr.bf16.vlgmr.msra.gmra.mrb[0].mxu1 %v16780_v59 }
 0x4d5   : > { %9381 = vmatpush1.bf16.msra.mxu0 %v16782_v4  ;;  %9607 = vmatpush1.bf16.msra.mxu1 %v16784_v31  ;;  %v7582_v4 = vld [vmem:[#allocation2 + $0x710] sm:$0xff]  ;;  %v16824_v31 = vcombine.high %v7579_v5, %v7583_v13 }
 0x4d6   : > { %9382 = vmatprep.subr.bf16.mxu0 %v16786_v8  ;;  %9608 = vmatprep.subr.bf16.mxu1 %v16788_v22  ;;  %v16819_v22 = vcombine.low %v7571_v53, %v7575_v50  ;;  %v16821_v8 = vcombine.high %v7578_v60, %v7582_v4  ;;  %v16832_v50 = vcombine.low %v7578_v60, %v7582_v4  ;;  %v16848_v60 = vld [vmem:[%s14970_s11 + $0xd8] ss:$16 sps:$4 sm:$0xff]  }
 0x4d7   : > { %12998 = vmatprep.mubr.msk.bf16.mxu0 %vm1748_vm1, %v16791_v42  ;;  %13007 = vmatprep.mubr.msk.bf16.mxu1 %vm1748_vm1, %v16791_v42  ;;  %19318 = vst [vmem:[#allocation103_spill] sm:$0xff] %v16824_v31  ;;  %v16836_v53 = vcombine.low %v7579_v5, %v7583_v13  ;;  %v7595_v4 = vld [vmem:[#allocation2 + $0x778] sm:$0xff]  ;;  %v16851_v13 = vcombine.low %v7586_v21, %v7590_v3 }
 0x4d8   : > { %19316 = vst [vmem:[#allocation101_spill] sm:$0xff] %v16819_v22  ;;  %19317 = vst [vmem:[#allocation102_spill] sm:$0xff] %v16821_v8  ;;  %v7599_v5 = vld [vmem:[#allocation2 + $0x798] sm:$0xff] }
 0x4d9   : > { %9383 = vmatpush1.bf16.msra.mxu0 %v16796_v9  ;;  %9609 = vmatpush1.bf16.msra.mxu1 %v16800_v37  ;;  %19319 = vst [vmem:[#allocation104_spill] sm:$0xff] %v16832_v50  ;;  %19320 = vst [vmem:[#allocation105_spill] sm:$0xff] %v16836_v53  ;;  %v7594_v37 = vld [vmem:[#allocation2 + $0x770] sm:$0xff]  ;;  %v16863_v9 = vld [vmem:[%s14970_s11 + $0xfc] ss:$16 sps:$4 sm:$0xff]  }
 0x4da   : > { %9384 = vmatprep.subr.bf16.mxu0 %v16802_v24  ;;  %9610 = vmatprep.subr.bf16.mxu1 %v16807_v11  ;;  %v16838_v11 = vcombine.high %v7586_v21, %v7590_v3  ;;  %v16843_v24 = vcombine.high %v7587_v16, %v7591_v52  ;;  %19323 = vst [vmem:[#allocation108_spill] sm:$0xff] %v16851_v13  ;;  %19327 = vst [vmem:[#allocation112_spill] sm:$0xff] %v16863_v9  ;;  %v7603_v21 = vld [vmem:[#allocation2 + $0x7b8] sm:$0xff] }
 0x4db   : > { %v7607_v3 = vld [vmem:[#allocation2 + $0x7d8] sm:$0xff] }
 0x4dc   : > { %9084 = vmatmul.mubr.bf16.gmra.mrb[4].mxu0 %v16812_v33  ;;  %9310 = vmatmul.mubr.bf16.gmra.mrb[4].mxu1 %v16812_v33  ;;  %19321 = vst [vmem:[#allocation106_spill] sm:$0xff] %v16838_v11  ;;  %19322 = vst [vmem:[#allocation107_spill] sm:$0xff] %v16843_v24 }
 0x4dd   : > { %9385 = vmatpush1.bf16.msra.mxu0 %v16815_v49  ;;  %9611 = vmatpush1.bf16.msra.mxu1 %v16819_v22  ;;  %v7598_v49 = vld [vmem:[#allocation2 + $0x790] sm:$0xff]  ;;  %v16860_v22 = vcombine.high %v7595_v4, %v7599_v5 }
 0x4de   : > { %9386 = vmatprep.subr.bf16.mxu0 %v16821_v8  ;;  %9612 = vmatprep.subr.bf16.mxu1 %v16824_v31  ;;  %v16855_v31 = vcombine.low %v7587_v16, %v7591_v52  ;;  %v16857_v8 = vcombine.high %v7594_v37, %v7598_v49  ;;  %v16868_v16 = vcombine.low %v7594_v37, %v7598_v49  ;;  %v16884_v37 = vld [vmem:[%s14970_s11 + $0xf8] ss:$16 sps:$4 sm:$0xff]  }
 0x4df   : > { %12999 = vmatprep.mubr.msk.bf16.mxu0 %vm1748_vm1, %v16827_v25  ;;  %13008 = vmatprep.mubr.msk.bf16.mxu1 %vm1748_vm1, %v16827_v25  ;;  %19326 = vst [vmem:[#allocation111_spill] sm:$0xff] %v16860_v22  ;;  %v16872_v52 = vcombine.low %v7595_v4, %v7599_v5  ;;  %19332 = vst [vmem:[#allocation117_spill] sm:$0xff] %v16884_v37  ;;  %v7611_v49 = vld [vmem:[#allocation2 + $0x7f8] sm:$0xff]  ;;  %v16887_v5 = vcombine.low %v7602_v41, %v7606_v14 }
 0x4e0   : > { %19324 = vst [vmem:[#allocation109_spill] sm:$0xff] %v16855_v31  ;;  %19325 = vst [vmem:[#allocation110_spill] sm:$0xff] %v16857_v8  ;;  %v7615_v4 = vld [vmem:[#allocation2 + $0x818] sm:$0xff] }
 0x4e1   : > { %9387 = vmatpush1.bf16.msra.mxu0 %v16832_v50  ;;  %9613 = vmatpush1.bf16.msra.mxu1 %v16836_v53  ;;  %19328 = vst [vmem:[#allocation113_spill] sm:$0xff] %v16868_v16  ;;  %19329 = vst [vmem:[#allocation114_spill] sm:$0xff] %v16872_v52  ;;  %v7610_v53 = vld [vmem:[#allocation2 + $0x7f0] sm:$0xff]  ;;  %v16899_v50 = vld [vmem:[%s14970_s11 + $0x1bc] ss:$16 sps:$4 sm:$0xff]  }
 0x4e2   : > { %9388 = vmatprep.subr.bf16.mxu0 %v16838_v11  ;;  %9614 = vmatprep.subr.bf16.mxu1 %v16843_v24  ;;  %v16874_v24 = vcombine.high %v7602_v41, %v7606_v14  ;;  %v16879_v11 = vcombine.high %v7603_v21, %v7607_v3  ;;  %19333 = vst [vmem:[#allocation118_spill] sm:$0xff] %v16887_v5  ;;  %19337 = vst [vmem:[#allocation122_spill] sm:$0xff] %v16899_v50  ;;  %v7619_v14 = vld [vmem:[#allocation2 + $0x838] sm:$0xff] }
 0x4e3   : > { %v7623_v41 = vld [vmem:[#allocation2 + $0x858] sm:$0xff] }
 0x4e4   : > { %9094 = vmatmul.mubr.bf16.gmra.mrb[8].mxu0 %v16848_v60  ;;  %9320 = vmatmul.mubr.bf16.gmra.mrb[8].mxu1 %v16848_v60  ;;  %19330 = vst [vmem:[#allocation115_spill] sm:$0xff] %v16874_v24  ;;  %19331 = vst [vmem:[#allocation116_spill] sm:$0xff] %v16879_v11 }
 0x4e5   : > { %9389 = vmatpush1.bf16.msra.mxu0 %v16851_v13  ;;  %9615 = vmatpush1.bf16.msra.mxu1 %v16855_v31  ;;  %v7614_v13 = vld [vmem:[#allocation2 + $0x810] sm:$0xff]  ;;  %v16896_v31 = vcombine.high %v7611_v49, %v7615_v4 }
 0x4e6   : > { %9390 = vmatprep.subr.bf16.mxu0 %v16857_v8  ;;  %9616 = vmatprep.subr.bf16.mxu1 %v16860_v22  ;;  %v16891_v22 = vcombine.low %v7603_v21, %v7607_v3  ;;  %v16893_v8 = vcombine.high %v7610_v53, %v7614_v13  ;;  %v16904_v21 = vcombine.low %v7610_v53, %v7614_v13  ;;  %v16920_v53 = vld [vmem:[%s14970_s11 + $0x1b8] ss:$16 sps:$4 sm:$0xff]  }
 0x4e7   : > { %13000 = vmatprep.mubr.msk.bf16.mxu0 %vm1748_vm1, %v16863_v9  ;;  %13009 = vmatprep.mubr.msk.bf16.mxu1 %vm1748_vm1, %v16863_v9  ;;  %19336 = vst [vmem:[#allocation121_spill] sm:$0xff] %v16896_v31  ;;  %v7622_v9 = vld [vmem:[#allocation2 + $0x850] sm:$0xff]  ;;  %v16908_v3 = vcombine.low %v7611_v49, %v7615_v4  ;;  %19342 = vst [vmem:[#allocation127_spill] sm:$0xff] %v16920_v53  ;;  %v7627_v13 = vld [vmem:[#allocation2 + $0x878] sm:$0xff] }
 0x4e8   : > { %19334 = vst [vmem:[#allocation119_spill] sm:$0xff] %v16891_v22  ;;  %19335 = vst [vmem:[#allocation120_spill] sm:$0xff] %v16893_v8  ;;  %v7631_v49 = vld [vmem:[#allocation2 + $0x898] sm:$0xff]  ;;  %v16923_v4 = vcombine.low %v7618_v38, %v7622_v9 }
 0x4e9   : > { %9391 = vmatpush1.bf16.msra.mxu0 %v16868_v16  ;;  %9617 = vmatpush1.bf16.msra.mxu1 %v16872_v52  ;;  %19338 = vst [vmem:[#allocation123_spill] sm:$0xff] %v16904_v21  ;;  %19339 = vst [vmem:[#allocation124_spill] sm:$0xff] %v16908_v3  ;;  %v7626_v52 = vld [vmem:[#allocation2 + $0x870] sm:$0xff]  ;;  %v16935_v16 = vld [vmem:[%s14970_s11 + $0x1dc] ss:$16 sps:$4 sm:$0xff]  }
 0x4ea   : > { %9392 = vmatprep.subr.bf16.mxu0 %v16874_v24  ;;  %9618 = vmatprep.subr.bf16.mxu1 %v16879_v11  ;;  %v16910_v11 = vcombine.high %v7618_v38, %v7622_v9  ;;  %v16915_v24 = vcombine.high %v7619_v14, %v7623_v41  ;;  %19343 = vst [vmem:[#allocation128_spill] sm:$0xff] %v16923_v4  ;;  %19347 = vst [vmem:[#allocation132_spill] sm:$0xff] %v16935_v16  ;;  %v7635_v38 = vld [vmem:[#allocation2 + $0x8b8] sm:$0xff] }
 0x4eb   : > { %v7639_v9 = vld [vmem:[#allocation2 + $0x8d8] sm:$0xff] }
 0x4ec   : > { %9104 = vmatmul.mubr.bf16.gmra.mrb[12].mxu0 %v16884_v37  ;;  %9330 = vmatmul.mubr.bf16.gmra.mrb[12].mxu1 %v16884_v37  ;;  %19340 = vst [vmem:[#allocation125_spill] sm:$0xff] %v16910_v11  ;;  %19341 = vst [vmem:[#allocation126_spill] sm:$0xff] %v16915_v24  ;;  %v7638_v37 = vld [vmem:[#allocation2 + $0x8d0] sm:$0xff] }
 0x4ed   : > { %9393 = vmatpush1.bf16.msra.mxu0 %v16887_v5  ;;  %9619 = vmatpush1.bf16.msra.mxu1 %v16891_v22  ;;  %v7630_v5 = vld [vmem:[#allocation2 + $0x890] sm:$0xff]  ;;  %v16932_v22 = vcombine.high %v7627_v13, %v7631_v49 }
 0x4ee   : > { %9394 = vmatprep.subr.bf16.mxu0 %v16893_v8  ;;  %9620 = vmatprep.subr.bf16.mxu1 %v16896_v31  ;;  %v16927_v31 = vcombine.low %v7619_v14, %v7623_v41  ;;  %v16929_v8 = vcombine.high %v7626_v52, %v7630_v5  ;;  %v16940_v14 = vcombine.low %v7626_v52, %v7630_v5  ;;  %v16956_v52 = vld [vmem:[%s14970_s11 + $0x1d8] ss:$16 sps:$4 sm:$0xff]  }
 0x4ef   : > { %13001 = vmatprep.mubr.msk.bf16.mxu0 %vm1748_vm1, %v16899_v50  ;;  %13010 = vmatprep.mubr.msk.bf16.mxu1 %vm1748_vm1, %v16899_v50  ;;  %19346 = vst [vmem:[#allocation131_spill] sm:$0xff] %v16932_v22  ;;  %v7634_v50 = vld [vmem:[#allocation2 + $0x8b0] sm:$0xff]  ;;  %v16944_v41 = vcombine.low %v7627_v13, %v7631_v49  ;;  %19352 = vst [vmem:[#allocation137_spill] sm:$0xff] %v16956_v52  ;;  %v7643_v5 = vld [vmem:[#allocation2 + $0x8f8] sm:$0xff] }
 0x4f0   : > { %19344 = vst [vmem:[#allocation129_spill] sm:$0xff] %v16927_v31  ;;  %19345 = vst [vmem:[#allocation130_spill] sm:$0xff] %v16929_v8  ;;  %v7647_v13 = vld [vmem:[#allocation2 + $0x918] sm:$0xff]  ;;  %v16959_v49 = vcombine.low %v7634_v50, %v7638_v37 }
 0x4f1   : > { %9395 = vmatpush1.bf16.msra.mxu0 %v16904_v21  ;;  %9621 = vmatpush1.bf16.msra.mxu1 %v16908_v3  ;;  %19348 = vst [vmem:[#allocation133_spill] sm:$0xff] %v16940_v14  ;;  %19349 = vst [vmem:[#allocation134_spill] sm:$0xff] %v16944_v41  ;;  %v7642_v3 = vld [vmem:[#allocation2 + $0x8f0] sm:$0xff]  ;;  %v16971_v21 = vld [vmem:[%s14970_s11 + $0x1fc] ss:$16 sps:$4 sm:$0xff]  }
 0x4f2   : > { %9396 = vmatprep.subr.bf16.mxu0 %v16910_v11  ;;  %9622 = vmatprep.subr.bf16.mxu1 %v16915_v24  ;;  %v16946_v24 = vcombine.high %v7634_v50, %v7638_v37  ;;  %v16951_v11 = vcombine.high %v7635_v38, %v7639_v9  ;;  %19353 = vst [vmem:[#allocation138_spill] sm:$0xff] %v16959_v49  ;;  %19357 = vst [vmem:[#allocation142_spill] sm:$0xff] %v16971_v21  ;;  %v7651_v50 = vld [vmem:[#allocation2 + $0x938] sm:$0xff] }
 0x4f3   : > { %v7655_v37 = vld [vmem:[#allocation2 + $0x958] sm:$0xff] }
 0x4f4   : > { %9114 = vmatmul.mubr.bf16.gmra.mrb[32].mxu0 %v16920_v53  ;;  %9340 = vmatmul.mubr.bf16.gmra.mrb[32].mxu1 %v16920_v53  ;;  %19350 = vst [vmem:[#allocation135_spill] sm:$0xff] %v16946_v24  ;;  %19351 = vst [vmem:[#allocation136_spill] sm:$0xff] %v16951_v11  ;;  %v7654_v53 = vld [vmem:[#allocation2 + $0x950] sm:$0xff] }
 0x4f5   : > { %9397 = vmatpush1.bf16.msra.mxu0 %v16923_v4  ;;  %9623 = vmatpush1.bf16.msra.mxu1 %v16927_v31  ;;  %v7646_v4 = vld [vmem:[#allocation2 + $0x910] sm:$0xff]  ;;  %v16968_v31 = vcombine.high %v7643_v5, %v7647_v13 }
 0x4f6   : > { %9398 = vmatprep.subr.bf16.mxu0 %v16929_v8  ;;  %9624 = vmatprep.subr.bf16.mxu1 %v16932_v22  ;;  %v16963_v22 = vcombine.low %v7635_v38, %v7639_v9  ;;  %v16965_v8 = vcombine.high %v7642_v3, %v7646_v4  ;;  %v16976_v38 = vcombine.low %v7642_v3, %v7646_v4  ;;  %v16992_v3 = vld [vmem:[%s14970_s11 + $0x1f8] ss:$16 sps:$4 sm:$0xff]  }
 0x4f7   : > { %13002 = vmatprep.mubr.msk.bf16.mxu0 %vm1748_vm1, %v16935_v16  ;;  %13011 = vmatprep.mubr.msk.bf16.mxu1 %vm1748_vm1, %v16935_v16  ;;  %19356 = vst [vmem:[#allocation141_spill] sm:$0xff] %v16968_v31  ;;  %v7650_v16 = vld [vmem:[#allocation2 + $0x930] sm:$0xff]  ;;  %v16980_v9 = vcombine.low %v7643_v5, %v7647_v13  ;;  %19362 = vst [vmem:[#allocation147_spill] sm:$0xff] %v16992_v3  ;;  %v7659_v4 = vld [vmem:[#allocation2 + $0x978] sm:$0xff] }
 0x4f8   : > { %19354 = vst [vmem:[#allocation139_spill] sm:$0xff] %v16963_v22  ;;  %19355 = vst [vmem:[#allocation140_spill] sm:$0xff] %v16965_v8  ;;  %v7663_v5 = vld [vmem:[#allocation2 + $0x998] sm:$0xff]  ;;  %v16995_v13 = vcombine.low %v7650_v16, %v7654_v53 }
 0x4f9   : > { %9399 = vmatpush1.bf16.msra.mxu0 %v16940_v14  ;;  %9625 = vmatpush1.bf16.msra.mxu1 %v16944_v41  ;;  %19358 = vst [vmem:[#allocation143_spill] sm:$0xff] %v16976_v38  ;;  %19359 = vst [vmem:[#allocation144_spill] sm:$0xff] %v16980_v9  ;;  %v7658_v41 = vld [vmem:[#allocation2 + $0x970] sm:$0xff]  ;;  %v17007_v14 = vld [vmem:[%s14970_s11 + $0x21c] ss:$16 sps:$4 sm:$0xff]  }
 0x4fa   : > { %9400 = vmatprep.subr.bf16.mxu0 %v16946_v24  ;;  %9626 = vmatprep.subr.bf16.mxu1 %v16951_v11  ;;  %v16982_v11 = vcombine.high %v7650_v16, %v7654_v53  ;;  %v16987_v24 = vcombine.high %v7651_v50, %v7655_v37  ;;  %19363 = vst [vmem:[#allocation148_spill] sm:$0xff] %v16995_v13  ;;  %19367 = vst [vmem:[#allocation152_spill] sm:$0xff] %v17007_v14  ;;  %v7667_v16 = vld [vmem:[#allocation2 + $0x9b8] sm:$0xff] }
 0x4fb   : > { %v7671_v53 = vld [vmem:[#allocation2 + $0x9d8] sm:$0xff] }
 0x4fc   : > { %9124 = vmatmul.mubr.bf16.gmra.mrb[36].mxu0 %v16956_v52  ;;  %9350 = vmatmul.mubr.bf16.gmra.mrb[36].mxu1 %v16956_v52  ;;  %19360 = vst [vmem:[#allocation145_spill] sm:$0xff] %v16982_v11  ;;  %19361 = vst [vmem:[#allocation146_spill] sm:$0xff] %v16987_v24  ;;  %v7670_v52 = vld [vmem:[#allocation2 + $0x9d0] sm:$0xff] }
 0x4fd   : > { %9401 = vmatpush1.bf16.msra.mxu0 %v16959_v49  ;;  %9627 = vmatpush1.bf16.msra.mxu1 %v16963_v22  ;;  %v7662_v49 = vld [vmem:[#allocation2 + $0x990] sm:$0xff]  ;;  %v17004_v22 = vcombine.high %v7659_v4, %v7663_v5 }
 0x4fe   : > { %9402 = vmatprep.subr.bf16.mxu0 %v16965_v8  ;;  %9628 = vmatprep.subr.bf16.mxu1 %v16968_v31  ;;  %v16999_v31 = vcombine.low %v7651_v50, %v7655_v37  ;;  %v17001_v8 = vcombine.high %v7658_v41, %v7662_v49  ;;  %v17012_v50 = vcombine.low %v7658_v41, %v7662_v49  ;;  %v17028_v41 = vld [vmem:[%s14970_s11 + $0x218] ss:$16 sps:$4 sm:$0xff]  }
 0x4ff   : > { %13003 = vmatprep.mubr.msk.bf16.mxu0 %vm1748_vm1, %v16971_v21  ;;  %13012 = vmatprep.mubr.msk.bf16.mxu1 %vm1748_vm1, %v16971_v21  ;;  %19366 = vst [vmem:[#allocation151_spill] sm:$0xff] %v17004_v22  ;;  %v7666_v21 = vld [vmem:[#allocation2 + $0x9b0] sm:$0xff]  ;;  %v17016_v37 = vcombine.low %v7659_v4, %v7663_v5  ;;  %v7675_v49 = vld [vmem:[#allocation2 + $0x9f8] sm:$0xff]  ;;  %v17035_v5 = vcombine.low %v7667_v16, %v7671_v53 }
 0x500   : > { %19364 = vst [vmem:[#allocation149_spill] sm:$0xff] %v16999_v31  ;;  %19365 = vst [vmem:[#allocation150_spill] sm:$0xff] %v17001_v8  ;;  %v17031_v4 = vcombine.low %v7666_v21, %v7670_v52 }
 0x501   : > { %9403 = vmatpush1.bf16.msra.mxu0 %v16976_v38  ;;  %9629 = vmatpush1.bf16.msra.mxu1 %v16980_v9  ;;  %19368 = vst [vmem:[#allocation153_spill] sm:$0xff] %v17012_v50  ;;  %v7674_v9 = vld [vmem:[#allocation2 + $0x9f0] sm:$0xff]  ;;  %19371 = vst [vmem:[#allocation156_spill] sm:$0xff] %v17035_v5 }
 0x502   : > { %9404 = vmatprep.subr.bf16.mxu0 %v16982_v11  ;;  %9630 = vmatprep.subr.bf16.mxu1 %v16987_v24  ;;  %v17018_v24 = vcombine.high %v7666_v21, %v7670_v52  ;;  %v17023_v11 = vcombine.high %v7667_v16, %v7671_v53  ;;  %v7678_v38 = vld [vmem:[#allocation2 + $0xa10] sm:$0xff]  ;;  %19370 = vst [vmem:[#allocation155_spill] sm:$0xff] %v17031_v4 }
 0x503   : > { %v17045_v21 = vcombine.low %v7674_v9, %v7678_v38 }
 0x504   : > { %9134 = vmatmul.mubr.bf16.gmra.mrb[40].mxu0 %v16992_v3  ;;  %9360 = vmatmul.mubr.bf16.gmra.mrb[40].mxu1 %v16992_v3  ;;  %19369 = vst [vmem:[#allocation154_spill] sm:$0xff] %v17023_v11  ;;  %v7683_v3 = vld [vmem:[#allocation2 + $0xa38] sm:$0xff] }
 0x505   : > { %9405 = vmatpush1.bf16.msra.mxu0 %v16995_v13  ;;  %9631 = vmatpush1.bf16.msra.mxu1 %v16999_v31  ;;  %v7682_v13 = vld [vmem:[#allocation2 + $0xa30] sm:$0xff] }
 0x506   : > { %9406 = vmatprep.subr.bf16.mxu0 %v17001_v8  ;;  %9632 = vmatprep.subr.bf16.mxu1 %v17004_v22  ;;  %v7679_v8 = vld [vmem:[#allocation2 + $0xa18] sm:$0xff]  ;;  %v17037_v22 = vcombine.high %v7674_v9, %v7678_v38 }
 0x507   : > { %13004 = vmatprep.mubr.msk.bf16.mxu0 %vm1748_vm1, %v17007_v14  ;;  %13013 = vmatprep.mubr.msk.bf16.mxu1 %vm1748_vm1, %v17007_v14  ;;  %v17040_v31 = vcombine.high %v7675_v49, %v7679_v8  ;;  %v7686_v14 = vld [vmem:[#allocation2 + $0xa50] sm:$0xff]  ;;  %v17049_v52 = vcombine.low %v7675_v49, %v7679_v8  ;;  %v7691_v9 = vld [vmem:[#allocation2 + $0xa78] sm:$0xff] }
 0x508   : > { %19372 = vst [vmem:[#allocation157_spill] sm:$0xff] %v17037_v22  ;;  %v17051_v16 = vcombine.high %v7682_v13, %v7686_v14  ;;  %v17059_v38 = vcombine.low %v7682_v13, %v7686_v14  ;;  %v7699_v14 = vld [vmem:[#allocation2 + $0xab8] sm:$0xff] }
 0x509   : > { %9407 = vmatpush1.bf16.msra.mxu0 %v17012_v50  ;;  %9633 = vmatpush1.bf16.msra.mxu1 %v17016_v37  ;;  %19373 = vst [vmem:[#allocation158_spill] sm:$0xff] %v17040_v31  ;;  %v7687_v50 = vld [vmem:[#allocation2 + $0xa58] sm:$0xff]  ;;  %19374 = vst [vmem:[#allocation159_spill] sm:$0xff] %v17049_v52 }
 0x50a   : > { %9408 = vmatprep.subr.bf16.mxu0 %v17018_v24  ;;  %9634 = vmatprep.subr.bf16.mxu1 %v17023_v11  ;;  %v17055_v53 = vcombine.high %v7683_v3, %v7687_v50  ;;  %v7690_v11 = vld [vmem:[#allocation2 + $0xa70] sm:$0xff]  ;;  %19376 = vst [vmem:[#allocation161_spill] sm:$0xff] %v17059_v38  ;;  %v17063_v8 = vcombine.low %v7683_v3, %v7687_v50  ;;  %v7703_v13 = vld [vmem:[#allocation2 + $0xad8] sm:$0xff] }
 0x50c   : > { %9144 = vmatmul.mubr.bf16.gmra.mrb[44].mxu0 %v17028_v41  ;;  %9370 = vmatmul.mubr.bf16.gmra.mrb[44].mxu1 %v17028_v41  ;;  %19375 = vst [vmem:[#allocation160_spill] sm:$0xff] %v17055_v53  ;;  %19377 = vst [vmem:[#allocation162_spill] sm:$0xff] %v17063_v8 }
 0x50d   : > { %9409 = vmatpush1.bf16.msra.mxu0 %v17031_v4  ;;  %9635 = vmatpush1.bf16.msra.mxu1 %v17035_v5  ;;  %v7694_v4 = vld [vmem:[#allocation2 + $0xa90] sm:$0xff] }
 0x50e   : > { %9410 = vmatprep.subr.bf16.mxu0 %v17037_v22  ;;  %9636 = vmatprep.subr.bf16.mxu1 %v17040_v31  ;;  %v7695_v22 = vld [vmem:[#allocation2 + $0xa98] sm:$0xff]  ;;  %v17066_v49 = vcombine.high %v7690_v11, %v7694_v4  ;;  %v7698_v31 = vld [vmem:[#allocation2 + $0xab0] sm:$0xff] }
 0x50f   : > { %9412 = vmatprep.mubr.bf16.mxu0 %v16583_v56  ;;  %9638 = vmatprep.mubr.bf16.mxu1 %v16583_v56  ;;  %v7702_v56 = vld [vmem:[#allocation2 + $0xad0] sm:$0xff]  ;;  %v17069_v5 = vcombine.high %v7691_v9, %v7695_v22  ;;  %v17077_v3 = vcombine.low %v7691_v9, %v7695_v22  ;;  %v17091_v9 = vcombine.low %v7699_v14, %v7703_v13 }
 0x510   : > { %19378 = vst [vmem:[#allocation163_spill] sm:$0xff] %v17066_v49  ;;  %v17079_v50 = vcombine.high %v7698_v31, %v7702_v56  ;;  %v17088_v22 = vcombine.low %v7698_v31, %v7702_v56  ;;  %v7715_v31 = vld [vmem:[#allocation2 + $0xb38] sm:$0xff] }
 0x511   : > { %9411 = vmatpush1.bf16.msra.mxu0 %v17045_v21  ;;  %9637 = vmatpush1.bf16.msra.mxu1 %v17049_v52  ;;  %19379 = vst [vmem:[#allocation164_spill] sm:$0xff] %v17069_v5  ;;  %v17073_v52 = vcombine.low %v7690_v11, %v7694_v4  ;;  %19381 = vst [vmem:[#allocation166_spill] sm:$0xff] %v17077_v3  ;;  %v7707_v11 = vld [vmem:[#allocation2 + $0xaf8] sm:$0xff] }
 0x512   : > { %9493 = vmatprep.subr.bf16.mxu0 %v17051_v16  ;;  %9719 = vmatprep.subr.bf16.mxu1 %v17055_v53  ;;  %19382 = vst [vmem:[#allocation167_spill] sm:$0xff] %v17079_v50  ;;  %v17083_v53 = vcombine.high %v7699_v14, %v7703_v13  ;;  %v7711_v4 = vld [vmem:[#allocation2 + $0xb18] sm:$0xff] }
 0x513   : > { %19380 = vst [vmem:[#allocation165_spill] sm:$0xff] %v17073_v52  ;;  %v7719_v56 = vld [vmem:[#allocation2 + $0xb58] sm:$0xff]  ;;  %v17107_v13 = vcombine.low %v7707_v11, %v7711_v4 }
 0x514   : > { %9413 = vmatmul.mubr.bf16.vlgmr.msra.gmra.mrb[64].mxu0 %v16590_v40  ;;  %9639 = vmatmul.mubr.bf16.vlgmr.msra.gmra.mrb[64].mxu1 %v16590_v40  ;;  %19383 = vst [vmem:[#allocation168_spill] sm:$0xff] %v17083_v53  ;;  %v7706_v40 = vld [vmem:[#allocation2 + $0xaf0] sm:$0xff] }
 0x515   : > { %9494 = vmatpush1.bf16.msra.mxu0 %v17059_v38  ;;  %9720 = vmatpush1.bf16.msra.mxu1 %v17063_v8  ;;  %v7710_v38 = vld [vmem:[#allocation2 + $0xb10] sm:$0xff]  ;;  %19387 = vst [vmem:[#allocation172_spill] sm:$0xff] %v17107_v13  ;;  %v7723_v8 = vld [vmem:[#allocation2 + $0xb78] sm:$0xff] }
 0x516   : > { %9422 = vmatprep.mubr.bf16.mxu0 %v16593_v0  ;;  %9648 = vmatprep.mubr.bf16.mxu1 %v16593_v0  ;;  %v17094_v0 = vcombine.high %v7706_v40, %v7710_v38  ;;  %v17103_v14 = vcombine.low %v7706_v40, %v7710_v38  ;;  %v17119_v40 = vcombine.low %v7715_v31, %v7719_v56 }
 0x517   : > { %9495 = vmatprep.subr.bf16.mxu0 %v17066_v49  ;;  %9721 = vmatprep.subr.bf16.mxu1 %v17069_v5  ;;  %v17097_v5 = vcombine.high %v7707_v11, %v7711_v4  ;;  %v7714_v49 = vld [vmem:[#allocation2 + $0xb30] sm:$0xff] }
 0x518   : > { %19384 = vst [vmem:[#allocation169_spill] sm:$0xff] %v17094_v0  ;;  %19386 = vst [vmem:[#allocation171_spill] sm:$0xff] %v17103_v14 }
 0x519   : > { %9496 = vmatpush1.bf16.msra.mxu0 %v17073_v52  ;;  %9722 = vmatpush1.bf16.msra.mxu1 %v17077_v3  ;;  %19385 = vst [vmem:[#allocation170_spill] sm:$0xff] %v17097_v5  ;;  %v7718_v52 = vld [vmem:[#allocation2 + $0xb50] sm:$0xff] }
 0x51a   : > { %9497 = vmatprep.subr.bf16.mxu0 %v17079_v50  ;;  %9723 = vmatprep.subr.bf16.mxu1 %v17083_v53  ;;  %v17109_v53 = vcombine.high %v7714_v49, %v7718_v52  ;;  %v7722_v50 = vld [vmem:[#allocation2 + $0xb70] sm:$0xff]  ;;  %v17115_v38 = vcombine.low %v7714_v49, %v7718_v52  ;;  %v7731_v52 = vld [vmem:[#allocation2 + $0xbb8] sm:$0xff] }
 0x51b   : > { %v7726_v3 = vld [vmem:[#allocation2 + $0xb90] sm:$0xff]  ;;  %v7735_v49 = vld [vmem:[#allocation2 + $0xbd8] sm:$0xff] }
 0x51c   : > { %9423 = vmatmul.mubr.bf16.gmra.mrb[68].mxu0 %v16615_v34  ;;  %9649 = vmatmul.mubr.bf16.gmra.mrb[68].mxu1 %v16615_v34  ;;  %19388 = vst [vmem:[#allocation173_spill] sm:$0xff] %v17109_v53  ;;  %v17112_v34 = vcombine.high %v7715_v31, %v7719_v56  ;;  %v17121_v11 = vcombine.high %v7722_v50, %v7726_v3 }
 0x51d   : > { %9432 = vmatprep.mubr.bf16.mxu0 %v16620_v58  ;;  %9658 = vmatprep.mubr.bf16.mxu1 %v16620_v58  ;;  %v7727_v58 = vld [vmem:[#allocation2 + $0xb98] sm:$0xff]  ;;  %v17131_v31 = vcombine.low %v7722_v50, %v7726_v3 }
 0x51e   : > { %9498 = vmatpush1.bf16.msra.mxu0 %v17088_v22  ;;  %9724 = vmatpush1.bf16.msra.mxu1 %v17091_v9  ;;  %19389 = vst [vmem:[#allocation174_spill] sm:$0xff] %v17112_v34  ;;  %v17125_v4 = vcombine.high %v7723_v8, %v7727_v58  ;;  %v17135_v56 = vcombine.low %v7723_v8, %v7727_v58 }
 0x51f   : > { %9499 = vmatprep.subr.bf16.mxu0 %v17094_v0  ;;  %9725 = vmatprep.subr.bf16.mxu1 %v17097_v5  ;;  %v7730_v5 = vld [vmem:[#allocation2 + $0xbb0] sm:$0xff]  ;;  %v17147_v8 = vcombine.low %v7731_v52, %v7735_v49 }
 0x520   : > { %19390 = vst [vmem:[#allocation175_spill] sm:$0xff] %v17125_v4  ;;  %v7734_v0 = vld [vmem:[#allocation2 + $0xbd0] sm:$0xff] }
 0x521   : > { %v17143_v3 = vcombine.low %v7730_v5, %v7734_v0 }
 0x522   : > { %9500 = vmatpush1.bf16.msra.mxu0 %v17103_v14  ;;  %9726 = vmatpush1.bf16.msra.mxu1 %v17107_v13  ;;  %v7742_v13 = vld [vmem:[#allocation2 + $0xc10] sm:$0xff]  ;;  %v7739_v14 = vld [vmem:[#allocation2 + $0xbf8] sm:$0xff] }
 0x523   : > { %9501 = vmatprep.subr.bf16.mxu0 %v17109_v53  ;;  %9727 = vmatprep.subr.bf16.mxu1 %v17112_v34  ;;  %v17137_v34 = vcombine.high %v7730_v5, %v7734_v0  ;;  %v7738_v53 = vld [vmem:[#allocation2 + $0xbf0] sm:$0xff]  ;;  %v7747_v5 = vld [vmem:[#allocation2 + $0xc38] sm:$0x77] }
 0x524   : > { %9433 = vmatmul.mubr.bf16.gmra.mrb[72].mxu0 %v16647_v1  ;;  %9659 = vmatmul.mubr.bf16.gmra.mrb[72].mxu1 %v16647_v1  ;;  %v17140_v1 = vcombine.high %v7731_v52, %v7735_v49  ;;  %v17149_v50 = vcombine.high %v7738_v53, %v7742_v13  ;;  %v17159_v0 = vcombine.low %v7738_v53, %v7742_v13  ;;  %v7185_v13 = vld [vmem:[%s14970_s11 + $0x30] sm:$0xff] }
 0x525   : > { %9442 = vmatprep.mubr.bf16.mxu0 %v16653_v12  ;;  %9668 = vmatprep.mubr.bf16.mxu1 %v16653_v12  ;;  %19391 = vst [vmem:[#allocation176_spill] sm:$0xff] %v17137_v34  ;;  %v7743_v12 = vld [vmem:[#allocation2 + $0xc18] sm:$0xff] }
 0x526   : > { %9502 = vmatpush1.bf16.msra.mxu0 %v17115_v38  ;;  %9728 = vmatpush1.bf16.msra.mxu1 %v17119_v40  ;;  %19392 = vst [vmem:[#allocation177_spill] sm:$0xff] %v17140_v1  ;;  %v17153_v58 = vcombine.high %v7739_v14, %v7743_v12  ;;  %19393 = vst [vmem:[#allocation178_spill] sm:$0xff] %v17159_v0  ;;  %v17163_v52 = vcombine.low %v7739_v14, %v7743_v12  ;;  %v19427_v12 = vld [vmem:[#allocation41_spill] sm:$0xff] }
 0x527   : > { %9503 = vmatprep.subr.bf16.mxu0 %v17121_v11  ;;  %9729 = vmatprep.subr.bf16.mxu1 %v17125_v4  ;;  %v7746_v4 = vld [vmem:[#allocation2 + $0xc30] sm:$0x77] }
 0x528   : > { %19394 = vst [vmem:[#allocation179_spill] sm:$0xff] %v17163_v52  ;;  %v17165_v49 = vcombine.high %v7746_v4, %v7746_v4 }
 0x52a   : > { %9504 = vmatpush1.bf16.msra.mxu0 %v17131_v31  ;;  %9730 = vmatpush1.bf16.msra.mxu1 %v17135_v56  ;;  %19395 = vst [vmem:[#allocation180_spill] sm:$0xff] %v17165_v49 }
 0x52b   : > { %9505 = vmatprep.subr.bf16.mxu0 %v17137_v34  ;;  %9731 = vmatprep.subr.bf16.mxu1 %v17140_v1  ;;  %v12992_v1 = vcombine.low %v7746_v4, %v7746_v4  ;;  %v12994_v34 = vcombine.low %v7747_v5, %v7747_v5  ;;  %v7183_v4 = vld [vmem:[%s14970_s11 + $0x20] sm:$0xff] }
 0x52c   : > { %9443 = vmatmul.mubr.bf16.gmra.mrb[76].mxu0 %v16681_v19  ;;  %9669 = vmatmul.mubr.bf16.gmra.mrb[76].mxu1 %v16681_v19  ;;  %v17168_v19 = vcombine.high %v7747_v5, %v7747_v5  ;;  %v19428_v5 = vld [vmem:[#allocation42_spill] sm:$0xff] }
 0x52d   : > { %9452 = vmatprep.mubr.bf16.mxu0 %v16687_v54  ;;  %9678 = vmatprep.mubr.bf16.mxu1 %v16687_v54  ;;  %v17175_v54 = vsel %vm1797_vm0, %v12992_v1, 0  ;;  %v17181_v53 = vsel %vm1797_vm0, %v12994_v34, 0  ;;  %v19425_v34 = vld [vmem:[#allocation39_spill] sm:$0xff]  ;;  %v19426_v1 = vld [vmem:[#allocation40_spill] sm:$0xff] }
 0x52e   : > { %9506 = vmatpush1.bf16.msra.mxu0 %v17143_v3  ;;  %9732 = vmatpush1.bf16.msra.mxu1 %v17147_v8  ;;  %19396 = vst [vmem:[#allocation181_spill] sm:$0xff] %v17168_v19  ;;  %19397 = vst [vmem:[#allocation182_spill] sm:$0xff] %v17175_v54 }
 0x52f   : > { %9507 = vmatprep.subr.bf16.mxu0 %v17149_v50  ;;  %9733 = vmatprep.subr.bf16.mxu1 %v17153_v58  ;;  %19398 = vst [vmem:[#allocation183_spill] sm:$0xff] %v17181_v53 }
 0x532   : > { %9508 = vmatpush1.bf16.msra.mxu0 %v17159_v0  ;;  %9734 = vmatpush1.bf16.msra.mxu1 %v17163_v52 }
 0x533   : > { %13014 = vmatprep.subr.msk.bf16.mxu0 %vm1797_vm0, %v17165_v49  ;;  %13023 = vmatprep.subr.msk.bf16.mxu1 %vm1797_vm0, %v17168_v19  ;;  %v7180_v19 = vld [vmem:[%s14970_s11 + $0x8] sm:$0xff]  ;;  %v7182_v49 = vld [vmem:[%s14970_s11 + $0x18] sm:$0xff] }
 0x534   : > { %9453 = vmatmul.mubr.bf16.gmra.mrb[96].mxu0 %v16715_v10  ;;  %9679 = vmatmul.mubr.bf16.gmra.mrb[96].mxu1 %v16715_v10  ;;  %v7233_v52 = vshll.u32 %v7180_v19, 16 }
 0x535   : > { %9462 = vmatprep.mubr.bf16.mxu0 %v16721_v29  ;;  %9688 = vmatprep.mubr.bf16.mxu1 %v16721_v29 }
 0x536   : > { %9510 = vmatpush1.bf16.msra.mxu0 %v17175_v54  ;;  %9736 = vmatpush1.bf16.msra.mxu1 %v17181_v53 }
 0x537   : > { %9976 = vmatprep.subr.bf16.mxu0 %v16224_v51  ;;  %10202 = vmatprep.subr.bf16.mxu1 %v16231_v44  ;;  %v19401_v51 = vld [vmem:[#allocation15_spill] sm:$0xff]  ;;  %v19402_v44 = vld [vmem:[#allocation16_spill] sm:$0xff] }
 0x53c   : > { %9463 = vmatmul.mubr.bf16.gmra.mrb[100].mxu0 %v16747_v2  ;;  %9689 = vmatmul.mubr.bf16.gmra.mrb[100].mxu1 %v16747_v2  ;;  %v19424_v2 = vld [vmem:[#allocation137_spill] sm:$0xff] }
 0x53d   : > { %9472 = vmatprep.mubr.bf16.mxu0 %v16751_v27  ;;  %9698 = vmatprep.mubr.bf16.mxu1 %v16751_v27 }
 0x544   : > { %9473 = vmatmul.mubr.bf16.gmra.mrb[104].mxu0 %v16758_v32  ;;  %9699 = vmatmul.mubr.bf16.gmra.mrb[104].mxu1 %v16758_v32  ;;  %v19420_v32 = vld [vmem:[#allocation30_spill] sm:$0xff] }
 0x545   : > { %9482 = vmatprep.mubr.bf16.mxu0 %v16761_v26  ;;  %9708 = vmatprep.mubr.bf16.mxu1 %v16761_v26  ;;  %v19422_v26 = vld [vmem:[#allocation37_spill] sm:$0xff] }
 0x54c   : > { %9483 = vmatmul.mubr.bf16.gmra.mrb[108].mxu0 %v16768_v20  ;;  %9709 = vmatmul.mubr.bf16.gmra.mrb[108].mxu1 %v16768_v20  ;;  %v19423_v20 = vld [vmem:[#allocation38_spill] sm:$0xff] }
 0x54d   : > { %13015 = vmatprep.mubr.msk.bf16.mxu0 %vm1748_vm1, %v16771_v28  ;;  %13024 = vmatprep.mubr.msk.bf16.mxu1 %vm1748_vm1, %v16771_v28  ;;  %v19421_v28 = vld [vmem:[#allocation31_spill] sm:$0xff] }
 0x554   : > { %9526 = vmatmul.mubr.bf16.vlgmr.msra.gmra.mrb[64].mxu0 %v16780_v59  ;;  %9752 = vmatmul.mubr.bf16.vlgmr.msra.gmra.mrb[64].mxu1 %v16780_v59 }
 0x555   : > { %9977 = vmatpush1.bf16.msra.mxu0 %v16199_v61  ;;  %10203 = vmatpush1.bf16.msra.mxu1 %v16206_v23  ;;  %v19399_v61 = vld [vmem:[#allocation112_spill] sm:$0xff]  ;;  %v19400_v23 = vld [vmem:[#allocation14_spill] sm:$0xff] }
 0x556   : > { %9978 = vmatprep.subr.bf16.mxu0 %v16284_v17  ;;  %10204 = vmatprep.subr.bf16.mxu1 %v16287_v6  ;;  %v19403_v17 = vld [vmem:[#allocation17_spill] sm:$0xff] }
 0x557   : > { %13016 = vmatprep.mubr.msk.bf16.mxu0 %vm1748_vm1, %v16791_v42  ;;  %13025 = vmatprep.mubr.msk.bf16.mxu1 %vm1748_vm1, %v16791_v42  ;;  %v19404_v6 = vld [vmem:[#allocation117_spill] sm:$0xff] }
 0x559   : > { %9979 = vmatpush1.bf16.msra.mxu0 %v16295_v18  ;;  %10205 = vmatpush1.bf16.msra.mxu1 %v16308_v57  ;;  %v19405_v18 = vld [vmem:[#allocation18_spill] sm:$0xff]  ;;  %v19406_v57 = vld [vmem:[#allocation19_spill] sm:$0xff] }
 0x55a   : > { %9980 = vmatprep.subr.bf16.mxu0 %v16310_v48  ;;  %10206 = vmatprep.subr.bf16.mxu1 %v16319_v36  ;;  %v19407_v48 = vld [vmem:[#allocation20_spill] sm:$0xff]  ;;  %v19408_v36 = vld [vmem:[#allocation21_spill] sm:$0xff] }
 0x55c   : > { %9536 = vmatmul.mubr.bf16.gmra.mrb[68].mxu0 %v16812_v33  ;;  %9762 = vmatmul.mubr.bf16.gmra.mrb[68].mxu1 %v16812_v33 }
 0x55d   : > { %9981 = vmatpush1.bf16.msra.mxu0 %v16324_v39  ;;  %10207 = vmatpush1.bf16.msra.mxu1 %v16327_v46  ;;  %v19409_v39 = vld [vmem:[#allocation122_spill] sm:$0xff] }
 0x55e   : > { %9982 = vmatprep.subr.bf16.mxu0 %v16330_v62  ;;  %10208 = vmatprep.subr.bf16.mxu1 %v16333_v63  ;;  %v19410_v46 = vld [vmem:[#allocation22_spill] sm:$0xff]  ;;  %v19411_v62 = vld [vmem:[#allocation23_spill] sm:$0xff]  ;;  %v19412_v63 = vld [vmem:[#allocation24_spill] sm:$0xff] }
 0x55f   : > { %13017 = vmatprep.mubr.msk.bf16.mxu0 %vm1748_vm1, %v16827_v25  ;;  %13026 = vmatprep.mubr.msk.bf16.mxu1 %vm1748_vm1, %v16827_v25  ;;  %v19419_v25 = vld [vmem:[#allocation132_spill] sm:$0xff] }
 0x561   : > { %9983 = vmatpush1.bf16.msra.mxu0 %v16341_v45  ;;  %10209 = vmatpush1.bf16.msra.mxu1 %v16345_v35  ;;  %v19413_v45 = vld [vmem:[#allocation25_spill] sm:$0xff]  ;;  %v19414_v35 = vld [vmem:[#allocation127_spill] sm:$0xff] }
 0x562   : > { %9984 = vmatprep.subr.bf16.mxu0 %v16347_v15  ;;  %10210 = vmatprep.subr.bf16.mxu1 %v16350_v55  ;;  %v19415_v15 = vld [vmem:[#allocation26_spill] sm:$0xff] }
 0x563   : > { %v7179_v55 = vld [vmem:[%s14970_s11] sm:$0xff] }
 0x564   : > { %9546 = vmatmul.mubr.bf16.gmra.mrb[72].mxu0 %v16848_v60  ;;  %9772 = vmatmul.mubr.bf16.gmra.mrb[72].mxu1 %v16848_v60  ;;  %v7216_v42 = vshrl.u32 %v7179_v55, 16  ;;  %v7219_v10 = vshll.u32 %v7179_v55, 16 }
 0x565   : > { %9985 = vmatpush1.bf16.msra.mxu0 %v16353_v7  ;;  %10211 = vmatpush1.bf16.msra.mxu1 %v16357_v43  ;;  %v7181_v7 = vld [vmem:[%s14970_s11 + $0x10] sm:$0xff]  ;;  %v19416_v43 = vld [vmem:[#allocation27_spill] sm:$0xff] }
 0x566   : > { %9986 = vmatprep.subr.bf16.mxu0 %v16359_v47  ;;  %10212 = vmatprep.subr.bf16.mxu1 %v16363_v30  ;;  %v19417_v47 = vld [vmem:[#allocation28_spill] sm:$0xff]  ;;  %v19418_v30 = vld [vmem:[#allocation29_spill] sm:$0xff]  ;;  %v7225_v59 = vshll.u32 %v7181_v7, 16  ;;  %v7243_v29 = vshrl.u32 %v7181_v7, 16  ;;  %v7218_v27 = vrot.slane %v7216_v42, 4  ;;  %v7221_v33 = vrot.slane %v7219_v10, 5 }
 0x567   : > { %13018 = vmatprep.mubr.msk.bf16.mxu0 %vm1748_vm1, %v19399_v61  ;;  %13027 = vmatprep.mubr.msk.bf16.mxu1 %vm1748_vm1, %v19399_v61  ;;  %v19429_v61 = vld [vmem:[#allocation142_spill] sm:$0xff]  ;;  %v19436_v10 = vld [vmem:[#allocation47_spill] sm:$0xff] }
 0x568   : > { %v7227_v60 = vrot.slane %v7225_v59, 5  ;;  %v7245_v14 = vrot.slane %v7243_v29, 4  ;;  %v19437_v59 = vld [vmem:[#allocation48_spill] sm:$0xff] }
 0x569   : > { %9987 = vmatpush1.bf16.msra.mxu0 %v19400_v23  ;;  %10213 = vmatpush1.bf16.msra.mxu1 %v19401_v51  ;;  %v7263_v23 = vshrl.u32 %v7183_v4, 16  ;;  %v7269_v51 = vshll.u32 %v7185_v13, 16 }
 0x56a   : > { %9988 = vmatprep.subr.bf16.mxu0 %v19402_v44  ;;  %10214 = vmatprep.subr.bf16.mxu1 %v19403_v17  ;;  %v7283_v44 = vshrl.u32 %v7185_v13, 16  ;;  %v7222_v17 = vor.u32 %v7221_v33, %v7218_v27  ;;  %v19441_v13 = vld [vmem:[#allocation34_spill] sm:$0xff] }
 0x56c   : > { %9556 = vmatmul.mubr.bf16.gmra.mrb[76].mxu0 %v19404_v6  ;;  %9782 = vmatmul.mubr.bf16.gmra.mrb[76].mxu1 %v19404_v6  ;;  %v7246_v6 = vor.u32 %v7245_v14, %v7227_v60  ;;  %v7223_v55 = vrot.slane %v7222_v17, 4 }
 0x56d   : > { %9989 = vmatpush1.bf16.msra.mxu0 %v19405_v18  ;;  %10215 = vmatpush1.bf16.msra.mxu1 %v19406_v57  ;;  %v7249_v18 = vshll.u32 %v7183_v4, 16  ;;  %v19430_v57 = vld [vmem:[#allocation32_spill] sm:$0xff] }
 0x56e   : > { %9990 = vmatprep.subr.bf16.mxu0 %v19407_v48  ;;  %10216 = vmatprep.subr.bf16.mxu1 %v19408_v36  ;;  %v19431_v48 = vld [vmem:[#allocation43_spill] sm:$0xff]  ;;  %v19432_v36 = vld [vmem:[#allocation44_spill] sm:$0xff]  ;;  %v7247_v7 = vrot.slane %v7246_v6, 4  ;;  %v7228_v27 = vsel %vm15541_vm4, %v7223_v55, %v7227_v60 }
 0x56f   : > { %13019 = vmatprep.mubr.msk.bf16.mxu0 %vm1748_vm1, %v19409_v39  ;;  %13028 = vmatprep.mubr.msk.bf16.mxu1 %vm1748_vm1, %v19409_v39  ;;  %v7189_v39 = vld [vmem:[%s14970_s11 + $0x50] sm:$0xff] }
 0x570   : > { %v7323_v42 = vshrl.u32 %v7189_v39, 16 }
 0x571   : > { %9991 = vmatpush1.bf16.msra.mxu0 %v19410_v46  ;;  %10217 = vmatpush1.bf16.msra.mxu1 %v19411_v62  ;;  %v19433_v46 = vld [vmem:[#allocation45_spill] sm:$0xff]  ;;  %v7187_v62 = vld [vmem:[%s14970_s11 + $0x40] sm:$0xff] }
 0x572   : > { %9992 = vmatprep.subr.bf16.mxu0 %v19412_v63  ;;  %10218 = vmatprep.subr.bf16.mxu1 %v19413_v45  ;;  %v7265_v63 = vrot.slane %v7263_v23, 4  ;;  %v7271_v45 = vrot.slane %v7269_v51, 5  ;;  %v7289_v29 = vshll.u32 %v7187_v62, 16  ;;  %v7193_v23 = vld [vmem:[%s14970_s11 + $0x70] sm:$0xff]  ;;  %v19444_v51 = vld [vmem:[#allocation51_spill] sm:$0xff] }
 0x574   : > { %9566 = vmatmul.mubr.bf16.gmra.mrb[96].mxu0 %v19414_v35  ;;  %9792 = vmatmul.mubr.bf16.gmra.mrb[96].mxu1 %v19414_v35  ;;  %v7285_v35 = vrot.slane %v7283_v44, 4 }
 0x575   : > { %9993 = vmatpush1.bf16.msra.mxu0 %v19415_v15  ;;  %10219 = vmatpush1.bf16.msra.mxu1 %v19416_v43  ;;  %v19434_v15 = vld [vmem:[#allocation147_spill] sm:$0xff]  ;;  %v7251_v43 = vrot.slane %v7249_v18, 5 }
 0x576   : > { %9994 = vmatprep.subr.bf16.mxu0 %v19417_v47  ;;  %10220 = vmatprep.subr.bf16.mxu1 %v19418_v30  ;;  %v7303_v47 = vshrl.u32 %v7187_v62, 16  ;;  %v19435_v30 = vld [vmem:[#allocation46_spill] sm:$0xff]  ;;  %v19446_v62 = vld [vmem:[#allocation53_spill] sm:$0xff] }
 0x577   : > { %13020 = vmatprep.mubr.msk.bf16.mxu0 %vm1748_vm1, %v19419_v25  ;;  %13029 = vmatprep.mubr.msk.bf16.mxu1 %vm1748_vm1, %v19419_v25  ;;  %v7309_v25 = vshll.u32 %v7189_v39, 16  ;;  %v7252_v33 = vsel %vm15541_vm4, %v7247_v7, %v7251_v43  ;;  %v7349_v39 = vshll.u32 %v7193_v23, 16 }
 0x578   : > { %v7305_v14 = vrot.slane %v7303_v47, 4  ;;  %v17314_v44 = vcombine.high %v7228_v27, %v7252_v33  ;;  %v17327_v55 = vcombine.low %v7228_v27, %v7252_v33  ;;  %v19449_v47 = vld [vmem:[#allocation56_spill] sm:$0xff] }
 0x579   : > { %9995 = vmatpush1.bf16.msra.mxu0 %v19420_v32  ;;  %10221 = vmatpush1.bf16.msra.mxu1 %v19421_v28  ;;  %v19438_v32 = vld [vmem:[#allocation33_spill] sm:$0xff]  ;;  %v19439_v28 = vld [vmem:[#allocation152_spill] sm:$0xff]  ;;  %v7311_v4 = vrot.slane %v7309_v25, 5 }
 0x57a   : > { %9996 = vmatprep.subr.bf16.mxu0 %v19422_v26  ;;  %10222 = vmatprep.subr.bf16.mxu1 %v19423_v20  ;;  %v7266_v26 = vor.u32 %v7265_v63, %v7251_v43  ;;  %v7286_v20 = vor.u32 %v7285_v35, %v7271_v45  ;;  %v19447_v63 = vld [vmem:[#allocation54_spill] sm:$0xff]  ;;  %v19448_v35 = vld [vmem:[#allocation55_spill] sm:$0xff]  ;;  %v19453_v33 = vld [vmem:[#allocation12_spill] sm:$0xff] }
 0x57c   : > { %9576 = vmatmul.mubr.bf16.gmra.mrb[100].mxu0 %v19424_v2  ;;  %9802 = vmatmul.mubr.bf16.gmra.mrb[100].mxu1 %v19424_v2  ;;  %v7267_v60 = vrot.slane %v7266_v26, 4  ;;  %v7287_v17 = vrot.slane %v7286_v20, 4  ;;  %v7197_v26 = vld [vmem:[%s14970_s11 + $0x120] sm:$0xff]  ;;  %v7199_v20 = vld [vmem:[%s14970_s11 + $0x130] sm:$0xff] }
 0x57d   : > { %9997 = vmatpush1.bf16.msra.mxu0 %v19425_v34  ;;  %10223 = vmatpush1.bf16.msra.mxu1 %v19426_v1  ;;  %v7191_v34 = vld [vmem:[%s14970_s11 + $0x60] sm:$0xff]  ;;  %v7325_v1 = vrot.slane %v7323_v42, 4  ;;  %v7351_v42 = vrot.slane %v7349_v39, 5  ;;  %v7203_v39 = vld [vmem:[%s14970_s11 + $0x150] sm:$0xff] }
 0x57e   : > { %9998 = vmatprep.subr.bf16.mxu0 %v19427_v12  ;;  %10224 = vmatprep.subr.bf16.mxu1 %v19428_v5  ;;  %v19442_v12 = vld [vmem:[#allocation49_spill] sm:$0xff]  ;;  %v19443_v5 = vld [vmem:[#allocation50_spill] sm:$0xff]  ;;  %v7329_v18 = vshll.u32 %v7191_v34, 16 }
 0x57f   : > { %13021 = vmatprep.mubr.msk.bf16.mxu0 %vm1748_vm1, %v19429_v61  ;;  %13030 = vmatprep.mubr.msk.bf16.mxu1 %vm1748_vm1, %v19429_v61  ;;  %v7291_v61 = vrot.slane %v7289_v29, 5  ;;  %v19602_v2 = vld [vmem:[#allocation150_spill] sm:$0xff] }
 0x580   : > { %v7331_v43 = vrot.slane %v7329_v18, 5 }
 0x581   : > { %9999 = vmatpush1.bf16.msra.mxu0 %v19430_v57  ;;  %10225 = vmatpush1.bf16.msra.mxu1 %v19431_v48  ;;  %v7306_v6 = vor.u32 %v7305_v14, %v7291_v61  ;;  %v19445_v57 = vld [vmem:[#allocation52_spill] sm:$0xff]  ;;  %v7326_v48 = vor.u32 %v7325_v1, %v7311_v4 }
 0x582   : > { %10000 = vmatprep.subr.bf16.mxu0 %v19432_v36  ;;  %10226 = vmatprep.subr.bf16.mxu1 %v19433_v46  ;;  %v7343_v36 = vshrl.u32 %v7191_v34, 16  ;;  %v7363_v46 = vshrl.u32 %v7193_v23, 16  ;;  %v7393_v23 = vshll.u32 %v7199_v20, 16 }
 0x583   : > { %v7307_v7 = vrot.slane %v7306_v6, 4  ;;  %v19457_v6 = vld [vmem:[#allocation60_spill] sm:$0xff] }
 0x584   : > { %9586 = vmatmul.mubr.bf16.gmra.mrb[104].mxu0 %v19434_v15  ;;  %9812 = vmatmul.mubr.bf16.gmra.mrb[104].mxu1 %v19434_v15  ;;  %v7272_v15 = vsel %vm15541_vm4, %v7267_v60, %v7271_v45  ;;  %v7345_v25 = vrot.slane %v7343_v36, 4  ;;  %v19451_v45 = vld [vmem:[#allocation58_spill] sm:$0xff] }
 0x585   : > { %10001 = vmatpush1.bf16.msra.mxu0 %v19435_v30  ;;  %10227 = vmatpush1.bf16.msra.mxu1 %v19436_v10  ;;  %v7327_v30 = vrot.slane %v7326_v48, 4  ;;  %v7365_v10 = vrot.slane %v7363_v46, 4  ;;  %v7312_v27 = vsel %vm15541_vm4, %v7307_v7, %v7311_v4  ;;  %v19455_v4 = vld [vmem:[#allocation35_spill] sm:$0xff]  ;;  %v19458_v46 = vld [vmem:[#allocation61_spill] sm:$0xff]  ;;  %v7395_v7 = vrot.slane %v7393_v23, 5  ;;  %v19465_v23 = vld [vmem:[#allocation68_spill] sm:$0xff] }
 0x586   : > { %10002 = vmatprep.subr.bf16.mxu0 %v19437_v59  ;;  %10228 = vmatprep.subr.bf16.mxu1 %v19438_v32  ;;  %v19450_v59 = vld [vmem:[#allocation57_spill] sm:$0xff]  ;;  %v7195_v32 = vld [vmem:[%s14970_s11 + $0x80] sm:$0x11] }
 0x587   : > { %13022 = vmatprep.mubr.msk.bf16.mxu0 %vm1748_vm1, %v19439_v28  ;;  %13031 = vmatprep.mubr.msk.bf16.mxu1 %vm1748_vm1, %v19439_v28  ;;  %v19452_v28 = vld [vmem:[#allocation59_spill] sm:$0xff]  ;;  %v7332_v14 = vsel %vm15541_vm4, %v7327_v30, %v7331_v43  ;;  %v7366_v34 = vor.u32 %v7365_v10, %v7351_v42  ;;  %v7369_v1 = vshll.u32 %v7195_v32, 16  ;;  %v7437_v30 = vshll.u32 %v7203_v39, 16 }
 0x588   : > { %v17354_v18 = vcombine.high %v7312_v27, %v7332_v14 }
 0x589   : > { %10003 = vmatpush1.bf16.msra.mxu0 %v19441_v13  ;;  %10229 = vmatpush1.bf16.msra.mxu1 %v19442_v12  ;;  %v7346_v13 = vor.u32 %v7345_v25, %v7331_v43  ;;  %v19454_v12 = vld [vmem:[#allocation13_spill] sm:$0xff]  ;;  %v7367_v48 = vrot.slane %v7366_v34, 4  ;;  %v7371_v36 = vrot.slane %v7369_v1, 5  ;;  %v7451_v25 = vshrl.u32 %v7203_v39, 16  ;;  %v19464_v34 = vld [vmem:[#allocation67_spill] sm:$0xff] }
 0x58a   : > { %10004 = vmatprep.subr.bf16.mxu0 %v19443_v5  ;;  %10230 = vmatprep.subr.bf16.mxu1 %v19444_v51  ;;  %v7384_v5 = vshrl.u32 %v7197_v26, 16  ;;  %v7411_v51 = vshrl.u32 %v7199_v20, 16  ;;  %v19462_v20 = vld [vmem:[#allocation65_spill] sm:$0xff]  ;;  %v7439_v1 = vrot.slane %v7437_v30, 5 }
 0x58b   : > { %v19470_v30 = vld [vmem:[#allocation73_spill] sm:$0xff] }
 0x58c   : > { %9596 = vmatmul.mubr.bf16.gmra.mrb[108].mxu0 %v17028_v41  ;;  %9822 = vmatmul.mubr.bf16.gmra.mrb[108].mxu1 %v17028_v41  ;;  %v7292_v41 = vsel %vm15541_vm4, %v7287_v17, %v7291_v61  ;;  %v7387_v61 = vshll.u32 %v7197_v26, 16  ;;  %v19456_v17 = vld [vmem:[#allocation36_spill] sm:$0xff]  ;;  %v7413_v43 = vrot.slane %v7411_v51, 4 }
 0x58d   : > { %10005 = vmatpush1.bf16.msra.mxu0 %v19445_v57  ;;  %10231 = vmatpush1.bf16.msra.mxu1 %v19446_v62  ;;  %v17333_v29 = vcombine.high %v7272_v15, %v7292_v41  ;;  %v17350_v60 = vcombine.low %v7272_v15, %v7292_v41  ;;  %v7347_v57 = vrot.slane %v7346_v13, 4  ;;  %v19459_v62 = vld [vmem:[#allocation62_spill] sm:$0xff]  ;;  %v19460_v15 = vld [vmem:[#allocation63_spill] sm:$0xff]  ;;  %v17372_v13 = vcombine.low %v7312_v27, %v7332_v14 }
 0x58e   : > { %10006 = vmatprep.subr.bf16.mxu0 %v19447_v63  ;;  %10232 = vmatprep.subr.bf16.mxu1 %v19448_v35  ;;  %v7386_v63 = vrot.slane %v7384_v5, 4  ;;  %v7389_v35 = vrot.slane %v7387_v61, 5  ;;  %v7201_v41 = vld [vmem:[%s14970_s11 + $0x140] sm:$0xff] }
 0x58f   : > { %10008 = vmatprep.mubr.bf16.mxu0 %v17314_v44  ;;  %10234 = vmatprep.mubr.bf16.mxu1 %v17314_v44  ;;  %v7352_v10 = vsel %vm15541_vm4, %v7347_v57, %v7351_v42  ;;  %v7417_v26 = vshll.u32 %v7201_v41, 16  ;;  %v7205_v61 = vld [vmem:[%s14970_s11 + $0x160] sm:$0xff]  ;;  %v19466_v57 = vld [vmem:[#allocation69_spill] sm:$0xff] }
 0x590   : > { %v7390_v32 = vor.u32 %v7389_v35, %v7386_v63  ;;  %v19468_v27 = vld [vmem:[#allocation71_spill] sm:$0xff]  ;;  %v7457_v39 = vshll.u32 %v7205_v61, 16  ;;  %v19469_v35 = vld [vmem:[#allocation72_spill] sm:$0xff] }
 0x591   : > { %10007 = vmatpush1.bf16.msra.mxu0 %v19449_v47  ;;  %10233 = vmatpush1.bf16.msra.mxu1 %v19450_v59  ;;  %v7431_v47 = vshrl.u32 %v7201_v41, 16  ;;  %v19461_v59 = vld [vmem:[#allocation64_spill] sm:$0xff] }
 0x592   : > { %10089 = vmatprep.subr.bf16.mxu0 %v19451_v45  ;;  %10315 = vmatprep.subr.bf16.mxu1 %v19452_v28  ;;  %v7372_v45 = vsel %vm15541_vm4, %v7367_v48, %v7371_v36  ;;  %v7414_v28 = vor.u32 %v7413_v43, %v7395_v7  ;;  %v7391_v51 = vrot.slane %v7390_v32, 4  ;;  %v19467_v48 = vld [vmem:[#allocation70_spill] sm:$0xff] }
 0x593   : > { %v7433_v42 = vrot.slane %v7431_v47, 4  ;;  %v17375_v5 = vcombine.high %v7352_v10, %v7372_v45  ;;  %v17394_v47 = vcombine.low %v7352_v10, %v7372_v45  ;;  %v7209_v45 = vld [vmem:[%s14970_s11 + $0x180] sm:$0xff] }
 0x594   : > { %10009 = vmatmul.mubr.bf16.vlgmr.msra.gmra.mrb[16].mxu0 %v17327_v55  ;;  %10235 = vmatmul.mubr.bf16.vlgmr.msra.gmra.mrb[16].mxu1 %v17327_v55  ;;  %v7396_v43 = vsel %vm15541_vm4, %v7391_v51, %v7395_v7 }
 0x595   : > { %10090 = vmatpush1.bf16.msra.mxu0 %v19453_v33  ;;  %10316 = vmatpush1.bf16.msra.mxu1 %v19454_v12  ;;  %v19463_v33 = vld [vmem:[#allocation66_spill] sm:$0xff]  ;;  %v7453_v12 = vrot.slane %v7451_v25, 4 }
 0x596   : > { %10018 = vmatprep.mubr.bf16.mxu0 %v17333_v29  ;;  %10244 = vmatprep.mubr.bf16.mxu1 %v17333_v29  ;;  %v19471_v25 = vld [vmem:[#allocation74_spill] sm:$0xff] }
 0x597   : > { %10091 = vmatprep.subr.bf16.mxu0 %v19455_v4  ;;  %10317 = vmatprep.subr.bf16.mxu1 %v19456_v17  ;;  %v7415_v4 = vrot.slane %v7414_v28, 4  ;;  %v7419_v17 = vrot.slane %v7417_v26, 5  ;;  %v7454_v36 = vor.u32 %v7453_v12, %v7439_v1  ;;  %v19472_v28 = vld [vmem:[#allocation75_spill] sm:$0xff] }
 0x599   : > { %10092 = vmatpush1.bf16.msra.mxu0 %v19457_v6  ;;  %10318 = vmatpush1.bf16.msra.mxu1 %v19458_v46  ;;  %v7207_v6 = vld [vmem:[%s14970_s11 + $0x170] sm:$0xff]  ;;  %v7434_v14 = vor.u32 %v7433_v42, %v7419_v17  ;;  %v7471_v46 = vshrl.u32 %v7205_v61, 16  ;;  %v7455_v26 = vrot.slane %v7454_v36, 4  ;;  %v19476_v36 = vld [vmem:[#allocation79_spill] sm:$0xff] }
 0x59a   : > { %10093 = vmatprep.subr.bf16.mxu0 %v19459_v62  ;;  %10319 = vmatprep.subr.bf16.mxu1 %v19460_v15  ;;  %v7477_v62 = vshll.u32 %v7207_v6, 16  ;;  %v7491_v63 = vshrl.u32 %v7207_v6, 16  ;;  %v7420_v15 = vsel %vm15541_vm4, %v7415_v4, %v7419_v17  ;;  %v19473_v4 = vld [vmem:[#allocation76_spill] sm:$0xff] }
 0x59b   : > { %v7435_v7 = vrot.slane %v7434_v14, 4  ;;  %v17407_v10 = vcombine.high %v7396_v43, %v7420_v15  ;;  %v7211_v17 = vld [vmem:[%s14970_s11 + $0x190] sm:$0xff] }
 0x59c   : > { %10019 = vmatmul.mubr.bf16.gmra.mrb[20].mxu0 %v17350_v60  ;;  %10245 = vmatmul.mubr.bf16.gmra.mrb[20].mxu1 %v17350_v60  ;;  %v7479_v12 = vrot.slane %v7477_v62, 5  ;;  %v7493_v61 = vrot.slane %v7491_v63, 4  ;;  %v7511_v63 = vshrl.u32 %v7209_v45, 16 }
 0x59d   : > { %10028 = vmatprep.mubr.bf16.mxu0 %v17354_v18  ;;  %10254 = vmatprep.mubr.bf16.mxu1 %v17354_v18 }
 0x59e   : > { %10094 = vmatpush1.bf16.msra.mxu0 %v19461_v59  ;;  %10320 = vmatpush1.bf16.msra.mxu1 %v19462_v20  ;;  %v7459_v20 = vrot.slane %v7457_v39, 5  ;;  %v7494_v62 = vor.u32 %v7493_v61, %v7479_v12 }
 0x59f   : > { %10095 = vmatprep.subr.bf16.mxu0 %v19463_v33  ;;  %10321 = vmatprep.subr.bf16.mxu1 %v19464_v34  ;;  %v7473_v33 = vrot.slane %v7471_v46, 4  ;;  %v7497_v46 = vshll.u32 %v7209_v45, 16 }
 0x5a0   : > { %v7460_v14 = vsel %vm15541_vm4, %v7455_v26, %v7459_v20 }
 0x5a1   : > { %v7474_v39 = vor.u32 %v7473_v33, %v7459_v20  ;;  %v17438_v33 = vcombine.low %v7396_v43, %v7420_v15  ;;  %v19486_v15 = vld [vmem:[#allocation84_spill] sm:$0xff] }
 0x5a2   : > { %10096 = vmatpush1.bf16.msra.mxu0 %v19465_v23  ;;  %10322 = vmatpush1.bf16.msra.mxu1 %v19466_v57  ;;  %v19474_v57 = vld [vmem:[#allocation77_spill] sm:$0xff] }
 0x5a3   : > { %10097 = vmatprep.subr.bf16.mxu0 %v19467_v48  ;;  %10323 = vmatprep.subr.bf16.mxu1 %v19468_v27  ;;  %v19475_v48 = vld [vmem:[#allocation78_spill] sm:$0xff]  ;;  %v7440_v27 = vsel %vm15541_vm4, %v7435_v7, %v7439_v1  ;;  %19480 = vst [vmem:[#allocation112_spill] sm:$0xff] %v17438_v33  ;;  %v7475_v61 = vrot.slane %v7474_v39, 4 }
 0x5a4   : > { %10029 = vmatmul.mubr.bf16.gmra.mrb[24].mxu0 %v17372_v13  ;;  %10255 = vmatmul.mubr.bf16.gmra.mrb[24].mxu1 %v17372_v13  ;;  %v19479_v7 = vld [vmem:[#allocation82_spill] sm:$0xff]  ;;  %v17440_v45 = vcombine.high %v7440_v27, %v7460_v14 }
 0x5a5   : > { %10038 = vmatprep.mubr.bf16.mxu0 %v17375_v5  ;;  %10264 = vmatprep.mubr.bf16.mxu1 %v17375_v5  ;;  %v7213_v39 = vld [vmem:[%s14970_s11 + $0x1a0] sm:$0x11] }
 0x5a6   : > { %10098 = vmatpush1.bf16.msra.mxu0 %v19469_v35  ;;  %10324 = vmatpush1.bf16.msra.mxu1 %v19470_v30  ;;  %v7517_v35 = vshll.u32 %v7211_v17, 16  ;;  %v7531_v30 = vshrl.u32 %v7211_v17, 16  ;;  %19481 = vst [vmem:[#allocation14_spill] sm:$0xff] %v17440_v45  ;;  %v19482_v17 = vld [vmem:[#allocation83_spill] sm:$0xff] }
 0x5a7   : > { %v17392_v41 = vpop.f32.mrb[0].mxu0  ;;  %10099 = vmatprep.subr.bf16.mxu0 %v19471_v25  ;;  %v17398_v59 = vpop.f32.mrb[0].mxu1  ;;  %10325 = vmatprep.subr.bf16.mxu1 %v19472_v28  ;;  %v19477_v25 = vld [vmem:[#allocation80_spill] sm:$0xff]  ;;  %v19478_v28 = vld [vmem:[#allocation81_spill] sm:$0xff] }
 0x5a8   : > { %v17400_v32 = vpop.f32.mrb[1].mxu0  ;;  %v17403_v34 = vpop.f32.mrb[1].mxu1 }
 0x5a9   : > { %v17405_v42 = vpop.f32.mrb[2].mxu0  ;;  %v17410_v23 = vpop.f32.mrb[2].mxu1 }
 0x5aa   : > { %v17412_v51 = vpop.f32.mrb[3].mxu0  ;;  %10100 = vmatpush1.bf16.msra.mxu0 %v19473_v4  ;;  %v17416_v6 = vpop.f32.mrb[3].mxu1  ;;  %10326 = vmatpush1.bf16.msra.mxu1 %v19474_v57  ;;  %v7499_v4 = vrot.slane %v7497_v46, 5  ;;  %v19488_v46 = vld [vmem:[#allocation85_spill] sm:$0xff] }
 0x5ab   : > { %10101 = vmatprep.subr.bf16.mxu0 %v19475_v48  ;;  %10327 = vmatprep.subr.bf16.mxu1 %v19476_v36  ;;  %v7495_v36 = vrot.slane %v7494_v62, 4  ;;  %v7480_v62 = vsel %vm15541_vm4, %v7475_v61, %v7479_v12  ;;  %v7239_v12 = vshll.u32 %v7182_v49, 16  ;;  %v7253_v61 = vshrl.u32 %v7182_v49, 16 }
 0x5ac   : > { %10039 = vmatmul.mubr.bf16.gmra.mrb[28].mxu0 %v17394_v47  ;;  %10265 = vmatmul.mubr.bf16.gmra.mrb[28].mxu1 %v17394_v47 }
 0x5ad   : > { %10048 = vmatprep.mubr.bf16.mxu0 %v17407_v10  ;;  %10274 = vmatprep.mubr.bf16.mxu1 %v17407_v10 }
 0x5ae   : > { %10102 = vmatpush1.bf16.msra.mxu0 %v19477_v25  ;;  %10328 = vmatpush1.bf16.msra.mxu1 %v19478_v28  ;;  %v7513_v25 = vrot.slane %v7511_v63, 4  ;;  %v7519_v28 = vrot.slane %v7517_v35, 5  ;;  %v19490_v63 = vld [vmem:[#allocation87_spill] sm:$0xff]  ;;  %v7500_v35 = vsel %vm15541_vm4, %v7495_v36, %v7499_v4 }
 0x5af   : > { %v17430_v1 = vpop.f32.mrb[4].mxu0  ;;  %10103 = vmatprep.subr.bf16.mxu0 %v19479_v7  ;;  %v17434_v26 = vpop.f32.mrb[4].mxu1  ;;  %10329 = vmatprep.subr.bf16.mxu1 %v19482_v17  ;;  %v7533_v7 = vrot.slane %v7531_v30, 4  ;;  %v19489_v17 = vld [vmem:[#allocation86_spill] sm:$0xff]  ;;  %v17486_v49 = vcombine.high %v7480_v62, %v7500_v35 }
 0x5b0   : > { %v17436_v20 = vpop.f32.mrb[5].mxu0  ;;  %v17443_v57 = vpop.f32.mrb[5].mxu1  ;;  %v7514_v30 = vor.u32 %v7513_v25, %v7499_v4  ;;  %v17479_v4 = vcombine.low %v7440_v27, %v7460_v14  ;;  %v19498_v25 = vld [vmem:[#allocation91_spill] sm:$0xff]  ;;  %v7241_v27 = vrot.slane %v7239_v12, 5  ;;  %v7255_v14 = vrot.slane %v7253_v61, 4 }
 0x5b1   : > { %v17445_v48 = vpop.f32.mrb[6].mxu0  ;;  %v17447_v53 = vpop.f32.mrb[6].mxu1  ;;  %19501 = vst [vmem:[#allocation23_spill] sm:$0xff] %v17486_v49 }
 0x5b2   : > { %19483 = vst [vmem:[#allocation15_spill] sm:$0xff] %v17445_v48  ;;  %19484 = vst [vmem:[#allocation16_spill] sm:$0xff] %v17447_v53  ;;  %v17449_v43 = vpop.f32.mrb[7].mxu0  ;;  %10104 = vmatpush1.bf16.msra.mxu0 %v19486_v15  ;;  %v17453_v54 = vpop.f32.mrb[7].mxu1  ;;  %10330 = vmatpush1.bf16.msra.mxu1 %v19488_v46  ;;  %v7534_v15 = vor.u32 %v7533_v7, %v7519_v28  ;;  %v7537_v46 = vshll.u32 %v7213_v39, 16  ;;  %v7515_v39 = vrot.slane %v7514_v30, 4 }
 0x5b3   : > { %19485 = vst [vmem:[#allocation17_spill] sm:$0xff] %v17449_v43  ;;  %19487 = vst [vmem:[#allocation117_spill] sm:$0xff] %v17453_v54  ;;  %13064 = vmatprep.subr.msk.bf16.mxu0 %vm1797_vm0, %v19489_v17  ;;  %13073 = vmatprep.subr.msk.bf16.mxu1 %vm1797_vm0, %v19490_v63  ;;  %v19491_v17 = vld [vmem:[#allocation88_spill] sm:$0xff]  ;;  %v7230_v54 = vshrl.u32 %v7180_v19, 16  ;;  %v19493_v63 = vld [vmem:[#allocation90_spill] sm:$0xff] }
 0x5b4   : > { %10049 = vmatmul.mubr.bf16.gmra.mrb[48].mxu0 %v17438_v33  ;;  %10275 = vmatmul.mubr.bf16.gmra.mrb[48].mxu1 %v17438_v33  ;;  %v19494_v33 = vld [vmem:[#allocation89_spill] sm:$0xff]  ;;  %19497 = vst [vmem:[#allocation21_spill] sm:$0xff] %v17479_v4  ;;  %v7520_v30 = vsel %vm15541_vm4, %v7515_v39, %v7519_v28  ;;  %v19537_v48 = vld [vmem:[#allocation95_spill] sm:$0xff] }
 0x5b5   : > { %10058 = vmatprep.mubr.bf16.mxu0 %v17440_v45  ;;  %10284 = vmatprep.mubr.bf16.mxu1 %v17440_v45 }
 0x5b6   : > { %10106 = vmatpush1.bf16.msra.mxu0 %v19491_v17  ;;  %10332 = vmatpush1.bf16.msra.mxu1 %v19493_v63  ;;  %v7535_v17 = vrot.slane %v7534_v15, 4  ;;  %v7539_v63 = vrot.slane %v7537_v46, 5  ;;  %v7256_v15 = vor.u32 %v7255_v14, %v7241_v27 }
 0x5b7   : > { %v17471_v43 = vpop.f32.mrb[8].mxu0  ;;  %10428 = vmatprep.subr.bf16.mxu0 %v19494_v33  ;;  %v17475_v53 = vpop.f32.mrb[8].mxu1  ;;  %10654 = vmatprep.subr.bf16.mxu1 %v19498_v25  ;;  %v7184_v25 = vld [vmem:[%s14970_s11 + $0x28] sm:$0xff] }
 0x5b8   : > { %19492 = vst [vmem:[#allocation18_spill] sm:$0xff] %v17471_v43  ;;  %19495 = vst [vmem:[#allocation19_spill] sm:$0xff] %v17475_v53  ;;  %v17477_v36 = vpop.f32.mrb[9].mxu0  ;;  %v17482_v7 = vpop.f32.mrb[9].mxu1  ;;  %v7235_v43 = vrot.slane %v7233_v52, 5  ;;  %v7540_v52 = vsel %vm15541_vm4, %v7535_v17, %v7539_v63  ;;  %v7259_v46 = vshll.u32 %v7184_v25, 16 }
 0x5b9   : > { %19496 = vst [vmem:[#allocation20_spill] sm:$0xff] %v17477_v36  ;;  %19499 = vst [vmem:[#allocation122_spill] sm:$0xff] %v17482_v7  ;;  %v17484_v19 = vpop.f32.mrb[10].mxu0  ;;  %v17488_v33 = vpop.f32.mrb[10].mxu1  ;;  %v7232_v36 = vrot.slane %v7230_v54, 4  ;;  %v7186_v7 = vld [vmem:[%s14970_s11 + $0x38] sm:$0xff] }
 0x5ba   : > { %19500 = vst [vmem:[#allocation22_spill] sm:$0xff] %v17484_v19  ;;  %19502 = vst [vmem:[#allocation24_spill] sm:$0xff] %v17488_v33  ;;  %v17490_v53 = vpop.f32.mrb[11].mxu0  ;;  %v17492_v45 = vpop.f32.mrb[11].mxu1  ;;  %v7273_v61 = vshrl.u32 %v7184_v25, 16  ;;  %v17510_v19 = vcombine.low %v7480_v62, %v7500_v35  ;;  %v7261_v14 = vrot.slane %v7259_v46, 5 }
 0x5bb   : > { %19503 = vst [vmem:[#allocation25_spill] sm:$0xff] %v17490_v53  ;;  %19504 = vst [vmem:[#allocation127_spill] sm:$0xff] %v17492_v45  ;;  %v7236_v54 = vor.u32 %v7235_v43, %v7232_v36  ;;  %v7279_v45 = vshll.u32 %v7186_v7, 16  ;;  %v7293_v53 = vshrl.u32 %v7186_v7, 16  ;;  %v17516_v43 = vcombine.high %v7520_v30, %v7540_v52  ;;  %v7188_v35 = vld [vmem:[%s14970_s11 + $0x48] sm:$0xff] }
 0x5bc   : > { %10059 = vmatmul.mubr.bf16.gmra.mrb[52].mxu0 %v17479_v4  ;;  %10285 = vmatmul.mubr.bf16.gmra.mrb[52].mxu1 %v17479_v4  ;;  %19508 = vst [vmem:[#allocation29_spill] sm:$0xff] %v17510_v19  ;;  %v7257_v7 = vrot.slane %v7256_v15, 4 }
 0x5bd   : > { %10068 = vmatprep.mubr.bf16.mxu0 %v17486_v49  ;;  %10294 = vmatprep.mubr.bf16.mxu1 %v17486_v49  ;;  %19511 = vst [vmem:[#allocation31_spill] sm:$0xff] %v17516_v43  ;;  %v7237_v63 = vrot.slane %v7236_v54, 4  ;;  %v7295_v62 = vrot.slane %v7293_v53, 4 }
 0x5be   : > { %v7262_v15 = vsel %vm15541_vm4, %v7257_v7, %v7261_v14 }
 0x5bf   : > { %v17504_v12 = vpop.f32.mrb[12].mxu0  ;;  %v17506_v33 = vpop.f32.mrb[12].mxu1  ;;  %v7242_v54 = vsel %vm15541_vm4, %v7237_v63, %v7241_v27 }
 0x5c0   : > { %19505 = vst [vmem:[#allocation26_spill] sm:$0xff] %v17504_v12  ;;  %19506 = vst [vmem:[#allocation27_spill] sm:$0xff] %v17506_v33  ;;  %v17508_v4 = vpop.f32.mrb[13].mxu0  ;;  %v17512_v28 = vpop.f32.mrb[13].mxu1  ;;  %v7275_v33 = vrot.slane %v7273_v61, 4  ;;  %v7299_v61 = vshll.u32 %v7188_v35, 16  ;;  %v17546_v63 = vcombine.high %v7242_v54, %v7262_v15 }
 0x5c1   : > { %19507 = vst [vmem:[#allocation28_spill] sm:$0xff] %v17508_v4  ;;  %19509 = vst [vmem:[#allocation132_spill] sm:$0xff] %v17512_v28  ;;  %v17514_v39 = vpop.f32.mrb[14].mxu0  ;;  %v17518_v36 = vpop.f32.mrb[14].mxu1  ;;  %v7281_v4 = vrot.slane %v7279_v45, 5 }
 0x5c2   : > { %19510 = vst [vmem:[#allocation30_spill] sm:$0xff] %v17514_v39  ;;  %19512 = vst [vmem:[#allocation37_spill] sm:$0xff] %v17518_v36  ;;  %v17520_v17 = vpop.f32.mrb[15].mxu0  ;;  %v17522_v25 = vpop.f32.mrb[15].mxu1  ;;  %v7190_v39 = vld [vmem:[%s14970_s11 + $0x58] sm:$0xff]  ;;  %v7276_v45 = vor.u32 %v7275_v33, %v7261_v14  ;;  %v17540_v36 = vcombine.low %v7520_v30, %v7540_v52  ;;  %v7192_v52 = vld [vmem:[%s14970_s11 + $0x68] sm:$0xff] }
 0x5c3   : > { %19513 = vst [vmem:[#allocation38_spill] sm:$0xff] %v17520_v17  ;;  %19514 = vst [vmem:[#allocation137_spill] sm:$0xff] %v17522_v25  ;;  %v7296_v53 = vor.u32 %v7295_v62, %v7281_v4  ;;  %v7313_v25 = vshrl.u32 %v7188_v35, 16  ;;  %v7333_v28 = vshrl.u32 %v7190_v39, 16 }
 0x5c4   : > { %10069 = vmatmul.mubr.bf16.gmra.mrb[56].mxu0 %v17510_v19  ;;  %10295 = vmatmul.mubr.bf16.gmra.mrb[56].mxu1 %v17510_v19  ;;  %19518 = vst [vmem:[#allocation42_spill] sm:$0xff] %v17540_v36  ;;  %19521 = vst [vmem:[#allocation43_spill] sm:$0xff] %v17546_v63  ;;  %v7277_v62 = vrot.slane %v7276_v45, 4 }
 0x5c5   : > { %10078 = vmatprep.mubr.bf16.mxu0 %v17516_v43  ;;  %10304 = vmatprep.mubr.bf16.mxu1 %v17516_v43  ;;  %v7319_v43 = vshll.u32 %v7190_v39, 16  ;;  %v7297_v35 = vrot.slane %v7296_v53, 4  ;;  %v7315_v30 = vrot.slane %v7313_v25, 4  ;;  %v7339_v53 = vshll.u32 %v7192_v52, 16 }
 0x5c6   : > { %v7282_v25 = vsel %vm15541_vm4, %v7277_v62, %v7281_v4 }
 0x5c7   : > { %v17534_v46 = vpop.f32.mrb[32].mxu0  ;;  %v17536_v17 = vpop.f32.mrb[32].mxu1  ;;  %v7321_v39 = vrot.slane %v7319_v43, 5 }
 0x5c8   : > { %19515 = vst [vmem:[#allocation39_spill] sm:$0xff] %v17534_v46  ;;  %19516 = vst [vmem:[#allocation40_spill] sm:$0xff] %v17536_v17  ;;  %v17538_v19 = vpop.f32.mrb[33].mxu0  ;;  %v17542_v12 = vpop.f32.mrb[33].mxu1 }
 0x5c9   : > { %19517 = vst [vmem:[#allocation41_spill] sm:$0xff] %v17538_v19  ;;  %19519 = vst [vmem:[#allocation142_spill] sm:$0xff] %v17542_v12  ;;  %v17544_v27 = vpop.f32.mrb[34].mxu0  ;;  %v17548_v33 = vpop.f32.mrb[34].mxu1  ;;  %v7301_v19 = vrot.slane %v7299_v61, 5  ;;  %v7335_v12 = vrot.slane %v7333_v28, 4 }
 0x5ca   : > { %19520 = vst [vmem:[#allocation32_spill] sm:$0xff] %v17544_v27  ;;  %19522 = vst [vmem:[#allocation44_spill] sm:$0xff] %v17548_v33  ;;  %v17550_v7 = vpop.f32.mrb[35].mxu0  ;;  %v17552_v14 = vpop.f32.mrb[35].mxu1  ;;  %v7194_v27 = vld [vmem:[%s14970_s11 + $0x78] sm:$0xff]  ;;  %v17560_v33 = vcombine.low %v7242_v54, %v7262_v15  ;;  %v7353_v15 = vshrl.u32 %v7192_v52, 16 }
 0x5cb   : > { %19523 = vst [vmem:[#allocation45_spill] sm:$0xff] %v17550_v7  ;;  %19524 = vst [vmem:[#allocation147_spill] sm:$0xff] %v17552_v14  ;;  %v7302_v43 = vsel %vm15541_vm4, %v7297_v35, %v7301_v19  ;;  %v7316_v28 = vor.u32 %v7315_v30, %v7301_v19  ;;  %v7336_v54 = vor.u32 %v7335_v12, %v7321_v39  ;;  %v7359_v14 = vshll.u32 %v7194_v27, 16  ;;  %v7200_v12 = vld [vmem:[%s14970_s11 + $0x138] sm:$0xff] }
 0x5cc   : > { %10079 = vmatmul.mubr.bf16.gmra.mrb[60].mxu0 %v17540_v36  ;;  %10305 = vmatmul.mubr.bf16.gmra.mrb[60].mxu1 %v17540_v36  ;;  %v17584_v35 = vcombine.high %v7282_v25, %v7302_v43  ;;  %v7355_v52 = vrot.slane %v7353_v15, 4  ;;  %v7421_v49 = vshrl.u32 %v7200_v12, 16 }
 0x5cd   : > { %13065 = vmatprep.mubr.msk.bf16.mxu0 %vm1748_vm1, %v17546_v63  ;;  %13074 = vmatprep.mubr.msk.bf16.mxu1 %vm1748_vm1, %v17546_v63  ;;  %v7373_v63 = vshrl.u32 %v7194_v27, 16  ;;  %v7317_v30 = vrot.slane %v7316_v28, 4  ;;  %v7337_v27 = vrot.slane %v7336_v54, 4 }
 0x5cf   : > { %v17564_v45 = vpop.f32.mrb[36].mxu0  ;;  %v17570_v61 = vpop.f32.mrb[36].mxu1  ;;  %v7375_v17 = vrot.slane %v7373_v63, 4  ;;  %v17599_v63 = vcombine.low %v7282_v25, %v7302_v43  ;;  %v19543_v43 = vld [vmem:[#allocation96_spill] sm:$0xff] }
 0x5d0   : > { %19525 = vst [vmem:[#allocation46_spill] sm:$0xff] %v17564_v45  ;;  %19526 = vst [vmem:[#allocation47_spill] sm:$0xff] %v17570_v61  ;;  %v17572_v36 = vpop.f32.mrb[37].mxu0  ;;  %v17574_v7 = vpop.f32.mrb[37].mxu1  ;;  %v7341_v61 = vrot.slane %v7339_v53, 5  ;;  %v7407_v53 = vshll.u32 %v7200_v12, 16 }
 0x5d1   : > { %19527 = vst [vmem:[#allocation48_spill] sm:$0xff] %v17572_v36  ;;  %19528 = vst [vmem:[#allocation33_spill] sm:$0xff] %v17574_v7  ;;  %v17576_v45 = vpop.f32.mrb[38].mxu0  ;;  %v17578_v4 = vpop.f32.mrb[38].mxu1  ;;  %v7198_v36 = vld [vmem:[%s14970_s11 + $0x128] sm:$0xff]  ;;  %v7361_v7 = vrot.slane %v7359_v14, 5  ;;  %v7322_v14 = vsel %vm15541_vm4, %v7317_v30, %v7321_v39 }
 0x5d2   : > { %19529 = vst [vmem:[#allocation152_spill] sm:$0xff] %v17576_v45  ;;  %19530 = vst [vmem:[#allocation11_spill] sm:$0xff] %v17578_v4  ;;  %v17580_v62 = vpop.f32.mrb[39].mxu0  ;;  %v17582_v19 = vpop.f32.mrb[39].mxu1  ;;  %v19533_v45 = vld [vmem:[#allocation92_spill] sm:$0xff]  ;;  %v7398_v46 = vshrl.u32 %v7198_v36, 16  ;;  %v7356_v15 = vor.u32 %v7355_v52, %v7341_v61 }
 0x5d3   : > { %19531 = vst [vmem:[#allocation34_spill] sm:$0xff] %v17580_v62  ;;  %19532 = vst [vmem:[#allocation49_spill] sm:$0xff] %v17582_v19  ;;  %v7196_v4 = vld [vmem:[%s14970_s11 + $0x88] sm:$0x11]  ;;  %v19534_v62 = vld [vmem:[#allocation93_spill] sm:$0xff]  ;;  %v7401_v28 = vshll.u32 %v7198_v36, 16  ;;  %v7342_v36 = vsel %vm15541_vm4, %v7337_v27, %v7341_v61 }
 0x5d4   : > { %10122 = vmatmul.mubr.bf16.vlgmr.msra.gmra.mrb[16].mxu0 %v17560_v33  ;;  %10348 = vmatmul.mubr.bf16.vlgmr.msra.gmra.mrb[16].mxu1 %v17560_v33  ;;  %v19535_v19 = vld [vmem:[#allocation94_spill] sm:$0xff]  ;;  %19538 = vst [vmem:[#allocation51_spill] sm:$0xff] %v17599_v63  ;;  %v19545_v30 = vld [vmem:[#allocation97_spill] sm:$0xff]  ;;  %v7400_v27 = vrot.slane %v7398_v46, 4  ;;  %v7423_v52 = vrot.slane %v7421_v49, 4 }
 0x5d5   : > { %10429 = vmatpush1.bf16.msra.mxu0 %v19533_v45  ;;  %10655 = vmatpush1.bf16.msra.mxu1 %v19534_v62  ;;  %v7379_v62 = vshll.u32 %v7196_v4, 16  ;;  %v7403_v61 = vrot.slane %v7401_v28, 5  ;;  %v19551_v46 = vld [vmem:[#allocation101_spill] sm:$0xff]  ;;  %v19552_v49 = vld [vmem:[#allocation102_spill] sm:$0xff] }
 0x5d6   : > { %10430 = vmatprep.subr.bf16.mxu0 %v19535_v19  ;;  %10656 = vmatprep.subr.bf16.mxu1 %v19537_v48  ;;  %v7376_v48 = vor.u32 %v7375_v17, %v7361_v7  ;;  %v7409_v17 = vrot.slane %v7407_v53, 5 }
 0x5d7   : > { %v17594_v0 = vpop.f32.mrb[40].mxu0  ;;  %13066 = vmatprep.mubr.msk.bf16.mxu0 %vm1748_vm1, %v17584_v35  ;;  %v17603_v45 = vpop.f32.mrb[40].mxu1  ;;  %13075 = vmatprep.mubr.msk.bf16.mxu1 %vm1748_vm1, %v17584_v35  ;;  %v7404_v28 = vor.u32 %v7403_v61, %v7400_v27  ;;  %v17645_v27 = vcombine.low %v7322_v14, %v7342_v36 }
 0x5d8   : > { %19536 = vst [vmem:[#allocation50_spill] sm:$0xff] %v17594_v0  ;;  %19539 = vst [vmem:[#allocation52_spill] sm:$0xff] %v17603_v45  ;;  %v17605_v54 = vpop.f32.mrb[41].mxu0  ;;  %v17611_v19 = vpop.f32.mrb[41].mxu1  ;;  %v7377_v45 = vrot.slane %v7376_v48, 4  ;;  %v7204_v0 = vld [vmem:[%s14970_s11 + $0x158] sm:$0xff]  ;;  %v7424_v53 = vor.u32 %v7423_v52, %v7409_v17 }
 0x5d9   : > { %19540 = vst [vmem:[#allocation53_spill] sm:$0xff] %v17605_v54  ;;  %19541 = vst [vmem:[#allocation54_spill] sm:$0xff] %v17611_v19  ;;  %v17613_v25 = vpop.f32.mrb[42].mxu0  ;;  %10431 = vmatpush1.bf16.msra.mxu0 %v19543_v43  ;;  %v17616_v39 = vpop.f32.mrb[42].mxu1  ;;  %10657 = vmatpush1.bf16.msra.mxu1 %v19545_v30  ;;  %v19547_v54 = vld [vmem:[#allocation98_spill] sm:$0xff]  ;;  %v19549_v19 = vld [vmem:[#allocation99_spill] sm:$0xff] }
 0x5da   : > { %19542 = vst [vmem:[#allocation55_spill] sm:$0xff] %v17613_v25  ;;  %19544 = vst [vmem:[#allocation56_spill] sm:$0xff] %v17616_v39  ;;  %v17619_v12 = vpop.f32.mrb[43].mxu0  ;;  %10432 = vmatprep.subr.bf16.mxu0 %v19547_v54  ;;  %v17622_v4 = vpop.f32.mrb[43].mxu1  ;;  %10658 = vmatprep.subr.bf16.mxu1 %v19549_v19  ;;  %v17625_v25 = vcombine.high %v7322_v14, %v7342_v36  ;;  %v7202_v43 = vld [vmem:[%s14970_s11 + $0x148] sm:$0xff]  ;;  %v7357_v39 = vrot.slane %v7356_v15, 4 }
 0x5db   : > { %19546 = vst [vmem:[#allocation57_spill] sm:$0xff] %v17619_v12  ;;  %19548 = vst [vmem:[#allocation58_spill] sm:$0xff] %v17622_v4  ;;  %v7381_v30 = vrot.slane %v7379_v62, 5  ;;  %v19550_v54 = vld [vmem:[#allocation100_spill] sm:$0xff]  ;;  %v7427_v19 = vshll.u32 %v7202_v43, 16  ;;  %v19554_v12 = vld [vmem:[#allocation103_spill] sm:$0xff] }
 0x5dc   : > { %10132 = vmatmul.mubr.bf16.gmra.mrb[20].mxu0 %v17599_v63  ;;  %10358 = vmatmul.mubr.bf16.gmra.mrb[20].mxu1 %v17599_v63  ;;  %v7441_v15 = vshrl.u32 %v7202_v43, 16  ;;  %v7447_v48 = vshll.u32 %v7204_v0, 16  ;;  %v7461_v62 = vshrl.u32 %v7204_v0, 16  ;;  %19557 = vst [vmem:[#allocation35_spill] sm:$0xff] %v17645_v27  ;;  %v7362_v61 = vsel %vm15541_vm4, %v7357_v39, %v7361_v7  ;;  %v19560_v0 = vld [vmem:[#allocation104_spill] sm:$0xff]  ;;  %v19564_v36 = vld [vmem:[#allocation106_spill] sm:$0xff] }
 0x5dd   : > { %10433 = vmatpush1.bf16.msra.mxu0 %v19550_v54  ;;  %10659 = vmatpush1.bf16.msra.mxu1 %v19551_v46  ;;  %v7405_v7 = vrot.slane %v7404_v28, 4  ;;  %v7425_v39 = vrot.slane %v7424_v53, 4  ;;  %v19569_v28 = vld [vmem:[#allocation109_spill] sm:$0xff]  ;;  %v19570_v53 = vld [vmem:[#allocation110_spill] sm:$0xff] }
 0x5de   : > { %10434 = vmatprep.subr.bf16.mxu0 %v19552_v49  ;;  %10660 = vmatprep.subr.bf16.mxu1 %v19554_v12  ;;  %v7382_v12 = vsel %vm15541_vm4, %v7377_v45, %v7381_v30  ;;  %v19562_v49 = vld [vmem:[#allocation105_spill] sm:$0xff]  ;;  %v19566_v30 = vld [vmem:[#allocation107_spill] sm:$0xff] }
 0x5df   : > { %v17634_v4 = vpop.f32.mrb[44].mxu0  ;;  %13067 = vmatprep.mubr.msk.bf16.mxu0 %vm1748_vm1, %v17625_v25  ;;  %v17639_v63 = vpop.f32.mrb[44].mxu1  ;;  %13076 = vmatprep.mubr.msk.bf16.mxu1 %vm1748_vm1, %v17625_v25 }
 0x5e0   : > { %19553 = vst [vmem:[#allocation59_spill] sm:$0xff] %v17634_v4  ;;  %19555 = vst [vmem:[#allocation12_spill] sm:$0xff] %v17639_v63  ;;  %v17641_v54 = vpop.f32.mrb[45].mxu0  ;;  %v17651_v52 = vpop.f32.mrb[45].mxu1  ;;  %v7463_v63 = vrot.slane %v7461_v62, 4 }
 0x5e1   : > { %19556 = vst [vmem:[#allocation13_spill] sm:$0xff] %v17641_v54  ;;  %19558 = vst [vmem:[#allocation36_spill] sm:$0xff] %v17651_v52  ;;  %v17653_v43 = vpop.f32.mrb[46].mxu0  ;;  %10435 = vmatpush1.bf16.msra.mxu0 %v19560_v0  ;;  %v17656_v46 = vpop.f32.mrb[46].mxu1  ;;  %10661 = vmatpush1.bf16.msra.mxu1 %v19562_v49  ;;  %v7429_v54 = vrot.slane %v7427_v19, 5  ;;  %v7443_v52 = vrot.slane %v7441_v15, 4  ;;  %v7410_v19 = vsel %vm15541_vm4, %v7405_v7, %v7409_v17 }
 0x5e2   : > { %19559 = vst [vmem:[#allocation60_spill] sm:$0xff] %v17653_v43  ;;  %19561 = vst [vmem:[#allocation61_spill] sm:$0xff] %v17656_v46  ;;  %v17659_v14 = vpop.f32.mrb[47].mxu0  ;;  %10436 = vmatprep.subr.bf16.mxu0 %v19564_v36  ;;  %v17662_v45 = vpop.f32.mrb[47].mxu1  ;;  %10662 = vmatprep.subr.bf16.mxu1 %v19566_v30  ;;  %v17665_v43 = vcombine.high %v7362_v61, %v7382_v12  ;;  %v7449_v0 = vrot.slane %v7447_v48, 5  ;;  %v7206_v49 = vld [vmem:[%s14970_s11 + $0x168] sm:$0xff] }
 0x5e3   : > { %19563 = vst [vmem:[#allocation62_spill] sm:$0xff] %v17659_v14  ;;  %19565 = vst [vmem:[#allocation63_spill] sm:$0xff] %v17662_v45  ;;  %v19568_v14 = vld [vmem:[#allocation108_spill] sm:$0xff]  ;;  %v7208_v36 = vld [vmem:[%s14970_s11 + $0x178] sm:$0xff]  ;;  %v7430_v15 = vsel %vm15541_vm4, %v7425_v39, %v7429_v54  ;;  %v7444_v62 = vor.u32 %v7443_v52, %v7429_v54 }
 0x5e4   : > { %19567 = vst [vmem:[#allocation64_spill] sm:$0xff] %v17665_v43  ;;  %10142 = vmatmul.mubr.bf16.gmra.mrb[24].mxu0 %v17645_v27  ;;  %10368 = vmatmul.mubr.bf16.gmra.mrb[24].mxu1 %v17645_v27  ;;  %v19571_v48 = vld [vmem:[#allocation111_spill] sm:$0xff]  ;;  %v7464_v30 = vor.u32 %v7463_v63, %v7449_v0  ;;  %v7467_v27 = vshll.u32 %v7206_v49, 16  ;;  %v7501_v17 = vshrl.u32 %v7208_v36, 16  ;;  %v19572_v7 = vld [vmem:[#allocation113_spill] sm:$0xff]  ;;  %v19573_v39 = vld [vmem:[#allocation114_spill] sm:$0xff]  ;;  %v17688_v45 = vcombine.high %v7410_v19, %v7430_v15 }
 0x5e5   : > { %10437 = vmatpush1.bf16.msra.mxu0 %v19568_v14  ;;  %10663 = vmatpush1.bf16.msra.mxu1 %v19569_v28  ;;  %v7481_v14 = vshrl.u32 %v7206_v49, 16  ;;  %v17683_v28 = vcombine.low %v7362_v61, %v7382_v12  ;;  %v19575_v63 = vld [vmem:[#allocation116_spill] sm:$0xff]  ;;  %v7445_v54 = vrot.slane %v7444_v62, 4  ;;  %v17698_v4 = vcombine.low %v7410_v19, %v7430_v15  ;;  %v19579_v62 = vld [vmem:[#allocation121_spill] sm:$0xff] }
 0x5e6   : > { %10438 = vmatprep.subr.bf16.mxu0 %v19570_v53  ;;  %10664 = vmatprep.subr.bf16.mxu1 %v19571_v48  ;;  %v7487_v53 = vshll.u32 %v7208_v36, 16  ;;  %v19574_v48 = vld [vmem:[#allocation115_spill] sm:$0xff]  ;;  %v7465_v52 = vrot.slane %v7464_v30, 4  ;;  %v7469_v49 = vrot.slane %v7467_v27, 5  ;;  %v7503_v36 = vrot.slane %v7501_v17, 4 }
 0x5e7   : > { %13068 = vmatprep.mubr.msk.bf16.mxu0 %vm1748_vm1, %v17665_v43  ;;  %13077 = vmatprep.mubr.msk.bf16.mxu1 %vm1748_vm1, %v17665_v43  ;;  %v7483_v46 = vrot.slane %v7481_v14, 4  ;;  %v7210_v61 = vld [vmem:[%s14970_s11 + $0x188] sm:$0xff]  ;;  %v7450_v27 = vsel %vm15541_vm4, %v7445_v54, %v7449_v0  ;;  %v19583_v0 = vld [vmem:[#allocation126_spill] sm:$0xff] }
 0x5e8   : > { %v7489_v12 = vrot.slane %v7487_v53, 5  ;;  %v19577_v43 = vld [vmem:[#allocation119_spill] sm:$0xff]  ;;  %v7470_v30 = vsel %vm15541_vm4, %v7465_v52, %v7469_v49  ;;  %v7507_v53 = vshll.u32 %v7210_v61, 16  ;;  %v7521_v17 = vshrl.u32 %v7210_v61, 16 }
 0x5e9   : > { %10439 = vmatpush1.bf16.msra.mxu0 %v19572_v7  ;;  %10665 = vmatpush1.bf16.msra.mxu1 %v19573_v39  ;;  %v19576_v7 = vld [vmem:[#allocation118_spill] sm:$0xff]  ;;  %v7484_v14 = vor.u32 %v7483_v46, %v7469_v49  ;;  %v17713_v54 = vcombine.high %v7450_v27, %v7470_v30 }
 0x5ea   : > { %10440 = vmatprep.subr.bf16.mxu0 %v19574_v48  ;;  %10666 = vmatprep.subr.bf16.mxu1 %v19575_v63  ;;  %v7212_v39 = vld [vmem:[%s14970_s11 + $0x198] sm:$0xff]  ;;  %v19578_v48 = vld [vmem:[#allocation120_spill] sm:$0xff]  ;;  %v19580_v63 = vld [vmem:[#allocation123_spill] sm:$0xff]  ;;  %v7509_v52 = vrot.slane %v7507_v53, 5 }
 0x5eb   : > { %v7527_v19 = vshll.u32 %v7212_v39, 16  ;;  %v7541_v15 = vshrl.u32 %v7212_v39, 16  ;;  %v7485_v46 = vrot.slane %v7484_v14, 4  ;;  %v19584_v39 = vld [vmem:[#allocation128_spill] sm:$0xff]  ;;  %v17724_v14 = vcombine.low %v7450_v27, %v7470_v30 }
 0x5ec   : > { %10152 = vmatmul.mubr.bf16.gmra.mrb[28].mxu0 %v17683_v28  ;;  %10378 = vmatmul.mubr.bf16.gmra.mrb[28].mxu1 %v17683_v28  ;;  %v19591_v27 = vld [vmem:[#allocation136_spill] sm:$0xff] }
 0x5ed   : > { %10441 = vmatpush1.bf16.msra.mxu0 %v19576_v7  ;;  %10667 = vmatpush1.bf16.msra.mxu1 %v19577_v43  ;;  %v7504_v43 = vor.u32 %v7503_v36, %v7489_v12  ;;  %v19581_v7 = vld [vmem:[#allocation124_spill] sm:$0xff]  ;;  %v7523_v36 = vrot.slane %v7521_v17, 4  ;;  %v7529_v61 = vrot.slane %v7527_v19, 5  ;;  %v7490_v53 = vsel %vm15541_vm4, %v7485_v46, %v7489_v12 }
 0x5ee   : > { %10442 = vmatprep.subr.bf16.mxu0 %v19578_v48  ;;  %10668 = vmatprep.subr.bf16.mxu1 %v19579_v62  ;;  %v19582_v48 = vld [vmem:[#allocation125_spill] sm:$0xff]  ;;  %v7543_v62 = vrot.slane %v7541_v15, 4 }
 0x5ef   : > { %13069 = vmatprep.mubr.msk.bf16.mxu0 %vm1748_vm1, %v17688_v45  ;;  %13078 = vmatprep.mubr.msk.bf16.mxu1 %vm1748_vm1, %v17688_v45  ;;  %v7505_v49 = vrot.slane %v7504_v43, 4  ;;  %v7524_v17 = vor.u32 %v7523_v36, %v7509_v52  ;;  %v19594_v36 = vld [vmem:[#allocation140_spill] sm:$0xff] }
 0x5f0   : > { %v7544_v19 = vor.u32 %v7543_v62, %v7529_v61  ;;  %v19595_v62 = vld [vmem:[#allocation141_spill] sm:$0xff] }
 0x5f1   : > { %10443 = vmatpush1.bf16.msra.mxu0 %v19580_v63  ;;  %10669 = vmatpush1.bf16.msra.mxu1 %v19581_v7  ;;  %v7214_v63 = vld [vmem:[%s14970_s11 + $0x1a8] sm:$0x11]  ;;  %v19585_v7 = vld [vmem:[#allocation129_spill] sm:$0xff]  ;;  %v7510_v43 = vsel %vm15541_vm4, %v7505_v49, %v7509_v52  ;;  %v7525_v12 = vrot.slane %v7524_v17, 4  ;;  %v19592_v52 = vld [vmem:[#allocation138_spill] sm:$0xff] }
 0x5f2   : > { %10444 = vmatprep.subr.bf16.mxu0 %v19582_v48  ;;  %10670 = vmatprep.subr.bf16.mxu1 %v19583_v0  ;;  %v19586_v48 = vld [vmem:[#allocation130_spill] sm:$0xff]  ;;  %v19587_v0 = vld [vmem:[#allocation131_spill] sm:$0xff]  ;;  %v7547_v15 = vshll.u32 %v7214_v63, 16  ;;  %v17736_v30 = vcombine.high %v7490_v53, %v7510_v43  ;;  %v7545_v46 = vrot.slane %v7544_v19, 4  ;;  %v17748_v63 = vcombine.low %v7490_v53, %v7510_v43  ;;  %v19600_v53 = vld [vmem:[#allocation148_spill] sm:$0xff] }
 0x5f3   : > { %v19593_v49 = vld [vmem:[#allocation139_spill] sm:$0xff]  ;;  %v7530_v17 = vsel %vm15541_vm4, %v7525_v12, %v7529_v61  ;;  %v19601_v61 = vld [vmem:[#allocation149_spill] sm:$0xff] }
 0x5f4   : > { %10162 = vmatmul.mubr.bf16.gmra.mrb[48].mxu0 %v17698_v4  ;;  %10388 = vmatmul.mubr.bf16.gmra.mrb[48].mxu1 %v17698_v4  ;;  %v19603_v43 = vld [vmem:[#allocation151_spill] sm:$0xff] }
 0x5f5   : > { %10445 = vmatpush1.bf16.msra.mxu0 %v19584_v39  ;;  %10671 = vmatpush1.bf16.msra.mxu1 %v19585_v7  ;;  %v19588_v39 = vld [vmem:[#allocation133_spill] sm:$0xff]  ;;  %v19589_v7 = vld [vmem:[#allocation134_spill] sm:$0xff] }
 0x5f6   : > { %10446 = vmatprep.subr.bf16.mxu0 %v19586_v48  ;;  %10672 = vmatprep.subr.bf16.mxu1 %v19587_v0  ;;  %v19590_v48 = vld [vmem:[#allocation135_spill] sm:$0xff]  ;;  %v7549_v0 = vrot.slane %v7547_v15, 5 }
 0x5f7   : > { %13070 = vmatprep.mubr.msk.bf16.mxu0 %vm1748_vm1, %v17713_v54  ;;  %13079 = vmatprep.mubr.msk.bf16.mxu1 %vm1748_vm1, %v17713_v54  ;;  %v19596_v15 = vld [vmem:[#allocation143_spill] sm:$0xff] }
 0x5f8   : > { %v7550_v19 = vsel %vm15541_vm4, %v7545_v46, %v7549_v0  ;;  %v19604_v46 = vld [vmem:[#allocation153_spill] sm:$0xff]  ;;  %v19605_v0 = vld [vmem:[#allocation154_spill] sm:$0xff] }
 0x5f9   : > { %10447 = vmatpush1.bf16.msra.mxu0 %v19588_v39  ;;  %10673 = vmatpush1.bf16.msra.mxu1 %v19589_v7  ;;  %v19597_v39 = vld [vmem:[#allocation144_spill] sm:$0xff]  ;;  %v19598_v7 = vld [vmem:[#allocation145_spill] sm:$0xff]  ;;  %v17770_v12 = vcombine.low %v7530_v17, %v7550_v19 }
 0x5fa   : > { %10448 = vmatprep.subr.bf16.mxu0 %v19590_v48  ;;  %10674 = vmatprep.subr.bf16.mxu1 %v19591_v27  ;;  %v19599_v48 = vld [vmem:[#allocation146_spill] sm:$0xff]  ;;  %v17758_v27 = vcombine.high %v7530_v17, %v7550_v19  ;;  %v19612_v17 = vld [vmem:[#allocation161_spill] sm:$0xff] }
 0x5fb   : > { %v19613_v19 = vld [vmem:[#allocation162_spill] sm:$0xff] }
 0x5fc   : > { %10172 = vmatmul.mubr.bf16.gmra.mrb[52].mxu0 %v17724_v14  ;;  %10398 = vmatmul.mubr.bf16.gmra.mrb[52].mxu1 %v17724_v14 }
 0x5fd   : > { %10449 = vmatpush1.bf16.msra.mxu0 %v19592_v52  ;;  %10675 = vmatpush1.bf16.msra.mxu1 %v19593_v49  ;;  %v19606_v52 = vld [vmem:[#allocation155_spill] sm:$0xff]  ;;  %v19607_v49 = vld [vmem:[#allocation156_spill] sm:$0xff] }
 0x5fe   : > { %10450 = vmatprep.subr.bf16.mxu0 %v19594_v36  ;;  %10676 = vmatprep.subr.bf16.mxu1 %v19595_v62  ;;  %v19608_v36 = vld [vmem:[#allocation157_spill] sm:$0xff]  ;;  %v19609_v62 = vld [vmem:[#allocation158_spill] sm:$0xff] }
 0x5ff   : > { %13071 = vmatprep.mubr.msk.bf16.mxu0 %vm1748_vm1, %v17736_v30  ;;  %13080 = vmatprep.mubr.msk.bf16.mxu1 %vm1748_vm1, %v17736_v30 }
 0x601   : > { %10451 = vmatpush1.bf16.msra.mxu0 %v19596_v15  ;;  %10677 = vmatpush1.bf16.msra.mxu1 %v19597_v39  ;;  %v19616_v15 = vld [vmem:[#allocation165_spill] sm:$0xff]  ;;  %v19618_v39 = vld [vmem:[#allocation167_spill] sm:$0xff] }
 0x602   : > { %10452 = vmatprep.subr.bf16.mxu0 %v19598_v7  ;;  %10678 = vmatprep.subr.bf16.mxu1 %v19599_v48  ;;  %v19619_v7 = vld [vmem:[#allocation168_spill] sm:$0xff]  ;;  %v19622_v48 = vld [vmem:[#allocation171_spill] sm:$0xff] }
 0x604   : > { %10182 = vmatmul.mubr.bf16.gmra.mrb[56].mxu0 %v17748_v63  ;;  %10408 = vmatmul.mubr.bf16.gmra.mrb[56].mxu1 %v17748_v63 }
 0x605   : > { %10453 = vmatpush1.bf16.msra.mxu0 %v19600_v53  ;;  %10679 = vmatpush1.bf16.msra.mxu1 %v19601_v61  ;;  %v19623_v53 = vld [vmem:[#allocation172_spill] sm:$0xff]  ;;  %v19624_v61 = vld [vmem:[#allocation173_spill] sm:$0xff] }
 0x606   : > { %10454 = vmatprep.subr.bf16.mxu0 %v19602_v2  ;;  %10680 = vmatprep.subr.bf16.mxu1 %v19603_v43 }
 0x607   : > { %13072 = vmatprep.mubr.msk.bf16.mxu0 %vm1748_vm1, %v17758_v27  ;;  %13081 = vmatprep.mubr.msk.bf16.mxu1 %vm1748_vm1, %v17758_v27 }
 0x609   : > { %10455 = vmatpush1.bf16.msra.mxu0 %v19604_v46  ;;  %10681 = vmatpush1.bf16.msra.mxu1 %v17016_v37  ;;  %v19611_v37 = vld [vmem:[#allocation160_spill] sm:$0xff] }
 0x60a   : > { %10456 = vmatprep.subr.bf16.mxu0 %v17018_v24  ;;  %10682 = vmatprep.subr.bf16.mxu1 %v19605_v0  ;;  %v19610_v24 = vld [vmem:[#allocation159_spill] sm:$0xff] }
 0x60c   : > { %10192 = vmatmul.mubr.bf16.gmra.mrb[60].mxu0 %v17770_v12  ;;  %10418 = vmatmul.mubr.bf16.gmra.mrb[60].mxu1 %v17770_v12 }
 0x60d   : > { %10457 = vmatpush1.bf16.msra.mxu0 %v19606_v52  ;;  %10683 = vmatpush1.bf16.msra.mxu1 %v19607_v49 }
 0x60e   : > { %10458 = vmatprep.subr.bf16.mxu0 %v19608_v36  ;;  %10684 = vmatprep.subr.bf16.mxu1 %v19609_v62 }
 0x60f   : > { %10460 = vmatprep.mubr.bf16.mxu0 %v17314_v44  ;;  %10686 = vmatprep.mubr.bf16.mxu1 %v17314_v44  ;;  %v19614_v44 = vld [vmem:[#allocation163_spill] sm:$0xff] }
 0x611   : > { %10459 = vmatpush1.bf16.msra.mxu0 %v17045_v21  ;;  %10685 = vmatpush1.bf16.msra.mxu1 %v19610_v24  ;;  %v19615_v21 = vld [vmem:[#allocation164_spill] sm:$0xff] }
 0x612   : > { %10541 = vmatprep.subr.bf16.mxu0 %v17051_v16  ;;  %10767 = vmatprep.subr.bf16.mxu1 %v19611_v37  ;;  %v19617_v16 = vld [vmem:[#allocation166_spill] sm:$0xff]  ;;  %v19627_v24 = vld [vmem:[#allocation176_spill] sm:$0xff]  ;;  %v19676_v37 = vld [vmem:[#allocation29_spill] sm:$0xff] }
 0x614   : > { %10461 = vmatmul.mubr.bf16.vlgmr.msra.gmra.mrb[80].mxu0 %v17327_v55  ;;  %10687 = vmatmul.mubr.bf16.vlgmr.msra.gmra.mrb[80].mxu1 %v17327_v55  ;;  %v19620_v55 = vld [vmem:[#allocation169_spill] sm:$0xff] }
 0x615   : > { %10542 = vmatpush1.bf16.msra.mxu0 %v19612_v17  ;;  %10768 = vmatpush1.bf16.msra.mxu1 %v19613_v19  ;;  %v19628_v17 = vld [vmem:[#allocation177_spill] sm:$0xff] }
 0x616   : > { %10470 = vmatprep.mubr.bf16.mxu0 %v17333_v29  ;;  %10696 = vmatprep.mubr.bf16.mxu1 %v17333_v29  ;;  %v19621_v29 = vld [vmem:[#allocation170_spill] sm:$0xff] }
 0x617   : > { %10543 = vmatprep.subr.bf16.mxu0 %v19614_v44  ;;  %10769 = vmatprep.subr.bf16.mxu1 %v19615_v21  ;;  %v19629_v21 = vld [vmem:[#allocation15_spill] sm:$0xff] }
 0x619   : > { %10544 = vmatpush1.bf16.msra.mxu0 %v19616_v15  ;;  %10770 = vmatpush1.bf16.msra.mxu1 %v19617_v16  ;;  %v19638_v15 = vld [vmem:[#allocation181_spill] sm:$0xff] }
 0x61a   : > { %10545 = vmatprep.subr.bf16.mxu0 %v19618_v39  ;;  %10771 = vmatprep.subr.bf16.mxu1 %v19619_v7  ;;  %v19631_v7 = vld [vmem:[#allocation16_spill] sm:$0xff] }
 0x61c   : > { %10471 = vmatmul.mubr.bf16.gmra.mrb[84].mxu0 %v17350_v60  ;;  %10697 = vmatmul.mubr.bf16.gmra.mrb[84].mxu1 %v17350_v60  ;;  %v19625_v60 = vld [vmem:[#allocation174_spill] sm:$0xff] }
 0x61d   : > { %10480 = vmatprep.mubr.bf16.mxu0 %v17354_v18  ;;  %10706 = vmatprep.mubr.bf16.mxu1 %v17354_v18 }
 0x61e   : > { %10546 = vmatpush1.bf16.msra.mxu0 %v17088_v22  ;;  %10772 = vmatpush1.bf16.msra.mxu1 %v17091_v9 }
 0x61f   : > { %10547 = vmatprep.subr.bf16.mxu0 %v19620_v55  ;;  %10773 = vmatprep.subr.bf16.mxu1 %v19621_v29  ;;  %v19632_v29 = vld [vmem:[#allocation17_spill] sm:$0xff]  ;;  %v19642_v55 = vld [vmem:[#allocation183_spill] sm:$0xff] }
 0x622   : > { %10548 = vmatpush1.bf16.msra.mxu0 %v19622_v48  ;;  %10774 = vmatpush1.bf16.msra.mxu1 %v19623_v53  ;;  %v19640_v48 = vld [vmem:[#allocation182_spill] sm:$0xff] }
 0x623   : > { %10549 = vmatprep.subr.bf16.mxu0 %v19624_v61  ;;  %10775 = vmatprep.subr.bf16.mxu1 %v19625_v60  ;;  %v19634_v61 = vld [vmem:[#allocation179_spill] sm:$0xff]  ;;  %v19635_v60 = vld [vmem:[#allocation180_spill] sm:$0xff] }
 0x624   : > { %10481 = vmatmul.mubr.bf16.gmra.mrb[88].mxu0 %v17372_v13  ;;  %10707 = vmatmul.mubr.bf16.gmra.mrb[88].mxu1 %v17372_v13  ;;  %v19626_v13 = vld [vmem:[#allocation175_spill] sm:$0xff] }
 0x625   : > { %10490 = vmatprep.mubr.bf16.mxu0 %v17375_v5  ;;  %10716 = vmatprep.mubr.bf16.mxu1 %v17375_v5 }
 0x626   : > { %10550 = vmatpush1.bf16.msra.mxu0 %v17115_v38  ;;  %10776 = vmatpush1.bf16.msra.mxu1 %v17119_v40 }
 0x627   : > { %v17817_v22 = vpop.f32.mrb[64].mxu0  ;;  %10551 = vmatprep.subr.bf16.mxu0 %v17121_v11  ;;  %v17823_v18 = vpop.f32.mrb[64].mxu1  ;;  %10777 = vmatprep.subr.bf16.mxu1 %v19626_v13 }
 0x628   : > { %v17825_v2 = vpop.f32.mrb[65].mxu0  ;;  %v17832_v43 = vpop.f32.mrb[65].mxu1 }
 0x629   : > { %v17834_v40 = vpop.f32.mrb[66].mxu0  ;;  %v17840_v0 = vpop.f32.mrb[66].mxu1 }
 0x62a   : > { %v17842_v52 = vpop.f32.mrb[67].mxu0  ;;  %10552 = vmatpush1.bf16.msra.mxu0 %v17131_v31  ;;  %v17849_v62 = vpop.f32.mrb[67].mxu1  ;;  %10778 = vmatpush1.bf16.msra.mxu1 %v17135_v56 }
 0x62b   : > { %10553 = vmatprep.subr.bf16.mxu0 %v19627_v24  ;;  %10779 = vmatprep.subr.bf16.mxu1 %v19628_v17  ;;  %v19637_v17 = vld [vmem:[#allocation112_spill] sm:$0xff]  ;;  %v19659_v24 = vld [vmem:[#allocation23_spill] sm:$0xff] }
 0x62c   : > { %10491 = vmatmul.mubr.bf16.gmra.mrb[92].mxu0 %v17394_v47  ;;  %10717 = vmatmul.mubr.bf16.gmra.mrb[92].mxu1 %v17394_v47  ;;  %v19658_v47 = vld [vmem:[#allocation21_spill] sm:$0xff] }
 0x62d   : > { %10500 = vmatprep.mubr.bf16.mxu0 %v17407_v10  ;;  %10726 = vmatprep.mubr.bf16.mxu1 %v17407_v10 }
 0x62e   : > { %10554 = vmatpush1.bf16.msra.mxu0 %v17143_v3  ;;  %10780 = vmatpush1.bf16.msra.mxu1 %v17147_v8 }
 0x62f   : > { %v17861_v31 = vpop.f32.mrb[68].mxu0  ;;  %10555 = vmatprep.subr.bf16.mxu0 %v17149_v50  ;;  %v17867_v19 = vpop.f32.mrb[68].mxu1  ;;  %10781 = vmatprep.subr.bf16.mxu1 %v17153_v58  ;;  %v19630_v58 = vld [vmem:[#allocation178_spill] sm:$0xff] }
 0x630   : > { %v17869_v44 = vpop.f32.mrb[69].mxu0  ;;  %v17876_v10 = vpop.f32.mrb[69].mxu1 }
 0x631   : > { %v17878_v8 = vpop.f32.mrb[70].mxu0  ;;  %v17884_v16 = vpop.f32.mrb[70].mxu1 }
 0x632   : > { %v17886_v39 = vpop.f32.mrb[71].mxu0  ;;  %10556 = vmatpush1.bf16.msra.mxu0 %v19630_v58  ;;  %v17893_v53 = vpop.f32.mrb[71].mxu1  ;;  %10782 = vmatpush1.bf16.msra.mxu1 %v19634_v61  ;;  %v19639_v58 = vld [vmem:[#allocation14_spill] sm:$0xff] }
 0x633   : > { %19633 = vst [vmem:[#allocation65_spill] sm:$0xff] %v17893_v53  ;;  %13082 = vmatprep.subr.msk.bf16.mxu0 %vm1797_vm0, %v19635_v60  ;;  %13091 = vmatprep.subr.msk.bf16.mxu1 %vm1797_vm0, %v19638_v15 }
 0x634   : > { %10501 = vmatmul.mubr.bf16.gmra.mrb[112].mxu0 %v19637_v17  ;;  %10727 = vmatmul.mubr.bf16.gmra.mrb[112].mxu1 %v19637_v17 }
 0x635   : > { %10510 = vmatprep.mubr.bf16.mxu0 %v19639_v58  ;;  %10736 = vmatprep.mubr.bf16.mxu1 %v19639_v58 }
 0x636   : > { %10558 = vmatpush1.bf16.msra.mxu0 %v19640_v48  ;;  %10784 = vmatpush1.bf16.msra.mxu1 %v19642_v55 }
 0x637   : > { %v17907_v61 = vpop.f32.mrb[72].mxu0  ;;  %v17912_v50 = vpop.f32.mrb[72].mxu1 }
 0x638   : > { %19641 = vst [vmem:[#allocation66_spill] sm:$0xff] %v17907_v61  ;;  %19644 = vst [vmem:[#allocation67_spill] sm:$0xff] %v17912_v50  ;;  %v17914_v3 = vpop.f32.mrb[73].mxu0  ;;  %v17920_v58 = vpop.f32.mrb[73].mxu1 }
 0x639   : > { %19645 = vst [vmem:[#allocation68_spill] sm:$0xff] %v17914_v3  ;;  %19648 = vst [vmem:[#allocation69_spill] sm:$0xff] %v17920_v58  ;;  %v17922_v48 = vpop.f32.mrb[74].mxu0  ;;  %v17928_v49 = vpop.f32.mrb[74].mxu1 }
 0x63a   : > { %19649 = vst [vmem:[#allocation70_spill] sm:$0xff] %v17922_v48  ;;  %19652 = vst [vmem:[#allocation71_spill] sm:$0xff] %v17928_v49  ;;  %v17930_v46 = vpop.f32.mrb[75].mxu0  ;;  %v17936_v5 = vpop.f32.mrb[75].mxu1  ;;  %v19677_v49 = vld [vmem:[#allocation31_spill] sm:$0xff] }
 0x63b   : > { %19653 = vst [vmem:[#allocation72_spill] sm:$0xff] %v17930_v46  ;;  %19656 = vst [vmem:[#allocation73_spill] sm:$0xff] %v17936_v5 }
 0x63c   : > { %10511 = vmatmul.mubr.bf16.gmra.mrb[116].mxu0 %v19658_v47  ;;  %10737 = vmatmul.mubr.bf16.gmra.mrb[116].mxu1 %v19658_v47 }
 0x63d   : > { %10520 = vmatprep.mubr.bf16.mxu0 %v19659_v24  ;;  %10746 = vmatprep.mubr.bf16.mxu1 %v19659_v24  ;;  %v19694_v24 = vld [vmem:[#allocation42_spill] sm:$0xff] }
 0x63f   : > { %v17944_v55 = vpop.f32.mrb[76].mxu0  ;;  %v17948_v11 = vpop.f32.mrb[76].mxu1 }
 0x640   : > { %19660 = vst [vmem:[#allocation74_spill] sm:$0xff] %v17944_v55  ;;  %19662 = vst [vmem:[#allocation75_spill] sm:$0xff] %v17948_v11  ;;  %v17950_v56 = vpop.f32.mrb[77].mxu0  ;;  %v17956_v47 = vpop.f32.mrb[77].mxu1 }
 0x641   : > { %19663 = vst [vmem:[#allocation76_spill] sm:$0xff] %v17950_v56  ;;  %19666 = vst [vmem:[#allocation77_spill] sm:$0xff] %v17956_v47  ;;  %v17958_v38 = vpop.f32.mrb[78].mxu0  ;;  %v17964_v55 = vpop.f32.mrb[78].mxu1 }
 0x642   : > { %19667 = vst [vmem:[#allocation78_spill] sm:$0xff] %v17958_v38  ;;  %19670 = vst [vmem:[#allocation79_spill] sm:$0xff] %v17964_v55  ;;  %v17966_v17 = vpop.f32.mrb[79].mxu0  ;;  %v17972_v56 = vpop.f32.mrb[79].mxu1  ;;  %v19695_v55 = vld [vmem:[#allocation43_spill] sm:$0xff] }
 0x643   : > { %19671 = vst [vmem:[#allocation80_spill] sm:$0xff] %v17966_v17  ;;  %19674 = vst [vmem:[#allocation81_spill] sm:$0xff] %v17972_v56 }
 0x644   : > { %10521 = vmatmul.mubr.bf16.gmra.mrb[120].mxu0 %v19676_v37  ;;  %10747 = vmatmul.mubr.bf16.gmra.mrb[120].mxu1 %v19676_v37 }
 0x645   : > { %10530 = vmatprep.mubr.bf16.mxu0 %v19677_v49  ;;  %10756 = vmatprep.mubr.bf16.mxu1 %v19677_v49 }
 0x647   : > { %v17980_v48 = vpop.f32.mrb[96].mxu0  ;;  %v17984_v58 = vpop.f32.mrb[96].mxu1 }
 0x648   : > { %19678 = vst [vmem:[#allocation82_spill] sm:$0xff] %v17980_v48  ;;  %19680 = vst [vmem:[#allocation83_spill] sm:$0xff] %v17984_v58  ;;  %v17986_v9 = vpop.f32.mrb[97].mxu0  ;;  %v17992_v37 = vpop.f32.mrb[97].mxu1 }
 0x649   : > { %19681 = vst [vmem:[#allocation84_spill] sm:$0xff] %v17986_v9  ;;  %19684 = vst [vmem:[#allocation85_spill] sm:$0xff] %v17992_v37  ;;  %v17994_v11 = vpop.f32.mrb[98].mxu0  ;;  %v18000_v48 = vpop.f32.mrb[98].mxu1 }
 0x64a   : > { %19685 = vst [vmem:[#allocation86_spill] sm:$0xff] %v17994_v11  ;;  %19688 = vst [vmem:[#allocation87_spill] sm:$0xff] %v18000_v48  ;;  %v18002_v3 = vpop.f32.mrb[99].mxu0  ;;  %v18008_v9 = vpop.f32.mrb[99].mxu1 }
 0x64b   : > { %19689 = vst [vmem:[#allocation88_spill] sm:$0xff] %v18002_v3  ;;  %19692 = vst [vmem:[#allocation90_spill] sm:$0xff] %v18008_v9 }
 0x64c   : > { %10531 = vmatmul.mubr.bf16.gmra.mrb[124].mxu0 %v19694_v24  ;;  %10757 = vmatmul.mubr.bf16.gmra.mrb[124].mxu1 %v19694_v24  ;;  %v19746_v24 = vld [vmem:[#allocation64_spill] sm:$0xff] }
 0x64d   : > { %13083 = vmatprep.mubr.msk.bf16.mxu0 %vm1748_vm1, %v19695_v55  ;;  %13092 = vmatprep.mubr.msk.bf16.mxu1 %vm1748_vm1, %v19695_v55 }
 0x64f   : > { %v18018_v38 = vpop.f32.mrb[100].mxu0  ;;  %v18022_v3 = vpop.f32.mrb[100].mxu1 }
 0x650   : > { %19696 = vst [vmem:[#allocation89_spill] sm:$0xff] %v18018_v38  ;;  %19698 = vst [vmem:[#allocation91_spill] sm:$0xff] %v18022_v3  ;;  %v18024_v58 = vpop.f32.mrb[101].mxu0  ;;  %v18030_v48 = vpop.f32.mrb[101].mxu1 }
 0x651   : > { %19699 = vst [vmem:[#allocation92_spill] sm:$0xff] %v18024_v58  ;;  %19702 = vst [vmem:[#allocation93_spill] sm:$0xff] %v18030_v48  ;;  %v18032_v47 = vpop.f32.mrb[102].mxu0  ;;  %v18038_v38 = vpop.f32.mrb[102].mxu1  ;;  %v19728_v48 = vld [vmem:[#allocation51_spill] sm:$0xff] }
 0x652   : > { %19703 = vst [vmem:[#allocation94_spill] sm:$0xff] %v18032_v47  ;;  %19706 = vst [vmem:[#allocation95_spill] sm:$0xff] %v18038_v38  ;;  %v18040_v46 = vpop.f32.mrb[103].mxu0  ;;  %v18046_v58 = vpop.f32.mrb[103].mxu1 }
 0x653   : > { %19707 = vst [vmem:[#allocation96_spill] sm:$0xff] %v18040_v46  ;;  %19710 = vst [vmem:[#allocation97_spill] sm:$0xff] %v18046_v58 }
 0x654   : > { %10574 = vmatmul.mubr.bf16.vlgmr.msra.gmra.mrb[80].mxu0 %v17560_v33  ;;  %10800 = vmatmul.mubr.bf16.vlgmr.msra.gmra.mrb[80].mxu1 %v17560_v33 }
 0x655   : > { %13084 = vmatprep.mubr.msk.bf16.mxu0 %vm1748_vm1, %v17584_v35  ;;  %13093 = vmatprep.mubr.msk.bf16.mxu1 %vm1748_vm1, %v17584_v35 }
 0x657   : > { %v18056_v5 = vpop.f32.mrb[104].mxu0  ;;  %v18060_v11 = vpop.f32.mrb[104].mxu1 }
 0x658   : > { %19712 = vst [vmem:[#allocation98_spill] sm:$0xff] %v18056_v5  ;;  %19714 = vst [vmem:[#allocation99_spill] sm:$0xff] %v18060_v11  ;;  %v18062_v46 = vpop.f32.mrb[105].mxu0  ;;  %v18068_v3 = vpop.f32.mrb[105].mxu1 }
 0x659   : > { %19715 = vst [vmem:[#allocation100_spill] sm:$0xff] %v18062_v46  ;;  %19718 = vst [vmem:[#allocation101_spill] sm:$0xff] %v18068_v3  ;;  %v18070_v38 = vpop.f32.mrb[106].mxu0  ;;  %v18076_v5 = vpop.f32.mrb[106].mxu1  ;;  %v19745_v3 = vld [vmem:[#allocation35_spill] sm:$0xff] }
 0x65a   : > { %19719 = vst [vmem:[#allocation102_spill] sm:$0xff] %v18070_v38  ;;  %19722 = vst [vmem:[#allocation103_spill] sm:$0xff] %v18076_v5  ;;  %v18078_v9 = vpop.f32.mrb[107].mxu0  ;;  %v18084_v46 = vpop.f32.mrb[107].mxu1 }
 0x65b   : > { %19723 = vst [vmem:[#allocation104_spill] sm:$0xff] %v18078_v9  ;;  %19726 = vst [vmem:[#allocation105_spill] sm:$0xff] %v18084_v46 }
 0x65c   : > { %10584 = vmatmul.mubr.bf16.gmra.mrb[84].mxu0 %v19728_v48  ;;  %10810 = vmatmul.mubr.bf16.gmra.mrb[84].mxu1 %v19728_v48 }
 0x65d   : > { %13085 = vmatprep.mubr.msk.bf16.mxu0 %vm1748_vm1, %v17625_v25  ;;  %13094 = vmatprep.mubr.msk.bf16.mxu1 %vm1748_vm1, %v17625_v25 }
 0x65f   : > { %v18094_v56 = vpop.f32.mrb[108].mxu0  ;;  %v18098_v37 = vpop.f32.mrb[108].mxu1 }
 0x660   : > { %19729 = vst [vmem:[#allocation106_spill] sm:$0xff] %v18094_v56  ;;  %19731 = vst [vmem:[#allocation107_spill] sm:$0xff] %v18098_v37  ;;  %v18100_v9 = vpop.f32.mrb[109].mxu0  ;;  %v18106_v11 = vpop.f32.mrb[109].mxu1 }
 0x661   : > { %19732 = vst [vmem:[#allocation108_spill] sm:$0xff] %v18100_v9  ;;  %19735 = vst [vmem:[#allocation109_spill] sm:$0xff] %v18106_v11  ;;  %v18108_v5 = vpop.f32.mrb[110].mxu0  ;;  %v18114_v56 = vpop.f32.mrb[110].mxu1 }
 0x662   : > { %19736 = vst [vmem:[#allocation110_spill] sm:$0xff] %v18108_v5  ;;  %19739 = vst [vmem:[#allocation111_spill] sm:$0xff] %v18114_v56  ;;  %v18116_v58 = vpop.f32.mrb[111].mxu0  ;;  %v18122_v9 = vpop.f32.mrb[111].mxu1 }
 0x663   : > { %19740 = vst [vmem:[#allocation113_spill] sm:$0xff] %v18116_v58  ;;  %19743 = vst [vmem:[#allocation114_spill] sm:$0xff] %v18122_v9 }
 0x664   : > { %10594 = vmatmul.mubr.bf16.gmra.mrb[88].mxu0 %v19745_v3  ;;  %10820 = vmatmul.mubr.bf16.gmra.mrb[88].mxu1 %v19745_v3 }
 0x665   : > { %13086 = vmatprep.mubr.msk.bf16.mxu0 %vm1748_vm1, %v19746_v24  ;;  %13095 = vmatprep.mubr.msk.bf16.mxu1 %vm1748_vm1, %v19746_v24 }
 0x66c   : > { %10604 = vmatmul.mubr.bf16.gmra.mrb[92].mxu0 %v17683_v28  ;;  %10830 = vmatmul.mubr.bf16.gmra.mrb[92].mxu1 %v17683_v28 }
 0x66d   : > { %13087 = vmatprep.mubr.msk.bf16.mxu0 %vm1748_vm1, %v17688_v45  ;;  %13096 = vmatprep.mubr.msk.bf16.mxu1 %vm1748_vm1, %v17688_v45 }
 0x674   : > { %10614 = vmatmul.mubr.bf16.gmra.mrb[112].mxu0 %v17698_v4  ;;  %10840 = vmatmul.mubr.bf16.gmra.mrb[112].mxu1 %v17698_v4 }
 0x675   : > { %13088 = vmatprep.mubr.msk.bf16.mxu0 %vm1748_vm1, %v17713_v54  ;;  %13097 = vmatprep.mubr.msk.bf16.mxu1 %vm1748_vm1, %v17713_v54 }
 0x67c   : > { %10624 = vmatmul.mubr.bf16.gmra.mrb[116].mxu0 %v17724_v14  ;;  %10850 = vmatmul.mubr.bf16.gmra.mrb[116].mxu1 %v17724_v14 }
 0x67d   : > { %13089 = vmatprep.mubr.msk.bf16.mxu0 %vm1748_vm1, %v17736_v30  ;;  %13098 = vmatprep.mubr.msk.bf16.mxu1 %vm1748_vm1, %v17736_v30 }
 0x684   : > { %10634 = vmatmul.mubr.bf16.gmra.mrb[120].mxu0 %v17748_v63  ;;  %10860 = vmatmul.mubr.bf16.gmra.mrb[120].mxu1 %v17748_v63 }
 0x685   : > { %13090 = vmatprep.mubr.msk.bf16.mxu0 %vm1748_vm1, %v17758_v27  ;;  %13099 = vmatprep.mubr.msk.bf16.mxu1 %vm1748_vm1, %v17758_v27 }
 0x68c   : > { %10644 = vmatmul.mubr.bf16.gmra.mrb[124].mxu0 %v17770_v12  ;;  %10870 = vmatmul.mubr.bf16.gmra.mrb[124].mxu1 %v17770_v12 }
 0x6a7   : > { %v18158_v4 = vpop.f32.mrb[16].mxu0  ;;  %v18160_v45 = vpop.f32.mrb[16].mxu1 }
 0x6a8   : > { %v18162_v28 = vpop.f32.mrb[17].mxu0  ;;  %v18164_v54 = vpop.f32.mrb[17].mxu1 }
 0x6a9   : > { %v18166_v14 = vpop.f32.mrb[18].mxu0  ;;  %v18168_v30 = vpop.f32.mrb[18].mxu1 }
 0x6aa   : > { %v18170_v63 = vpop.f32.mrb[19].mxu0  ;;  %v18172_v3 = vpop.f32.mrb[19].mxu1 }
 0x6af   : > { %v18174_v27 = vpop.f32.mrb[20].mxu0  ;;  %v18176_v24 = vpop.f32.mrb[20].mxu1 }
 0x6b0   : > { %v18178_v12 = vpop.f32.mrb[21].mxu0  ;;  %v18180_v17 = vpop.f32.mrb[21].mxu1 }
 0x6b1   : > { %v18182_v33 = vpop.f32.mrb[22].mxu0  ;;  %v18184_v46 = vpop.f32.mrb[22].mxu1 }
 0x6b2   : > { %v18186_v36 = vpop.f32.mrb[23].mxu0  ;;  %v18188_v9 = vpop.f32.mrb[23].mxu1 }
 0x6b7   : > { %v18190_v48 = vpop.f32.mrb[24].mxu0  ;;  %v18192_v58 = vpop.f32.mrb[24].mxu1 }
 0x6b8   : > { %19747 = vst [vmem:[#allocation115_spill] sm:$0xff] %v18190_v48  ;;  %19748 = vst [vmem:[#allocation116_spill] sm:$0xff] %v18192_v58  ;;  %v18194_v37 = vpop.f32.mrb[25].mxu0  ;;  %v18196_v56 = vpop.f32.mrb[25].mxu1 }
 0x6b9   : > { %19749 = vst [vmem:[#allocation118_spill] sm:$0xff] %v18194_v37  ;;  %19750 = vst [vmem:[#allocation119_spill] sm:$0xff] %v18196_v56  ;;  %v18198_v47 = vpop.f32.mrb[26].mxu0  ;;  %v18200_v5 = vpop.f32.mrb[26].mxu1 }
 0x6ba   : > { %19751 = vst [vmem:[#allocation120_spill] sm:$0xff] %v18198_v47  ;;  %19752 = vst [vmem:[#allocation121_spill] sm:$0xff] %v18200_v5  ;;  %v18202_v38 = vpop.f32.mrb[27].mxu0  ;;  %v18204_v11 = vpop.f32.mrb[27].mxu1 }
 0x6bb   : > { %19753 = vst [vmem:[#allocation123_spill] sm:$0xff] %v18202_v38  ;;  %19754 = vst [vmem:[#allocation124_spill] sm:$0xff] %v18204_v11 }
 0x6bf   : > { %v18206_v25 = vpop.f32.mrb[28].mxu0  ;;  %v18208_v35 = vpop.f32.mrb[28].mxu1 }
 0x6c0   : > { %19755 = vst [vmem:[#allocation125_spill] sm:$0xff] %v18206_v25  ;;  %19756 = vst [vmem:[#allocation126_spill] sm:$0xff] %v18208_v35  ;;  %v18210_v55 = vpop.f32.mrb[29].mxu0  ;;  %v18212_v49 = vpop.f32.mrb[29].mxu1 }
 0x6c1   : > { %19757 = vst [vmem:[#allocation128_spill] sm:$0xff] %v18210_v55  ;;  %19758 = vst [vmem:[#allocation129_spill] sm:$0xff] %v18212_v49  ;;  %v18214_v50 = vpop.f32.mrb[30].mxu0  ;;  %v18216_v37 = vpop.f32.mrb[30].mxu1 }
 0x6c2   : > { %19759 = vst [vmem:[#allocation130_spill] sm:$0xff] %v18214_v50  ;;  %19760 = vst [vmem:[#allocation131_spill] sm:$0xff] %v18216_v37  ;;  %v18218_v56 = vpop.f32.mrb[31].mxu0  ;;  %v18220_v47 = vpop.f32.mrb[31].mxu1 }
 0x6c3   : > { %19761 = vst [vmem:[#allocation133_spill] sm:$0xff] %v18218_v56  ;;  %19762 = vst [vmem:[#allocation134_spill] sm:$0xff] %v18220_v47 }
 0x6c7   : > { %v18222_v5 = vpop.f32.mrb[48].mxu0  ;;  %v18224_v38 = vpop.f32.mrb[48].mxu1 }
 0x6c8   : > { %19763 = vst [vmem:[#allocation135_spill] sm:$0xff] %v18222_v5  ;;  %19764 = vst [vmem:[#allocation136_spill] sm:$0xff] %v18224_v38  ;;  %v18226_v11 = vpop.f32.mrb[49].mxu0  ;;  %v18228_v25 = vpop.f32.mrb[49].mxu1 }
 0x6c9   : > { %19765 = vst [vmem:[#allocation138_spill] sm:$0xff] %v18226_v11  ;;  %19766 = vst [vmem:[#allocation139_spill] sm:$0xff] %v18228_v25  ;;  %v18230_v35 = vpop.f32.mrb[50].mxu0  ;;  %v18232_v55 = vpop.f32.mrb[50].mxu1 }
 0x6ca   : > { %19767 = vst [vmem:[#allocation140_spill] sm:$0xff] %v18230_v35  ;;  %19768 = vst [vmem:[#allocation141_spill] sm:$0xff] %v18232_v55  ;;  %v18234_v49 = vpop.f32.mrb[51].mxu0  ;;  %v18236_v50 = vpop.f32.mrb[51].mxu1 }
 0x6cb   : > { %19769 = vst [vmem:[#allocation143_spill] sm:$0xff] %v18234_v49  ;;  %19770 = vst [vmem:[#allocation144_spill] sm:$0xff] %v18236_v50 }
 0x6cf   : > { %v18238_v37 = vpop.f32.mrb[52].mxu0  ;;  %v18240_v56 = vpop.f32.mrb[52].mxu1 }
 0x6d0   : > { %19771 = vst [vmem:[#allocation145_spill] sm:$0xff] %v18238_v37  ;;  %19772 = vst [vmem:[#allocation146_spill] sm:$0xff] %v18240_v56  ;;  %v18242_v47 = vpop.f32.mrb[53].mxu0  ;;  %v18244_v5 = vpop.f32.mrb[53].mxu1 }
 0x6d1   : > { %19773 = vst [vmem:[#allocation148_spill] sm:$0xff] %v18242_v47  ;;  %19774 = vst [vmem:[#allocation149_spill] sm:$0xff] %v18244_v5  ;;  %v18246_v38 = vpop.f32.mrb[54].mxu0  ;;  %v18248_v11 = vpop.f32.mrb[54].mxu1 }
 0x6d2   : > { %19775 = vst [vmem:[#allocation150_spill] sm:$0xff] %v18246_v38  ;;  %19776 = vst [vmem:[#allocation151_spill] sm:$0xff] %v18248_v11  ;;  %v18250_v25 = vpop.f32.mrb[55].mxu0  ;;  %v18252_v35 = vpop.f32.mrb[55].mxu1 }
 0x6d3   : > { %19777 = vst [vmem:[#allocation153_spill] sm:$0xff] %v18250_v25  ;;  %19778 = vst [vmem:[#allocation154_spill] sm:$0xff] %v18252_v35 }
 0x6d7   : > { %v18254_v55 = vpop.f32.mrb[56].mxu0  ;;  %v18256_v49 = vpop.f32.mrb[56].mxu1 }
 0x6d8   : > { %19779 = vst [vmem:[#allocation155_spill] sm:$0xff] %v18254_v55  ;;  %19780 = vst [vmem:[#allocation156_spill] sm:$0xff] %v18256_v49  ;;  %v18258_v50 = vpop.f32.mrb[57].mxu0  ;;  %v18260_v37 = vpop.f32.mrb[57].mxu1 }
 0x6d9   : > { %19781 = vst [vmem:[#allocation157_spill] sm:$0xff] %v18258_v50  ;;  %19782 = vst [vmem:[#allocation158_spill] sm:$0xff] %v18260_v37  ;;  %v18262_v56 = vpop.f32.mrb[58].mxu0  ;;  %v18264_v47 = vpop.f32.mrb[58].mxu1 }
 0x6da   : > { %19783 = vst [vmem:[#allocation159_spill] sm:$0xff] %v18262_v56  ;;  %19784 = vst [vmem:[#allocation160_spill] sm:$0xff] %v18264_v47  ;;  %v18266_v5 = vpop.f32.mrb[59].mxu0  ;;  %v18268_v38 = vpop.f32.mrb[59].mxu1  ;;  %v11586_v47 = vlaneseq }
 0x6db   : > { %19785 = vst [vmem:[#allocation161_spill] sm:$0xff] %v18266_v5  ;;  %19786 = vst [vmem:[#allocation162_spill] sm:$0xff] %v18268_v38  ;;  %v11584_v38 = vld [vmem:[#allocation5] sm:$0xf] }
 0x6dc   : > { %v11587_v5 = vshrl.u32 %v11586_v47, 7 }
 0x6de   : > { %v11588_v15 = vsub.s32 0, %v11587_v5  ;;  %v11592_v61 = vsub.s32 1, %v11587_v5 }
 0x6df   : > { %v18270_v11 = vpop.f32.mrb[60].mxu0  ;;  %v18272_v25 = vpop.f32.mrb[60].mxu1 }
 0x6e0   : > { %19787 = vst [vmem:[#allocation163_spill] sm:$0xff] %v18270_v11  ;;  %19788 = vst [vmem:[#allocation164_spill] sm:$0xff] %v18272_v25  ;;  %v18274_v35 = vpop.f32.mrb[61].mxu0  ;;  %v18276_v55 = vpop.f32.mrb[61].mxu1  ;;  %v11596_v11 = vsub.s32 2, %v11587_v5  ;;  %v11600_v25 = vsub.s32 3, %v11587_v5  ;;  %v18293_v47 = vrot.slane %v11584_v38, %v11592_v61  ;;  %v19795_v5 = vmax.f32 %v17392_v41, %v17817_v22 }
 0x6e1   : > { %19789 = vst [vmem:[#allocation165_spill] sm:$0xff] %v18274_v35  ;;  %19790 = vst [vmem:[#allocation166_spill] sm:$0xff] %v18276_v55  ;;  %v18278_v49 = vpop.f32.mrb[62].mxu0  ;;  %v18280_v50 = vpop.f32.mrb[62].mxu1  ;;  %v18287_v55 = vrot.slane %v11584_v38, %v11588_v15  ;;  %v19796_v61 = vmax.f32 %v17398_v59, %v17823_v18 }
 0x6e2   : > { %19791 = vst [vmem:[#allocation167_spill] sm:$0xff] %v18278_v49  ;;  %19792 = vst [vmem:[#allocation168_spill] sm:$0xff] %v18280_v50  ;;  %v18282_v37 = vpop.f32.mrb[63].mxu0  ;;  %v18284_v56 = vpop.f32.mrb[63].mxu1  ;;  %v18300_v15 = vrot.slane %v11584_v38, %v11600_v25  ;;  %v19799_v25 = vmax.f32 %v17405_v42, %v17834_v40 }
 0x6e3   : > { %19793 = vst [vmem:[#allocation169_spill] sm:$0xff] %v18282_v37  ;;  %19794 = vst [vmem:[#allocation170_spill] sm:$0xff] %v18284_v56  ;;  %v18290_v37 = vrot.slane %v11584_v38, %v11596_v11 }
 0x727   : > { %v10575_v60 = vpop.f32.mrb[80].mxu0  ;;  %v10801_v49 = vpop.f32.mrb[80].mxu1 }
 0x728   : > { %v11456_v35 = vmax.f32 %v18158_v4, %v10575_v60  ;;  %v10577_v58 = vpop.f32.mrb[81].mxu0  ;;  %v11458_v50 = vmax.f32 %v18160_v45, %v10801_v49  ;;  %v10803_v48 = vpop.f32.mrb[81].mxu1  ;;  %v19797_v45 = vmax.f32 %v17400_v32, %v17825_v2 }
 0x729   : > { %v11457_v56 = vmax.f32 %v18162_v28, %v10577_v58  ;;  %v10579_v53 = vpop.f32.mrb[82].mxu0  ;;  %v11459_v60 = vmax.f32 %v18164_v54, %v10803_v48  ;;  %v10805_v11 = vpop.f32.mrb[82].mxu1  ;;  %v19802_v54 = vmax.f32 %v17416_v6, %v17849_v62 }
 0x72a   : > { %v11520_v13 = vmax.f32 %v19795_v5, %v11456_v35  ;;  %v11460_v49 = vmax.f32 %v18166_v14, %v10579_v53  ;;  %v10581_v4 = vpop.f32.mrb[83].mxu0  ;;  %v11522_v58 = vmax.f32 %v19796_v61, %v11458_v50  ;;  %v11462_v41 = vmax.f32 %v18168_v30, %v10805_v11  ;;  %v10807_v35 = vpop.f32.mrb[83].mxu1 }
 0x72b   : > { %v11521_v28 = vmax.f32 %v19797_v45, %v11457_v56  ;;  %v11461_v22 = vmax.f32 %v18170_v63, %v10581_v4  ;;  %v19798_v53 = vmax.f32 %v17403_v34, %v17832_v43  ;;  %v11463_v18 = vmax.f32 %v18172_v3, %v10807_v35 }
 0x72c   : > { %v11606_v38 = vadd.f32 %v18287_v55, %v11520_v13  ;;  %v11524_v59 = vmax.f32 %v19799_v25, %v11460_v49  ;;  %v11608_v32 = vadd.f32 %v18290_v37, %v11522_v58  ;;  %v19800_v56 = vmax.f32 %v17410_v23, %v17840_v0 }
 0x72d   : > { %v11523_v48 = vmax.f32 %v19798_v53, %v11459_v60  ;;  %v11607_v2 = vadd.f32 %v18293_v47, %v11521_v28  ;;  %v19801_v34 = vmax.f32 %v17412_v51, %v17842_v52  ;;  %v11527_v14 = vmax.f32 %v19802_v54, %v11463_v18 }
 0x72e   : > { %v11526_v50 = vmax.f32 %v19800_v56, %v11462_v41  ;;  %v11670_v13 = vmax.f32 %v11606_v38, 0.0  ;;  %v11610_v40 = vadd.f32 %v18287_v55, %v11524_v59  ;;  %v11672_v30 = vmax.f32 %v11608_v32, 0.0 }
 0x72f   : > { %v11525_v43 = vmax.f32 %v19801_v34, %v11461_v22  ;;  %v11609_v42 = vadd.f32 %v18300_v15, %v11523_v48  ;;  %v11671_v63 = vmax.f32 %v11607_v2, 0.0  ;;  %v10585_v0 = vpop.f32.mrb[84].mxu0  ;;  %v11613_v51 = vadd.f32 %v18300_v15, %v11527_v14  ;;  %v10811_v49 = vpop.f32.mrb[84].mxu1  ;;  %v19810_v14 = vld [vmem:[#allocation117_spill] sm:$0xff] }
 0x730   : > { %v11612_v3 = vadd.f32 %v18290_v37, %v11526_v50  ;;  %v11674_v60 = vmax.f32 %v11610_v40, 0.0  ;;  %v11464_v52 = vmax.f32 %v18174_v27, %v10585_v0  ;;  %v10587_v11 = vpop.f32.mrb[85].mxu0  ;;  %v11466_v62 = vmax.f32 %v18176_v24, %v10811_v49  ;;  %v10813_v58 = vpop.f32.mrb[85].mxu1 }
 0x731   : > { %v11611_v23 = vadd.f32 %v18293_v47, %v11525_v43  ;;  %v11673_v5 = vmax.f32 %v11609_v42, 0.0  ;;  %v13138_v4 = vpack.c.bf16 %v11671_v63, %v11670_v13  ;;  %v10589_v45 = vpop.f32.mrb[86].mxu0  ;;  %v11677_v41 = vmax.f32 %v11613_v51, 0.0  ;;  %v10815_v53 = vpop.f32.mrb[86].mxu1  ;;  %v19814_v51 = vld [vmem:[#allocation116_spill] sm:$0xff] }
 0x732   : > { %v11676_v61 = vmax.f32 %v11612_v3, 0.0  ;;  %v19803_v22 = vmax.f32 %v17430_v1, %v17861_v31  ;;  %v11465_v38 = vmax.f32 %v18178_v12, %v10587_v11  ;;  %v10591_v48 = vpop.f32.mrb[87].mxu0  ;;  %v19804_v24 = vmax.f32 %v17434_v26, %v17867_v19  ;;  %v10817_v31 = vpop.f32.mrb[87].mxu1 }
 0x733   : > { %v11675_v6 = vmax.f32 %v11611_v23, 0.0  ;;  %v13139_v28 = vpack.c.bf16 %v11673_v5, %v11672_v30  ;;  %11926 = vst [vmem:[%s18346_s20] sm:$0xff] %v13138_v4  ;;  %v11467_v59 = vmax.f32 %v18180_v17, %v10813_v58  ;;  %v11468_v1 = vmax.f32 %v18182_v33, %v10589_v45  ;;  %v19811_v30 = vld [vmem:[#allocation65_spill] sm:$0xff] }
 0x734   : > { %v11528_v35 = vmax.f32 %v19803_v22, %v11464_v52  ;;  %v11530_v25 = vmax.f32 %v19804_v24, %v11466_v62  ;;  %v13141_v12 = vpack.c.bf16 %v11677_v41, %v11676_v61  ;;  %v19805_v32 = vmax.f32 %v17436_v20, %v17869_v44  ;;  %v19815_v61 = vld [vmem:[#allocation18_spill] sm:$0xff] }
 0x735   : > { %v13140_v27 = vpack.c.bf16 %v11675_v6, %v11674_v60  ;;  %11927 = vst [vmem:[%s18346_s20 + $0x8] sm:$0xff] %v13139_v28  ;;  %v11470_v56 = vmax.f32 %v18184_v46, %v10815_v53  ;;  %v19806_v26 = vmax.f32 %v17443_v57, %v17876_v10  ;;  %v19807_v17 = vmax.f32 %v19629_v21, %v17878_v8  ;;  %v19816_v6 = vld [vmem:[#allocation66_spill] sm:$0xff] }
 0x736   : > { %v11614_v18 = vadd.f32 %v18287_v55, %v11528_v35  ;;  %v11529_v2 = vmax.f32 %v19805_v32, %v11465_v38  ;;  %v11616_v50 = vadd.f32 %v18290_v37, %v11530_v25  ;;  %v11469_v34 = vmax.f32 %v18186_v36, %v10591_v48  ;;  %11929 = vst [vmem:[%s18346_s20 + $0x18] sm:$0xff] %v13141_v12  ;;  %v19818_v35 = vld [vmem:[#allocation19_spill] sm:$0xff] }
 0x737   : > { %11928 = vst [vmem:[%s18346_s20 + $0x10] sm:$0xff] %v13140_v27  ;;  %v11531_v19 = vmax.f32 %v19806_v26, %v11467_v59  ;;  %v11532_v33 = vmax.f32 %v19807_v17, %v11468_v1  ;;  %v19808_v46 = vmax.f32 %v19631_v7, %v17884_v16  ;;  %v11471_v13 = vmax.f32 %v18188_v9, %v10817_v31  ;;  %v10595_v36 = vpop.f32.mrb[88].mxu0  ;;  %v19813_v7 = vld [vmem:[#allocation115_spill] sm:$0xff]  ;;  %v10821_v9 = vpop.f32.mrb[88].mxu1  ;;  %v19821_v27 = vld [vmem:[#allocation118_spill] sm:$0xff]  ;;  %v19825_v26 = vld [vmem:[#allocation68_spill] sm:$0xff] }
 0x738   : > { %v11678_v43 = vmax.f32 %v11614_v18, 0.0  ;;  %v11615_v20 = vadd.f32 %v18293_v47, %v11529_v2  ;;  %v11680_v42 = vmax.f32 %v11616_v50, 0.0  ;;  %v19809_v8 = vmax.f32 %v19632_v29, %v17886_v39  ;;  %v10597_v23 = vpop.f32.mrb[89].mxu0  ;;  %v10823_v29 = vpop.f32.mrb[89].mxu1  ;;  %v19819_v38 = vld [vmem:[#allocation67_spill] sm:$0xff]  ;;  %v19823_v18 = vld [vmem:[#allocation120_spill] sm:$0xff] }
 0x739   : > { %v11534_v44 = vmax.f32 %v19808_v46, %v11470_v56  ;;  %v11617_v57 = vadd.f32 %v18300_v15, %v11531_v19  ;;  %v11618_v10 = vadd.f32 %v18287_v55, %v11532_v33  ;;  %v19812_v63 = vmax.f32 %v19810_v14, %v19811_v30  ;;  %v10599_v52 = vpop.f32.mrb[90].mxu0  ;;  %v10825_v45 = vpop.f32.mrb[90].mxu1  ;;  %v19822_v31 = vld [vmem:[#allocation119_spill] sm:$0xff]  ;;  %v19824_v50 = vld [vmem:[#allocation20_spill] sm:$0xff]  ;;  %v19827_v33 = vld [vmem:[#allocation121_spill] sm:$0xff] }
 0x73a   : > { %v11533_v21 = vmax.f32 %v19809_v8, %v11469_v34  ;;  %v11679_v40 = vmax.f32 %v11615_v20, 0.0  ;;  %v11472_v3 = vmax.f32 %v19813_v7, %v10595_v36  ;;  %v11474_v39 = vmax.f32 %v19814_v51, %v10821_v9  ;;  %v10601_v28 = vpop.f32.mrb[91].mxu0  ;;  %v10827_v25 = vpop.f32.mrb[91].mxu1  ;;  %v19828_v46 = vld [vmem:[#allocation122_spill] sm:$0xff]  ;;  %v19835_v14 = vld [vmem:[#allocation71_spill] sm:$0xff] }
 0x73b   : > { %v11620_v54 = vadd.f32 %v18290_v37, %v11534_v44  ;;  %v11535_v16 = vmax.f32 %v19812_v63, %v11471_v13  ;;  %v11681_v0 = vmax.f32 %v11617_v57, 0.0  ;;  %v11682_v5 = vmax.f32 %v11618_v10, 0.0  ;;  %v19829_v44 = vld [vmem:[#allocation69_spill] sm:$0xff]  ;;  %v19831_v57 = vld [vmem:[#allocation22_spill] sm:$0xff] }
 0x73c   : > { %v11619_v60 = vadd.f32 %v18293_v47, %v11533_v21  ;;  %v13142_v49 = vpack.c.bf16 %v11679_v40, %v11678_v43  ;;  %v19817_v62 = vmax.f32 %v19815_v61, %v19816_v6  ;;  %v19820_v53 = vmax.f32 %v19818_v35, %v19819_v38  ;;  %v19832_v10 = vld [vmem:[#allocation70_spill] sm:$0xff]  ;;  %v19844_v35 = vld [vmem:[#allocation127_spill] sm:$0xff]  ;;  %v19845_v38 = vld [vmem:[#allocation73_spill] sm:$0xff] }
 0x73d   : > { %v11684_v11 = vmax.f32 %v11620_v54, 0.0  ;;  %v11621_v4 = vadd.f32 %v18300_v15, %v11535_v16  ;;  %v13143_v41 = vpack.c.bf16 %v11681_v0, %v11680_v42  ;;  %v11473_v24 = vmax.f32 %v19821_v27, %v10597_v23  ;;  %v19834_v54 = vld [vmem:[#allocation24_spill] sm:$0xff]  ;;  %v19837_v16 = vld [vmem:[#allocation123_spill] sm:$0xff]  ;;  %v19847_v27 = vld [vmem:[#allocation26_spill] sm:$0xff] }
 0x73e   : > { %v11536_v58 = vmax.f32 %v19817_v62, %v11472_v3  ;;  %v11683_v22 = vmax.f32 %v11619_v60, 0.0  ;;  %v11538_v48 = vmax.f32 %v19820_v53, %v11474_v39  ;;  %11930 = vst [vmem:[%s18346_s20 + $0x20] sm:$0xff] %v13142_v49  ;;  %v11475_v12 = vmax.f32 %v19822_v31, %v10823_v29  ;;  %v19838_v0 = vld [vmem:[#allocation124_spill] sm:$0xff]  ;;  %v19839_v60 = vld [vmem:[#allocation125_spill] sm:$0xff]  ;;  %v19843_v62 = vld [vmem:[#allocation126_spill] sm:$0xff] }
 0x73f   : > { %v11685_v59 = vmax.f32 %v11621_v4, 0.0  ;;  %v11476_v32 = vmax.f32 %v19823_v18, %v10599_v52  ;;  %11931 = vst [vmem:[%s18346_s20 + $0x28] sm:$0xff] %v13143_v41  ;;  %v19826_v19 = vmax.f32 %v19824_v50, %v19825_v26  ;;  %v11478_v34 = vmax.f32 %v19827_v33, %v10825_v45  ;;  %v10605_v3 = vpop.f32.mrb[92].mxu0  ;;  %v10831_v39 = vpop.f32.mrb[92].mxu1  ;;  %v19841_v4 = vld [vmem:[#allocation72_spill] sm:$0xff] }
 0x740   : > { %v11622_v1 = vadd.f32 %v18287_v55, %v11536_v58  ;;  %v13144_v2 = vpack.c.bf16 %v11683_v22, %v11682_v5  ;;  %v11624_v56 = vadd.f32 %v18290_v37, %v11538_v48  ;;  %v19830_v13 = vmax.f32 %v19828_v46, %v19829_v44  ;;  %v10607_v29 = vpop.f32.mrb[93].mxu0  ;;  %v10833_v45 = vpop.f32.mrb[93].mxu1 }
 0x741   : > { %v11537_v17 = vmax.f32 %v19826_v19, %v11473_v24  ;;  %v13145_v43 = vpack.c.bf16 %v11685_v59, %v11684_v11  ;;  %v19833_v8 = vmax.f32 %v19831_v57, %v19832_v10  ;;  %v19836_v30 = vmax.f32 %v19834_v54, %v19835_v14  ;;  %v19840_v11 = vld [vmem:[#allocation25_spill] sm:$0xff]  ;;  %v19848_v24 = vld [vmem:[#allocation74_spill] sm:$0xff] }
 0x742   : > { %v11686_v20 = vmax.f32 %v11622_v1, 0.0  ;;  %v11539_v42 = vmax.f32 %v19830_v13, %v11475_v12  ;;  %11932 = vst [vmem:[%s18346_s20 + $0x30] sm:$0xff] %v13144_v2  ;;  %v11688_v36 = vmax.f32 %v11624_v56, 0.0  ;;  %v11477_v7 = vmax.f32 %v19837_v16, %v10601_v28  ;;  %v10609_v28 = vpop.f32.mrb[94].mxu0  ;;  %v10835_v1 = vpop.f32.mrb[94].mxu1  ;;  %v19850_v2 = vld [vmem:[#allocation27_spill] sm:$0xff] }
 0x743   : > { %v11540_v21 = vmax.f32 %v19833_v8, %v11476_v32  ;;  %v11623_v40 = vadd.f32 %v18293_v47, %v11537_v17  ;;  %v11542_v63 = vmax.f32 %v19836_v30, %v11478_v34  ;;  %11933 = vst [vmem:[%s18346_s20 + $0x38] sm:$0xff] %v13145_v43  ;;  %v11479_v5 = vmax.f32 %v19838_v0, %v10827_v25  ;;  %v10611_v31 = vpop.f32.mrb[95].mxu0  ;;  %v19851_v56 = vld [vmem:[#allocation75_spill] sm:$0xff]  ;;  %v10837_v19 = vpop.f32.mrb[95].mxu1  ;;  %v19853_v43 = vld [vmem:[#allocation128_spill] sm:$0xff]  ;;  %v19855_v57 = vld [vmem:[#allocation130_spill] sm:$0xff] }
 0x744   : > { %v11625_v9 = vadd.f32 %v18300_v15, %v11539_v42  ;;  %v11480_v51 = vmax.f32 %v19839_v60, %v10605_v3  ;;  %v19842_v61 = vmax.f32 %v19840_v11, %v19841_v4  ;;  %v11482_v58 = vmax.f32 %v19843_v62, %v10831_v39  ;;  %v19859_v30 = vld [vmem:[#allocation131_spill] sm:$0xff]  ;;  %v19860_v3 = vld [vmem:[#allocation132_spill] sm:$0xff]  ;;  %v19864_v60 = vld [vmem:[#allocation78_spill] sm:$0xff] }
 0x745   : > { %v11626_v23 = vadd.f32 %v18287_v55, %v11540_v21  ;;  %v11687_v52 = vmax.f32 %v11623_v40, 0.0  ;;  %v11628_v49 = vadd.f32 %v18290_v37, %v11542_v63  ;;  %v19846_v53 = vmax.f32 %v19844_v35, %v19845_v38  ;;  %v19856_v40 = vld [vmem:[#allocation28_spill] sm:$0xff]  ;;  %v19866_v11 = vld [vmem:[#allocation37_spill] sm:$0xff]  ;;  %v19867_v4 = vld [vmem:[#allocation79_spill] sm:$0xff] }
 0x746   : > { %v11541_v6 = vmax.f32 %v19842_v61, %v11477_v7  ;;  %v11689_v41 = vmax.f32 %v11625_v9, 0.0  ;;  %v19849_v25 = vmax.f32 %v19847_v27, %v19848_v24  ;;  %v19852_v50 = vmax.f32 %v19850_v2, %v19851_v56  ;;  %v19861_v9 = vld [vmem:[#allocation77_spill] sm:$0xff]  ;;  %v19870_v35 = vld [vmem:[#allocation134_spill] sm:$0xff] }
 0x747   : > { %v11690_v22 = vmax.f32 %v11626_v23, 0.0  ;;  %v11543_v48 = vmax.f32 %v19846_v53, %v11479_v5  ;;  %v13146_v12 = vpack.c.bf16 %v11687_v52, %v11686_v20  ;;  %v11692_v18 = vmax.f32 %v11628_v49, 0.0  ;;  %v19854_v20 = vld [vmem:[#allocation129_spill] sm:$0xff]  ;;  %v19863_v5 = vld [vmem:[#allocation30_spill] sm:$0xff]  ;;  %v19871_v53 = vld [vmem:[#allocation135_spill] sm:$0xff] }
 0x748   : > { %v11544_v59 = vmax.f32 %v19849_v25, %v11480_v51  ;;  %v11627_v32 = vadd.f32 %v18293_v47, %v11541_v6  ;;  %v11546_v26 = vmax.f32 %v19852_v50, %v11482_v58  ;;  %v13147_v17 = vpack.c.bf16 %v11689_v41, %v11688_v36  ;;  %v19857_v36 = vld [vmem:[#allocation76_spill] sm:$0xff]  ;;  %v19869_v62 = vld [vmem:[#allocation133_spill] sm:$0xff] }
 0x749   : > { %v11629_v33 = vadd.f32 %v18300_v15, %v11543_v48  ;;  %v11481_v46 = vmax.f32 %v19853_v43, %v10607_v29  ;;  %11934 = vst [vmem:[%s18346_s20 + $0x40] sm:$0xff] %v13146_v12  ;;  %v11483_v42 = vmax.f32 %v19854_v20, %v10833_v45  ;;  %v11484_v10 = vmax.f32 %v19855_v57, %v10609_v28  ;;  %v10615_v29 = vpop.f32.mrb[112].mxu0  ;;  %v10841_v45 = vpop.f32.mrb[112].mxu1  ;;  %v19873_v12 = vld [vmem:[#allocation80_spill] sm:$0xff] }
 0x74a   : > { %v11630_v34 = vadd.f32 %v18287_v55, %v11544_v59  ;;  %v11691_v44 = vmax.f32 %v11627_v32, 0.0  ;;  %v11632_v13 = vadd.f32 %v18290_v37, %v11546_v26  ;;  %11935 = vst [vmem:[%s18346_s20 + $0x48] sm:$0xff] %v13147_v17  ;;  %v19858_v54 = vmax.f32 %v19856_v40, %v19857_v36  ;;  %v10617_v28 = vpop.f32.mrb[113].mxu0  ;;  %v10843_v27 = vpop.f32.mrb[113].mxu1  ;;  %v19875_v32 = vld [vmem:[#allocation136_spill] sm:$0xff]  ;;  %v19883_v36 = vld [vmem:[#allocation83_spill] sm:$0xff] }
 0x74b   : > { %v11693_v8 = vmax.f32 %v11629_v33, 0.0  ;;  %v11486_v63 = vmax.f32 %v19859_v30, %v10835_v1  ;;  %v19862_v23 = vmax.f32 %v19860_v3, %v19861_v9  ;;  %v19865_v51 = vmax.f32 %v19863_v5, %v19864_v60  ;;  %v10619_v24 = vpop.f32.mrb[114].mxu0  ;;  %v19872_v1 = vld [vmem:[#allocation38_spill] sm:$0xff]  ;;  %v10845_v56 = vpop.f32.mrb[114].mxu1  ;;  %v19877_v33 = vld [vmem:[#allocation81_spill] sm:$0xff]  ;;  %v19882_v40 = vld [vmem:[#allocation40_spill] sm:$0xff] }
 0x74c   : > { %v11694_v21 = vmax.f32 %v11630_v34, 0.0  ;;  %v11545_v14 = vmax.f32 %v19858_v54, %v11481_v46  ;;  %v13148_v16 = vpack.c.bf16 %v11691_v44, %v11690_v22  ;;  %v11696_v7 = vmax.f32 %v11632_v13, 0.0  ;;  %v10621_v50 = vpop.f32.mrb[115].mxu0  ;;  %v19879_v46 = vld [vmem:[#allocation39_spill] sm:$0xff]  ;;  %v19880_v44 = vld [vmem:[#allocation82_spill] sm:$0xff]  ;;  %v19887_v60 = vld [vmem:[#allocation140_spill] sm:$0xff] }
 0x74d   : > { %v11547_v0 = vmax.f32 %v19862_v23, %v11483_v42  ;;  %v11548_v39 = vmax.f32 %v19865_v51, %v11484_v10  ;;  %v13149_v52 = vpack.c.bf16 %v11693_v8, %v11692_v18  ;;  %v19868_v61 = vmax.f32 %v19866_v11, %v19867_v4  ;;  %v10847_v42 = vpop.f32.mrb[115].mxu1  ;;  %v19885_v3 = vld [vmem:[#allocation138_spill] sm:$0xff]  ;;  %v19886_v5 = vld [vmem:[#allocation139_spill] sm:$0xff]  ;;  %v19891_v4 = vld [vmem:[#allocation141_spill] sm:$0xff] }
 0x74e   : > { %v11631_v49 = vadd.f32 %v18293_v47, %v11545_v14  ;;  %v11485_v58 = vmax.f32 %v19869_v62, %v10611_v31  ;;  %11936 = vst [vmem:[%s18346_s20 + $0x50] sm:$0xff] %v13148_v16  ;;  %v11487_v38 = vmax.f32 %v19870_v35, %v10837_v19  ;;  %v11488_v48 = vmax.f32 %v19871_v53, %v10615_v29  ;;  %v19876_v19 = vld [vmem:[#allocation137_spill] sm:$0xff]  ;;  %v19895_v35 = vld [vmem:[#allocation32_spill] sm:$0xff] }
 0x74f   : > { %v11550_v6 = vmax.f32 %v19868_v61, %v11486_v63  ;;  %v11633_v41 = vadd.f32 %v18300_v15, %v11547_v0  ;;  %v11634_v22 = vadd.f32 %v18287_v55, %v11548_v39  ;;  %11937 = vst [vmem:[%s18346_s20 + $0x58] sm:$0xff] %v13149_v52  ;;  %v19874_v31 = vmax.f32 %v19872_v1, %v19873_v12  ;;  %v19888_v52 = vld [vmem:[#allocation41_spill] sm:$0xff]  ;;  %v19898_v1 = vld [vmem:[#allocation44_spill] sm:$0xff]  ;;  %v19899_v12 = vld [vmem:[#allocation87_spill] sm:$0xff] }
 0x750   : > { %v11695_v25 = vmax.f32 %v11631_v49, 0.0  ;;  %v11490_v2 = vmax.f32 %v19875_v32, %v10841_v45  ;;  %v19878_v34 = vmax.f32 %v19876_v19, %v19877_v33  ;;  %v19881_v13 = vmax.f32 %v19879_v46, %v19880_v44  ;;  %v19889_v49 = vld [vmem:[#allocation84_spill] sm:$0xff]  ;;  %v19892_v45 = vld [vmem:[#allocation142_spill] sm:$0xff]  ;;  %v19901_v32 = vld [vmem:[#allocation143_spill] sm:$0xff] }
 0x751   : > { %v11636_v59 = vadd.f32 %v18290_v37, %v11550_v6  ;;  %v11549_v18 = vmax.f32 %v19874_v31, %v11485_v58  ;;  %v11697_v26 = vmax.f32 %v11633_v41, 0.0  ;;  %v11698_v17 = vmax.f32 %v11634_v22, 0.0  ;;  %v10625_v6 = vpop.f32.mrb[116].mxu0  ;;  %v19902_v33 = vld [vmem:[#allocation144_spill] sm:$0xff] }
 0x752   : > { %v11551_v43 = vmax.f32 %v19878_v34, %v11487_v38  ;;  %v11552_v20 = vmax.f32 %v19881_v13, %v11488_v48  ;;  %v13150_v57 = vpack.c.bf16 %v11695_v25, %v11694_v21  ;;  %v19884_v54 = vmax.f32 %v19882_v40, %v19883_v36  ;;  %v19896_v38 = vld [vmem:[#allocation86_spill] sm:$0xff] }
 0x753   : > { %v11700_v10 = vmax.f32 %v11636_v59, 0.0  ;;  %v11635_v8 = vadd.f32 %v18293_v47, %v11549_v18  ;;  %v13151_v30 = vpack.c.bf16 %v11697_v26, %v11696_v7  ;;  %v11489_v9 = vmax.f32 %v19885_v3, %v10617_v28  ;;  %v19893_v28 = vld [vmem:[#allocation85_spill] sm:$0xff]  ;;  %v19907_v36 = vld [vmem:[#allocation146_spill] sm:$0xff] }
 0x754   : > { %v11554_v14 = vmax.f32 %v19884_v54, %v11490_v2  ;;  %v11637_v63 = vadd.f32 %v18300_v15, %v11551_v43  ;;  %v11638_v16 = vadd.f32 %v18287_v55, %v11552_v20  ;;  %11938 = vst [vmem:[%s18346_s20 + $0x60] sm:$0xff] %v13150_v57  ;;  %v11491_v21 = vmax.f32 %v19886_v5, %v10843_v27  ;;  %v10851_v27 = vpop.f32.mrb[116].mxu1  ;;  %v19903_v43 = vld [vmem:[#allocation145_spill] sm:$0xff] }
 0x755   : > { %v11699_v23 = vmax.f32 %v11635_v8, 0.0  ;;  %v11492_v51 = vmax.f32 %v19887_v60, %v10619_v24  ;;  %11939 = vst [vmem:[%s18346_s20 + $0x68] sm:$0xff] %v13151_v30  ;;  %v19890_v7 = vmax.f32 %v19888_v52, %v19889_v49  ;;  %v11494_v61 = vmax.f32 %v19891_v4, %v10845_v56  ;;  %v10627_v24 = vpop.f32.mrb[117].mxu0  ;;  %v10853_v56 = vpop.f32.mrb[117].mxu1  ;;  %v19905_v8 = vld [vmem:[#allocation88_spill] sm:$0xff]  ;;  %v19914_v52 = vld [vmem:[#allocation47_spill] sm:$0xff] }
 0x756   : > { %v11640_v0 = vadd.f32 %v18290_v37, %v11554_v14  ;;  %v11701_v39 = vmax.f32 %v11637_v63, 0.0  ;;  %v11702_v29 = vmax.f32 %v11638_v16, 0.0  ;;  %v19894_v41 = vmax.f32 %v19892_v45, %v19893_v28  ;;  %v10629_v26 = vpop.f32.mrb[118].mxu0  ;;  %v10855_v44 = vpop.f32.mrb[118].mxu1  ;;  %v19908_v16 = vld [vmem:[#allocation147_spill] sm:$0xff] }
 0x757   : > { %v11553_v11 = vmax.f32 %v19890_v7, %v11489_v9  ;;  %v13152_v62 = vpack.c.bf16 %v11699_v23, %v11698_v17  ;;  %v19897_v53 = vmax.f32 %v19895_v35, %v19896_v38  ;;  %v19900_v31 = vmax.f32 %v19898_v1, %v19899_v12  ;;  %v10631_v13 = vpop.f32.mrb[119].mxu0  ;;  %v10857_v14 = vpop.f32.mrb[119].mxu1  ;;  %v19911_v23 = vld [vmem:[#allocation46_spill] sm:$0xff]  ;;  %v19915_v49 = vld [vmem:[#allocation91_spill] sm:$0xff] }
 0x758   : > { %v11704_v58 = vmax.f32 %v11640_v0, 0.0  ;;  %v11555_v22 = vmax.f32 %v19894_v41, %v11491_v21  ;;  %v13153_v25 = vpack.c.bf16 %v11701_v39, %v11700_v10  ;;  %v11493_v2 = vmax.f32 %v19901_v32, %v10621_v50  ;;  %v19904_v10 = vld [vmem:[#allocation45_spill] sm:$0xff]  ;;  %v19919_v35 = vld [vmem:[#allocation150_spill] sm:$0xff]  ;;  %v19923_v12 = vld [vmem:[#allocation151_spill] sm:$0xff] }
 0x759   : > { %v11556_v48 = vmax.f32 %v19897_v53, %v11492_v51  ;;  %v11639_v59 = vadd.f32 %v18293_v47, %v11553_v11  ;;  %v11558_v18 = vmax.f32 %v19900_v31, %v11494_v61  ;;  %11940 = vst [vmem:[%s18346_s20 + $0x70] sm:$0xff] %v13152_v62  ;;  %v11495_v34 = vmax.f32 %v19902_v33, %v10847_v42  ;;  %v19909_v42 = vld [vmem:[#allocation90_spill] sm:$0xff]  ;;  %v19912_v0 = vld [vmem:[#allocation89_spill] sm:$0xff]  ;;  %v19917_v62 = vld [vmem:[#allocation148_spill] sm:$0xff]  ;;  %v10635_v53 = vpop.f32.mrb[120].mxu0 }
 0x75a   : > { %v11641_v17 = vadd.f32 %v18300_v15, %v11555_v22  ;;  %v11496_v46 = vmax.f32 %v19903_v43, %v10625_v6  ;;  %11941 = vst [vmem:[%s18346_s20 + $0x78] sm:$0xff] %v13153_v25  ;;  %v19906_v50 = vmax.f32 %v19904_v10, %v19905_v8  ;;  %v11498_v54 = vmax.f32 %v19907_v36, %v10851_v27  ;;  %v19918_v22 = vld [vmem:[#allocation149_spill] sm:$0xff]  ;;  %v19920_v25 = vld [vmem:[#allocation48_spill] sm:$0xff] }
 0x75b   : > { %v11642_v19 = vadd.f32 %v18287_v55, %v11556_v48  ;;  %v11703_v20 = vmax.f32 %v11639_v59, 0.0  ;;  %v11644_v57 = vadd.f32 %v18290_v37, %v11558_v18  ;;  %v19910_v3 = vmax.f32 %v19908_v16, %v19909_v42  ;;  %v10637_v18 = vpop.f32.mrb[121].mxu0 }
 0x75c   : > { %v11557_v40 = vmax.f32 %v19906_v50, %v11493_v2  ;;  %v11705_v30 = vmax.f32 %v11641_v17, 0.0  ;;  %v19913_v5 = vmax.f32 %v19911_v23, %v19912_v0  ;;  %v19916_v7 = vmax.f32 %v19914_v52, %v19915_v49  ;;  %v19924_v17 = vld [vmem:[#allocation33_spill] sm:$0xff]  ;;  %v19930_v50 = vld [vmem:[#allocation11_spill] sm:$0xff]  ;;  %v19937_v52 = vld [vmem:[#allocation96_spill] sm:$0xff] }
 0x75d   : > { %v11706_v63 = vmax.f32 %v11642_v19, 0.0  ;;  %v11559_v9 = vmax.f32 %v19910_v3, %v11495_v34  ;;  %v13154_v60 = vpack.c.bf16 %v11703_v20, %v11702_v29  ;;  %v11708_v51 = vmax.f32 %v11644_v57, 0.0  ;;  %v19925_v19 = vld [vmem:[#allocation93_spill] sm:$0xff]  ;;  %v19928_v34 = vld [vmem:[#allocation94_spill] sm:$0xff]  ;;  %v10639_v57 = vpop.f32.mrb[122].mxu0  ;;  %v19935_v0 = vld [vmem:[#allocation155_spill] sm:$0xff] }
 0x75e   : > { %v11560_v21 = vmax.f32 %v19913_v5, %v11496_v46  ;;  %v11643_v39 = vadd.f32 %v18293_v47, %v11557_v40  ;;  %v11562_v11 = vmax.f32 %v19916_v7, %v11498_v54  ;;  %v13155_v4 = vpack.c.bf16 %v11705_v30, %v11704_v58  ;;  %v19921_v58 = vld [vmem:[#allocation92_spill] sm:$0xff]  ;;  %v19933_v54 = vld [vmem:[#allocation153_spill] sm:$0xff]  ;;  %v10641_v16 = vpop.f32.mrb[123].mxu0 }
 0x75f   : > { %v11645_v61 = vadd.f32 %v18300_v15, %v11559_v9  ;;  %v11497_v45 = vmax.f32 %v19917_v62, %v10627_v24  ;;  %11942 = vst [vmem:[%s18346_s20 + $0x80] sm:$0xff] %v13154_v60  ;;  %v11499_v29 = vmax.f32 %v19918_v22, %v10853_v56  ;;  %v11500_v38 = vmax.f32 %v19919_v35, %v10629_v26  ;;  %v10861_v24 = vpop.f32.mrb[120].mxu1  ;;  %v19927_v26 = vld [vmem:[#allocation152_spill] sm:$0xff]  ;;  %v19934_v9 = vld [vmem:[#allocation154_spill] sm:$0xff]  ;;  %v19941_v62 = vld [vmem:[#allocation97_spill] sm:$0xff] }
 0x760   : > { %v11646_v6 = vadd.f32 %v18287_v55, %v11560_v21  ;;  %v11707_v28 = vmax.f32 %v11643_v39, 0.0  ;;  %v11648_v41 = vadd.f32 %v18290_v37, %v11562_v11  ;;  %11943 = vst [vmem:[%s18346_s20 + $0x88] sm:$0xff] %v13155_v4  ;;  %v19922_v59 = vmax.f32 %v19920_v25, %v19921_v58  ;;  %v10863_v20 = vpop.f32.mrb[121].mxu1  ;;  %v19936_v39 = vld [vmem:[#allocation34_spill] sm:$0xff]  ;;  %v19939_v7 = vld [vmem:[#allocation156_spill] sm:$0xff]  ;;  %v19947_v25 = vld [vmem:[#allocation99_spill] sm:$0xff] }
 0x761   : > { %v11709_v48 = vmax.f32 %v11645_v61, 0.0  ;;  %v11502_v31 = vmax.f32 %v19923_v12, %v10855_v44  ;;  %v19926_v56 = vmax.f32 %v19924_v17, %v19925_v19  ;;  %v19929_v43 = vmax.f32 %v19927_v26, %v19928_v34  ;;  %v19931_v44 = vld [vmem:[#allocation95_spill] sm:$0xff]  ;;  %v10645_v17 = vpop.f32.mrb[124].mxu0 }
 0x762   : > { %v11710_v27 = vmax.f32 %v11646_v6, 0.0  ;;  %v11561_v1 = vmax.f32 %v19922_v59, %v11497_v45  ;;  %v13156_v32 = vpack.c.bf16 %v11707_v28, %v11706_v63  ;;  %v11712_v2 = vmax.f32 %v11648_v41, 0.0  ;;  %v10865_v63 = vpop.f32.mrb[122].mxu1  ;;  %v19940_v6 = vld [vmem:[#allocation49_spill] sm:$0xff]  ;;  %v19943_v28 = vld [vmem:[#allocation50_spill] sm:$0xff]  ;;  %v19951_v26 = vld [vmem:[#allocation159_spill] sm:$0xff] }
 0x763   : > { %v11563_v33 = vmax.f32 %v19926_v56, %v11499_v29  ;;  %v11564_v46 = vmax.f32 %v19929_v43, %v11500_v38  ;;  %v13157_v10 = vpack.c.bf16 %v11709_v48, %v11708_v51  ;;  %v19932_v40 = vmax.f32 %v19930_v50, %v19931_v44  ;;  %v10867_v21 = vpop.f32.mrb[123].mxu1  ;;  %v19944_v41 = vld [vmem:[#allocation98_spill] sm:$0xff]  ;;  %v19946_v48 = vld [vmem:[#allocation52_spill] sm:$0xff] }
 0x764   : > { %v11647_v8 = vadd.f32 %v18293_v47, %v11561_v1  ;;  %v11501_v30 = vmax.f32 %v19933_v54, %v10631_v13  ;;  %11944 = vst [vmem:[%s18346_s20 + $0x90] sm:$0xff] %v13156_v32  ;;  %v11503_v23 = vmax.f32 %v19934_v9, %v10857_v14  ;;  %v11504_v5 = vmax.f32 %v19935_v0, %v10635_v53  ;;  %v19950_v56 = vld [vmem:[#allocation158_spill] sm:$0xff]  ;;  %v10871_v43 = vpop.f32.mrb[124].mxu1  ;;  %v19953_v50 = vld [vmem:[#allocation100_spill] sm:$0xff]  ;;  %v19957_v9 = vld [vmem:[#allocation101_spill] sm:$0xff] }
 0x765   : > { %v11566_v36 = vmax.f32 %v19932_v40, %v11502_v31  ;;  %v11649_v42 = vadd.f32 %v18300_v15, %v11563_v33  ;;  %v11650_v3 = vadd.f32 %v18287_v55, %v11564_v46  ;;  %11945 = vst [vmem:[%s18346_s20 + $0x98] sm:$0xff] %v13157_v10  ;;  %v19938_v49 = vmax.f32 %v19936_v39, %v19937_v52  ;;  %v10647_v46 = vpop.f32.mrb[125].mxu0  ;;  %v10873_v54 = vpop.f32.mrb[125].mxu1  ;;  %v19959_v0 = vld [vmem:[#allocation55_spill] sm:$0xff] }
 0x766   : > { %v11711_v60 = vmax.f32 %v11647_v8, 0.0  ;;  %v11506_v11 = vmax.f32 %v19939_v7, %v10861_v24  ;;  %v19942_v45 = vmax.f32 %v19940_v6, %v19941_v62  ;;  %v19945_v22 = vmax.f32 %v19943_v28, %v19944_v41  ;;  %v19949_v24 = vld [vmem:[#allocation157_spill] sm:$0xff]  ;;  %v10875_v39 = vpop.f32.mrb[126].mxu1  ;;  %v19962_v7 = vld [vmem:[#allocation56_spill] sm:$0xff]  ;;  %v19966_v28 = vld [vmem:[#allocation162_spill] sm:$0xff] }
 0x767   : > { %v11652_v51 = vadd.f32 %v18290_v37, %v11566_v36  ;;  %v11565_v13 = vmax.f32 %v19938_v49, %v11501_v30  ;;  %v11713_v4 = vmax.f32 %v11649_v42, 0.0  ;;  %v11714_v61 = vmax.f32 %v11650_v3, 0.0  ;;  %v19952_v8 = vld [vmem:[#allocation53_spill] sm:$0xff]  ;;  %v10649_v30 = vpop.f32.mrb[126].mxu0  ;;  %v10877_v62 = vpop.f32.mrb[127].mxu1 }
 0x768   : > { %v11567_v14 = vmax.f32 %v19942_v45, %v11503_v23  ;;  %v11568_v29 = vmax.f32 %v19945_v22, %v11504_v5  ;;  %v13158_v35 = vpack.c.bf16 %v11711_v60, %v11710_v27  ;;  %v19948_v58 = vmax.f32 %v19946_v48, %v19947_v25  ;;  %v19960_v5 = vld [vmem:[#allocation102_spill] sm:$0xff]  ;;  %v10651_v52 = vpop.f32.mrb[127].mxu0  ;;  %v19967_v22 = vld [vmem:[#allocation163_spill] sm:$0xff]  ;;  %v19969_v48 = vld [vmem:[#allocation104_spill] sm:$0xff] }
 0x769   : > { %v11716_v38 = vmax.f32 %v11652_v51, 0.0  ;;  %v11651_v53 = vadd.f32 %v18293_v47, %v11565_v13  ;;  %v13159_v1 = vpack.c.bf16 %v11713_v4, %v11712_v2  ;;  %v11505_v32 = vmax.f32 %v19949_v24, %v10637_v18  ;;  %v19955_v18 = vld [vmem:[#allocation160_spill] sm:$0xff]  ;;  %v19973_v24 = vld [vmem:[#allocation105_spill] sm:$0xff] }
 0x76a   : > { %v11570_v59 = vmax.f32 %v19948_v58, %v11506_v11  ;;  %v11653_v12 = vadd.f32 %v18300_v15, %v11567_v14  ;;  %v11654_v31 = vadd.f32 %v18287_v55, %v11568_v29  ;;  %11946 = vst [vmem:[%s18346_s20 + $0xa0] sm:$0xff] %v13158_v35  ;;  %v11507_v33 = vmax.f32 %v19950_v56, %v10863_v20  ;;  %v19956_v20 = vld [vmem:[#allocation54_spill] sm:$0xff] }
 0x76b   : > { %v11715_v19 = vmax.f32 %v11651_v53, 0.0  ;;  %v11508_v34 = vmax.f32 %v19951_v26, %v10639_v57  ;;  %11947 = vst [vmem:[%s18346_s20 + $0xa8] sm:$0xff] %v13159_v1  ;;  %v19954_v44 = vmax.f32 %v19952_v8, %v19953_v50  ;;  %v11510_v36 = vmax.f32 %v19955_v18, %v10865_v63  ;;  %v19963_v63 = vld [vmem:[#allocation103_spill] sm:$0xff]  ;;  %v19968_v53 = vld [vmem:[#allocation57_spill] sm:$0xff] }
 0x76c   : > { %v11656_v27 = vadd.f32 %v18290_v37, %v11570_v59  ;;  %v11717_v10 = vmax.f32 %v11653_v12, 0.0  ;;  %v11718_v2 = vmax.f32 %v11654_v31, 0.0  ;;  %v19958_v57 = vmax.f32 %v19956_v20, %v19957_v9  ;;  %v19972_v31 = vld [vmem:[#allocation58_spill] sm:$0xff]  ;;  %v19979_v8 = vld [vmem:[#allocation107_spill] sm:$0xff] }
 0x76d   : > { %v11569_v40 = vmax.f32 %v19954_v44, %v11505_v32  ;;  %v13160_v42 = vpack.c.bf16 %v11715_v19, %v11714_v61  ;;  %v19961_v60 = vmax.f32 %v19959_v0, %v19960_v5  ;;  %v19964_v11 = vmax.f32 %v19962_v7, %v19963_v63  ;;  %v19965_v61 = vld [vmem:[#allocation161_spill] sm:$0xff]  ;;  %v19975_v19 = vld [vmem:[#allocation59_spill] sm:$0xff] }
 0x76e   : > { %v11720_v3 = vmax.f32 %v11656_v27, 0.0  ;;  %v11571_v23 = vmax.f32 %v19958_v57, %v11507_v33  ;;  %v13161_v49 = vpack.c.bf16 %v11717_v10, %v11716_v38  ;;  %v11509_v6 = vmax.f32 %v19965_v61, %v10641_v16  ;;  %v19971_v16 = vld [vmem:[#allocation164_spill] sm:$0xff] }
 0x76f   : > { %v11572_v51 = vmax.f32 %v19961_v60, %v11508_v34  ;;  %v11655_v13 = vadd.f32 %v18293_v47, %v11569_v40  ;;  %v11574_v4 = vmax.f32 %v19964_v11, %v11510_v36  ;;  %11948 = vst [vmem:[%s18346_s20 + $0xb0] sm:$0xff] %v13160_v42  ;;  %v11511_v41 = vmax.f32 %v19966_v28, %v10867_v21  ;;  %v19978_v10 = vld [vmem:[#allocation12_spill] sm:$0xff]  ;;  %v19981_v36 = vld [vmem:[#allocation165_spill] sm:$0xff] }
 0x770   : > { %v11657_v45 = vadd.f32 %v18300_v15, %v11571_v23  ;;  %v11512_v29 = vmax.f32 %v19967_v22, %v10645_v17  ;;  %11949 = vst [vmem:[%s18346_s20 + $0xb8] sm:$0xff] %v13161_v49  ;;  %v19970_v25 = vmax.f32 %v19968_v53, %v19969_v48  ;;  %v11514_v59 = vmax.f32 %v19971_v16, %v10871_v43  ;;  %v19976_v17 = vld [vmem:[#allocation106_spill] sm:$0xff]  ;;  %v19983_v23 = vld [vmem:[#allocation167_spill] sm:$0xff]  ;;  %v19984_v60 = vld [vmem:[#allocation13_spill] sm:$0xff] }
 0x771   : > { %v11658_v14 = vadd.f32 %v18287_v55, %v11572_v51  ;;  %v11719_v35 = vmax.f32 %v11655_v13, 0.0  ;;  %v11660_v38 = vadd.f32 %v18290_v37, %v11574_v4  ;;  %v19974_v32 = vmax.f32 %v19972_v31, %v19973_v24  ;;  %v19985_v51 = vld [vmem:[#allocation108_spill] sm:$0xff]  ;;  %v19989_v4 = vld [vmem:[#allocation109_spill] sm:$0xff]  ;;  %v19998_v16 = vld [vmem:[#allocation170_spill] sm:$0xff] }
 0x772   : > { %v11573_v58 = vmax.f32 %v19970_v25, %v11509_v6  ;;  %v11721_v1 = vmax.f32 %v11657_v45, 0.0  ;;  %v19977_v27 = vmax.f32 %v19975_v19, %v19976_v17  ;;  %v19980_v50 = vmax.f32 %v19978_v10, %v19979_v8  ;;  %v19987_v13 = vld [vmem:[#allocation168_spill] sm:$0xff]  ;;  %v19994_v22 = vld [vmem:[#allocation61_spill] sm:$0xff]  ;;  %v19999_v31 = vld [vmem:[#allocation62_spill] sm:$0xff] }
 0x773   : > { %v11722_v12 = vmax.f32 %v11658_v14, 0.0  ;;  %v11575_v21 = vmax.f32 %v19974_v32, %v11511_v41  ;;  %v13162_v33 = vpack.c.bf16 %v11719_v35, %v11718_v2  ;;  %v11724_v26 = vmax.f32 %v11660_v38, 0.0  ;;  %v19982_v2 = vld [vmem:[#allocation166_spill] sm:$0xff]  ;;  %v19988_v11 = vld [vmem:[#allocation36_spill] sm:$0xff]  ;;  %v19997_v53 = vld [vmem:[#allocation169_spill] sm:$0xff] }
 0x774   : > { %v11576_v56 = vmax.f32 %v19977_v27, %v11512_v29  ;;  %v11659_v34 = vadd.f32 %v18293_v47, %v11573_v58  ;;  %v11578_v44 = vmax.f32 %v19980_v50, %v11514_v59  ;;  %v13163_v43 = vpack.c.bf16 %v11721_v1, %v11720_v3  ;;  %v19991_v45 = vld [vmem:[#allocation60_spill] sm:$0xff]  ;;  %v19992_v14 = vld [vmem:[#allocation110_spill] sm:$0xff]  ;;  %v19995_v29 = vld [vmem:[#allocation111_spill] sm:$0xff] }
 0x775   : > { %v11661_v40 = vadd.f32 %v18300_v15, %v11575_v21  ;;  %v11513_v42 = vmax.f32 %v19981_v36, %v10647_v46  ;;  %11950 = vst [vmem:[%s18346_s20 + $0xc0] sm:$0xff] %v13162_v33  ;;  %v11515_v57 = vmax.f32 %v19982_v2, %v10873_v54  ;;  %v11516_v0 = vmax.f32 %v19983_v23, %v10649_v30  ;;  %v20000_v24 = vld [vmem:[#allocation113_spill] sm:$0xff]  ;;  %v20002_v19 = vld [vmem:[#allocation63_spill] sm:$0xff]  ;;  %v20003_v17 = vld [vmem:[#allocation114_spill] sm:$0xff] }
 0x776   : > { %v11662_v18 = vadd.f32 %v18287_v55, %v11576_v56  ;;  %v11723_v20 = vmax.f32 %v11659_v34, 0.0  ;;  %v11664_v9 = vadd.f32 %v18290_v37, %v11578_v44  ;;  %11951 = vst [vmem:[%s18346_s20 + $0xc8] sm:$0xff] %v13163_v43  ;;  %v19986_v3 = vmax.f32 %v19984_v60, %v19985_v51 }
 0x777   : > { %v11725_v5 = vmax.f32 %v11661_v40, 0.0  ;;  %v11518_v7 = vmax.f32 %v19987_v13, %v10875_v39  ;;  %v19990_v61 = vmax.f32 %v19988_v11, %v19989_v4  ;;  %v19993_v54 = vmax.f32 %v19991_v45, %v19992_v14 }
 0x778   : > { %v11577_v49 = vmax.f32 %v19986_v3, %v11513_v42  ;;  %v13164_v63 = vpack.c.bf16 %v11723_v20, %v11722_v12  ;;  %v11726_v46 = vmax.f32 %v11662_v18, 0.0  ;;  %v19996_v35 = vmax.f32 %v19994_v22, %v19995_v29 }
 0x779   : > { %v11579_v6 = vmax.f32 %v19990_v61, %v11515_v57  ;;  %v11580_v28 = vmax.f32 %v19993_v54, %v11516_v0  ;;  %v13165_v30 = vpack.c.bf16 %v11725_v5, %v11724_v26  ;;  %v11517_v48 = vmax.f32 %v19997_v53, %v10651_v52 }
 0x77a   : > { %v11663_v41 = vadd.f32 %v18293_v47, %v11577_v49  ;;  %v11582_v38 = vmax.f32 %v19996_v35, %v11518_v7  ;;  %11952 = vst [vmem:[%s18346_s20 + $0xd0] sm:$0xff] %v13164_v63  ;;  %v11728_v39 = vmax.f32 %v11664_v9, 0.0  ;;  %v11519_v59 = vmax.f32 %v19998_v16, %v10877_v62 }
 0x77b   : > { %v11665_v25 = vadd.f32 %v18300_v15, %v11579_v6  ;;  %v11666_v58 = vadd.f32 %v18287_v55, %v11580_v28  ;;  %11953 = vst [vmem:[%s18346_s20 + $0xd8] sm:$0xff] %v13165_v30  ;;  %v20001_v32 = vmax.f32 %v19999_v31, %v20000_v24  ;;  %v20004_v27 = vmax.f32 %v20002_v19, %v20003_v17 }
 0x77c   : > { %v11727_v1 = vmax.f32 %v11663_v41, 0.0  ;;  %v11668_v12 = vadd.f32 %v18290_v37, %v11582_v38 }
 0x77d   : > { %v11581_v52 = vmax.f32 %v20001_v32, %v11517_v48  ;;  %v11729_v21 = vmax.f32 %v11665_v25, 0.0  ;;  %v11583_v56 = vmax.f32 %v20004_v27, %v11519_v59  ;;  %v11730_v55 = vmax.f32 %v11666_v58, 0.0 }
 0x77e   : > { %v13166_v33 = vpack.c.bf16 %v11727_v1, %v11726_v46  ;;  %v11732_v34 = vmax.f32 %v11668_v12, 0.0 }
 0x77f   : > { %v11667_v62 = vadd.f32 %v18293_v47, %v11581_v52  ;;  %v13167_v26 = vpack.c.bf16 %v11729_v21, %v11728_v39  ;;  %v11669_v37 = vadd.f32 %v18300_v15, %v11583_v56 }
 0x780   : > { %11954 = vst [vmem:[%s18346_s20 + $0xe0] sm:$0xff] %v13166_v33 }
 0x781   : > { %v11731_v10 = vmax.f32 %v11667_v62, 0.0  ;;  %11955 = vst [vmem:[%s18346_s20 + $0xe8] sm:$0xff] %v13167_v26  ;;  %v11733_v8 = vmax.f32 %v11669_v37, 0.0 }
 0x783   : > { %v13168_v50 = vpack.c.bf16 %v11731_v10, %v11730_v55  ;;  %v13169_v47 = vpack.c.bf16 %v11733_v8, %v11732_v34 }
 0x785   : > { %11956 = vst [vmem:[%s18346_s20 + $0xf0] sm:$0xff] %v13168_v50  ;;  %11957 = vst [vmem:[%s18346_s20 + $0xf8] sm:$0xff] %v13169_v47 }
 0x786   : > { %14760 = shalt.err (!%p14757_p11)
}
 0x787   : > { %s14761_s9 = scalar_lea.hbm %s18657_s5, 4096  ;;  %s14765_s29 = scalar_lea.hbm %s18709_s3, 8192 }
 0x788   : > { %p14762_p13 = scmp.ne.s32.totalorder %s18657_s5, %s14761_s9  ;;  %p14766_p6 = scmp.lt.u32.totalorder %s18657_s5, %s18709_s3 }
 0x789   : > { %p14767_p9 = scmp.lt.u32.totalorder %s14765_s29, %s14761_s9  ;;  %p14769_p10 = scmp.lt.u32.totalorder %s14761_s9, %s18657_s5 }
 0x78a   : > { %p14763_p5 = pnand %p14762_p13, %p20005_p1 }
 0x78b   : > { %p14768_p12 = por %p14767_p9, %p14766_p6 }
 0x78c   : > { %p14764_p0 = pneg %p14763_p5 }
 0x78d   : > { %p14770_p2 = por %p14769_p10, %p14768_p12 }
 0x78f   : > { %p14771_p3 = pnand %p14770_p2, %p14764_p0 }
 0x791   : > { %14774 = shalt.err (!%p14771_p3)
}
 0x792   : > { %s14824_s17 = smov 256   ;;  %s14825_s19 = smov 16  }
 0x793   : > { %14461 = dma.vmem_to_hbm [thread:$0]  (%p20005_p1), %s18659_s28, 4096, %s18657_s5, %s18665_s16, %s14824_s17, %s14824_s17, %s14825_s19  }
 0x794 PF: > { %p14478_p4 = scmp.ge.s32.totalorder %s14817_s15, 2  ;;  %s11988_s20 = sand.u32 1, %s14805_s12  }
 0x795   : > { %p20006_p7 = scmp.ne.s32.totalorder %s19114_s23, 0  ;;  %s11989_s25 = scalar_lea.sflag [#allocation4], %s11988_s20 }
 0x797   : > { %p14471_p8 = pnand %p14478_p4, %p20006_p7 }
 0x799   : > { %14800 = dma.done.wait (!%p14471_p8), %s11989_s25, 4096  }
 0x79a   : > { %14802 = vsyncadd (!%p14471_p8), %s11989_s25, 4294963200  ;;  %p15_p11 = scmp.ge.s32.totalorder %s14871_s18, 4   ;;  %s20007_s12 = smov %s14809_s13 }
 0x79b   : > { %s20008_s13 = smov %s14813_s14  ;;  %s20009_s14 = smov %s14882_s21 }
 0x79c   : > { %s20010_s15 = smov %s14871_s18  ;;  %17 = sbr.rel (!%p15_p11) target bundleno = 5 (0x5), region = 79 }
 0x7a3   :  { %11994 = vsyncpa [#allocation3], 1 }
 0x7a4   :  { %11996 = vsyncpa [#allocation3 + $0x1], 1 }
 0x7a5   :  { %11997 = vsyncpa [#allocation6], 1 }
 0x7a6   :  { %11998 = vsyncpa [#allocation4], 1 }
 0x7a7   :  { %12000 = vsyncpa [#allocation4 + $0x1], 1 }

</bundles_post_ra>
